<compile_context>
chip_gen: v7x
topology: tpu7x:2x2x1
jax: 0.10.0
libtpu: 0.0.40
codegen_flags: <defaults>
</compile_context>

<pallas_src>
import functools

import jax
import jax.numpy as jnp
from jax.experimental import pallas as pl
from jax.experimental.pallas import tpu as pltpu


def _ceil_to(x, m):
    return ((x + m - 1) // m) * m


# ----------------------------------------------------------------------------
# Pallas kernel 1: 3x3 / stride 1 / pad 1 convolution, im2col + one MXU matmul
# (optionally fused bias + ReLU, f32 epilogue)
# ----------------------------------------------------------------------------
def _conv3x3_kernel(x_ref, w_ref, b_ref, o_ref, *, TH, W, relu):
    # x_ref : (1, TH+2, W+2, Cin)  bf16 padded/haloed input row-tile
    # w_ref : (9*Cin, Cout)        bf16, tap-major (ky, kx, cin) ordering
    # b_ref : (1, Cout)            f32
    # o_ref : (1, TH, W, Cout)     f32
    Cin = x_ref.shape[-1]
    Cout = o_ref.shape[-1]
    x = x_ref[0]                                        # (TH+2, W+2, Cin)
    # Build the (TH*W, 9*Cin) patch slab once, then a single big-K matmul.
    cols = [x[ky:ky + TH, kx:kx + W, :].reshape(TH * W, Cin)
            for ky in range(3) for kx in range(3)]
    patches = jnp.concatenate(cols, axis=-1)            # (TH*W, 9*Cin) bf16
    acc = jnp.dot(patches, w_ref[...],
                  preferred_element_type=jnp.float32)   # (TH*W, Cout) f32
    acc = acc + b_ref[...]                              # f32 bias (broadcast)
    if relu:
        acc = jnp.maximum(acc, 0.0)
    o_ref[0] = acc.reshape(TH, W, Cout)


def conv3x3(x_nhwc, w, b, relu=False, block_rows=8):
    """x_nhwc: [B,H,W,Cx], w: [3,3,Cw,Cout] (Cw <= Cx), b: [Cout].

    Returns [B,H,W,Cout_padded_to_128]; padded output channels are exactly 0
    (zero weights / zero bias), so the result can be chained or sliced freely.
    Input channels beyond Cw are multiplied by zero weights (exact).
    """
    B, H, W, Cin_x = x_nhwc.shape
    Cw, Cout = w.shape[2], w.shape[3]
    assert Cw <= Cin_x
    Cin_p = max(128, _ceil_to(Cin_x, 128))
    Cout_p = max(128, _ceil_to(Cout, 128))

    # bf16 matmul operands (MXU), f32 accumulate/epilogue in-kernel.
    x = x_nhwc.astype(jnp.bfloat16)
    if Cin_p != Cin_x:
        x = jnp.pad(x, ((0, 0), (0, 0), (0, 0), (0, Cin_p - Cin_x)))
    wp = jnp.pad(w.astype(jnp.bfloat16),
                 ((0, 0), (0, 0), (0, Cin_p - Cw), (0, Cout_p - Cout)))
    w2d = wp.reshape(9 * Cin_p, Cout_p)                 # (ky,kx,cin)-major K
    bp = jnp.pad(b.astype(jnp.float32), (0, Cout_p - Cout)).reshape(1, Cout_p)

    # Row tiling: largest divisor of H that is <= block_rows (size per VMEM /
    # generation; also deepens the grid for pipelining + megacore sharding).
    th = min(block_rows, H)
    while H % th:
        th -= 1
    n_th = H // th

    x_pad = jnp.pad(x, ((0, 0), (1, 1), (1, 1), (0, 0)))
    # TODO(synk): at large H, replace this wrapper-side halo duplication with a
    # pl.Element-indexed overlapping-window in_spec (or manual DMA) to avoid
    # materializing the (th+2)/th halo copy in HBM.
    x_blk = jnp.stack([x_pad[:, t * th:t * th + th + 2] for t in range(n_th)],
                      axis=1).reshape(B * n_th, th + 2, W + 2, Cin_p)

    kernel = functools.partial(_conv3x3_kernel, TH=th, W=W, relu=relu)
    out = pl.pallas_call(
        kernel,
        out_shape=jax.ShapeDtypeStruct((B * n_th, th, W, Cout_p), jnp.float32),
        grid=(B * n_th,),
        in_specs=[
            pl.BlockSpec((1, th + 2, W + 2, Cin_p), lambda i: (i, 0, 0, 0)),
            pl.BlockSpec((9 * Cin_p, Cout_p), lambda i: (0, 0)),
            pl.BlockSpec((1, Cout_p), lambda i: (0, 0)),
        ],
        out_specs=pl.BlockSpec((1, th, W, Cout_p), lambda i: (i, 0, 0, 0)),
        compiler_params=pltpu.CompilerParams(
            dimension_semantics=("parallel",),
            vmem_limit_bytes=64 * 1024 * 1024),
    )(x_blk, w2d, bp)
    return out.reshape(B, H, W, Cout_p)


# ----------------------------------------------------------------------------
# Pallas kernel 2: grouped weighted sum over the sample dimension
# (the per-group `self.g * convolution_3D(samples_group, weights_group)`)
# HW sits in the lane dimension; one vectorized expression, one store.
# ----------------------------------------------------------------------------
def _group_wsum_kernel(s_ref, w_ref, o_ref, *, groups, cpg, scale):
    # s_ref : (1, S, D, HW)   samples (f32)
    # w_ref : (1, S, HW)      per-sample weights (f32)
    # o_ref : (1, groups*D, HW)
    prod = s_ref[0] * w_ref[0][:, None, :]                       # (S, D, HW)
    parts = [jnp.sum(prod[g * cpg:(g + 1) * cpg], axis=0)        # (D, HW)
             for g in range(groups)]
    o_ref[0] = scale * jnp.concatenate(parts, axis=0)            # one store


def grouped_weighted_sum(samples, weights, groups):
    """samples: [B,S,D,H,W], weights: [B,S,H,W] -> [B,groups,D,H,W]."""
    B, S, D, H, W = samples.shape
    cpg = S // groups
    s_flat = samples.reshape(B, S, D, H * W)
    w_flat = weights.reshape(B, S, H * W)
    kernel = functools.partial(_group_wsum_kernel, groups=groups, cpg=cpg,
                               scale=float(groups))
    out = pl.pallas_call(
        kernel,
        out_shape=jax.ShapeDtypeStruct((B, groups * D, H * W), jnp.float32),
        grid=(B,),
        in_specs=[
            pl.BlockSpec((1, S, D, H * W), lambda i: (i, 0, 0, 0)),
            pl.BlockSpec((1, S, H * W), lambda i: (i, 0, 0)),
        ],
        out_specs=pl.BlockSpec((1, groups * D, H * W), lambda i: (i, 0, 0)),
        compiler_params=pltpu.CompilerParams(
            dimension_semantics=("parallel",)),
    )(s_flat, w_flat)
    return out.reshape(B, groups, D, H, W)


# ----------------------------------------------------------------------------
# Trilinear interpolation of the burst volume at predicted offsets (plain JAX).
# Flattened single-index gather per corner (replaces 8x advanced indexing +
# moveaxis); output is channel-last [B,H,W,S,D] so the weight-conv feed needs
# no transpose.
# ----------------------------------------------------------------------------
def trilinear_interpolation(data, offsets_nhwc, sample_nums):
    """data: [B,F,D,H,W]; offsets_nhwc: [B,H,W,3*S] -> samples [B,H,W,S,D]."""
    B, F, D, H, W = data.shape
    off = offsets_nhwc.reshape(B, H, W, sample_nums, 3)
    gy = jnp.arange(H, dtype=jnp.float32).reshape(1, H, 1, 1)
    gx = jnp.arange(W, dtype=jnp.float32).reshape(1, 1, W, 1)
    f = jnp.clip((F - 1) / 2.0 + off[..., 0], 0.0, F - 1)   # [B,H,W,S]
    y = jnp.clip(gy + off[..., 1], 0.0, H - 1)
    x = jnp.clip(gx + off[..., 2], 0.0, W - 1)

    f0 = jnp.floor(f).astype(jnp.int32); f1 = jnp.minimum(f0 + 1, F - 1)
    y0 = jnp.floor(y).astype(jnp.int32); y1 = jnp.minimum(y0 + 1, H - 1)
    x0 = jnp.floor(x).astype(jnp.int32); x1 = jnp.minimum(x0 + 1, W - 1)
    wf = f - f0
    wy = y - y0
    wx = x - x0

    # Single flattened gather source: [B, F*H*W, D] (channel-last voxels).
    src = jnp.transpose(data, (0, 1, 3, 4, 2)).reshape(B, F * H * W, D)

    def corner(fi, yi, xi):
        idx = ((fi * H + yi) * W + xi).reshape(B, H * W * sample_nums, 1)
        v = jnp.take_along_axis(src, idx, axis=1, mode="clip")  # [B,HWS,D]
        return v.reshape(B, H, W, sample_nums, D)

    out = jnp.zeros((B, H, W, sample_nums, D), jnp.float32)
    for fi, wfz in ((f0, 1.0 - wf), (f1, wf)):
        for yi, wyy in ((y0, 1.0 - wy), (y1, wy)):
            for xi, wxx in ((x0, 1.0 - wx), (x1, wx)):
                out = out + (wfz * wyy * wxx)[..., None] * corner(fi, yi, xi)
    return out


# ----------------------------------------------------------------------------
# Deformable_KPN
# ----------------------------------------------------------------------------
def _init_conv(key, cin, cout, scale=0.05):
    kw, kb = jax.random.split(key)
    w = scale * jax.random.normal(kw, (3, 3, cin, cout), jnp.float32)
    b = scale * jax.random.normal(kb, (cout,), jnp.float32)
    return w, b


class DeformableKPN:
    def __init__(self, burst_length=5, color=True, blind=True, sample_nums=27,
                 groups=3, key=None):
        if key is None:
            key = jax.random.PRNGKey(0)
        self.depth = 3 if color else 1
        self.burst_length = burst_length
        self.blind = blind
        self.input_length = (burst_length + (0 if blind else 1)) * self.depth
        self.sample_nums = sample_nums
        self.g = groups

        keys = jax.random.split(key, 6)
        # TODO(synk): the real Encoder_Decoder (U-Net) source was not provided;
        # stand-in = two 3x3 conv+ReLU layers producing the 128-ch feature plus
        # a 3x3 offsets head producing sample_nums*3 offset channels.
        self.enc1 = _init_conv(keys[0], self.input_length, 64)
        self.enc2 = _init_conv(keys[1], 64, 128)
        self.off_head = _init_conv(keys[2], 128, sample_nums * 3)

        cin_weight = self.input_length + 128 + sample_nums * self.depth
        self.w1 = _init_conv(keys[3], cin_weight, 64)
        self.w2 = _init_conv(keys[4], 64, 64)
        self.w3 = _init_conv(keys[5], 64, sample_nums)

    def __call__(self, data, noise_estimation=None):
        # data: [b, c, d, h, w] with c = burst frames, d = color channels
        assert data.ndim == 5
        b, c, d, h, w = data.shape
        s = self.sample_nums

        # Channel-last feed (one transpose of the raw burst; everything after
        # this stays NHWC until the required [b,S,d,h,w] outputs).
        nf_nhwc = jnp.transpose(data, (0, 3, 4, 1, 2)).reshape(b, h, w, c * d)
        if not self.blind:
            ne = jnp.transpose(noise_estimation.reshape(b, -1, h, w),
                               (0, 2, 3, 1))
            nf_nhwc = jnp.concatenate([nf_nhwc, ne], axis=-1)

        f1 = conv3x3(nf_nhwc, *self.enc1, relu=True)            # [b,h,w,128]
        feature = conv3x3(f1, *self.enc2, relu=True)            # [b,h,w,128]
        offsets = conv3x3(feature, *self.off_head)[..., :3 * s]  # [b,h,w,3S]

        samples_hwsd = trilinear_interpolation(data, offsets, s)  # [b,h,w,S,d]

        weight_feed = jnp.concatenate(
            [nf_nhwc, feature, samples_hwsd.reshape(b, h, w, s * d)],
            axis=-1)                                             # [b,h,w,224]
        wv = conv3x3(weight_feed, *self.w1, relu=True)
        wv = conv3x3(wv, *self.w2, relu=True)
        weights_nhwc = conv3x3(wv, *self.w3)[..., :s]            # [b,h,w,S]

        # One transpose each (samples layout is required for the return value).
        samples = jnp.transpose(samples_hwsd, (0, 3, 4, 1, 2))   # [b,S,d,h,w]
        weights = jnp.transpose(weights_nhwc, (0, 3, 1, 2))      # [b,S,h,w]

        # TODO(synk): convolution_3D source was not provided; implemented as the
        # standard KPN fusion: per-group weighted sum over the sample dimension
        # (weights used raw, no softmax — matches the given PyTorch code).
        # Same scaling as the reference: res_i = g * fusion, pred = sum/g.
        res_i = grouped_weighted_sum(samples, weights, self.g)   # [b,g,d,h,w]
        pred = jnp.sum(res_i, axis=1) / self.g                   # [b,d,h,w]
        return res_i, pred, samples                              # eval-mode


if __name__ == "__main__":
    key = jax.random.PRNGKey(0)
    k_data, k_params = jax.random.split(key)

    b, burst, depth, h, w = 2, 5, 3, 16, 16
    data = jax.random.normal(k_data, (b, burst, depth, h, w), jnp.float32)

    model = DeformableKPN(burst_length=burst, color=True, blind=True,
                          sample_nums=27, groups=3, key=k_params)
    fwd = jax.jit(model.__call__)
    res_i, pred, samples = fwd(data)
    jax.block_until_ready((res_i, pred, samples))

    assert res_i.shape == (b, 3, depth, h, w)
    assert pred.shape == (b, depth, h, w)
    assert samples.shape == (b, 27, depth, h, w)
    assert jnp.all(jnp.isfinite(res_i)) and jnp.all(jnp.isfinite(pred))
    print("KERNEL_OK")
</pallas_src>

<mosaic_0001>
module attributes {stable_mosaic.version = 11 : i64} {
  func.func @_conv3x3_kernel(%arg0: i32, %arg1: memref<1x10x18x128xbf16, #tpu.memory_space<vmem>>, %arg2: memref<1152x128xbf16, #tpu.memory_space<vmem>>, %arg3: memref<1x128xf32, #tpu.memory_space<vmem>>, %arg4: memref<1x8x16x128xf32, #tpu.memory_space<vmem>>) attributes {dimension_semantics = [#tpu.dimension_semantics<parallel>], iteration_bounds = array<i64: 4>, scalar_prefetch = 0 : i64, scratch_operands = 0 : i64, tpu.core_type = #tpu.core_type<tc>, window_params = [{transform_indices = @transform_0, window_bounds = array<i64: 1, 10, 18, 128>}, {pipeline_mode = #tpu.pipeline_mode<synchronous>, transform_indices = @transform_1, window_bounds = array<i64: 1152, 128>}, {pipeline_mode = #tpu.pipeline_mode<synchronous>, transform_indices = @transform_2, window_bounds = array<i64: 1, 128>}, {transform_indices = @transform_3, window_bounds = array<i64: 1, 8, 16, 128>}]} {
    %c0 = arith.constant 0 : index
    %c0_0 = arith.constant 0 : index
    %c0_1 = arith.constant 0 : index
    %c0_2 = arith.constant 0 : index
    %0 = vector.load %arg1[%c0, %c0_0, %c0_1, %c0_2] : memref<1x10x18x128xbf16, #tpu.memory_space<vmem>>, vector<1x10x18x128xbf16>
    %1 = vector.shape_cast %0 : vector<1x10x18x128xbf16> to vector<10x18x128xbf16>
    %2 = vector.extract_strided_slice %1 {offsets = [0, 0, 0], sizes = [8, 16, 128], strides = [1, 1, 1]} : vector<10x18x128xbf16> to vector<8x16x128xbf16>
    %3 = vector.shape_cast %2 : vector<8x16x128xbf16> to vector<128x128xbf16>
    %4 = vector.extract_strided_slice %1 {offsets = [0, 1, 0], sizes = [8, 16, 128], strides = [1, 1, 1]} : vector<10x18x128xbf16> to vector<8x16x128xbf16>
    %5 = vector.shape_cast %4 : vector<8x16x128xbf16> to vector<128x128xbf16>
    %6 = vector.extract_strided_slice %1 {offsets = [0, 2, 0], sizes = [8, 16, 128], strides = [1, 1, 1]} : vector<10x18x128xbf16> to vector<8x16x128xbf16>
    %7 = vector.shape_cast %6 : vector<8x16x128xbf16> to vector<128x128xbf16>
    %8 = vector.extract_strided_slice %1 {offsets = [1, 0, 0], sizes = [8, 16, 128], strides = [1, 1, 1]} : vector<10x18x128xbf16> to vector<8x16x128xbf16>
    %9 = vector.shape_cast %8 : vector<8x16x128xbf16> to vector<128x128xbf16>
    %10 = vector.extract_strided_slice %1 {offsets = [1, 1, 0], sizes = [8, 16, 128], strides = [1, 1, 1]} : vector<10x18x128xbf16> to vector<8x16x128xbf16>
    %11 = vector.shape_cast %10 : vector<8x16x128xbf16> to vector<128x128xbf16>
    %12 = vector.extract_strided_slice %1 {offsets = [1, 2, 0], sizes = [8, 16, 128], strides = [1, 1, 1]} : vector<10x18x128xbf16> to vector<8x16x128xbf16>
    %13 = vector.shape_cast %12 : vector<8x16x128xbf16> to vector<128x128xbf16>
    %14 = vector.extract_strided_slice %1 {offsets = [2, 0, 0], sizes = [8, 16, 128], strides = [1, 1, 1]} : vector<10x18x128xbf16> to vector<8x16x128xbf16>
    %15 = vector.shape_cast %14 : vector<8x16x128xbf16> to vector<128x128xbf16>
    %16 = vector.extract_strided_slice %1 {offsets = [2, 1, 0], sizes = [8, 16, 128], strides = [1, 1, 1]} : vector<10x18x128xbf16> to vector<8x16x128xbf16>
    %17 = vector.shape_cast %16 : vector<8x16x128xbf16> to vector<128x128xbf16>
    %18 = vector.extract_strided_slice %1 {offsets = [2, 2, 0], sizes = [8, 16, 128], strides = [1, 1, 1]} : vector<10x18x128xbf16> to vector<8x16x128xbf16>
    %19 = vector.shape_cast %18 : vector<8x16x128xbf16> to vector<128x128xbf16>
    %20 = tpu.concatenate %3, %5, %7, %9, %11, %13, %15, %17, %19 in 1 : vector<128x128xbf16>, vector<128x128xbf16>, vector<128x128xbf16>, vector<128x128xbf16>, vector<128x128xbf16>, vector<128x128xbf16>, vector<128x128xbf16>, vector<128x128xbf16>, vector<128x128xbf16> -> vector<128x1152xbf16>
    %c0_3 = arith.constant 0 : index
    %c0_4 = arith.constant 0 : index
    %21 = vector.load %arg2[%c0_3, %c0_4] : memref<1152x128xbf16, #tpu.memory_space<vmem>>, vector<1152x128xbf16>
    %cst = arith.constant dense<0.000000e+00> : vector<128x128xf32>
    %22 = tpu.matmul %20, %21, %cst {dimension_numbers = #tpu.dot_dimension_numbers<[1], [0], [0], [1], [0, 0, 1, 1], [], []>} : vector<128x1152xbf16>, vector<1152x128xbf16>, vector<128x128xf32> -> vector<128x128xf32>
    %c0_5 = arith.constant 0 : index
    %c0_6 = arith.constant 0 : index
    %23 = vector.load %arg3[%c0_5, %c0_6] : memref<1x128xf32, #tpu.memory_space<vmem>>, vector<1x128xf32>
    %24 = vector.broadcast %23 : vector<1x128xf32> to vector<128x128xf32>
    %25 = arith.addf %22, %24 : vector<128x128xf32>
    %cst_7 = arith.constant 0.000000e+00 : f32
    %26 = vector.broadcast %cst_7 : f32 to vector<128x128xf32>
    %27 = arith.maximumf %25, %26 : vector<128x128xf32>
    %28 = vector.shape_cast %27 : vector<128x128xf32> to vector<8x16x128xf32>
    %c0_8 = arith.constant 0 : index
    %c0_9 = arith.constant 0 : index
    %c0_10 = arith.constant 0 : index
    %c0_11 = arith.constant 0 : index
    %29 = vector.load %arg4[%c0_8, %c0_9, %c0_10, %c0_11] : memref<1x8x16x128xf32, #tpu.memory_space<vmem>>, vector<1x8x16x128xf32>
    %30 = vector.shape_cast %29 : vector<1x8x16x128xf32> to vector<8x16x128xf32>
    %31 = vector.shape_cast %28 : vector<8x16x128xf32> to vector<1x8x16x128xf32>
    tpu.vector_store %arg4[%c0_8, %c0_9, %c0_10, %c0_11], %31 {strides = array<i32>} : memref<1x8x16x128xf32, #tpu.memory_space<vmem>>, vector<1x8x16x128xf32>,
    return
  }
  func.func @transform_0(%arg0: i32) -> (i32, i32, i32, i32) {
    %c0_i32 = arith.constant 0 : i32
    %c0_i32_0 = arith.constant 0 : i32
    %c0_i32_1 = arith.constant 0 : i32
    %c0_i32_2 = arith.constant 0 : i32
    return %arg0, %c0_i32, %c0_i32_0, %c0_i32_1 : i32, i32, i32, i32
  }
  func.func @transform_1(%arg0: i32) -> (i32, i32) {
    %c0_i32 = arith.constant 0 : i32
    %c0_i32_0 = arith.constant 0 : i32
    %c0_i32_1 = arith.constant 0 : i32
    return %c0_i32, %c0_i32_0 : i32, i32
  }
  func.func @transform_2(%arg0: i32) -> (i32, i32) {
    %c0_i32 = arith.constant 0 : i32
    %c0_i32_0 = arith.constant 0 : i32
    %c0_i32_1 = arith.constant 0 : i32
    return %c0_i32, %c0_i32_0 : i32, i32
  }
  func.func @transform_3(%arg0: i32) -> (i32, i32, i32, i32) {
    %c0_i32 = arith.constant 0 : i32
    %c0_i32_0 = arith.constant 0 : i32
    %c0_i32_1 = arith.constant 0 : i32
    %c0_i32_2 = arith.constant 0 : i32
    return %arg0, %c0_i32, %c0_i32_0, %c0_i32_1 : i32, i32, i32, i32
  }
}

module attributes {stable_mosaic.version = 11 : i64} {
  func.func @_conv3x3_kernel(%arg0: i32, %arg1: memref<1x10x18x128xbf16, #tpu.memory_space<vmem>>, %arg2: memref<1152x128xbf16, #tpu.memory_space<vmem>>, %arg3: memref<1x128xf32, #tpu.memory_space<vmem>>, %arg4: memref<1x8x16x128xf32, #tpu.memory_space<vmem>>) attributes {dimension_semantics = [#tpu.dimension_semantics<parallel>], iteration_bounds = array<i64: 4>, scalar_prefetch = 0 : i64, scratch_operands = 0 : i64, tpu.core_type = #tpu.core_type<tc>, window_params = [{transform_indices = @transform_0, window_bounds = array<i64: 1, 10, 18, 128>}, {pipeline_mode = #tpu.pipeline_mode<synchronous>, transform_indices = @transform_1, window_bounds = array<i64: 1152, 128>}, {pipeline_mode = #tpu.pipeline_mode<synchronous>, transform_indices = @transform_2, window_bounds = array<i64: 1, 128>}, {transform_indices = @transform_3, window_bounds = array<i64: 1, 8, 16, 128>}]} {
    %c0 = arith.constant 0 : index
    %c0_0 = arith.constant 0 : index
    %c0_1 = arith.constant 0 : index
    %c0_2 = arith.constant 0 : index
    %0 = vector.load %arg1[%c0, %c0_0, %c0_1, %c0_2] : memref<1x10x18x128xbf16, #tpu.memory_space<vmem>>, vector<1x10x18x128xbf16>
    %1 = vector.shape_cast %0 : vector<1x10x18x128xbf16> to vector<10x18x128xbf16>
    %2 = vector.extract_strided_slice %1 {offsets = [0, 0, 0], sizes = [8, 16, 128], strides = [1, 1, 1]} : vector<10x18x128xbf16> to vector<8x16x128xbf16>
    %3 = vector.shape_cast %2 : vector<8x16x128xbf16> to vector<128x128xbf16>
    %4 = vector.extract_strided_slice %1 {offsets = [0, 1, 0], sizes = [8, 16, 128], strides = [1, 1, 1]} : vector<10x18x128xbf16> to vector<8x16x128xbf16>
    %5 = vector.shape_cast %4 : vector<8x16x128xbf16> to vector<128x128xbf16>
    %6 = vector.extract_strided_slice %1 {offsets = [0, 2, 0], sizes = [8, 16, 128], strides = [1, 1, 1]} : vector<10x18x128xbf16> to vector<8x16x128xbf16>
    %7 = vector.shape_cast %6 : vector<8x16x128xbf16> to vector<128x128xbf16>
    %8 = vector.extract_strided_slice %1 {offsets = [1, 0, 0], sizes = [8, 16, 128], strides = [1, 1, 1]} : vector<10x18x128xbf16> to vector<8x16x128xbf16>
    %9 = vector.shape_cast %8 : vector<8x16x128xbf16> to vector<128x128xbf16>
    %10 = vector.extract_strided_slice %1 {offsets = [1, 1, 0], sizes = [8, 16, 128], strides = [1, 1, 1]} : vector<10x18x128xbf16> to vector<8x16x128xbf16>
    %11 = vector.shape_cast %10 : vector<8x16x128xbf16> to vector<128x128xbf16>
    %12 = vector.extract_strided_slice %1 {offsets = [1, 2, 0], sizes = [8, 16, 128], strides = [1, 1, 1]} : vector<10x18x128xbf16> to vector<8x16x128xbf16>
    %13 = vector.shape_cast %12 : vector<8x16x128xbf16> to vector<128x128xbf16>
    %14 = vector.extract_strided_slice %1 {offsets = [2, 0, 0], sizes = [8, 16, 128], strides = [1, 1, 1]} : vector<10x18x128xbf16> to vector<8x16x128xbf16>
    %15 = vector.shape_cast %14 : vector<8x16x128xbf16> to vector<128x128xbf16>
    %16 = vector.extract_strided_slice %1 {offsets = [2, 1, 0], sizes = [8, 16, 128], strides = [1, 1, 1]} : vector<10x18x128xbf16> to vector<8x16x128xbf16>
    %17 = vector.shape_cast %16 : vector<8x16x128xbf16> to vector<128x128xbf16>
    %18 = vector.extract_strided_slice %1 {offsets = [2, 2, 0], sizes = [8, 16, 128], strides = [1, 1, 1]} : vector<10x18x128xbf16> to vector<8x16x128xbf16>
    %19 = vector.shape_cast %18 : vector<8x16x128xbf16> to vector<128x128xbf16>
    %20 = tpu.concatenate %3, %5, %7, %9, %11, %13, %15, %17, %19 in 1 : vector<128x128xbf16>, vector<128x128xbf16>, vector<128x128xbf16>, vector<128x128xbf16>, vector<128x128xbf16>, vector<128x128xbf16>, vector<128x128xbf16>, vector<128x128xbf16>, vector<128x128xbf16> -> vector<128x1152xbf16>
    %c0_3 = arith.constant 0 : index
    %c0_4 = arith.constant 0 : index
    %21 = vector.load %arg2[%c0_3, %c0_4] : memref<1152x128xbf16, #tpu.memory_space<vmem>>, vector<1152x128xbf16>
    %cst = arith.constant dense<0.000000e+00> : vector<128x128xf32>
    %22 = tpu.matmul %20, %21, %cst {dimension_numbers = #tpu.dot_dimension_numbers<[1], [0], [0], [1], [0, 0, 1, 1], [], []>} : vector<128x1152xbf16>, vector<1152x128xbf16>, vector<128x128xf32> -> vector<128x128xf32>
    %c0_5 = arith.constant 0 : index
    %c0_6 = arith.constant 0 : index
    %23 = vector.load %arg3[%c0_5, %c0_6] : memref<1x128xf32, #tpu.memory_space<vmem>>, vector<1x128xf32>
    %24 = vector.broadcast %23 : vector<1x128xf32> to vector<128x128xf32>
    %25 = arith.addf %22, %24 : vector<128x128xf32>
    %26 = vector.shape_cast %25 : vector<128x128xf32> to vector<8x16x128xf32>
    %c0_7 = arith.constant 0 : index
    %c0_8 = arith.constant 0 : index
    %c0_9 = arith.constant 0 : index
    %c0_10 = arith.constant 0 : index
    %27 = vector.load %arg4[%c0_7, %c0_8, %c0_9, %c0_10] : memref<1x8x16x128xf32, #tpu.memory_space<vmem>>, vector<1x8x16x128xf32>
    %28 = vector.shape_cast %27 : vector<1x8x16x128xf32> to vector<8x16x128xf32>
    %29 = vector.shape_cast %26 : vector<8x16x128xf32> to vector<1x8x16x128xf32>
    tpu.vector_store %arg4[%c0_7, %c0_8, %c0_9, %c0_10], %29 {strides = array<i32>} : memref<1x8x16x128xf32, #tpu.memory_space<vmem>>, vector<1x8x16x128xf32>,
    return
  }
  func.func @transform_0(%arg0: i32) -> (i32, i32, i32, i32) {
    %c0_i32 = arith.constant 0 : i32
    %c0_i32_0 = arith.constant 0 : i32
    %c0_i32_1 = arith.constant 0 : i32
    %c0_i32_2 = arith.constant 0 : i32
    return %arg0, %c0_i32, %c0_i32_0, %c0_i32_1 : i32, i32, i32, i32
  }
  func.func @transform_1(%arg0: i32) -> (i32, i32) {
    %c0_i32 = arith.constant 0 : i32
    %c0_i32_0 = arith.constant 0 : i32
    %c0_i32_1 = arith.constant 0 : i32
    return %c0_i32, %c0_i32_0 : i32, i32
  }
  func.func @transform_2(%arg0: i32) -> (i32, i32) {
    %c0_i32 = arith.constant 0 : i32
    %c0_i32_0 = arith.constant 0 : i32
    %c0_i32_1 = arith.constant 0 : i32
    return %c0_i32, %c0_i32_0 : i32, i32
  }
  func.func @transform_3(%arg0: i32) -> (i32, i32, i32, i32) {
    %c0_i32 = arith.constant 0 : i32
    %c0_i32_0 = arith.constant 0 : i32
    %c0_i32_1 = arith.constant 0 : i32
    %c0_i32_2 = arith.constant 0 : i32
    return %arg0, %c0_i32, %c0_i32_0, %c0_i32_1 : i32, i32, i32, i32
  }
}

module attributes {stable_mosaic.version = 11 : i64} {
  func.func @_conv3x3_kernel(%arg0: i32, %arg1: memref<1x10x18x256xbf16, #tpu.memory_space<vmem>>, %arg2: memref<2304x128xbf16, #tpu.memory_space<vmem>>, %arg3: memref<1x128xf32, #tpu.memory_space<vmem>>, %arg4: memref<1x8x16x128xf32, #tpu.memory_space<vmem>>) attributes {dimension_semantics = [#tpu.dimension_semantics<parallel>], iteration_bounds = array<i64: 4>, scalar_prefetch = 0 : i64, scratch_operands = 0 : i64, tpu.core_type = #tpu.core_type<tc>, window_params = [{transform_indices = @transform_0, window_bounds = array<i64: 1, 10, 18, 256>}, {pipeline_mode = #tpu.pipeline_mode<synchronous>, transform_indices = @transform_1, window_bounds = array<i64: 2304, 128>}, {pipeline_mode = #tpu.pipeline_mode<synchronous>, transform_indices = @transform_2, window_bounds = array<i64: 1, 128>}, {transform_indices = @transform_3, window_bounds = array<i64: 1, 8, 16, 128>}]} {
    %c0 = arith.constant 0 : index
    %c0_0 = arith.constant 0 : index
    %c0_1 = arith.constant 0 : index
    %c0_2 = arith.constant 0 : index
    %0 = vector.load %arg1[%c0, %c0_0, %c0_1, %c0_2] : memref<1x10x18x256xbf16, #tpu.memory_space<vmem>>, vector<1x10x18x256xbf16>
    %1 = vector.shape_cast %0 : vector<1x10x18x256xbf16> to vector<10x18x256xbf16>
    %2 = vector.extract_strided_slice %1 {offsets = [0, 0, 0], sizes = [8, 16, 256], strides = [1, 1, 1]} : vector<10x18x256xbf16> to vector<8x16x256xbf16>
    %3 = vector.shape_cast %2 : vector<8x16x256xbf16> to vector<128x256xbf16>
    %4 = vector.extract_strided_slice %1 {offsets = [0, 1, 0], sizes = [8, 16, 256], strides = [1, 1, 1]} : vector<10x18x256xbf16> to vector<8x16x256xbf16>
    %5 = vector.shape_cast %4 : vector<8x16x256xbf16> to vector<128x256xbf16>
    %6 = vector.extract_strided_slice %1 {offsets = [0, 2, 0], sizes = [8, 16, 256], strides = [1, 1, 1]} : vector<10x18x256xbf16> to vector<8x16x256xbf16>
    %7 = vector.shape_cast %6 : vector<8x16x256xbf16> to vector<128x256xbf16>
    %8 = vector.extract_strided_slice %1 {offsets = [1, 0, 0], sizes = [8, 16, 256], strides = [1, 1, 1]} : vector<10x18x256xbf16> to vector<8x16x256xbf16>
    %9 = vector.shape_cast %8 : vector<8x16x256xbf16> to vector<128x256xbf16>
    %10 = vector.extract_strided_slice %1 {offsets = [1, 1, 0], sizes = [8, 16, 256], strides = [1, 1, 1]} : vector<10x18x256xbf16> to vector<8x16x256xbf16>
    %11 = vector.shape_cast %10 : vector<8x16x256xbf16> to vector<128x256xbf16>
    %12 = vector.extract_strided_slice %1 {offsets = [1, 2, 0], sizes = [8, 16, 256], strides = [1, 1, 1]} : vector<10x18x256xbf16> to vector<8x16x256xbf16>
    %13 = vector.shape_cast %12 : vector<8x16x256xbf16> to vector<128x256xbf16>
    %14 = vector.extract_strided_slice %1 {offsets = [2, 0, 0], sizes = [8, 16, 256], strides = [1, 1, 1]} : vector<10x18x256xbf16> to vector<8x16x256xbf16>
    %15 = vector.shape_cast %14 : vector<8x16x256xbf16> to vector<128x256xbf16>
    %16 = vector.extract_strided_slice %1 {offsets = [2, 1, 0], sizes = [8, 16, 256], strides = [1, 1, 1]} : vector<10x18x256xbf16> to vector<8x16x256xbf16>
    %17 = vector.shape_cast %16 : vector<8x16x256xbf16> to vector<128x256xbf16>
    %18 = vector.extract_strided_slice %1 {offsets = [2, 2, 0], sizes = [8, 16, 256], strides = [1, 1, 1]} : vector<10x18x256xbf16> to vector<8x16x256xbf16>
    %19 = vector.shape_cast %18 : vector<8x16x256xbf16> to vector<128x256xbf16>
    %20 = tpu.concatenate %3, %5, %7, %9, %11, %13, %15, %17, %19 in 1 : vector<128x256xbf16>, vector<128x256xbf16>, vector<128x256xbf16>, vector<128x256xbf16>, vector<128x256xbf16>, vector<128x256xbf16>, vector<128x256xbf16>, vector<128x256xbf16>, vector<128x256xbf16> -> vector<128x2304xbf16>
    %c0_3 = arith.constant 0 : index
    %c0_4 = arith.constant 0 : index
    %21 = vector.load %arg2[%c0_3, %c0_4] : memref<2304x128xbf16, #tpu.memory_space<vmem>>, vector<2304x128xbf16>
    %cst = arith.constant dense<0.000000e+00> : vector<128x128xf32>
    %22 = tpu.matmul %20, %21, %cst {dimension_numbers = #tpu.dot_dimension_numbers<[1], [0], [0], [1], [0, 0, 1, 1], [], []>} : vector<128x2304xbf16>, vector<2304x128xbf16>, vector<128x128xf32> -> vector<128x128xf32>
    %c0_5 = arith.constant 0 : index
    %c0_6 = arith.constant 0 : index
    %23 = vector.load %arg3[%c0_5, %c0_6] : memref<1x128xf32, #tpu.memory_space<vmem>>, vector<1x128xf32>
    %24 = vector.broadcast %23 : vector<1x128xf32> to vector<128x128xf32>
    %25 = arith.addf %22, %24 : vector<128x128xf32>
    %cst_7 = arith.constant 0.000000e+00 : f32
    %26 = vector.broadcast %cst_7 : f32 to vector<128x128xf32>
    %27 = arith.maximumf %25, %26 : vector<128x128xf32>
    %28 = vector.shape_cast %27 : vector<128x128xf32> to vector<8x16x128xf32>
    %c0_8 = arith.constant 0 : index
    %c0_9 = arith.constant 0 : index
    %c0_10 = arith.constant 0 : index
    %c0_11 = arith.constant 0 : index
    %29 = vector.load %arg4[%c0_8, %c0_9, %c0_10, %c0_11] : memref<1x8x16x128xf32, #tpu.memory_space<vmem>>, vector<1x8x16x128xf32>
    %30 = vector.shape_cast %29 : vector<1x8x16x128xf32> to vector<8x16x128xf32>
    %31 = vector.shape_cast %28 : vector<8x16x128xf32> to vector<1x8x16x128xf32>
    tpu.vector_store %arg4[%c0_8, %c0_9, %c0_10, %c0_11], %31 {strides = array<i32>} : memref<1x8x16x128xf32, #tpu.memory_space<vmem>>, vector<1x8x16x128xf32>,
    return
  }
  func.func @transform_0(%arg0: i32) -> (i32, i32, i32, i32) {
    %c0_i32 = arith.constant 0 : i32
    %c0_i32_0 = arith.constant 0 : i32
    %c0_i32_1 = arith.constant 0 : i32
    %c0_i32_2 = arith.constant 0 : i32
    return %arg0, %c0_i32, %c0_i32_0, %c0_i32_1 : i32, i32, i32, i32
  }
  func.func @transform_1(%arg0: i32) -> (i32, i32) {
    %c0_i32 = arith.constant 0 : i32
    %c0_i32_0 = arith.constant 0 : i32
    %c0_i32_1 = arith.constant 0 : i32
    return %c0_i32, %c0_i32_0 : i32, i32
  }
  func.func @transform_2(%arg0: i32) -> (i32, i32) {
    %c0_i32 = arith.constant 0 : i32
    %c0_i32_0 = arith.constant 0 : i32
    %c0_i32_1 = arith.constant 0 : i32
    return %c0_i32, %c0_i32_0 : i32, i32
  }
  func.func @transform_3(%arg0: i32) -> (i32, i32, i32, i32) {
    %c0_i32 = arith.constant 0 : i32
    %c0_i32_0 = arith.constant 0 : i32
    %c0_i32_1 = arith.constant 0 : i32
    %c0_i32_2 = arith.constant 0 : i32
    return %arg0, %c0_i32, %c0_i32_0, %c0_i32_1 : i32, i32, i32, i32
  }
}

module attributes {stable_mosaic.version = 11 : i64} {
  func.func @_group_wsum_kernel(%arg0: i32, %arg1: memref<1x27x3x256xf32, #tpu.memory_space<vmem>>, %arg2: memref<1x27x256xf32, #tpu.memory_space<vmem>>, %arg3: memref<1x9x256xf32, #tpu.memory_space<vmem>>) attributes {dimension_semantics = [#tpu.dimension_semantics<parallel>], iteration_bounds = array<i64: 2>, scalar_prefetch = 0 : i64, scratch_operands = 0 : i64, tpu.core_type = #tpu.core_type<tc>, window_params = [{transform_indices = @transform_0, window_bounds = array<i64: 1, 27, 3, 256>}, {transform_indices = @transform_1, window_bounds = array<i64: 1, 27, 256>}, {transform_indices = @transform_2, window_bounds = array<i64: 1, 9, 256>}]} {
    %c0 = arith.constant 0 : index
    %c0_0 = arith.constant 0 : index
    %c0_1 = arith.constant 0 : index
    %c0_2 = arith.constant 0 : index
    %0 = vector.load %arg1[%c0, %c0_0, %c0_1, %c0_2] : memref<1x27x3x256xf32, #tpu.memory_space<vmem>>, vector<1x27x3x256xf32>
    %1 = vector.shape_cast %0 : vector<1x27x3x256xf32> to vector<27x3x256xf32>
    %c0_3 = arith.constant 0 : index
    %c0_4 = arith.constant 0 : index
    %c0_5 = arith.constant 0 : index
    %2 = vector.load %arg2[%c0_3, %c0_4, %c0_5] : memref<1x27x256xf32, #tpu.memory_space<vmem>>, vector<1x27x256xf32>
    %3 = vector.shape_cast %2 : vector<1x27x256xf32> to vector<27x256xf32>
    %4 = vector.shape_cast %3 : vector<27x256xf32> to vector<27x1x256xf32>
    %5 = vector.broadcast %4 : vector<27x1x256xf32> to vector<27x3x256xf32>
    %6 = arith.mulf %1, %5 : vector<27x3x256xf32>
    %7 = vector.extract_strided_slice %6 {offsets = [0, 0, 0], sizes = [9, 3, 256], strides = [1, 1, 1]} : vector<27x3x256xf32> to vector<9x3x256xf32>
    %cst = arith.constant dense<0.000000e+00> : vector<3x256xf32>
    %8 = vector.multi_reduction <add>, %7, %cst [0] : vector<9x3x256xf32> to vector<3x256xf32>
    %9 = vector.extract_strided_slice %6 {offsets = [9, 0, 0], sizes = [9, 3, 256], strides = [1, 1, 1]} : vector<27x3x256xf32> to vector<9x3x256xf32>
    %cst_6 = arith.constant dense<0.000000e+00> : vector<3x256xf32>
    %10 = vector.multi_reduction <add>, %9, %cst_6 [0] : vector<9x3x256xf32> to vector<3x256xf32>
    %11 = vector.extract_strided_slice %6 {offsets = [18, 0, 0], sizes = [9, 3, 256], strides = [1, 1, 1]} : vector<27x3x256xf32> to vector<9x3x256xf32>
    %cst_7 = arith.constant dense<0.000000e+00> : vector<3x256xf32>
    %12 = vector.multi_reduction <add>, %11, %cst_7 [0] : vector<9x3x256xf32> to vector<3x256xf32>
    %13 = tpu.concatenate %8, %10, %12 in 0 : vector<3x256xf32>, vector<3x256xf32>, vector<3x256xf32> -> vector<9x256xf32>
    %cst_8 = arith.constant 3.000000e+00 : f32
    %14 = vector.broadcast %cst_8 : f32 to vector<9x256xf32>
    %15 = arith.mulf %14, %13 : vector<9x256xf32>
    %c0_9 = arith.constant 0 : index
    %c0_10 = arith.constant 0 : index
    %c0_11 = arith.constant 0 : index
    %16 = vector.load %arg3[%c0_9, %c0_10, %c0_11] : memref<1x9x256xf32, #tpu.memory_space<vmem>>, vector<1x9x256xf32>
    %17 = vector.shape_cast %16 : vector<1x9x256xf32> to vector<9x256xf32>
    %18 = vector.shape_cast %15 : vector<9x256xf32> to vector<1x9x256xf32>
    tpu.vector_store %arg3[%c0_9, %c0_10, %c0_11], %18 {strides = array<i32>} : memref<1x9x256xf32, #tpu.memory_space<vmem>>, vector<1x9x256xf32>,
    return
  }
  func.func @transform_0(%arg0: i32) -> (i32, i32, i32, i32) {
    %c0_i32 = arith.constant 0 : i32
    %c0_i32_0 = arith.constant 0 : i32
    %c0_i32_1 = arith.constant 0 : i32
    %c0_i32_2 = arith.constant 0 : i32
    return %arg0, %c0_i32, %c0_i32_0, %c0_i32_1 : i32, i32, i32, i32
  }
  func.func @transform_1(%arg0: i32) -> (i32, i32, i32) {
    %c0_i32 = arith.constant 0 : i32
    %c0_i32_0 = arith.constant 0 : i32
    %c0_i32_1 = arith.constant 0 : i32
    return %arg0, %c0_i32, %c0_i32_0 : i32, i32, i32
  }
  func.func @transform_2(%arg0: i32) -> (i32, i32, i32) {
    %c0_i32 = arith.constant 0 : i32
    %c0_i32_0 = arith.constant 0 : i32
    %c0_i32_1 = arith.constant 0 : i32
    return %arg0, %c0_i32, %c0_i32_0 : i32, i32, i32
  }
}

</mosaic_0001>

<bundles_post_ra>
// kernel: a_call__.9
= control target key start
LH: loop header
LB: loop body
LE: loop exit
PB: predicated region body
PF: predicated region fallthrough
CT: control target
= control target key end

     0   :  { %8 = vsyncpa [#allocation3], 0  ;;  %s3392_s0 = inlined_call_operand.hbm [shape: bf16[4,10,18,128], index: 0, kind: input, shape index: {}]   ;;  %s3393_s1 = inlined_call_operand.hbm [shape: bf16[1152,128], index: 1, kind: input, shape index: {}]   ;;  %s3394_s2 = inlined_call_operand.hbm [shape: f32[1,128], index: 2, kind: input, shape index: {}]   ;;  %s3395_s3 = inlined_call_operand.hbm [shape: f32[4,8,16,128], index: 3, kind: output, shape index: {}]  }
   0x1   :  { %10 = vsyncpa [#allocation3 + $0x1], 0 }
   0x2   :  { %11 = vsyncpa [#allocation6], 0 }
   0x3   :  { %12 = vsyncpa [#allocation4], 0 }
   0x4   :  { %14 = vsyncpa [#allocation4 + $0x1], 0  ;;  %s2694_s12 = smov 0   ;;  %s2696_s13 = smov 0  }
   0x5   :  { %s2698_s14 = smov 0   ;;  %s2700_s15 = smov 0  }
   0x6 LB: > { %s2715_s16 = sadd.s32 4294967295, %s2664_s15   ;;  %s1903_s17 = sadd.s32 4294967294, %s2664_s15   ;;  %s2664_s15 = sphi %s2700_s15, %s3418_s15   ;;  %s2660_s14 = sphi %s2698_s14, %s3417_s14   ;;  %s2656_s13 = sphi %s2696_s13, %s3416_s13   ;;  %s2652_s12 = sphi %s2694_s12, %s3415_s12  }
   0x7   : > { %p40_p0 = scmp.ne.s32.totalorder %s2656_s13, %s2652_s12  ;;  %p3396_p1 = scmp.eq.s32.totalorder %s2715_s16, 0 }
   0x8   : > { %p112_p3 = scmp.eq.s32.totalorder %s1903_s17, 3  ;;  %p1904_p5 = scmp.ge.s32.totalorder %s2664_s15, 1 }
   0x9   : > { %p2724_p4 = por %p3396_p1, %p40_p0  ;;  %p119_p7 = scmp.lt.s32.totalorder %s2664_s15, 5 }
   0xa   : > { %p2729_p6 = por %p112_p3, %p40_p0  ;;  %s2666_s21 = smov [#allocation5]  }
   0xb   : > { %s3399_s18 = scalar_select %p2724_p4, 1, 0 }
   0xc   : > { %s3400_s19 = scalar_select %p2729_p6, 1, 0 }
   0xd   : > { %p2734_p8 = pnand %p1904_p5, %p119_p7  ;;  %s131_s22 = sshll.u32 %s2666_s21, 4  ;;  %s132_s22 = int_to_ptr.vmem [resolvable:$true] %s131_s22 }
   0xe   : > { %s2667_s24 = smov [#allocation7]   ;;  %s2508_s28 = scalar_lea.hbm %s3393_s1, 9216 }
   0xf   : > { %s3401_s20 = scalar_select %p2734_p8, 1, 0 }
  0x10   : > { %p2367_p9 = pneg %p2734_p8  ;;  %s145_s25 = sshll.u32 %s2667_s24, 4  ;;  %s2746_s25 = int_to_ptr.vmem [resolvable:$true] %s145_s25 }
  0x11   : > { %p2509_p11 = scmp.ne.s32.totalorder %s3393_s1, %s2508_s28  ;;  %p2515_p3 = scmp.lt.u32.totalorder %s2508_s28, %s3393_s1 }
  0x12   : > { %p2742_p10 = pnand %p2367_p9, %p3396_p1 }
  0x14   : > { %p2510_p12 = pneg %p2742_p10 }
  0x16   : > { %p2511_p13 = pnand %p2510_p12, %p2509_p11 }
  0x18   : > { %p2512_p0 = pneg %p2511_p13 }
  0x1a   : > { %p2517_p5 = pnand %p2515_p3, %p2512_p0 }
  0x1c   : > { %2520 = shalt.err (!%p2517_p5)
}
  0x1d   : > { %s2521_s6 = scalar_lea.vmem %s132_s22, 9216  ;;  %p2529_p2 = scmp.lt.s32.totalorder %s132_s22, %s132_s22 }
  0x1e   : > { %p2522_p7 = scmp.ne.s32.totalorder %s132_s22, %s2521_s6  ;;  %p2530_p6 = scmp.lt.s32.totalorder %s2521_s6, %s2521_s6 }
  0x20   : > { %p2524_p9 = pnand %p2522_p7, %p2510_p12  ;;  %p2531_p4 = por %p2530_p6, %p2529_p2 }
  0x22   : > { %p2525_p1 = pneg %p2524_p9 }
  0x24   : > { %p2532_p8 = pnand %p2531_p4, %p2525_p1 }
  0x26   : > { %2535 = shalt.err (!%p2532_p8)
}
  0x27   : > { %s2668_s7 = smov 64   ;;  %s2669_s8 = smov 4  }
  0x28   : > { %2370 = dma.hbm_to_vmem [thread:$0]  (!%p2742_p10), %s3393_s1, 9216, %s132_s22, [#allocation6], %s2668_s7, %s2668_s7, %s2669_s8  }
  0x29   : > { %s2536_s21 = scalar_lea.hbm %s3394_s2, 16 }
  0x2a   : > { %p2537_p1 = scmp.ne.s32.totalorder %s3394_s2, %s2536_s21  ;;  %p2543_p6 = scmp.lt.u32.totalorder %s2536_s21, %s3394_s2 }
  0x2c   : > { %p2539_p2 = pnand %p2537_p1, %p2510_p12 }
  0x2e   : > { %p2540_p4 = pneg %p2539_p2 }
  0x30   : > { %p2545_p8 = pnand %p2543_p6, %p2540_p4 }
  0x32   : > { %2548 = shalt.err (!%p2545_p8)
}
  0x33   : > { %s2549_s22 = scalar_lea.vmem %s2746_s25, 16  ;;  %s2556_s29 = scalar_lea.vmem %s2746_s25, 32 }
  0x34   : > { %p2550_p11 = scmp.ne.s32.totalorder %s2746_s25, %s2549_s22  ;;  %p2557_p3 = scmp.lt.s32.totalorder %s2746_s25, %s2746_s25 }
  0x35   : > { %p2558_p5 = scmp.lt.s32.totalorder %s2556_s29, %s2549_s22 }
  0x36   : > { %p2552_p13 = pnand %p2550_p11, %p2510_p12 }
  0x37   : > { %p2559_p7 = por %p2558_p5, %p2557_p3 }
  0x38   : > { %p2553_p0 = pneg %p2552_p13 }
  0x3a   : > { %p2560_p9 = pnand %p2559_p7, %p2553_p0 }
  0x3c   : > { %2563 = shalt.err (!%p2560_p9)
}
  0x3d   : > { %2373 = dma.hbm_to_vmem [thread:$0]  (!%p2742_p10), %s3394_s2, 16, %s2746_s25, [#allocation6]  }
  0x3e   : > { %s2800_s5 = sadd.s32 1, %s2664_s15   ;;  %s27_s23 = sadd.s32 1, %s2660_s14 }
  0x3f   : > { %s24_s6 = ssub.s32 %s2664_s15, %s2800_s5  ;;  %p34_p12 = scmp.ne.s32.totalorder %s2660_s14, %s2656_s13 }
  0x40   : > { %p25_p1 = scmp.eq.s32.totalorder %s24_s6, 0  ;;  %p35_p2 = scmp.eq.s32.totalorder %s2664_s15, 0 }
  0x41   : > { %p3403_p4 = scmp.eq.s32.totalorder %s2715_s16, 3  ;;  %p2384_p8 = scmp.lt.s32.totalorder %s2664_s15, 4 }
  0x42   : > { %s2816_s10 = scalar_select %p25_p1, %s2660_s14, %s27_s23  }
  0x43   : > { %p2810_p6 = por %p3403_p4, %p34_p12  ;;  %p36_p11 = por %p35_p2, %p34_p12 }
  0x44   : > { %s156_s11 = sand.u32 1, %s2660_s14   ;;  %s2353_s25 = smul.u32 1920, %s2664_s15 }
  0x45   : > { %s2352_s17 = smul.u32 120, %s156_s11  ;;  %p2820_p10 = pnand %p2384_p8, %p36_p11 }
  0x46   : > { %s2827_s27 = scalar_lea.hbm %s3392_s0, %s2353_s25  ;;  %s2831_s29 = scalar_lea.sflag [#allocation3], %s156_s11 }
  0x47   : > { %s160_s28 = scalar_lea.vmem [#allocation2], %s2352_s17  ;;  %s2564_s30 = scalar_lea.hbm %s2827_s27, 1920 }
  0x48   : > { %s167_s22 = sshll.u32 %s160_s28, 4  ;;  %p2565_p13 = scmp.ne.s32.totalorder %s2827_s27, %s2564_s30  ;;  %s2829_s22 = int_to_ptr.vmem [resolvable:$true] %s167_s22 }
  0x49   : > { %p2566_p0 = pneg %p2820_p10  ;;  %s2569_s6 = scalar_lea.hbm %s3392_s0, 7680 }
  0x4a   : > { %p2570_p7 = scmp.lt.u32.totalorder %s2827_s27, %s3392_s0  ;;  %p2571_p9 = scmp.lt.u32.totalorder %s2569_s6, %s2564_s30 }
  0x4b   : > { %p2567_p3 = pnand %p2566_p0, %p2565_p13  ;;  %p2573_p1 = scmp.lt.u32.totalorder %s2564_s30, %s2827_s27 }
  0x4c   : > { %p2572_p12 = por %p2571_p9, %p2570_p7 }
  0x4d   : > { %p2568_p5 = pneg %p2567_p3 }
  0x4e   : > { %p2574_p2 = por %p2573_p1, %p2572_p12 }
  0x50   : > { %p2575_p4 = pnand %p2574_p2, %p2568_p5 }
  0x52   : > { %2578 = shalt.err (!%p2575_p4)
}
  0x53   : > { %s2579_s11 = scalar_lea.vmem %s2829_s22, 1920  ;;  %s2670_s17 = smov [#allocation2]  }
  0x54   : > { %p2580_p8 = scmp.ne.s32.totalorder %s2829_s22, %s2579_s11  ;;  %s2584_s26 = sshll.u32 %s2670_s17, 4  ;;  %s2585_s26 = int_to_ptr.vmem [resolvable:$false] %s2584_s26 }
  0x55   : > { %s2586_s28 = scalar_lea.vmem %s2585_s26, 3840  ;;  %p2587_p3 = scmp.lt.s32.totalorder %s2829_s22, %s2585_s26 }
  0x56   : > { %p2582_p11 = pnand %p2580_p8, %p2566_p0  ;;  %p2588_p7 = scmp.lt.s32.totalorder %s2586_s28, %s2579_s11 }
  0x58   : > { %p2583_p13 = pneg %p2582_p11  ;;  %p2589_p9 = por %p2588_p7, %p2587_p3 }
  0x5a   : > { %p2590_p12 = pnand %p2589_p9, %p2583_p13 }
  0x5c   : > { %2593 = shalt.err (!%p2590_p12)
}
  0x5d   : > { %2377 = dma.hbm_to_vmem [thread:$0]  (!%p2820_p10), %s2827_s27, 1920, %s2829_s22, %s2831_s29, %s2668_s7, %s2668_s7, %s2669_s8  }
  0x5e   : > { %p3406_p0 = scmp.ne.s32.totalorder %s3401_s20, 0 }
  0x5f   : > { %s2865_s30 = sand.u32 (!%p3406_p0), 1, %s2656_s13   ;;  %p3407_p5 = scmp.ne.s32.totalorder (!%p3406_p0), %s3399_s18, 0 }
  0x60   : > { %179 = sbr.rel (%p3406_p0) target bundleno = 510 (0x1fe), region = 32  ;;  %s182_s23 = scalar_lea.sflag (!%p3406_p0), [#allocation3], %s2865_s30 }
  0x61   : > { %s2354_s4 = smul.u32 (!%p3406_p0), 120, %s2865_s30 }
  0x63   : > { %s2869_s6 = scalar_lea.vmem (!%p3406_p0), [#allocation2], %s2354_s4 }
  0x67   : > { %2639 = dma.done.wait (%p3407_p5), %s182_s23, 1920  }
  0x68   : > { %2641 = vsyncadd (%p3407_p5), %s182_s23, 4294965376  ;;  %p3408_p10 = scmp.eq.s32.totalorder %s2715_s16, 0 }
  0x6a   : > { %2643 = dma.done.wait (%p3408_p10), [#allocation6], 9232   ;;  %p3409_p1 = pmov %p3408_p10 }
  0x6b   : > { %v2426_v0 = vld [vmem:[#allocation5 + $0x40] sm:$0xff]   ;;  %v2430_v4 = vld [vmem:[#allocation5 + $0x48] sm:$0xff]   ;;  %v2434_v8 = vld [vmem:[#allocation5 + $0x50] sm:$0xff]   ;;  %vm247_vm0 = vsmask.f32 3328  ;;  %vm466_vm2 = vcmask 1042432  }
  0x6c   : > { %2645 = vsyncadd (%p3409_p1), [#allocation6], 4294958064  ;;  %v2427_v1 = vld [vmem:[#allocation5 + $0xc0] sm:$0xff]   ;;  %2032 = vmatprep.subr.bf16.mxu0 %v2426_v0  ;;  %v2431_v5 = vld [vmem:[#allocation5 + $0xc8] sm:$0xff]   ;;  %vm248_vm1 = vsmask.f32 7440 }
  0x6d   : > { %v2428_v2 = vld [vmem:[#allocation5] sm:$0xff]   ;;  %2096 = vmatprep.subr.bf16.mxu1 %v2427_v1  ;;  %v2432_v6 = vld [vmem:[#allocation5 + $0x8] sm:$0xff]   ;;  %v2435_v9 = vld [vmem:[#allocation5 + $0xd0] sm:$0xff]   ;;  %vm467_vm3 = vcmask 1046532   ;;  %s1912_s18 = sshll.u32 %s2865_s30, 7  ;;  %s2031_s7 = sshll.u32 %s2715_s16, 11 }
  0x6e   : > { %v2429_v3 = vld [vmem:[#allocation5 + $0x80] sm:$0xff]   ;;  %2033 = vmatpush3.bf16.msra.mxu0 %v2428_v2  ;;  %v2433_v7 = vld [vmem:[#allocation5 + $0x88] sm:$0xff]   ;;  %v2436_v10 = vld [vmem:[#allocation5 + $0x10] sm:$0xff]   ;;  %s3316_s20 = scalar_lea.vmem [#allocation8], %s1912_s18  ;;  %s3339_s27 = scalar_lea.hbm %s3395_s3, %s2031_s7 }
  0x6f   : > { %2097 = vmatpush3.bf16.msra.mxu1 %v2429_v3  ;;  %2034 = vmatprep.subr.bf16.mxu0 %v2430_v4  ;;  %v2437_v11 = vld [vmem:[#allocation5 + $0x90] sm:$0xff]   ;;  %v2438_v12 = vld [vmem:[#allocation5 + $0x58] sm:$0xff]   ;;  %v2442_v16 = vld [vmem:[#allocation5 + $0x60] sm:$0xff]   ;;  %s1811_s8 = sshll.u32 %s3316_s20, 4  ;;  %s1798_s22 = scalar_lea.sflag [#allocation4], %s2865_s30  ;;  %s3341_s8 = int_to_ptr.vmem [resolvable:$true] %s1811_s8 }
  0x70   : > { %2098 = vmatprep.subr.bf16.mxu1 %v2431_v5  ;;  %v2439_v13 = vld [vmem:[#allocation5 + $0xd8] sm:$0xff]   ;;  %v2443_v17 = vld [vmem:[#allocation5 + $0xe0] sm:$0xff]   ;;  %v2446_v20 = vld [vmem:[#allocation5 + $0x68] sm:$0xff]   ;;  %s2594_s29 = scalar_lea.vmem %s3341_s8, 2048  ;;  %s2671_s25 = smov [#allocation8]  }
  0x71   : > { %v2440_v14 = vld [vmem:[#allocation5 + $0x18] sm:$0xff]   ;;  %v2444_v18 = vld [vmem:[#allocation5 + $0x20] sm:$0xff]   ;;  %v2447_v21 = vld [vmem:[#allocation5 + $0xe8] sm:$0xff]   ;;  %p2595_p2 = scmp.ne.s32.totalorder %s3341_s8, %s2594_s29  ;;  %s2598_s24 = sshll.u32 %s2671_s25, 4  ;;  %s2599_s24 = int_to_ptr.vmem [resolvable:$false] %s2598_s24 }
  0x72   : > { %2035 = vmatpush3.bf16.msra.mxu0 %v2432_v6  ;;  %v2441_v15 = vld [vmem:[#allocation5 + $0x98] sm:$0xff]   ;;  %v2445_v19 = vld [vmem:[#allocation5 + $0xa0] sm:$0xff]   ;;  %v2448_v22 = vld [vmem:[#allocation5 + $0x28] sm:$0xff]   ;;  %s2600_s11 = scalar_lea.vmem %s2599_s24, 4096  ;;  %p2601_p11 = scmp.lt.s32.totalorder %s3341_s8, %s2599_s24 }
  0x73   : > { %2099 = vmatpush3.bf16.msra.mxu1 %v2433_v7  ;;  %2036 = vmatprep.subr.bf16.mxu0 %v2434_v8  ;;  %v2449_v23 = vld [vmem:[#allocation5 + $0xa8] sm:$0xff]   ;;  %v2450_v24 = vld [vmem:[#allocation5 + $0x70] sm:$0xff]   ;;  %v2454_v28 = vld [vmem:[#allocation5 + $0x78] sm:$0xff]   ;;  %p2596_p4 = pnand %p2595_p2, %p2810_p6  ;;  %p2602_p13 = scmp.lt.s32.totalorder %s2600_s11, %s2594_s29 }
  0x74   : > { %2100 = vmatprep.subr.bf16.mxu1 %v2435_v9  ;;  %v2451_v25 = vld [vmem:[#allocation5 + $0xf0] sm:$0xff]   ;;  %v2455_v29 = vld [vmem:[#allocation5 + $0xf8] sm:$0xff]   ;;  %vm2901_vm4 = vmor %vm466_vm2, %vm467_vm3 }
  0x75   : > { %v2452_v26 = vld [vmem:[#allocation5 + $0x30] sm:$0xff]   ;;  %v2456_v30 = vld [vmem:[#allocation5 + $0x38] sm:$0xff]   ;;  %v2460_v57 = vld [vmem:[#allocation5 + $0x140] sm:$0xff]   ;;  %p2597_p8 = pneg %p2596_p4  ;;  %p2603_p3 = por %p2602_p13, %p2601_p11 }
  0x76   : > { %2037 = vmatpush3.bf16.msra.mxu0 %v2436_v10  ;;  %v2453_v27 = vld [vmem:[#allocation5 + $0xb0] sm:$0xff]   ;;  %v2457_v31 = vld [vmem:[#allocation5 + $0xb8] sm:$0xff]   ;;  %vm2912_vm5 = vmor %vm247_vm0, %vm248_vm1 }
  0x77   : > { %2101 = vmatpush3.bf16.msra.mxu1 %v2437_v11  ;;  %2038 = vmatprep.subr.bf16.mxu0 %v2438_v12  ;;  %v2880_v32 = vld [vmem:[%s2869_s6] sm:$0xf]  ;;  %v2883_v33 = vld [vmem:[%s2869_s6 + $0x4] sm:$0xf]  ;;  %v219_v34 = vld [vmem:[%s2869_s6 + $0x8] sm:$0x1]  ;;  %p2604_p7 = pnand %p2603_p3, %p2597_p8 }
  0x78   : > { %2102 = vmatprep.subr.bf16.mxu1 %v2439_v13  ;;  %v251_v35 = vshrl.u32 %v2880_v32, 16  ;;  %v254_v36 = vshll.u32 %v2880_v32, 16  ;;  %v260_v37 = vshll.u32 %v2883_v33, 16  ;;  %v264_v38 = vshrl.u32 %v2883_v33, 16  ;;  %v2891_v39 = vld [vmem:[%s2869_s6 + $0xc] sm:$0xf] }
  0x79   : > { %v270_v40 = vshll.u32 %v219_v34, 16  ;;  %v2894_v41 = vld [vmem:[%s2869_s6 + $0x10] sm:$0xf]  ;;  %v275_v42 = vshrl.u32 %v2891_v39, 16  ;;  %v278_v43 = vshll.u32 %v2891_v39, 16  ;;  %v474_v59 = vrot.slane %v219_v34, 5 }
  0x7a   : > { %2039 = vmatpush3.bf16.msra.mxu0 %v2440_v14  ;;  %v253_v44 = vrot.slane %v251_v35, 4  ;;  %v256_v45 = vrot.slane %v254_v36, 5  ;;  %v262_v46 = vrot.slane %v260_v37, 5  ;;  %v266_v47 = vrot.slane %v264_v38, 4  ;;  %v2461_v62 = vld [vmem:[#allocation5 + $0x1c0] sm:$0xff]   ;;  %v2467_v34 = vld [vmem:[#allocation5 + $0x108] sm:$0xff]  }
  0x7b   : > { %2103 = vmatpush3.bf16.msra.mxu1 %v2441_v15  ;;  %2040 = vmatprep.subr.bf16.mxu0 %v2442_v16  ;;  %v272_v48 = vrot.slane %v270_v40, 5  ;;  %v277_v49 = vrot.slane %v275_v42, 4  ;;  %v280_v50 = vrot.slane %v278_v43, 5  ;;  %v284_v51 = vshll.u32 %v2894_v41, 16  ;;  %v2462_v6 = vld [vmem:[#allocation5 + $0x100] sm:$0xff]   ;;  %v2468_v36 = vld [vmem:[#allocation5 + $0x188] sm:$0xff]  }
  0x7c   : > { %2104 = vmatprep.subr.bf16.mxu1 %v2443_v17  ;;  %v257_v53 = vor.u32 %v256_v45, %v253_v44  ;;  %v267_v54 = vor.u32 %v266_v47, %v262_v46  ;;  %v288_v55 = vshrl.u32 %v2894_v41, 16  ;;  %v2908_v56 = vcombine.low %v2891_v39, %v2894_v41  ;;  %v2463_v7 = vld [vmem:[#allocation5 + $0x180] sm:$0xff]   ;;  %v225_v37 = vld [vmem:[%s2869_s6 + $0x20] sm:$0x1]  ;;  %v2959_v45 = vld [vmem:[%s2869_s6 + $0x24] sm:$0xf] }
  0x7d   : > { %v1913_v60 = vrot.slane %v2880_v32, 9  ;;  %v471_v61 = vrot.slane %v2883_v33, 5  ;;  %v281_v63 = vor.u32 %v280_v50, %v277_v49  ;;  %v1923_v3 = vcombine.low %v2880_v32, %v2883_v33  ;;  %v222_v11 = vld [vmem:[%s2869_s6 + $0x14] sm:$0x1]  ;;  %v2929_v13 = vld [vmem:[%s2869_s6 + $0x18] sm:$0xf] }
  0x7e   : > { %2041 = vmatpush3.bf16.msra.mxu0 %v2444_v18  ;;  %v258_v0 = vrot.slane %v257_v53, 4  ;;  %v268_v1 = vrot.slane %v267_v54, 4  ;;  %v290_v2 = vrot.slane %v288_v55, 4  ;;  %1425 = vmatprep.mubr.bf16.mxu1 %v2908_v56  ;;  %v286_v12 = vrot.slane %v284_v51, 5  ;;  %v2935_v18 = vld [vmem:[%s2869_s6 + $0x1c] sm:$0xf] }
  0x7f   : > { %2105 = vmatpush3.bf16.msra.mxu1 %v2445_v19  ;;  %2042 = vmatprep.subr.bf16.mxu0 %v2446_v20  ;;  %v472_v4 = vsel %vm2901_vm4, %v1913_v60, %v471_v61  ;;  %v473_v5 = vrot.slane %v471_v61, 4  ;;  %v282_v8 = vrot.slane %v281_v63, 4  ;;  %v1914_v14 = vrot.slane %v2891_v39, 9  ;;  %v2471_v63 = vld [vmem:[#allocation5 + $0x1d0] sm:$0xff]  }
  0x80   : > { %2106 = vmatprep.subr.bf16.mxu1 %v2447_v21  ;;  %v263_v9 = vsel %vm2912_vm5, %v258_v0, %v262_v46  ;;  %v273_v10 = vsel %vm2912_vm5, %v268_v1, %v272_v48  ;;  %v294_v17 = vshll.u32 %v222_v11, 16  ;;  %v299_v19 = vshrl.u32 %v2929_v13, 16  ;;  %v2962_v46 = vld [vmem:[%s2869_s6 + $0x28] sm:$0xf] }
  0x81   : > { %v1931_v15 = vcombine.low %v263_v9, %v273_v10  ;;  %v475_v16 = vsel %vm2901_vm4, %v473_v5, %v474_v59  ;;  %v291_v21 = vor.u32 %v290_v2, %v286_v12  ;;  %v308_v40 = vshll.u32 %v2935_v18, 16  ;;  %v2472_v1 = vld [vmem:[#allocation5 + $0x110] sm:$0xff]  }
  0x82   : > { %2043 = vmatpush3.bf16.msra.mxu0 %v2448_v22  ;;  %v1939_v20 = vcombine.low %v472_v4, %v475_v16  ;;  %v302_v22 = vshll.u32 %v2929_v13, 16  ;;  %v301_v38 = vrot.slane %v299_v19, 4  ;;  %v318_v44 = vshll.u32 %v225_v37, 16 }
  0x83   : > { %2107 = vmatpush3.bf16.msra.mxu1 %v2449_v23  ;;  %2044 = vmatprep.subr.bf16.mxu0 %v2450_v24  ;;  %v2465_v23 = vld [vmem:[#allocation5 + $0x148] sm:$0xff]   ;;  %v296_v24 = vrot.slane %v294_v17, 5  ;;  %v310_v49 = vrot.slane %v308_v40, 5  ;;  %v323_v50 = vshrl.u32 %v2959_v45, 16  ;;  %v326_v53 = vshll.u32 %v2959_v45, 16 }
  0x84   : > { %2108 = vmatprep.subr.bf16.mxu1 %v2451_v25  ;;  %1328 = vmatprep.mubr.bf16.mxu0 %v1931_v15  ;;  %v312_v25 = vshrl.u32 %v2935_v18, 16  ;;  %v304_v39 = vrot.slane %v302_v22, 5  ;;  %v320_v51 = vrot.slane %v318_v44, 5  ;;  %v336_v54 = vshrl.u32 %v2962_v46, 16  ;;  %v2993_v15 = vld [vmem:[%s2869_s6 + $0x34] sm:$0xf] }
  0x85   : > { %v2972_v55 = vcombine.low %v2959_v45, %v2962_v46  ;;  %v1915_v61 = vrot.slane %v2929_v13, 9  ;;  %v488_v0 = vrot.slane %v225_v37, 5  ;;  %v328_v9 = vrot.slane %v326_v53, 5 }
  0x86   : > { %2045 = vmatpush3.bf16.msra.mxu0 %v2452_v26  ;;  %v2942_v26 = vcombine.low %v2929_v13, %v2935_v18  ;;  %v314_v43 = vrot.slane %v312_v25, 4  ;;  %v305_v48 = vor.u32 %v304_v39, %v301_v38  ;;  %v231_v39 = vld [vmem:[%s2869_s6 + $0x38] sm:$0x1] }
  0x87   : > { %2109 = vmatpush3.bf16.msra.mxu1 %v2453_v27  ;;  %2046 = vmatprep.subr.bf16.mxu0 %v2454_v28  ;;  %v478_v27 = vrot.slane %v2894_v41, 5  ;;  %v2466_v28 = vld [vmem:[#allocation5 + $0x1c8] sm:$0xff]  }
  0x88   : > { %2110 = vmatprep.subr.bf16.mxu1 %v2455_v29  ;;  %v287_v29 = vsel %vm2912_vm5, %v282_v8, %v286_v12  ;;  %v306_v59 = vrot.slane %v305_v48, 4  ;;  %v315_v60 = vor.u32 %v314_v43, %v310_v49  ;;  %v325_v8 = vrot.slane %v323_v50, 4  ;;  %v2480_v43 = vld [vmem:[#allocation5 + $0x160] sm:$0xff]  }
  0x89   : > { %v479_v32 = vsel %vm2901_vm4, %v1914_v14, %v478_v27  ;;  %v480_v33 = vrot.slane %v478_v27, 4  ;;  %v338_v12 = vrot.slane %v336_v54, 4  ;;  %v2990_v14 = vld [vmem:[%s2869_s6 + $0x30] sm:$0xf]  ;;  %v366_v48 = vshll.u32 %v231_v39, 16 }
  0x8a   : > { %2047 = vmatpush3.bf16.msra.mxu0 %v2456_v30  ;;  %v292_v30 = vrot.slane %v291_v21, 4  ;;  %v311_v2 = vsel %vm2912_vm5, %v306_v59, %v310_v49  ;;  %v347_v22 = vshrl.u32 %v2990_v14, 16  ;;  %v3021_v49 = vld [vmem:[%s2869_s6 + $0x3c] sm:$0xf] }
  0x8b   : > { %2111 = vmatpush3.bf16.msra.mxu1 %v2457_v31  ;;  %2160 = vmatprep.subr.bf16.mxu0 %v2460_v57  ;;  %v481_v31 = vrot.slane %v222_v11, 5  ;;  %v2470_v57 = vld [vmem:[#allocation5 + $0x150] sm:$0xff]   ;;  %v2481_v50 = vld [vmem:[#allocation5 + $0x1e0] sm:$0xff]   ;;  %v371_v59 = vshrl.u32 %v3021_v49, 16 }
  0x8c   : > { %2224 = vmatprep.subr.bf16.mxu1 %v2461_v62  ;;  %v297_v35 = vsel %vm2912_vm5, %v292_v30, %v296_v24  ;;  %v485_v62 = vrot.slane %v2935_v18, 5  ;;  %v329_v18 = vor.u32 %v328_v9, %v325_v8  ;;  %v360_v24 = vshrl.u32 %v2993_v15, 16  ;;  %v2476_v30 = vld [vmem:[#allocation5 + $0x1d8] sm:$0xff]  }
  0x8d   : > { %1329 = vmatmul.mubr.bf16.vlgmr.msra.gmra.mrb[0].mxu0 %v1923_v3  ;;  %v2954_v41 = vcombine.low %v287_v29, %v297_v35  ;;  %v482_v42 = vsel %vm2901_vm4, %v480_v33, %v481_v31  ;;  %v316_v3 = vrot.slane %v315_v60, 4  ;;  %v1916_v29 = vrot.slane %v2959_v45, 9  ;;  %v2477_v31 = vld [vmem:[#allocation5 + $0x118] sm:$0xff]   ;;  %v2482_v60 = vld [vmem:[#allocation5 + $0x120] sm:$0xff]  }
  0x8e   : > { %1426 = vmatmul.mubr.bf16.vlgmr.msra.gmra.mrb[0].mxu1 %v1939_v20  ;;  %2161 = vmatpush3.bf16.msra.mxu0 %v2462_v6  ;;  %v2964_v47 = vcombine.low %v479_v32, %v482_v42  ;;  %v486_v4 = vsel %vm2901_vm4, %v1915_v61, %v485_v62  ;;  %v487_v5 = vrot.slane %v485_v62, 4  ;;  %v2473_v6 = vld [vmem:[#allocation5 + $0x190] sm:$0xff]   ;;  %v2475_v20 = vld [vmem:[#allocation5 + $0x158] sm:$0xff]   ;;  %v330_v25 = vrot.slane %v329_v18, 4  ;;  %v2486_v18 = vld [vmem:[#allocation5 + $0x1e8] sm:$0xff]  }
  0x8f   : > { %2225 = vmatpush3.bf16.msra.mxu1 %v2463_v7  ;;  %1433 = vmatprep.mubr.bf16.mxu1 %v2942_v26  ;;  %v228_v7 = vld [vmem:[%s2869_s6 + $0x2c] sm:$0x1]  ;;  %v321_v10 = vsel %vm2912_vm5, %v316_v3, %v320_v51  ;;  %v492_v32 = vrot.slane %v2962_v46, 5  ;;  %v349_v40 = vrot.slane %v347_v22, 4  ;;  %v356_v45 = vshll.u32 %v2993_v15, 16 }
  0x90   : > { %2162 = vmatprep.subr.bf16.mxu0 %v2465_v23  ;;  %2226 = vmatprep.subr.bf16.mxu1 %v2466_v28  ;;  %v489_v11 = vsel %vm2901_vm4, %v487_v5, %v488_v0  ;;  %v342_v13 = vshll.u32 %v228_v7, 16  ;;  %v2995_v16 = vcombine.low %v311_v2, %v321_v10  ;;  %v350_v23 = vshll.u32 %v2990_v14, 16  ;;  %v2483_v0 = vld [vmem:[#allocation5 + $0x1a0] sm:$0xff]   ;;  %v2485_v5 = vld [vmem:[#allocation5 + $0x168] sm:$0xff]   ;;  %v3051_v22 = vld [vmem:[%s2869_s6 + $0x48] sm:$0xf] }
  0x91   : > { %1336 = vmatprep.mubr.bf16.mxu0 %v2954_v41  ;;  %v2997_v17 = vcombine.low %v486_v4, %v489_v11  ;;  %v3005_v28 = vcombine.low %v2990_v14, %v2993_v15  ;;  %v495_v33 = vrot.slane %v228_v7, 5  ;;  %v493_v37 = vsel %vm2901_vm4, %v1916_v29, %v492_v32 }
  0x92   : > { %2163 = vmatpush3.bf16.msra.mxu0 %v2467_v34  ;;  %v344_v21 = vrot.slane %v342_v13, 5  ;;  %v494_v38 = vrot.slane %v492_v32, 4  ;;  %v352_v42 = vrot.slane %v350_v23, 5  ;;  %v358_v61 = vrot.slane %v356_v45, 5  ;;  %v234_v13 = vld [vmem:[%s2869_s6 + $0x44] sm:$0x1] }
  0x93   : > { %2227 = vmatpush3.bf16.msra.mxu1 %v2468_v36  ;;  %2164 = vmatprep.subr.bf16.mxu0 %v2470_v57  ;;  %v2478_v36 = vld [vmem:[#allocation5 + $0x198] sm:$0xff]   ;;  %v3028_v57 = vld [vmem:[%s2869_s6 + $0x40] sm:$0xf]  ;;  %v368_v62 = vrot.slane %v366_v48, 5  ;;  %v1917_v4 = vrot.slane %v2990_v14, 9  ;;  %v499_v8 = vrot.slane %v2993_v15, 5 }
  0x94   : > { %2228 = vmatprep.subr.bf16.mxu1 %v2471_v63  ;;  %v496_v53 = vsel %vm2901_vm4, %v494_v38, %v495_v33  ;;  %v353_v54 = vor.u32 %v352_v42, %v349_v40  ;;  %v374_v63 = vshll.u32 %v3021_v49, 16  ;;  %v384_v3 = vshrl.u32 %v3028_v57, 16  ;;  %v2487_v33 = vld [vmem:[#allocation5 + $0x128] sm:$0xff]  }
  0x95   : > { %1337 = vmatmul.mubr.bf16.gmra.mrb[4].mxu0 %v2908_v56  ;;  %v332_v56 = vshll.u32 %v2962_v46, 16  ;;  %v362_v46 = vrot.slane %v360_v24, 4  ;;  %v3039_v7 = vcombine.low %v3021_v49, %v3028_v57  ;;  %v502_v9 = vrot.slane %v231_v39, 5  ;;  %v2488_v38 = vld [vmem:[#allocation5 + $0x1a8] sm:$0xff]  }
  0x96   : > { %1434 = vmatmul.mubr.bf16.gmra.mrb[4].mxu1 %v2964_v47  ;;  %2165 = vmatpush3.bf16.msra.mxu0 %v2472_v1  ;;  %v3033_v1 = vcombine.low %v493_v37, %v496_v53  ;;  %v354_v2 = vrot.slane %v353_v54, 4  ;;  %v500_v11 = vsel %vm2901_vm4, %v1917_v4, %v499_v8  ;;  %v373_v14 = vrot.slane %v371_v59, 4  ;;  %v3079_v53 = vld [vmem:[%s2869_s6 + $0x54] sm:$0xf] }
  0x97   : > { %1441 = vmatprep.mubr.bf16.mxu1 %v2972_v55  ;;  %2229 = vmatpush3.bf16.msra.mxu1 %v2473_v6  ;;  %v334_v19 = vrot.slane %v332_v56, 5  ;;  %v363_v6 = vor.u32 %v362_v46, %v358_v61  ;;  %v376_v15 = vrot.slane %v374_v63, 5  ;;  %v398_v29 = vshll.u32 %v3051_v22, 16 }
  0x98   : > { %1344 = vmatprep.mubr.bf16.mxu0 %v2995_v16  ;;  %2166 = vmatprep.subr.bf16.mxu0 %v2475_v20  ;;  %v359_v56 = vsel %vm2912_vm5, %v354_v2, %v358_v61  ;;  %v386_v20 = vrot.slane %v384_v3, 4  ;;  %v1918_v37 = vrot.slane %v3021_v49, 9  ;;  %v506_v42 = vrot.slane %v3028_v57, 5  ;;  %v3083_v61 = vld [vmem:[%s2869_s6 + $0x58] sm:$0xf] }
  0x99   : > { %v339_v27 = vor.u32 %v338_v12, %v334_v19  ;;  %v335_v34 = vsel %vm2912_vm5, %v330_v25, %v334_v19  ;;  %2230 = vmatprep.subr.bf16.mxu1 %v2476_v30  ;;  %v364_v10 = vrot.slane %v363_v6, 4  ;;  %v501_v12 = vrot.slane %v499_v8, 4  ;;  %v3059_v25 = vld [vmem:[%s2869_s6 + $0x4c] sm:$0xf] }
  0x9a   : > { %2167 = vmatpush3.bf16.msra.mxu0 %v2477_v31  ;;  %v380_v19 = vshll.u32 %v3028_v57, 16  ;;  %v377_v31 = vor.u32 %v376_v15, %v373_v14  ;;  %v3073_v45 = vcombine.low %v3051_v22, %v3059_v25  ;;  %v508_v49 = vrot.slane %v506_v42, 4  ;;  %v2491_v8 = vld [vmem:[#allocation5 + $0x1f0] sm:$0xff]  }
  0x9b   : > { %v340_v35 = vrot.slane %v339_v27, 4  ;;  %2231 = vmatpush3.bf16.msra.mxu1 %v2478_v36  ;;  %2168 = vmatprep.subr.bf16.mxu0 %v2480_v43  ;;  %v369_v23 = vsel %vm2912_vm5, %v364_v10, %v368_v62  ;;  %v503_v24 = vsel %vm2901_vm4, %v501_v12, %v502_v9  ;;  %v395_v27 = vshrl.u32 %v3051_v22, 16  ;;  %v2492_v10 = vld [vmem:[#allocation5 + $0x130] sm:$0xff]  }
  0x9c   : > { %2232 = vmatprep.subr.bf16.mxu1 %v2481_v50  ;;  %v3063_v30 = vcombine.low %v359_v56, %v369_v23  ;;  %v382_v32 = vrot.slane %v380_v19, 5  ;;  %v408_v36 = vshrl.u32 %v3059_v25, 16  ;;  %v378_v39 = vrot.slane %v377_v31, 4  ;;  %v237_v50 = vld [vmem:[%s2869_s6 + $0x50] sm:$0x1] }
  0x9d   : > { %1345 = vmatmul.mubr.bf16.gmra.mrb[8].mxu0 %v2942_v26  ;;  %v345_v44 = vsel %vm2912_vm5, %v340_v35, %v344_v21  ;;  %v390_v21 = vshll.u32 %v234_v13, 16  ;;  %v509_v43 = vrot.slane %v234_v13, 5  ;;  %v397_v54 = vrot.slane %v395_v27, 4 }
  0x9e   : > { %1442 = vmatmul.mubr.bf16.gmra.mrb[8].mxu1 %v2997_v17  ;;  %v3023_v51 = vcombine.low %v335_v34, %v345_v44  ;;  %2169 = vmatpush3.bf16.msra.mxu0 %v2482_v60  ;;  %v3065_v34 = vcombine.low %v500_v11, %v503_v24  ;;  %v387_v40 = vor.u32 %v386_v20, %v382_v32  ;;  %v2490_v44 = vld [vmem:[#allocation5 + $0x170] sm:$0xff]   ;;  %v400_v57 = vrot.slane %v398_v29, 5 }
  0x9f   : > { %1449 = vmatprep.mubr.bf16.mxu1 %v3005_v28  ;;  %2233 = vmatpush3.bf16.msra.mxu1 %v2483_v0  ;;  %v392_v35 = vrot.slane %v390_v21, 5  ;;  %v383_v46 = vsel %vm2912_vm5, %v378_v39, %v382_v32  ;;  %v404_v59 = vshll.u32 %v3059_v25, 16  ;;  %v410_v60 = vrot.slane %v408_v36, 4  ;;  %v3119_v39 = vld [vmem:[%s2869_s6 + $0x60] sm:$0xf] }
  0xa0   : > { %1352 = vmatprep.mubr.bf16.mxu0 %v3023_v51  ;;  %2170 = vmatprep.subr.bf16.mxu0 %v2485_v5  ;;  %v388_v48 = vrot.slane %v387_v40, 4  ;;  %v507_v63 = vsel %vm2901_vm4, %v1918_v37, %v506_v42  ;;  %v414_v0 = vshll.u32 %v237_v50, 16  ;;  %v419_v2 = vshrl.u32 %v3079_v53, 16  ;;  %v2495_v40 = vld [vmem:[#allocation5 + $0x178] sm:$0xff]  }
  0xa1   : > { %2234 = vmatprep.subr.bf16.mxu1 %v2486_v18  ;;  %v510_v4 = vsel %vm2901_vm4, %v508_v49, %v509_v43  ;;  %v401_v5 = vor.u32 %v400_v57, %v397_v54  ;;  %v406_v6 = vrot.slane %v404_v59, 5  ;;  %v422_v9 = vshll.u32 %v3079_v53, 16  ;;  %v2493_v18 = vld [vmem:[#allocation5 + $0x1b0] sm:$0xff]   ;;  %v2497_v57 = vld [vmem:[#allocation5 + $0x138] sm:$0xff]  }
  0xa2   : > { %2171 = vmatpush3.bf16.msra.mxu0 %v2487_v33  ;;  %v393_v62 = vsel %vm2912_vm5, %v388_v48, %v392_v35  ;;  %v432_v56 = vshrl.u32 %v3083_v61, 16  ;;  %v416_v13 = vrot.slane %v414_v0, 5  ;;  %v513_v14 = vrot.slane %v3059_v25, 5  ;;  %v240_v25 = vld [vmem:[%s2869_s6 + $0x5c] sm:$0x1] }
  0xa3   : > { %2235 = vmatpush3.bf16.msra.mxu1 %v2488_v38  ;;  %2172 = vmatprep.subr.bf16.mxu0 %v2490_v44  ;;  %v3092_v3 = vcombine.low %v383_v46, %v393_v62  ;;  %v402_v11 = vrot.slane %v401_v5, 4  ;;  %v411_v12 = vor.u32 %v410_v60, %v406_v6  ;;  %v3101_v15 = vcombine.low %v507_v63, %v510_v4  ;;  %v3127_v44 = vld [vmem:[%s2869_s6 + $0x64] sm:$0xf]  ;;  %v2496_v46 = vld [vmem:[#allocation5 + $0x1f8] sm:$0xff]  }
  0xa4   : > { %2236 = vmatprep.subr.bf16.mxu1 %v2491_v8  ;;  %v3105_v19 = vcombine.low %v3079_v53, %v3083_v61  ;;  %v1919_v20 = vrot.slane %v3051_v22, 9  ;;  %v421_v21 = vrot.slane %v419_v2, 4  ;;  %v515_v27 = vrot.slane %v513_v14, 4  ;;  %v2498_v60 = vld [vmem:[#allocation5 + $0x1b8] sm:$0xff]  }
  0xa5   : > { %1353 = vmatmul.mubr.bf16.gmra.mrb[12].mxu0 %v2972_v55  ;;  %v407_v23 = vsel %vm2912_vm5, %v402_v11, %v406_v6  ;;  %v412_v24 = vrot.slane %v411_v12, 4  ;;  %v516_v29 = vrot.slane %v237_v50, 5  ;;  %v424_v31 = vrot.slane %v422_v9, 5  ;;  %v2501_v11 = vld [vmem:[#allocation5 + $0x210] sm:$0xff]  }
  0xa6   : > { %1450 = vmatmul.mubr.bf16.gmra.mrb[12].mxu1 %v3033_v1  ;;  %1360 = vmatprep.mubr.bf16.mxu0 %v3063_v30  ;;  %v428_v32 = vshll.u32 %v3083_v61, 16  ;;  %v434_v33 = vrot.slane %v432_v56, 4  ;;  %v438_v35 = vshll.u32 %v240_v25, 16  ;;  %v514_v42 = vsel %vm2901_vm4, %v1919_v20, %v513_v14 }
  0xa7   : > { %1457 = vmatprep.mubr.bf16.mxu1 %v3039_v7  ;;  %2173 = vmatpush3.bf16.msra.mxu0 %v2492_v10  ;;  %v417_v22 = vsel %vm2912_vm5, %v412_v24, %v416_v13  ;;  %v425_v37 = vor.u32 %v424_v31, %v421_v21  ;;  %v517_v43 = vsel %vm2901_vm4, %v515_v27, %v516_v29  ;;  %v520_v54 = vrot.slane %v3083_v61, 5  ;;  %v2499_v61 = vld [vmem:[#allocation5 + $0x200] sm:$0xff]   ;;  %v2500_v10 = vld [vmem:[#allocation5 + $0x208] sm:$0xff]   ;;  %v243_v21 = vld [vmem:[%s2869_s6 + $0x68] sm:$0x1] }
  0xa8   : > { %2237 = vmatpush3.bf16.msra.mxu1 %v2493_v18  ;;  %v3116_v36 = vcombine.low %v407_v23, %v417_v22  ;;  %v430_v38 = vrot.slane %v428_v32, 5  ;;  %v440_v50 = vrot.slane %v438_v35, 5  ;;  %2174 = vmatprep.subr.bf16.mxu0 %v2495_v40  ;;  %v1920_v59 = vrot.slane %v3079_v53, 9  ;;  %v3176_v23 = vld [vmem:[%s2869_s6 + $0x6c] sm:$0xf] }
  0xa9   : > { %v426_v48 = vrot.slane %v425_v37, 4  ;;  %2238 = vmatprep.subr.bf16.mxu1 %v2496_v46  ;;  %v3132_v62 = vcombine.low %v514_v42, %v517_v43  ;;  %v523_v2 = vrot.slane %v240_v25, 5  ;;  %v3138_v4 = vcombine.low %v3119_v39, %v3127_v44  ;;  %v3179_v24 = vld [vmem:[%s2869_s6 + $0x70] sm:$0xf]  ;;  %v246_v46 = vld [vmem:[%s2869_s6 + $0x74] sm:$0x1] }
  0xaa   : > { %v435_v49 = vor.u32 %v434_v33, %v430_v38  ;;  %v522_v5 = vrot.slane %v520_v54, 4  ;;  %v521_v8 = vsel %vm2901_vm4, %v1920_v59, %v520_v54  ;;  %v539_v12 = vshrl.u32 %v3127_v44, 16  ;;  %v2507_v27 = vld [vmem:[#allocation5 + $0x238] sm:$0xff]  }
  0xab   : > { %v431_v63 = vsel %vm2912_vm5, %v426_v48, %v430_v38  ;;  %2175 = vmatpush3.bf16.msra.mxu0 %v2497_v57  ;;  %v535_v13 = vshll.u32 %v3127_v44, 16  ;;  %v545_v31 = vshll.u32 %v243_v21, 16  ;;  %v560_v32 = vshrl.u32 %v3176_v23, 16 }
  0xac   : > { %v436_v0 = vrot.slane %v435_v49, 4  ;;  %2239 = vmatpush3.bf16.msra.mxu1 %v2498_v60  ;;  %2304 = vmatprep.subr.bf16.mxu0 %v2499_v61  ;;  %v524_v9 = vsel %vm2901_vm4, %v522_v5, %v523_v2  ;;  %v541_v20 = vrot.slane %v539_v12, 4  ;;  %v563_v33 = vshll.u32 %v3176_v23, 16 }
  0xad   : > { %1361 = vmatmul.mubr.bf16.gmra.mrb[16].mxu0 %v3005_v28  ;;  %2336 = vmatprep.subr.bf16.mxu1 %v2499_v61  ;;  %v3152_v56 = vcombine.low %v521_v8, %v524_v9  ;;  %v537_v18 = vrot.slane %v535_v13, 5  ;;  %v569_v35 = vshll.u32 %v3179_v24, 16  ;;  %v547_v37 = vrot.slane %v545_v31, 5 }
  0xae   : > { %1458 = vmatmul.mubr.bf16.gmra.mrb[16].mxu1 %v3065_v34  ;;  %1368 = vmatprep.mubr.bf16.mxu0 %v3092_v3  ;;  %v441_v53 = vsel %vm2912_vm5, %v436_v0, %v440_v50  ;;  %v562_v38 = vrot.slane %v560_v32, 4  ;;  %v565_v40 = vrot.slane %v563_v33, 5  ;;  %v554_v49 = vrot.slane %v3127_v44, 5 }
  0xaf   : > { %1465 = vmatprep.mubr.bf16.mxu1 %v3073_v45  ;;  %v3142_v6 = vcombine.low %v431_v63, %v441_v53  ;;  %v542_v25 = vor.u32 %v541_v20, %v537_v18  ;;  %v571_v42 = vrot.slane %v569_v35, 5  ;;  %v579_v59 = vshll.u32 %v246_v46, 16 }
  0xb0   : > { %v566_v54 = vor.u32 %v565_v40, %v562_v38  ;;  %v557_v63 = vrot.slane %v243_v21, 5  ;;  %v588_v58 = vrot.slane %v3179_v24, 5 }
  0xb1   : > { %v543_v22 = vrot.slane %v542_v25, 4  ;;  %v581_v5 = vrot.slane %v579_v59, 5 }
  0xb2   : > { %v567_v0 = vrot.slane %v566_v54, 4 }
  0xb3   : > { %v548_v50 = vsel %vm2912_vm5, %v543_v22, %v547_v37 }
  0xb5   : > { %1369 = vmatmul.mubr.bf16.gmra.mrb[20].mxu0 %v3039_v7 }
  0xb6   : > { %1466 = vmatmul.mubr.bf16.gmra.mrb[20].mxu1 %v3101_v15  ;;  %1376 = vmatprep.mubr.bf16.mxu0 %v3116_v36 }
  0xb7   : > { %1473 = vmatprep.mubr.bf16.mxu1 %v3105_v19 }
  0xbd   : > { %1377 = vmatmul.mubr.bf16.gmra.mrb[24].mxu0 %v3073_v45 }
  0xbe   : > { %1474 = vmatmul.mubr.bf16.gmra.mrb[24].mxu1 %v3132_v62  ;;  %1384 = vmatprep.mubr.bf16.mxu0 %v3142_v6 }
  0xbf   : > { %1481 = vmatprep.mubr.bf16.mxu1 %v3138_v4 }
  0xc5   : > { %1385 = vmatmul.mubr.bf16.gmra.mrb[28].mxu0 %v3105_v19 }
  0xc6   : > { %1482 = vmatmul.mubr.bf16.gmra.mrb[28].mxu1 %v3152_v56  ;;  %1522 = vmatprep.mubr.bf16.mxu0 %v2964_v47  ;;  %v2502_v47 = vld [vmem:[#allocation5 + $0x218] sm:$0xff]  }
  0xc7   : > { %1619 = vmatprep.mubr.bf16.mxu1 %v2995_v16 }
  0xcd   : > { %1523 = vmatmul.mubr.bf16.vlgmr.msra.gmra.mrb[32].mxu0 %v2954_v41  ;;  %v2504_v41 = vld [vmem:[#allocation5 + $0x228] sm:$0xff]  }
  0xce   : > { %1620 = vmatmul.mubr.bf16.vlgmr.msra.gmra.mrb[32].mxu1 %v2942_v26  ;;  %2305 = vmatpush3.bf16.msra.mxu0 %v2499_v61  ;;  %v2503_v26 = vld [vmem:[#allocation5 + $0x220] sm:$0xff]  }
  0xcf   : > { %2344 = vmatpush3.bf16.msra.mxu1 %v2499_v61  ;;  %1530 = vmatprep.mubr.bf16.mxu0 %v2997_v17 }
  0xd0   : > { %1627 = vmatprep.mubr.bf16.mxu1 %v3023_v51  ;;  %2306 = vmatprep.subr.bf16.mxu0 %v2500_v10 }
  0xd1   : > { %2337 = vmatprep.subr.bf16.mxu1 %v2500_v10 }
  0xd2   : > { %2307 = vmatpush3.bf16.msra.mxu0 %v2500_v10 }
  0xd3   : > { %2345 = vmatpush3.bf16.msra.mxu1 %v2500_v10  ;;  %2308 = vmatprep.subr.bf16.mxu0 %v2501_v11  ;;  %v590_v10 = vrot.slane %v588_v58, 4 }
  0xd4   : > { %2338 = vmatprep.subr.bf16.mxu1 %v2501_v11 }
  0xd5   : > { %1531 = vmatmul.mubr.bf16.gmra.mrb[36].mxu0 %v2995_v16  ;;  %v529_v16 = vshll.u32 %v3119_v39, 16 }
  0xd6   : > { %1628 = vmatmul.mubr.bf16.gmra.mrb[36].mxu1 %v2972_v55  ;;  %1538 = vmatprep.mubr.bf16.mxu0 %v3033_v1  ;;  %v526_v55 = vshrl.u32 %v3119_v39, 16 }
  0xd7   : > { %1635 = vmatprep.mubr.bf16.mxu1 %v3063_v30  ;;  %2309 = vmatpush3.bf16.msra.mxu0 %v2501_v11  ;;  %v531_v14 = vrot.slane %v529_v16, 5 }
  0xd8   : > { %2346 = vmatpush3.bf16.msra.mxu1 %v2501_v11  ;;  %2310 = vmatprep.subr.bf16.mxu0 %v2502_v47  ;;  %v591_v11 = vrot.slane %v246_v46, 5 }
  0xd9   : > { %2339 = vmatprep.subr.bf16.mxu1 %v2502_v47 }
  0xdb   : > { %2311 = vmatpush3.bf16.msra.mxu0 %v2502_v47 }
  0xdc   : > { %2347 = vmatpush3.bf16.msra.mxu1 %v2502_v47  ;;  %2312 = vmatprep.subr.bf16.mxu0 %v2503_v26 }
  0xdd   : > { %2340 = vmatprep.subr.bf16.mxu1 %v2503_v26  ;;  %1539 = vmatmul.mubr.bf16.gmra.mrb[40].mxu0 %v3023_v51  ;;  %v528_v51 = vrot.slane %v526_v55, 4 }
  0xde   : > { %1636 = vmatmul.mubr.bf16.gmra.mrb[40].mxu1 %v3005_v28  ;;  %1546 = vmatprep.mubr.bf16.mxu0 %v3065_v34  ;;  %v2505_v28 = vld [vmem:[#allocation5 + $0x230] sm:$0xff]  }
  0xdf   : > { %1643 = vmatprep.mubr.bf16.mxu1 %v3092_v3  ;;  %2313 = vmatpush3.bf16.msra.mxu0 %v2503_v26  ;;  %v532_v29 = vor.u32 %v531_v14, %v528_v51 }
  0xe0   : > { %2348 = vmatpush3.bf16.msra.mxu1 %v2503_v26  ;;  %2314 = vmatprep.subr.bf16.mxu0 %v2504_v41  ;;  %v3227_v26 = vld [vmem:[#allocation7] ss:$0 sm:$0xff] }
  0xe1   : > { %2341 = vmatprep.subr.bf16.mxu1 %v2504_v41 }
  0xe3   : > { %2315 = vmatpush3.bf16.msra.mxu0 %v2504_v41 }
  0xe4   : > { %2349 = vmatpush3.bf16.msra.mxu1 %v2504_v41  ;;  %2316 = vmatprep.subr.bf16.mxu0 %v2505_v28 }
  0xe5   : > { %2342 = vmatprep.subr.bf16.mxu1 %v2505_v28  ;;  %1547 = vmatmul.mubr.bf16.gmra.mrb[44].mxu0 %v3063_v30  ;;  %v573_v30 = vshrl.u32 %v3179_v24, 16 }
  0xe6   : > { %1644 = vmatmul.mubr.bf16.gmra.mrb[44].mxu1 %v3039_v7  ;;  %1554 = vmatprep.mubr.bf16.mxu0 %v3101_v15  ;;  %v533_v7 = vrot.slane %v532_v29, 4 }
  0xe7   : > { %1651 = vmatprep.mubr.bf16.mxu1 %v3116_v36  ;;  %2317 = vmatpush3.bf16.msra.mxu0 %v2505_v28  ;;  %v575_v43 = vrot.slane %v573_v30, 4 }
  0xe8   : > { %2350 = vmatpush3.bf16.msra.mxu1 %v2505_v28  ;;  %2318 = vmatprep.subr.bf16.mxu0 %v2507_v27  ;;  %v538_v48 = vsel %vm2912_vm5, %v533_v7, %v537_v18 }
  0xe9   : > { %2343 = vmatprep.subr.bf16.mxu1 %v2507_v27  ;;  %v576_v57 = vor.u32 %v575_v43, %v571_v42  ;;  %v1948_v60 = vcombine.low %v538_v48, %v548_v50 }
  0xeb   : > { %2319 = vmatpush3.bf16.msra.mxu0 %v2507_v27  ;;  %v577_v2 = vrot.slane %v576_v57, 4 }
  0xec   : > { %2351 = vmatpush3.bf16.msra.mxu1 %v2507_v27 }
  0xed   : > { %1555 = vmatmul.mubr.bf16.gmra.mrb[48].mxu0 %v3092_v3  ;;  %v1921_v3 = vrot.slane %v3119_v39, 9  ;;  %v572_v39 = vsel %vm2912_vm5, %v567_v0, %v571_v42  ;;  %v582_v53 = vsel %vm2912_vm5, %v577_v2, %v581_v5 }
  0xee   : > { %1652 = vmatmul.mubr.bf16.gmra.mrb[48].mxu1 %v3073_v45  ;;  %1562 = vmatprep.mubr.bf16.mxu0 %v3132_v62  ;;  %v556_v45 = vrot.slane %v554_v49, 4  ;;  %v1951_v9 = vcombine.low %v572_v39, %v582_v53 }
  0xef   : > { %1659 = vmatprep.mubr.bf16.mxu1 %v3142_v6  ;;  %v555_v44 = vsel %vm2901_vm4, %v1921_v3, %v554_v49 }
  0xf0   : > { %v558_v61 = vsel %vm2901_vm4, %v556_v45, %v557_v63 }
  0xf1   : > { %v1949_v8 = vcombine.low %v555_v44, %v558_v61 }
  0xf5   : > { %1563 = vmatmul.mubr.bf16.gmra.mrb[52].mxu0 %v3116_v36  ;;  %v1922_v36 = vrot.slane %v3176_v23, 9 }
  0xf6   : > { %1660 = vmatmul.mubr.bf16.gmra.mrb[52].mxu1 %v3105_v19  ;;  %1570 = vmatprep.mubr.bf16.mxu0 %v3152_v56  ;;  %v1950_v19 = vcombine.low %v3176_v23, %v3179_v24 }
  0xf7   : > { %1667 = vmatprep.mubr.bf16.mxu1 %v1948_v60 }
  0xfd   : > { %1571 = vmatmul.mubr.bf16.gmra.mrb[56].mxu0 %v3142_v6 }
  0xfe   : > { %1668 = vmatmul.mubr.bf16.gmra.mrb[56].mxu1 %v3138_v4  ;;  %1578 = vmatprep.mubr.bf16.mxu0 %v1949_v8  ;;  %v589_v4 = vsel %vm2901_vm4, %v1922_v36, %v588_v58 }
  0xff   : > { %1675 = vmatprep.mubr.bf16.mxu1 %v1951_v9 }
 0x105   : > { %1579 = vmatmul.mubr.bf16.gmra.mrb[60].mxu0 %v1948_v60 }
 0x106   : > { %1676 = vmatmul.mubr.bf16.gmra.mrb[60].mxu1 %v1950_v19  ;;  %2320 = vmatprep.mubr.bf16.mxu0 %v2997_v17  ;;  %v592_v17 = vsel %vm2901_vm4, %v590_v10, %v591_v11 }
 0x107   : > { %2328 = vmatprep.mubr.bf16.mxu1 %v3132_v62  ;;  %v1952_v62 = vcombine.low %v589_v4, %v592_v17 }
 0x10d   : > { %2321 = vmatmul.mubr.bf16.vlgmr.msra.gmra.mrb[64].mxu0 %v3033_v1 }
 0x10e   : > { %2329 = vmatmul.mubr.bf16.vlgmr.msra.gmra.mrb[64].mxu1 %v3152_v56  ;;  %2324 = vmatprep.mubr.bf16.mxu0 %v3065_v34 }
 0x10f   : > { %2332 = vmatprep.mubr.bf16.mxu1 %v1949_v8 }
 0x115   : > { %2325 = vmatmul.mubr.bf16.gmra.mrb[68].mxu0 %v3101_v15 }
 0x116   : > { %2333 = vmatmul.mubr.bf16.gmra.mrb[68].mxu1 %v1952_v62 }
 0x160   : > { %v2048_v6 = vpop.f32.mrb[0].mxu0 }
 0x161   : > { %v2112_v47 = vpop.f32.mrb[0].mxu1  ;;  %v2049_v1 = vpop.f32.mrb[1].mxu0 }
 0x162   : > { %v2113_v41 = vpop.f32.mrb[1].mxu1  ;;  %v2050_v56 = vadd.f32 %v2049_v1, %v2048_v6  ;;  %v2051_v34 = vpop.f32.mrb[2].mxu0 }
 0x163   : > { %v2114_v55 = vadd.f32 %v2113_v41, %v2112_v47  ;;  %v2115_v16 = vpop.f32.mrb[2].mxu1  ;;  %v2052_v12 = vpop.f32.mrb[3].mxu0 }
 0x164   : > { %v2116_v13 = vpop.f32.mrb[3].mxu1  ;;  %v1331_v28 = vadd.f32 %v2050_v56, %v3227_v26  ;;  %v2053_v52 = vadd.f32 %v2052_v12, %v2051_v34 }
 0x165   : > { %v2117_v51 = vadd.f32 %v2116_v13, %v2115_v16 }
 0x166   : > { %v3230_v14 = vadd.f32 %v2114_v55, %v1331_v28  ;;  %v1334_v15 = vadd.f32 %v2053_v52, %v3227_v26 }
 0x168   : > { %v3233_v18 = vadd.f32 %v2117_v51, %v1334_v15  ;;  %v2054_v20 = vpop.f32.mrb[4].mxu0 }
 0x169   : > { %v2118_v21 = vpop.f32.mrb[4].mxu1  ;;  %v2055_v23 = vpop.f32.mrb[5].mxu0 }
 0x16a   : > { %v2119_v24 = vpop.f32.mrb[5].mxu1  ;;  %v2056_v27 = vadd.f32 %v2055_v23, %v2054_v20  ;;  %v2057_v25 = vpop.f32.mrb[6].mxu0 }
 0x16b   : > { %v2120_v29 = vadd.f32 %v2119_v24, %v2118_v21  ;;  %v2121_v31 = vpop.f32.mrb[6].mxu1  ;;  %v2058_v32 = vpop.f32.mrb[7].mxu0 }
 0x16c   : > { %v2122_v33 = vpop.f32.mrb[7].mxu1  ;;  %v1339_v35 = vadd.f32 %v2056_v27, %v3227_v26  ;;  %v2059_v30 = vadd.f32 %v2058_v32, %v2057_v25 }
 0x16d   : > { %v2123_v7 = vadd.f32 %v2122_v33, %v2121_v31 }
 0x16e   : > { %v3236_v22 = vadd.f32 %v2120_v29, %v1339_v35  ;;  %v1342_v37 = vadd.f32 %v2059_v30, %v3227_v26 }
 0x170   : > { %v3239_v38 = vadd.f32 %v2123_v7, %v1342_v37  ;;  %v2060_v40 = vpop.f32.mrb[8].mxu0 }
 0x171   : > { %v2124_v42 = vpop.f32.mrb[8].mxu1  ;;  %v2061_v43 = vpop.f32.mrb[9].mxu0 }
 0x172   : > { %v2125_v46 = vpop.f32.mrb[9].mxu1  ;;  %v2062_v48 = vadd.f32 %v2061_v43, %v2060_v40  ;;  %v2063_v50 = vpop.f32.mrb[10].mxu0 }
 0x173   : > { %v2126_v49 = vadd.f32 %v2125_v46, %v2124_v42  ;;  %v2127_v54 = vpop.f32.mrb[10].mxu1  ;;  %v2064_v57 = vpop.f32.mrb[11].mxu0 }
 0x174   : > { %v2128_v59 = vpop.f32.mrb[11].mxu1  ;;  %v1347_v60 = vadd.f32 %v2062_v48, %v3227_v26  ;;  %v2065_v3 = vadd.f32 %v2064_v57, %v2063_v50 }
 0x175   : > { %v2129_v63 = vadd.f32 %v2128_v59, %v2127_v54 }
 0x176   : > { %v3242_v45 = vadd.f32 %v2126_v49, %v1347_v60  ;;  %v1350_v0 = vadd.f32 %v2065_v3, %v3227_v26 }
 0x178   : > { %v3245_v2 = vadd.f32 %v2129_v63, %v1350_v0  ;;  %v2066_v5 = vpop.f32.mrb[12].mxu0 }
 0x179   : > { %v2130_v44 = vpop.f32.mrb[12].mxu1  ;;  %v2067_v61 = vpop.f32.mrb[13].mxu0 }
 0x17a   : > { %v2131_v39 = vpop.f32.mrb[13].mxu1  ;;  %v2068_v53 = vadd.f32 %v2067_v61, %v2066_v5  ;;  %v2069_v9 = vpop.f32.mrb[14].mxu0 }
 0x17b   : > { %v2132_v8 = vadd.f32 %v2131_v39, %v2130_v44  ;;  %v2133_v19 = vpop.f32.mrb[14].mxu1  ;;  %v2070_v58 = vpop.f32.mrb[15].mxu0 }
 0x17c   : > { %v2134_v36 = vpop.f32.mrb[15].mxu1  ;;  %v1355_v10 = vadd.f32 %v2068_v53, %v3227_v26  ;;  %v2071_v11 = vadd.f32 %v2070_v58, %v2069_v9 }
 0x17d   : > { %v2135_v4 = vadd.f32 %v2134_v36, %v2133_v19 }
 0x17e   : > { %v3248_v17 = vadd.f32 %v2132_v8, %v1355_v10  ;;  %v1358_v62 = vadd.f32 %v2071_v11, %v3227_v26 }
 0x180   : > { %v3251_v6 = vadd.f32 %v2135_v4, %v1358_v62  ;;  %v2072_v47 = vpop.f32.mrb[16].mxu0 }
 0x181   : > { %v2136_v1 = vpop.f32.mrb[16].mxu1  ;;  %v2073_v41 = vpop.f32.mrb[17].mxu0 }
 0x182   : > { %v2137_v56 = vpop.f32.mrb[17].mxu1  ;;  %v2074_v55 = vadd.f32 %v2073_v41, %v2072_v47  ;;  %v2075_v16 = vpop.f32.mrb[18].mxu0 }
 0x183   : > { %v2138_v34 = vadd.f32 %v2137_v56, %v2136_v1  ;;  %v2139_v12 = vpop.f32.mrb[18].mxu1  ;;  %v2076_v13 = vpop.f32.mrb[19].mxu0 }
 0x184   : > { %v2140_v28 = vpop.f32.mrb[19].mxu1  ;;  %v1363_v52 = vadd.f32 %v2074_v55, %v3227_v26  ;;  %v2077_v51 = vadd.f32 %v2076_v13, %v2075_v16 }
 0x185   : > { %v2141_v15 = vadd.f32 %v2140_v28, %v2139_v12 }
 0x186   : > { %v3254_v20 = vadd.f32 %v2138_v34, %v1363_v52  ;;  %v1366_v21 = vadd.f32 %v2077_v51, %v3227_v26 }
 0x188   : > { %v3257_v23 = vadd.f32 %v2141_v15, %v1366_v21  ;;  %v2078_v24 = vpop.f32.mrb[20].mxu0 }
 0x189   : > { %v2142_v27 = vpop.f32.mrb[20].mxu1  ;;  %v2079_v29 = vpop.f32.mrb[21].mxu0 }
 0x18a   : > { %v2143_v25 = vpop.f32.mrb[21].mxu1  ;;  %v2080_v31 = vadd.f32 %v2079_v29, %v2078_v24  ;;  %v2081_v33 = vpop.f32.mrb[22].mxu0 }
 0x18b   : > { %v2144_v32 = vadd.f32 %v2143_v25, %v2142_v27  ;;  %v2145_v35 = vpop.f32.mrb[22].mxu1  ;;  %v2082_v30 = vpop.f32.mrb[23].mxu0 }
 0x18c   : > { %v2146_v7 = vpop.f32.mrb[23].mxu1  ;;  %v1371_v37 = vadd.f32 %v2080_v31, %v3227_v26  ;;  %v2083_v40 = vadd.f32 %v2082_v30, %v2081_v33 }
 0x18d   : > { %v2147_v42 = vadd.f32 %v2146_v7, %v2145_v35 }
 0x18e   : > { %v3260_v43 = vadd.f32 %v2144_v32, %v1371_v37  ;;  %v1374_v46 = vadd.f32 %v2083_v40, %v3227_v26 }
 0x190   : > { %v3263_v48 = vadd.f32 %v2147_v42, %v1374_v46  ;;  %v2084_v49 = vpop.f32.mrb[24].mxu0 }
 0x191   : > { %v2148_v50 = vpop.f32.mrb[24].mxu1  ;;  %v2085_v54 = vpop.f32.mrb[25].mxu0 }
 0x192   : > { %v2149_v57 = vpop.f32.mrb[25].mxu1  ;;  %v2086_v59 = vadd.f32 %v2085_v54, %v2084_v49  ;;  %v2087_v3 = vpop.f32.mrb[26].mxu0 }
 0x193   : > { %v2150_v60 = vadd.f32 %v2149_v57, %v2148_v50  ;;  %v2151_v63 = vpop.f32.mrb[26].mxu1  ;;  %v2088_v0 = vpop.f32.mrb[27].mxu0 }
 0x194   : > { %v2152_v5 = vpop.f32.mrb[27].mxu1  ;;  %v1379_v44 = vadd.f32 %v2086_v59, %v3227_v26  ;;  %v2089_v61 = vadd.f32 %v2088_v0, %v2087_v3 }
 0x195   : > { %v2153_v39 = vadd.f32 %v2152_v5, %v2151_v63 }
 0x196   : > { %v3266_v53 = vadd.f32 %v2150_v60, %v1379_v44  ;;  %v1382_v8 = vadd.f32 %v2089_v61, %v3227_v26 }
 0x198   : > { %v3269_v9 = vadd.f32 %v2153_v39, %v1382_v8  ;;  %v2090_v19 = vpop.f32.mrb[28].mxu0 }
 0x199   : > { %v2154_v58 = vpop.f32.mrb[28].mxu1  ;;  %v2091_v36 = vpop.f32.mrb[29].mxu0 }
 0x19a   : > { %v2155_v10 = vpop.f32.mrb[29].mxu1  ;;  %v2092_v11 = vadd.f32 %v2091_v36, %v2090_v19  ;;  %v2093_v62 = vpop.f32.mrb[30].mxu0 }
 0x19b   : > { %v2156_v4 = vadd.f32 %v2155_v10, %v2154_v58  ;;  %v2157_v47 = vpop.f32.mrb[30].mxu1  ;;  %v2094_v1 = vpop.f32.mrb[31].mxu0 }
 0x19c   : > { %v2158_v41 = vpop.f32.mrb[31].mxu1  ;;  %v1387_v56 = vadd.f32 %v2092_v11, %v3227_v26  ;;  %v2095_v55 = vadd.f32 %v2094_v1, %v2093_v62 }
 0x19d   : > { %v2159_v34 = vadd.f32 %v2158_v41, %v2157_v47 }
 0x19e   : > { %v3272_v16 = vadd.f32 %v2156_v4, %v1387_v56  ;;  %v1390_v12 = vadd.f32 %v2095_v55, %v3227_v26 }
 0x1a0   : > { %v3275_v13 = vadd.f32 %v2159_v34, %v1390_v12  ;;  %v2176_v28 = vpop.f32.mrb[32].mxu0 }
 0x1a1   : > { %v2240_v52 = vpop.f32.mrb[32].mxu1  ;;  %v2177_v51 = vpop.f32.mrb[33].mxu0 }
 0x1a2   : > { %v2241_v15 = vpop.f32.mrb[33].mxu1  ;;  %v2178_v21 = vadd.f32 %v2177_v51, %v2176_v28  ;;  %v2179_v27 = vpop.f32.mrb[34].mxu0 }
 0x1a3   : > { %v2242_v24 = vadd.f32 %v2241_v15, %v2240_v52  ;;  %v2243_v29 = vpop.f32.mrb[34].mxu1  ;;  %v2180_v25 = vpop.f32.mrb[35].mxu0 }
 0x1a4   : > { %v2244_v31 = vpop.f32.mrb[35].mxu1  ;;  %v1525_v32 = vadd.f32 %v2178_v21, %v3230_v14  ;;  %v2181_v33 = vadd.f32 %v2180_v25, %v2179_v27 }
 0x1a5   : > { %v2245_v35 = vadd.f32 %v2244_v31, %v2243_v29 }
 0x1a6   : > { %v1528_v30 = vadd.f32 %v2181_v33, %v3233_v18  ;;  %v3279_v7 = vadd.f32 %v2242_v24, %v1525_v32 }
 0x1a8   : > { %v2182_v26 = vpop.f32.mrb[36].mxu0  ;;  %v3281_v40 = vadd.f32 %v2245_v35, %v1528_v30 }
 0x1a9   : > { %v2246_v37 = vpop.f32.mrb[36].mxu1  ;;  %v2183_v42 = vpop.f32.mrb[37].mxu0 }
 0x1aa   : > { %v2247_v46 = vpop.f32.mrb[37].mxu1  ;;  %v2184_v49 = vadd.f32 %v2183_v42, %v2182_v26  ;;  %v2185_v54 = vpop.f32.mrb[38].mxu0 }
 0x1ab   : > { %v2248_v50 = vadd.f32 %v2247_v46, %v2246_v37  ;;  %v2249_v57 = vpop.f32.mrb[38].mxu1  ;;  %v2186_v59 = vpop.f32.mrb[39].mxu0 }
 0x1ac   : > { %v2250_v60 = vpop.f32.mrb[39].mxu1  ;;  %v1533_v14 = vadd.f32 %v2184_v49, %v3236_v22  ;;  %v2187_v3 = vadd.f32 %v2186_v59, %v2185_v54 }
 0x1ad   : > { %v2251_v63 = vadd.f32 %v2250_v60, %v2249_v57 }
 0x1ae   : > { %v1536_v18 = vadd.f32 %v2187_v3, %v3239_v38  ;;  %v3285_v0 = vadd.f32 %v2248_v50, %v1533_v14 }
 0x1b0   : > { %v2188_v5 = vpop.f32.mrb[40].mxu0  ;;  %v3287_v61 = vadd.f32 %v2251_v63, %v1536_v18 }
 0x1b1   : > { %v2252_v44 = vpop.f32.mrb[40].mxu1  ;;  %v2189_v39 = vpop.f32.mrb[41].mxu0 }
 0x1b2   : > { %v2253_v8 = vpop.f32.mrb[41].mxu1  ;;  %v2190_v19 = vadd.f32 %v2189_v39, %v2188_v5  ;;  %v2191_v36 = vpop.f32.mrb[42].mxu0 }
 0x1b3   : > { %v2254_v58 = vadd.f32 %v2253_v8, %v2252_v44  ;;  %v2255_v10 = vpop.f32.mrb[42].mxu1  ;;  %v2192_v11 = vpop.f32.mrb[43].mxu0 }
 0x1b4   : > { %v2256_v4 = vpop.f32.mrb[43].mxu1  ;;  %v1541_v22 = vadd.f32 %v2190_v19, %v3242_v45  ;;  %v2193_v62 = vadd.f32 %v2192_v11, %v2191_v36 }
 0x1b5   : > { %v2257_v47 = vadd.f32 %v2256_v4, %v2255_v10 }
 0x1b6   : > { %v1544_v38 = vadd.f32 %v2193_v62, %v3245_v2  ;;  %v3291_v1 = vadd.f32 %v2254_v58, %v1541_v22 }
 0x1b8   : > { %v2194_v41 = vpop.f32.mrb[44].mxu0  ;;  %v3293_v55 = vadd.f32 %v2257_v47, %v1544_v38 }
 0x1b9   : > { %v2258_v56 = vpop.f32.mrb[44].mxu1  ;;  %v2195_v34 = vpop.f32.mrb[45].mxu0 }
 0x1ba   : > { %v2259_v12 = vpop.f32.mrb[45].mxu1  ;;  %v2196_v28 = vadd.f32 %v2195_v34, %v2194_v41  ;;  %v2197_v51 = vpop.f32.mrb[46].mxu0 }
 0x1bb   : > { %v2260_v52 = vadd.f32 %v2259_v12, %v2258_v56  ;;  %v2261_v15 = vpop.f32.mrb[46].mxu1  ;;  %v2198_v21 = vpop.f32.mrb[47].mxu0 }
 0x1bc   : > { %v2262_v24 = vpop.f32.mrb[47].mxu1  ;;  %v1549_v45 = vadd.f32 %v2196_v28, %v3248_v17  ;;  %v2199_v27 = vadd.f32 %v2198_v21, %v2197_v51 }
 0x1bd   : > { %v2263_v29 = vadd.f32 %v2262_v24, %v2261_v15 }
 0x1be   : > { %v1552_v2 = vadd.f32 %v2199_v27, %v3251_v6  ;;  %v3297_v25 = vadd.f32 %v2260_v52, %v1549_v45 }
 0x1c0   : > { %v2200_v31 = vpop.f32.mrb[48].mxu0  ;;  %v3299_v33 = vadd.f32 %v2263_v29, %v1552_v2 }
 0x1c1   : > { %v2264_v32 = vpop.f32.mrb[48].mxu1  ;;  %v2201_v35 = vpop.f32.mrb[49].mxu0 }
 0x1c2   : > { %v2265_v30 = vpop.f32.mrb[49].mxu1  ;;  %v2202_v26 = vadd.f32 %v2201_v35, %v2200_v31  ;;  %v2203_v42 = vpop.f32.mrb[50].mxu0 }
 0x1c3   : > { %v2266_v37 = vadd.f32 %v2265_v30, %v2264_v32  ;;  %v2267_v46 = vpop.f32.mrb[50].mxu1  ;;  %v2204_v49 = vpop.f32.mrb[51].mxu0 }
 0x1c4   : > { %v2268_v50 = vpop.f32.mrb[51].mxu1  ;;  %v1557_v17 = vadd.f32 %v2202_v26, %v3254_v20  ;;  %v2205_v54 = vadd.f32 %v2204_v49, %v2203_v42 }
 0x1c5   : > { %v2269_v57 = vadd.f32 %v2268_v50, %v2267_v46 }
 0x1c6   : > { %v1560_v6 = vadd.f32 %v2205_v54, %v3257_v23  ;;  %v1654_v59 = vadd.f32 %v2266_v37, %v1557_v17 }
 0x1c8   : > { %v2206_v60 = vpop.f32.mrb[52].mxu0  ;;  %v3303_v3 = vadd.f32 %v2269_v57, %v1560_v6 }
 0x1c9   : > { %v2270_v14 = vpop.f32.mrb[52].mxu1  ;;  %v2207_v63 = vpop.f32.mrb[53].mxu0 }
 0x1ca   : > { %v2271_v18 = vpop.f32.mrb[53].mxu1  ;;  %v2208_v5 = vadd.f32 %v2207_v63, %v2206_v60  ;;  %v2209_v39 = vpop.f32.mrb[54].mxu0 }
 0x1cb   : > { %v2272_v44 = vadd.f32 %v2271_v18, %v2270_v14  ;;  %v2273_v8 = vpop.f32.mrb[54].mxu1  ;;  %v2210_v19 = vpop.f32.mrb[55].mxu0 }
 0x1cc   : > { %v2274_v58 = vpop.f32.mrb[55].mxu1  ;;  %v1565_v36 = vadd.f32 %v2208_v5, %v3260_v43  ;;  %v2211_v20 = vadd.f32 %v2210_v19, %v2209_v39 }
 0x1cd   : > { %v2275_v10 = vadd.f32 %v2274_v58, %v2273_v8 }
 0x1ce   : > { %v1568_v11 = vadd.f32 %v2211_v20, %v3263_v48  ;;  %v1662_v23 = vadd.f32 %v2272_v44, %v1565_v36 }
 0x1d0   : > { %v2212_v4 = vpop.f32.mrb[56].mxu0  ;;  %v1665_v62 = vadd.f32 %v2275_v10, %v1568_v11 }
 0x1d1   : > { %v2276_v22 = vpop.f32.mrb[56].mxu1  ;;  %v2213_v47 = vpop.f32.mrb[57].mxu0 }
 0x1d2   : > { %v2277_v38 = vpop.f32.mrb[57].mxu1  ;;  %v2214_v41 = vadd.f32 %v2213_v47, %v2212_v4  ;;  %v2215_v34 = vpop.f32.mrb[58].mxu0 }
 0x1d3   : > { %v2278_v56 = vadd.f32 %v2277_v38, %v2276_v22  ;;  %v2279_v12 = vpop.f32.mrb[58].mxu1  ;;  %v2216_v28 = vpop.f32.mrb[59].mxu0 }
 0x1d4   : > { %v2280_v52 = vpop.f32.mrb[59].mxu1  ;;  %v1573_v51 = vadd.f32 %v2214_v41, %v3266_v53  ;;  %v2217_v15 = vadd.f32 %v2216_v28, %v2215_v34 }
 0x1d5   : > { %v2281_v43 = vadd.f32 %v2280_v52, %v2279_v12 }
 0x1d6   : > { %v1576_v21 = vadd.f32 %v2217_v15, %v3269_v9  ;;  %v1670_v48 = vadd.f32 %v2278_v56, %v1573_v51 }
 0x1d8   : > { %v2218_v24 = vpop.f32.mrb[60].mxu0  ;;  %v3309_v27 = vadd.f32 %v2281_v43, %v1576_v21 }
 0x1d9   : > { %v2282_v45 = vpop.f32.mrb[60].mxu1  ;;  %v2219_v29 = vpop.f32.mrb[61].mxu0 }
 0x1da   : > { %v2283_v2 = vpop.f32.mrb[61].mxu1  ;;  %v2220_v31 = vadd.f32 %v2219_v29, %v2218_v24  ;;  %v2221_v35 = vpop.f32.mrb[62].mxu0 }
 0x1db   : > { %v2284_v32 = vadd.f32 %v2283_v2, %v2282_v45  ;;  %v2285_v30 = vpop.f32.mrb[62].mxu1  ;;  %v2222_v26 = vpop.f32.mrb[63].mxu0 }
 0x1dc   : > { %v2286_v37 = vpop.f32.mrb[63].mxu1  ;;  %v1581_v53 = vadd.f32 %v2220_v31, %v3272_v16  ;;  %v2223_v42 = vadd.f32 %v2222_v26, %v2221_v35 }
 0x1dd   : > { %v2287_v46 = vadd.f32 %v2286_v37, %v2285_v30 }
 0x1de   : > { %v1584_v9 = vadd.f32 %v2223_v42, %v3275_v13  ;;  %v1678_v49 = vadd.f32 %v2284_v32, %v1581_v53 }
 0x1e0   : > { %v2322_v50 = vpop.f32.mrb[64].mxu0  ;;  %v1681_v54 = vadd.f32 %v2287_v46, %v1584_v9 }
 0x1e1   : > { %v2330_v17 = vpop.f32.mrb[64].mxu1  ;;  %v1727_v57 = vadd.f32 %v2322_v50, %v3285_v0  ;;  %v1718_v60 = vpop.f32.mrb[65].mxu0 }
 0x1e2   : > { %v1759_v6 = vadd.f32 %v2330_v17, %v1662_v23  ;;  %v1750_v14 = vpop.f32.mrb[65].mxu1  ;;  %v1719_v63 = vadd.f32 %v1718_v60, %v3279_v7  ;;  %v2323_v5 = vpop.f32.mrb[66].mxu0 }
 0x1e3   : > { %v1751_v18 = vadd.f32 %v1750_v14, %v1654_v59  ;;  %v2331_v44 = vpop.f32.mrb[66].mxu1  ;;  %1783 = vst [vmem:[%s3316_s20 + $0x10] sm:$0xff] %v1727_v57  ;;  %v1730_v16 = vadd.f32 %v2323_v5, %v3287_v61  ;;  %v1721_v7 = vpop.f32.mrb[67].mxu0 }
 0x1e4   : > { %1791 = vst [vmem:[%s3316_s20 + $0x50] sm:$0xff] %v1759_v6  ;;  %v1762_v13 = vadd.f32 %v2331_v44, %v1665_v62  ;;  %v1753_v0 = vpop.f32.mrb[67].mxu1  ;;  %1781 = vst [vmem:[%s3316_s20] sm:$0xff] %v1719_v63  ;;  %v1722_v59 = vadd.f32 %v1721_v7, %v3281_v40 }
 0x1e5   : > { %1789 = vst [vmem:[%s3316_s20 + $0x40] sm:$0xff] %v1751_v18  ;;  %v1754_v39 = vadd.f32 %v1753_v0, %v3303_v3  ;;  %1784 = vst [vmem:[%s3316_s20 + $0x18] sm:$0xff] %v1730_v16 }
 0x1e6   : > { %1792 = vst [vmem:[%s3316_s20 + $0x58] sm:$0xff] %v1762_v13  ;;  %1782 = vst [vmem:[%s3316_s20 + $0x8] sm:$0xff] %v1722_v59 }
 0x1e7   : > { %1790 = vst [vmem:[%s3316_s20 + $0x48] sm:$0xff] %v1754_v39 }
 0x1e8   : > { %v2326_v8 = vpop.f32.mrb[68].mxu0 }
 0x1e9   : > { %v2334_v19 = vpop.f32.mrb[68].mxu1  ;;  %v1743_v61 = vadd.f32 %v2326_v8, %v3297_v25  ;;  %v1734_v36 = vpop.f32.mrb[69].mxu0 }
 0x1ea   : > { %v1775_v58 = vadd.f32 %v2334_v19, %v1678_v49  ;;  %v1766_v20 = vpop.f32.mrb[69].mxu1  ;;  %v1735_v40 = vadd.f32 %v1734_v36, %v3291_v1  ;;  %v2327_v10 = vpop.f32.mrb[70].mxu0 }
 0x1eb   : > { %v1767_v3 = vadd.f32 %v1766_v20, %v1670_v48  ;;  %v2335_v11 = vpop.f32.mrb[70].mxu1  ;;  %1787 = vst [vmem:[%s3316_s20 + $0x30] sm:$0xff] %v1743_v61  ;;  %v1746_v23 = vadd.f32 %v2327_v10, %v3299_v33  ;;  %v1737_v4 = vpop.f32.mrb[71].mxu0 }
 0x1ec   : > { %1795 = vst [vmem:[%s3316_s20 + $0x70] sm:$0xff] %v1775_v58  ;;  %v1778_v25 = vadd.f32 %v2335_v11, %v1681_v54  ;;  %v1769_v22 = vpop.f32.mrb[71].mxu1  ;;  %1785 = vst [vmem:[%s3316_s20 + $0x20] sm:$0xff] %v1735_v40  ;;  %v1738_v1 = vadd.f32 %v1737_v4, %v3293_v55 }
 0x1ed   : > { %1793 = vst [vmem:[%s3316_s20 + $0x60] sm:$0xff] %v1767_v3  ;;  %v1770_v33 = vadd.f32 %v1769_v22, %v3309_v27  ;;  %1788 = vst [vmem:[%s3316_s20 + $0x38] sm:$0xff] %v1746_v23 }
 0x1ee   : > { %1796 = vst [vmem:[%s3316_s20 + $0x78] sm:$0xff] %v1778_v25  ;;  %1786 = vst [vmem:[%s3316_s20 + $0x28] sm:$0xff] %v1738_v1 }
 0x1ef   : > { %1794 = vst [vmem:[%s3316_s20 + $0x68] sm:$0xff] %v1770_v33 }
 0x1f0   : > { %2607 = shalt.err (!%p2604_p7)
}
 0x1f1   : > { %s2608_s17 = scalar_lea.hbm %s3339_s27, 2048  ;;  %s2612_s4 = scalar_lea.hbm %s3395_s3, 8192 }
 0x1f2   : > { %p2609_p9 = scmp.ne.s32.totalorder %s3339_s27, %s2608_s17  ;;  %p2613_p5 = scmp.lt.u32.totalorder %s3339_s27, %s3395_s3 }
 0x1f3   : > { %p2614_p10 = scmp.lt.u32.totalorder %s2612_s4, %s2608_s17  ;;  %p2616_p2 = scmp.lt.u32.totalorder %s2608_s17, %s3339_s27 }
 0x1f4   : > { %p2610_p12 = pnand %p2609_p9, %p2810_p6 }
 0x1f5   : > { %p2615_p1 = por %p2614_p10, %p2613_p5 }
 0x1f6   : > { %p2611_p0 = pneg %p2610_p12 }
 0x1f7   : > { %p2617_p4 = por %p2616_p2, %p2615_p1 }
 0x1f9   : > { %p2618_p8 = pnand %p2617_p4, %p2611_p0 }
 0x1fb   : > { %2621 = shalt.err (!%p2618_p8)
}
 0x1fc   : > { %s2672_s18 = smov 128   ;;  %s2673_s20 = smov 8  }
 0x1fd   : > { %2365 = dma.vmem_to_hbm [thread:$0]  (%p2810_p6), %s3341_s8, 2048, %s3339_s27, %s1798_s22, %s2672_s18, %s2672_s18, %s2673_s20  }
 0x1fe PF: > { %p2387_p11 = scmp.ge.s32.totalorder %s2664_s15, 2  ;;  %s1826_s7 = sand.u32 1, %s2652_s12  }
 0x1ff   : > { %p3414_p13 = scmp.ne.s32.totalorder %s3400_s19, 0  ;;  %s1827_s16 = scalar_lea.sflag [#allocation4], %s1826_s7 }
 0x201   : > { %p2379_p3 = pnand %p2387_p11, %p3414_p13 }
 0x203   : > { %2647 = dma.done.wait (!%p2379_p3), %s1827_s16, 2048  }
 0x204   : > { %2649 = vsyncadd (!%p2379_p3), %s1827_s16, 4294965248  ;;  %p17_p7 = scmp.ge.s32.totalorder %s2800_s5, 6   ;;  %s3415_s12 = smov %s2656_s13 }
 0x205   : > { %s3416_s13 = smov %s2660_s14  ;;  %s3417_s14 = smov %s2816_s10 }
 0x206   : > { %s3418_s15 = smov %s2800_s5  ;;  %19 = sbr.rel (!%p17_p7) target bundleno = 6 (0x6), region = 85 }
 0x20d   :  { %1832 = vsyncpa [#allocation3], 1 }
 0x20e   :  { %1834 = vsyncpa [#allocation3 + $0x1], 1 }
 0x20f   :  { %1835 = vsyncpa [#allocation6], 1 }
 0x210   :  { %1836 = vsyncpa [#allocation4], 1 }
 0x211   :  { %1838 = vsyncpa [#allocation4 + $0x1], 1 }

// kernel: a_call__.7
= control target key start
LH: loop header
LB: loop body
LE: loop exit
PB: predicated region body
PF: predicated region fallthrough
CT: control target
= control target key end

     0   :  { %8 = vsyncpa [#allocation3], 0  ;;  %s3408_s0 = inlined_call_operand.hbm [shape: bf16[4,10,18,128], index: 0, kind: input, shape index: {}]   ;;  %s3409_s1 = inlined_call_operand.hbm [shape: bf16[1152,128], index: 1, kind: input, shape index: {}]   ;;  %s3410_s2 = inlined_call_operand.hbm [shape: f32[1,128], index: 2, kind: input, shape index: {}]   ;;  %s3411_s3 = inlined_call_operand.hbm [shape: f32[4,8,16,128], index: 3, kind: output, shape index: {}]  }
   0x1   :  { %10 = vsyncpa [#allocation3 + $0x1], 0 }
   0x2   :  { %11 = vsyncpa [#allocation6], 0 }
   0x3   :  { %12 = vsyncpa [#allocation4], 0 }
   0x4   :  { %14 = vsyncpa [#allocation4 + $0x1], 0  ;;  %s2710_s12 = smov 0   ;;  %s2712_s13 = smov 0  }
   0x5   :  { %s2714_s14 = smov 0   ;;  %s2716_s15 = smov 0  }
   0x6 LB: > { %s2731_s16 = sadd.s32 4294967295, %s2680_s15   ;;  %s1919_s17 = sadd.s32 4294967294, %s2680_s15   ;;  %s2680_s15 = sphi %s2716_s15, %s3434_s15   ;;  %s2676_s14 = sphi %s2714_s14, %s3433_s14   ;;  %s2672_s13 = sphi %s2712_s13, %s3432_s13   ;;  %s2668_s12 = sphi %s2710_s12, %s3431_s12  }
   0x7   : > { %p40_p0 = scmp.ne.s32.totalorder %s2672_s13, %s2668_s12  ;;  %p3412_p1 = scmp.eq.s32.totalorder %s2731_s16, 0 }
   0x8   : > { %p112_p3 = scmp.eq.s32.totalorder %s1919_s17, 3  ;;  %p1920_p5 = scmp.ge.s32.totalorder %s2680_s15, 1 }
   0x9   : > { %p2740_p4 = por %p3412_p1, %p40_p0  ;;  %p119_p7 = scmp.lt.s32.totalorder %s2680_s15, 5 }
   0xa   : > { %p2745_p6 = por %p112_p3, %p40_p0  ;;  %s2682_s21 = smov [#allocation5]  }
   0xb   : > { %s3415_s18 = scalar_select %p2740_p4, 1, 0 }
   0xc   : > { %s3416_s19 = scalar_select %p2745_p6, 1, 0 }
   0xd   : > { %p2750_p8 = pnand %p1920_p5, %p119_p7  ;;  %s131_s22 = sshll.u32 %s2682_s21, 4  ;;  %s132_s22 = int_to_ptr.vmem [resolvable:$true] %s131_s22 }
   0xe   : > { %s2683_s24 = smov [#allocation7]   ;;  %s2524_s28 = scalar_lea.hbm %s3409_s1, 9216 }
   0xf   : > { %s3417_s20 = scalar_select %p2750_p8, 1, 0 }
  0x10   : > { %p2383_p9 = pneg %p2750_p8  ;;  %s145_s25 = sshll.u32 %s2683_s24, 4  ;;  %s2762_s25 = int_to_ptr.vmem [resolvable:$true] %s145_s25 }
  0x11   : > { %p2525_p11 = scmp.ne.s32.totalorder %s3409_s1, %s2524_s28  ;;  %p2531_p3 = scmp.lt.u32.totalorder %s2524_s28, %s3409_s1 }
  0x12   : > { %p2758_p10 = pnand %p2383_p9, %p3412_p1 }
  0x14   : > { %p2526_p12 = pneg %p2758_p10 }
  0x16   : > { %p2527_p13 = pnand %p2526_p12, %p2525_p11 }
  0x18   : > { %p2528_p0 = pneg %p2527_p13 }
  0x1a   : > { %p2533_p5 = pnand %p2531_p3, %p2528_p0 }
  0x1c   : > { %2536 = shalt.err (!%p2533_p5)
}
  0x1d   : > { %s2537_s6 = scalar_lea.vmem %s132_s22, 9216  ;;  %p2545_p2 = scmp.lt.s32.totalorder %s132_s22, %s132_s22 }
  0x1e   : > { %p2538_p7 = scmp.ne.s32.totalorder %s132_s22, %s2537_s6  ;;  %p2546_p6 = scmp.lt.s32.totalorder %s2537_s6, %s2537_s6 }
  0x20   : > { %p2540_p9 = pnand %p2538_p7, %p2526_p12  ;;  %p2547_p4 = por %p2546_p6, %p2545_p2 }
  0x22   : > { %p2541_p1 = pneg %p2540_p9 }
  0x24   : > { %p2548_p8 = pnand %p2547_p4, %p2541_p1 }
  0x26   : > { %2551 = shalt.err (!%p2548_p8)
}
  0x27   : > { %s2684_s7 = smov 64   ;;  %s2685_s8 = smov 4  }
  0x28   : > { %2386 = dma.hbm_to_vmem [thread:$0]  (!%p2758_p10), %s3409_s1, 9216, %s132_s22, [#allocation6], %s2684_s7, %s2684_s7, %s2685_s8  }
  0x29   : > { %s2552_s21 = scalar_lea.hbm %s3410_s2, 16 }
  0x2a   : > { %p2553_p1 = scmp.ne.s32.totalorder %s3410_s2, %s2552_s21  ;;  %p2559_p6 = scmp.lt.u32.totalorder %s2552_s21, %s3410_s2 }
  0x2c   : > { %p2555_p2 = pnand %p2553_p1, %p2526_p12 }
  0x2e   : > { %p2556_p4 = pneg %p2555_p2 }
  0x30   : > { %p2561_p8 = pnand %p2559_p6, %p2556_p4 }
  0x32   : > { %2564 = shalt.err (!%p2561_p8)
}
  0x33   : > { %s2565_s22 = scalar_lea.vmem %s2762_s25, 16  ;;  %s2572_s29 = scalar_lea.vmem %s2762_s25, 32 }
  0x34   : > { %p2566_p11 = scmp.ne.s32.totalorder %s2762_s25, %s2565_s22  ;;  %p2573_p3 = scmp.lt.s32.totalorder %s2762_s25, %s2762_s25 }
  0x35   : > { %p2574_p5 = scmp.lt.s32.totalorder %s2572_s29, %s2565_s22 }
  0x36   : > { %p2568_p13 = pnand %p2566_p11, %p2526_p12 }
  0x37   : > { %p2575_p7 = por %p2574_p5, %p2573_p3 }
  0x38   : > { %p2569_p0 = pneg %p2568_p13 }
  0x3a   : > { %p2576_p9 = pnand %p2575_p7, %p2569_p0 }
  0x3c   : > { %2579 = shalt.err (!%p2576_p9)
}
  0x3d   : > { %2389 = dma.hbm_to_vmem [thread:$0]  (!%p2758_p10), %s3410_s2, 16, %s2762_s25, [#allocation6]  }
  0x3e   : > { %s2816_s5 = sadd.s32 1, %s2680_s15   ;;  %s27_s23 = sadd.s32 1, %s2676_s14 }
  0x3f   : > { %s24_s6 = ssub.s32 %s2680_s15, %s2816_s5  ;;  %p34_p12 = scmp.ne.s32.totalorder %s2676_s14, %s2672_s13 }
  0x40   : > { %p25_p1 = scmp.eq.s32.totalorder %s24_s6, 0  ;;  %p35_p2 = scmp.eq.s32.totalorder %s2680_s15, 0 }
  0x41   : > { %p3419_p4 = scmp.eq.s32.totalorder %s2731_s16, 3  ;;  %p2400_p8 = scmp.lt.s32.totalorder %s2680_s15, 4 }
  0x42   : > { %s2832_s10 = scalar_select %p25_p1, %s2676_s14, %s27_s23  }
  0x43   : > { %p2826_p6 = por %p3419_p4, %p34_p12  ;;  %p36_p11 = por %p35_p2, %p34_p12 }
  0x44   : > { %s156_s11 = sand.u32 1, %s2676_s14   ;;  %s2369_s25 = smul.u32 1920, %s2680_s15 }
  0x45   : > { %s2368_s17 = smul.u32 120, %s156_s11  ;;  %p2836_p10 = pnand %p2400_p8, %p36_p11 }
  0x46   : > { %s2843_s27 = scalar_lea.hbm %s3408_s0, %s2369_s25  ;;  %s2847_s29 = scalar_lea.sflag [#allocation3], %s156_s11 }
  0x47   : > { %s160_s28 = scalar_lea.vmem [#allocation2], %s2368_s17  ;;  %s2580_s30 = scalar_lea.hbm %s2843_s27, 1920 }
  0x48   : > { %s167_s22 = sshll.u32 %s160_s28, 4  ;;  %p2581_p13 = scmp.ne.s32.totalorder %s2843_s27, %s2580_s30  ;;  %s2845_s22 = int_to_ptr.vmem [resolvable:$true] %s167_s22 }
  0x49   : > { %p2582_p0 = pneg %p2836_p10  ;;  %s2585_s6 = scalar_lea.hbm %s3408_s0, 7680 }
  0x4a   : > { %p2586_p7 = scmp.lt.u32.totalorder %s2843_s27, %s3408_s0  ;;  %p2587_p9 = scmp.lt.u32.totalorder %s2585_s6, %s2580_s30 }
  0x4b   : > { %p2583_p3 = pnand %p2582_p0, %p2581_p13  ;;  %p2589_p1 = scmp.lt.u32.totalorder %s2580_s30, %s2843_s27 }
  0x4c   : > { %p2588_p12 = por %p2587_p9, %p2586_p7 }
  0x4d   : > { %p2584_p5 = pneg %p2583_p3 }
  0x4e   : > { %p2590_p2 = por %p2589_p1, %p2588_p12 }
  0x50   : > { %p2591_p4 = pnand %p2590_p2, %p2584_p5 }
  0x52   : > { %2594 = shalt.err (!%p2591_p4)
}
  0x53   : > { %s2595_s11 = scalar_lea.vmem %s2845_s22, 1920  ;;  %s2686_s17 = smov [#allocation2]  }
  0x54   : > { %p2596_p8 = scmp.ne.s32.totalorder %s2845_s22, %s2595_s11  ;;  %s2600_s26 = sshll.u32 %s2686_s17, 4  ;;  %s2601_s26 = int_to_ptr.vmem [resolvable:$false] %s2600_s26 }
  0x55   : > { %s2602_s28 = scalar_lea.vmem %s2601_s26, 3840  ;;  %p2603_p3 = scmp.lt.s32.totalorder %s2845_s22, %s2601_s26 }
  0x56   : > { %p2598_p11 = pnand %p2596_p8, %p2582_p0  ;;  %p2604_p7 = scmp.lt.s32.totalorder %s2602_s28, %s2595_s11 }
  0x58   : > { %p2599_p13 = pneg %p2598_p11  ;;  %p2605_p9 = por %p2604_p7, %p2603_p3 }
  0x5a   : > { %p2606_p12 = pnand %p2605_p9, %p2599_p13 }
  0x5c   : > { %2609 = shalt.err (!%p2606_p12)
}
  0x5d   : > { %2393 = dma.hbm_to_vmem [thread:$0]  (!%p2836_p10), %s2843_s27, 1920, %s2845_s22, %s2847_s29, %s2684_s7, %s2684_s7, %s2685_s8  }
  0x5e   : > { %p3422_p0 = scmp.ne.s32.totalorder %s3417_s20, 0 }
  0x5f   : > { %s2881_s30 = sand.u32 (!%p3422_p0), 1, %s2672_s13   ;;  %p3423_p5 = scmp.ne.s32.totalorder (!%p3422_p0), %s3415_s18, 0 }
  0x60   : > { %179 = sbr.rel (%p3422_p0) target bundleno = 512 (0x200), region = 32  ;;  %s182_s23 = scalar_lea.sflag (!%p3422_p0), [#allocation3], %s2881_s30 }
  0x61   : > { %s2370_s4 = smul.u32 (!%p3422_p0), 120, %s2881_s30 }
  0x63   : > { %s2885_s6 = scalar_lea.vmem (!%p3422_p0), [#allocation2], %s2370_s4 }
  0x67   : > { %2655 = dma.done.wait (%p3423_p5), %s182_s23, 1920  }
  0x68   : > { %2657 = vsyncadd (%p3423_p5), %s182_s23, 4294965376  ;;  %p3424_p10 = scmp.eq.s32.totalorder %s2731_s16, 0 }
  0x6a   : > { %2659 = dma.done.wait (%p3424_p10), [#allocation6], 9232   ;;  %p3425_p1 = pmov %p3424_p10 }
  0x6b   : > { %v2442_v0 = vld [vmem:[#allocation5 + $0x40] sm:$0xff]   ;;  %v2446_v4 = vld [vmem:[#allocation5 + $0x48] sm:$0xff]   ;;  %v2450_v8 = vld [vmem:[#allocation5 + $0x50] sm:$0xff]   ;;  %vm247_vm0 = vsmask.f32 3328  ;;  %vm466_vm2 = vcmask 1042432  }
  0x6c   : > { %2661 = vsyncadd (%p3425_p1), [#allocation6], 4294958064  ;;  %v2443_v1 = vld [vmem:[#allocation5 + $0xc0] sm:$0xff]   ;;  %2048 = vmatprep.subr.bf16.mxu0 %v2442_v0  ;;  %v2447_v5 = vld [vmem:[#allocation5 + $0xc8] sm:$0xff]   ;;  %vm248_vm1 = vsmask.f32 7440 }
  0x6d   : > { %v2444_v2 = vld [vmem:[#allocation5] sm:$0xff]   ;;  %2112 = vmatprep.subr.bf16.mxu1 %v2443_v1  ;;  %v2448_v6 = vld [vmem:[#allocation5 + $0x8] sm:$0xff]   ;;  %v2451_v9 = vld [vmem:[#allocation5 + $0xd0] sm:$0xff]   ;;  %vm467_vm3 = vcmask 1046532   ;;  %s1928_s18 = sshll.u32 %s2881_s30, 7  ;;  %s2047_s7 = sshll.u32 %s2731_s16, 11 }
  0x6e   : > { %v2445_v3 = vld [vmem:[#allocation5 + $0x80] sm:$0xff]   ;;  %2049 = vmatpush3.bf16.msra.mxu0 %v2444_v2  ;;  %v2449_v7 = vld [vmem:[#allocation5 + $0x88] sm:$0xff]   ;;  %v2452_v10 = vld [vmem:[#allocation5 + $0x10] sm:$0xff]   ;;  %s3335_s20 = scalar_lea.vmem [#allocation8], %s1928_s18  ;;  %s3357_s27 = scalar_lea.hbm %s3411_s3, %s2047_s7 }
  0x6f   : > { %2113 = vmatpush3.bf16.msra.mxu1 %v2445_v3  ;;  %2050 = vmatprep.subr.bf16.mxu0 %v2446_v4  ;;  %v2453_v11 = vld [vmem:[#allocation5 + $0x90] sm:$0xff]   ;;  %v2454_v12 = vld [vmem:[#allocation5 + $0x58] sm:$0xff]   ;;  %v2458_v16 = vld [vmem:[#allocation5 + $0x60] sm:$0xff]   ;;  %s1827_s8 = sshll.u32 %s3335_s20, 4  ;;  %s1814_s22 = scalar_lea.sflag [#allocation4], %s2881_s30  ;;  %s3359_s8 = int_to_ptr.vmem [resolvable:$true] %s1827_s8 }
  0x70   : > { %2114 = vmatprep.subr.bf16.mxu1 %v2447_v5  ;;  %v2455_v13 = vld [vmem:[#allocation5 + $0xd8] sm:$0xff]   ;;  %v2459_v17 = vld [vmem:[#allocation5 + $0xe0] sm:$0xff]   ;;  %v2462_v20 = vld [vmem:[#allocation5 + $0x68] sm:$0xff]   ;;  %s2610_s29 = scalar_lea.vmem %s3359_s8, 2048  ;;  %s2687_s25 = smov [#allocation8]  }
  0x71   : > { %v2456_v14 = vld [vmem:[#allocation5 + $0x18] sm:$0xff]   ;;  %v2460_v18 = vld [vmem:[#allocation5 + $0x20] sm:$0xff]   ;;  %v2463_v21 = vld [vmem:[#allocation5 + $0xe8] sm:$0xff]   ;;  %p2611_p2 = scmp.ne.s32.totalorder %s3359_s8, %s2610_s29  ;;  %s2614_s24 = sshll.u32 %s2687_s25, 4  ;;  %s2615_s24 = int_to_ptr.vmem [resolvable:$false] %s2614_s24 }
  0x72   : > { %2051 = vmatpush3.bf16.msra.mxu0 %v2448_v6  ;;  %v2457_v15 = vld [vmem:[#allocation5 + $0x98] sm:$0xff]   ;;  %v2461_v19 = vld [vmem:[#allocation5 + $0xa0] sm:$0xff]   ;;  %v2464_v22 = vld [vmem:[#allocation5 + $0x28] sm:$0xff]   ;;  %s2616_s11 = scalar_lea.vmem %s2615_s24, 4096  ;;  %p2617_p11 = scmp.lt.s32.totalorder %s3359_s8, %s2615_s24 }
  0x73   : > { %2115 = vmatpush3.bf16.msra.mxu1 %v2449_v7  ;;  %2052 = vmatprep.subr.bf16.mxu0 %v2450_v8  ;;  %v2465_v23 = vld [vmem:[#allocation5 + $0xa8] sm:$0xff]   ;;  %v2466_v24 = vld [vmem:[#allocation5 + $0x70] sm:$0xff]   ;;  %v2470_v28 = vld [vmem:[#allocation5 + $0x78] sm:$0xff]   ;;  %p2612_p4 = pnand %p2611_p2, %p2826_p6  ;;  %p2618_p13 = scmp.lt.s32.totalorder %s2616_s11, %s2610_s29 }
  0x74   : > { %2116 = vmatprep.subr.bf16.mxu1 %v2451_v9  ;;  %v2467_v25 = vld [vmem:[#allocation5 + $0xf0] sm:$0xff]   ;;  %v2471_v29 = vld [vmem:[#allocation5 + $0xf8] sm:$0xff]   ;;  %vm2917_vm4 = vmor %vm466_vm2, %vm467_vm3 }
  0x75   : > { %v2468_v26 = vld [vmem:[#allocation5 + $0x30] sm:$0xff]   ;;  %v2472_v30 = vld [vmem:[#allocation5 + $0x38] sm:$0xff]   ;;  %v2476_v57 = vld [vmem:[#allocation5 + $0x140] sm:$0xff]   ;;  %p2613_p8 = pneg %p2612_p4  ;;  %p2619_p3 = por %p2618_p13, %p2617_p11 }
  0x76   : > { %2053 = vmatpush3.bf16.msra.mxu0 %v2452_v10  ;;  %v2469_v27 = vld [vmem:[#allocation5 + $0xb0] sm:$0xff]   ;;  %v2473_v31 = vld [vmem:[#allocation5 + $0xb8] sm:$0xff]   ;;  %vm2928_vm5 = vmor %vm247_vm0, %vm248_vm1 }
  0x77   : > { %2117 = vmatpush3.bf16.msra.mxu1 %v2453_v11  ;;  %2054 = vmatprep.subr.bf16.mxu0 %v2454_v12  ;;  %v2896_v32 = vld [vmem:[%s2885_s6] sm:$0xf]  ;;  %v2899_v33 = vld [vmem:[%s2885_s6 + $0x4] sm:$0xf]  ;;  %v219_v34 = vld [vmem:[%s2885_s6 + $0x8] sm:$0x1]  ;;  %p2620_p7 = pnand %p2619_p3, %p2613_p8 }
  0x78   : > { %2118 = vmatprep.subr.bf16.mxu1 %v2455_v13  ;;  %v251_v35 = vshrl.u32 %v2896_v32, 16  ;;  %v254_v36 = vshll.u32 %v2896_v32, 16  ;;  %v260_v37 = vshll.u32 %v2899_v33, 16  ;;  %v264_v38 = vshrl.u32 %v2899_v33, 16  ;;  %v2907_v39 = vld [vmem:[%s2885_s6 + $0xc] sm:$0xf] }
  0x79   : > { %v270_v40 = vshll.u32 %v219_v34, 16  ;;  %v2910_v41 = vld [vmem:[%s2885_s6 + $0x10] sm:$0xf]  ;;  %v275_v42 = vshrl.u32 %v2907_v39, 16  ;;  %v278_v43 = vshll.u32 %v2907_v39, 16  ;;  %v474_v59 = vrot.slane %v219_v34, 5 }
  0x7a   : > { %2055 = vmatpush3.bf16.msra.mxu0 %v2456_v14  ;;  %v253_v44 = vrot.slane %v251_v35, 4  ;;  %v256_v45 = vrot.slane %v254_v36, 5  ;;  %v262_v46 = vrot.slane %v260_v37, 5  ;;  %v266_v47 = vrot.slane %v264_v38, 4  ;;  %v2477_v62 = vld [vmem:[#allocation5 + $0x1c0] sm:$0xff]   ;;  %v2483_v34 = vld [vmem:[#allocation5 + $0x108] sm:$0xff]  }
  0x7b   : > { %2119 = vmatpush3.bf16.msra.mxu1 %v2457_v15  ;;  %2056 = vmatprep.subr.bf16.mxu0 %v2458_v16  ;;  %v272_v48 = vrot.slane %v270_v40, 5  ;;  %v277_v49 = vrot.slane %v275_v42, 4  ;;  %v280_v50 = vrot.slane %v278_v43, 5  ;;  %v284_v51 = vshll.u32 %v2910_v41, 16  ;;  %v2478_v6 = vld [vmem:[#allocation5 + $0x100] sm:$0xff]   ;;  %v2484_v36 = vld [vmem:[#allocation5 + $0x188] sm:$0xff]  }
  0x7c   : > { %2120 = vmatprep.subr.bf16.mxu1 %v2459_v17  ;;  %v257_v53 = vor.u32 %v256_v45, %v253_v44  ;;  %v267_v54 = vor.u32 %v266_v47, %v262_v46  ;;  %v288_v55 = vshrl.u32 %v2910_v41, 16  ;;  %v2924_v56 = vcombine.low %v2907_v39, %v2910_v41  ;;  %v2479_v7 = vld [vmem:[#allocation5 + $0x180] sm:$0xff]   ;;  %v225_v37 = vld [vmem:[%s2885_s6 + $0x20] sm:$0x1]  ;;  %v2975_v45 = vld [vmem:[%s2885_s6 + $0x24] sm:$0xf] }
  0x7d   : > { %v1929_v60 = vrot.slane %v2896_v32, 9  ;;  %v471_v61 = vrot.slane %v2899_v33, 5  ;;  %v281_v63 = vor.u32 %v280_v50, %v277_v49  ;;  %v1939_v3 = vcombine.low %v2896_v32, %v2899_v33  ;;  %v222_v11 = vld [vmem:[%s2885_s6 + $0x14] sm:$0x1]  ;;  %v2945_v13 = vld [vmem:[%s2885_s6 + $0x18] sm:$0xf] }
  0x7e   : > { %2057 = vmatpush3.bf16.msra.mxu0 %v2460_v18  ;;  %v258_v0 = vrot.slane %v257_v53, 4  ;;  %v268_v1 = vrot.slane %v267_v54, 4  ;;  %v290_v2 = vrot.slane %v288_v55, 4  ;;  %1425 = vmatprep.mubr.bf16.mxu1 %v2924_v56  ;;  %v286_v12 = vrot.slane %v284_v51, 5  ;;  %v2951_v18 = vld [vmem:[%s2885_s6 + $0x1c] sm:$0xf] }
  0x7f   : > { %2121 = vmatpush3.bf16.msra.mxu1 %v2461_v19  ;;  %2058 = vmatprep.subr.bf16.mxu0 %v2462_v20  ;;  %v472_v4 = vsel %vm2917_vm4, %v1929_v60, %v471_v61  ;;  %v473_v5 = vrot.slane %v471_v61, 4  ;;  %v282_v8 = vrot.slane %v281_v63, 4  ;;  %v1930_v14 = vrot.slane %v2907_v39, 9  ;;  %v2487_v63 = vld [vmem:[#allocation5 + $0x1d0] sm:$0xff]  }
  0x80   : > { %2122 = vmatprep.subr.bf16.mxu1 %v2463_v21  ;;  %v263_v9 = vsel %vm2928_vm5, %v258_v0, %v262_v46  ;;  %v273_v10 = vsel %vm2928_vm5, %v268_v1, %v272_v48  ;;  %v294_v17 = vshll.u32 %v222_v11, 16  ;;  %v299_v19 = vshrl.u32 %v2945_v13, 16  ;;  %v2978_v46 = vld [vmem:[%s2885_s6 + $0x28] sm:$0xf] }
  0x81   : > { %v1947_v15 = vcombine.low %v263_v9, %v273_v10  ;;  %v475_v16 = vsel %vm2917_vm4, %v473_v5, %v474_v59  ;;  %v291_v21 = vor.u32 %v290_v2, %v286_v12  ;;  %v308_v40 = vshll.u32 %v2951_v18, 16  ;;  %v2488_v1 = vld [vmem:[#allocation5 + $0x110] sm:$0xff]  }
  0x82   : > { %2059 = vmatpush3.bf16.msra.mxu0 %v2464_v22  ;;  %v1955_v20 = vcombine.low %v472_v4, %v475_v16  ;;  %v302_v22 = vshll.u32 %v2945_v13, 16  ;;  %v301_v38 = vrot.slane %v299_v19, 4  ;;  %v318_v44 = vshll.u32 %v225_v37, 16 }
  0x83   : > { %2123 = vmatpush3.bf16.msra.mxu1 %v2465_v23  ;;  %2060 = vmatprep.subr.bf16.mxu0 %v2466_v24  ;;  %v2481_v23 = vld [vmem:[#allocation5 + $0x148] sm:$0xff]   ;;  %v296_v24 = vrot.slane %v294_v17, 5  ;;  %v310_v49 = vrot.slane %v308_v40, 5  ;;  %v323_v50 = vshrl.u32 %v2975_v45, 16  ;;  %v326_v53 = vshll.u32 %v2975_v45, 16 }
  0x84   : > { %2124 = vmatprep.subr.bf16.mxu1 %v2467_v25  ;;  %1328 = vmatprep.mubr.bf16.mxu0 %v1947_v15  ;;  %v312_v25 = vshrl.u32 %v2951_v18, 16  ;;  %v304_v39 = vrot.slane %v302_v22, 5  ;;  %v320_v51 = vrot.slane %v318_v44, 5  ;;  %v336_v54 = vshrl.u32 %v2978_v46, 16  ;;  %v3009_v15 = vld [vmem:[%s2885_s6 + $0x34] sm:$0xf] }
  0x85   : > { %v2988_v55 = vcombine.low %v2975_v45, %v2978_v46  ;;  %v1931_v61 = vrot.slane %v2945_v13, 9  ;;  %v488_v0 = vrot.slane %v225_v37, 5  ;;  %v328_v9 = vrot.slane %v326_v53, 5 }
  0x86   : > { %2061 = vmatpush3.bf16.msra.mxu0 %v2468_v26  ;;  %v2958_v26 = vcombine.low %v2945_v13, %v2951_v18  ;;  %v314_v43 = vrot.slane %v312_v25, 4  ;;  %v305_v48 = vor.u32 %v304_v39, %v301_v38  ;;  %v231_v39 = vld [vmem:[%s2885_s6 + $0x38] sm:$0x1] }
  0x87   : > { %2125 = vmatpush3.bf16.msra.mxu1 %v2469_v27  ;;  %2062 = vmatprep.subr.bf16.mxu0 %v2470_v28  ;;  %v478_v27 = vrot.slane %v2910_v41, 5  ;;  %v2482_v28 = vld [vmem:[#allocation5 + $0x1c8] sm:$0xff]  }
  0x88   : > { %2126 = vmatprep.subr.bf16.mxu1 %v2471_v29  ;;  %v287_v29 = vsel %vm2928_vm5, %v282_v8, %v286_v12  ;;  %v306_v59 = vrot.slane %v305_v48, 4  ;;  %v315_v60 = vor.u32 %v314_v43, %v310_v49  ;;  %v325_v8 = vrot.slane %v323_v50, 4  ;;  %v2496_v43 = vld [vmem:[#allocation5 + $0x160] sm:$0xff]  }
  0x89   : > { %v479_v32 = vsel %vm2917_vm4, %v1930_v14, %v478_v27  ;;  %v480_v33 = vrot.slane %v478_v27, 4  ;;  %v338_v12 = vrot.slane %v336_v54, 4  ;;  %v3006_v14 = vld [vmem:[%s2885_s6 + $0x30] sm:$0xf]  ;;  %v366_v48 = vshll.u32 %v231_v39, 16 }
  0x8a   : > { %2063 = vmatpush3.bf16.msra.mxu0 %v2472_v30  ;;  %v292_v30 = vrot.slane %v291_v21, 4  ;;  %v311_v2 = vsel %vm2928_vm5, %v306_v59, %v310_v49  ;;  %v347_v22 = vshrl.u32 %v3006_v14, 16  ;;  %v3037_v49 = vld [vmem:[%s2885_s6 + $0x3c] sm:$0xf] }
  0x8b   : > { %2127 = vmatpush3.bf16.msra.mxu1 %v2473_v31  ;;  %2176 = vmatprep.subr.bf16.mxu0 %v2476_v57  ;;  %v481_v31 = vrot.slane %v222_v11, 5  ;;  %v2486_v57 = vld [vmem:[#allocation5 + $0x150] sm:$0xff]   ;;  %v2497_v50 = vld [vmem:[#allocation5 + $0x1e0] sm:$0xff]   ;;  %v371_v59 = vshrl.u32 %v3037_v49, 16 }
  0x8c   : > { %2240 = vmatprep.subr.bf16.mxu1 %v2477_v62  ;;  %v297_v35 = vsel %vm2928_vm5, %v292_v30, %v296_v24  ;;  %v485_v62 = vrot.slane %v2951_v18, 5  ;;  %v329_v18 = vor.u32 %v328_v9, %v325_v8  ;;  %v360_v24 = vshrl.u32 %v3009_v15, 16  ;;  %v2492_v30 = vld [vmem:[#allocation5 + $0x1d8] sm:$0xff]  }
  0x8d   : > { %1329 = vmatmul.mubr.bf16.vlgmr.msra.gmra.mrb[0].mxu0 %v1939_v3  ;;  %v2970_v41 = vcombine.low %v287_v29, %v297_v35  ;;  %v482_v42 = vsel %vm2917_vm4, %v480_v33, %v481_v31  ;;  %v316_v3 = vrot.slane %v315_v60, 4  ;;  %v1932_v29 = vrot.slane %v2975_v45, 9  ;;  %v2493_v31 = vld [vmem:[#allocation5 + $0x118] sm:$0xff]   ;;  %v2498_v60 = vld [vmem:[#allocation5 + $0x120] sm:$0xff]  }
  0x8e   : > { %1426 = vmatmul.mubr.bf16.vlgmr.msra.gmra.mrb[0].mxu1 %v1955_v20  ;;  %2177 = vmatpush3.bf16.msra.mxu0 %v2478_v6  ;;  %v2980_v47 = vcombine.low %v479_v32, %v482_v42  ;;  %v486_v4 = vsel %vm2917_vm4, %v1931_v61, %v485_v62  ;;  %v487_v5 = vrot.slane %v485_v62, 4  ;;  %v2489_v6 = vld [vmem:[#allocation5 + $0x190] sm:$0xff]   ;;  %v2491_v20 = vld [vmem:[#allocation5 + $0x158] sm:$0xff]   ;;  %v330_v25 = vrot.slane %v329_v18, 4  ;;  %v2502_v18 = vld [vmem:[#allocation5 + $0x1e8] sm:$0xff]  }
  0x8f   : > { %2241 = vmatpush3.bf16.msra.mxu1 %v2479_v7  ;;  %1433 = vmatprep.mubr.bf16.mxu1 %v2958_v26  ;;  %v228_v7 = vld [vmem:[%s2885_s6 + $0x2c] sm:$0x1]  ;;  %v321_v10 = vsel %vm2928_vm5, %v316_v3, %v320_v51  ;;  %v492_v32 = vrot.slane %v2978_v46, 5  ;;  %v349_v40 = vrot.slane %v347_v22, 4  ;;  %v356_v45 = vshll.u32 %v3009_v15, 16 }
  0x90   : > { %2178 = vmatprep.subr.bf16.mxu0 %v2481_v23  ;;  %2242 = vmatprep.subr.bf16.mxu1 %v2482_v28  ;;  %v489_v11 = vsel %vm2917_vm4, %v487_v5, %v488_v0  ;;  %v342_v13 = vshll.u32 %v228_v7, 16  ;;  %v3011_v16 = vcombine.low %v311_v2, %v321_v10  ;;  %v350_v23 = vshll.u32 %v3006_v14, 16  ;;  %v2499_v0 = vld [vmem:[#allocation5 + $0x1a0] sm:$0xff]   ;;  %v2501_v5 = vld [vmem:[#allocation5 + $0x168] sm:$0xff]   ;;  %v3067_v22 = vld [vmem:[%s2885_s6 + $0x48] sm:$0xf] }
  0x91   : > { %1336 = vmatprep.mubr.bf16.mxu0 %v2970_v41  ;;  %v3013_v17 = vcombine.low %v486_v4, %v489_v11  ;;  %v3021_v28 = vcombine.low %v3006_v14, %v3009_v15  ;;  %v495_v33 = vrot.slane %v228_v7, 5  ;;  %v493_v37 = vsel %vm2917_vm4, %v1932_v29, %v492_v32 }
  0x92   : > { %2179 = vmatpush3.bf16.msra.mxu0 %v2483_v34  ;;  %v344_v21 = vrot.slane %v342_v13, 5  ;;  %v494_v38 = vrot.slane %v492_v32, 4  ;;  %v352_v42 = vrot.slane %v350_v23, 5  ;;  %v358_v61 = vrot.slane %v356_v45, 5  ;;  %v234_v13 = vld [vmem:[%s2885_s6 + $0x44] sm:$0x1] }
  0x93   : > { %2243 = vmatpush3.bf16.msra.mxu1 %v2484_v36  ;;  %2180 = vmatprep.subr.bf16.mxu0 %v2486_v57  ;;  %v2494_v36 = vld [vmem:[#allocation5 + $0x198] sm:$0xff]   ;;  %v3044_v57 = vld [vmem:[%s2885_s6 + $0x40] sm:$0xf]  ;;  %v368_v62 = vrot.slane %v366_v48, 5  ;;  %v1933_v4 = vrot.slane %v3006_v14, 9  ;;  %v499_v8 = vrot.slane %v3009_v15, 5 }
  0x94   : > { %2244 = vmatprep.subr.bf16.mxu1 %v2487_v63  ;;  %v496_v53 = vsel %vm2917_vm4, %v494_v38, %v495_v33  ;;  %v353_v54 = vor.u32 %v352_v42, %v349_v40  ;;  %v374_v63 = vshll.u32 %v3037_v49, 16  ;;  %v384_v3 = vshrl.u32 %v3044_v57, 16  ;;  %v2503_v33 = vld [vmem:[#allocation5 + $0x128] sm:$0xff]  }
  0x95   : > { %1337 = vmatmul.mubr.bf16.gmra.mrb[4].mxu0 %v2924_v56  ;;  %v332_v56 = vshll.u32 %v2978_v46, 16  ;;  %v362_v46 = vrot.slane %v360_v24, 4  ;;  %v3055_v7 = vcombine.low %v3037_v49, %v3044_v57  ;;  %v502_v9 = vrot.slane %v231_v39, 5  ;;  %v2504_v38 = vld [vmem:[#allocation5 + $0x1a8] sm:$0xff]  }
  0x96   : > { %1434 = vmatmul.mubr.bf16.gmra.mrb[4].mxu1 %v2980_v47  ;;  %2181 = vmatpush3.bf16.msra.mxu0 %v2488_v1  ;;  %v3049_v1 = vcombine.low %v493_v37, %v496_v53  ;;  %v354_v2 = vrot.slane %v353_v54, 4  ;;  %v500_v11 = vsel %vm2917_vm4, %v1933_v4, %v499_v8  ;;  %v373_v14 = vrot.slane %v371_v59, 4  ;;  %v3095_v53 = vld [vmem:[%s2885_s6 + $0x54] sm:$0xf] }
  0x97   : > { %1441 = vmatprep.mubr.bf16.mxu1 %v2988_v55  ;;  %2245 = vmatpush3.bf16.msra.mxu1 %v2489_v6  ;;  %v334_v19 = vrot.slane %v332_v56, 5  ;;  %v363_v6 = vor.u32 %v362_v46, %v358_v61  ;;  %v376_v15 = vrot.slane %v374_v63, 5  ;;  %v398_v29 = vshll.u32 %v3067_v22, 16 }
  0x98   : > { %1344 = vmatprep.mubr.bf16.mxu0 %v3011_v16  ;;  %2182 = vmatprep.subr.bf16.mxu0 %v2491_v20  ;;  %v359_v56 = vsel %vm2928_vm5, %v354_v2, %v358_v61  ;;  %v386_v20 = vrot.slane %v384_v3, 4  ;;  %v1934_v37 = vrot.slane %v3037_v49, 9  ;;  %v506_v42 = vrot.slane %v3044_v57, 5  ;;  %v3099_v61 = vld [vmem:[%s2885_s6 + $0x58] sm:$0xf] }
  0x99   : > { %v339_v27 = vor.u32 %v338_v12, %v334_v19  ;;  %v335_v34 = vsel %vm2928_vm5, %v330_v25, %v334_v19  ;;  %2246 = vmatprep.subr.bf16.mxu1 %v2492_v30  ;;  %v364_v10 = vrot.slane %v363_v6, 4  ;;  %v501_v12 = vrot.slane %v499_v8, 4  ;;  %v3075_v25 = vld [vmem:[%s2885_s6 + $0x4c] sm:$0xf] }
  0x9a   : > { %2183 = vmatpush3.bf16.msra.mxu0 %v2493_v31  ;;  %v380_v19 = vshll.u32 %v3044_v57, 16  ;;  %v377_v31 = vor.u32 %v376_v15, %v373_v14  ;;  %v3089_v45 = vcombine.low %v3067_v22, %v3075_v25  ;;  %v508_v49 = vrot.slane %v506_v42, 4  ;;  %v2507_v8 = vld [vmem:[#allocation5 + $0x1f0] sm:$0xff]  }
  0x9b   : > { %v340_v35 = vrot.slane %v339_v27, 4  ;;  %2247 = vmatpush3.bf16.msra.mxu1 %v2494_v36  ;;  %2184 = vmatprep.subr.bf16.mxu0 %v2496_v43  ;;  %v369_v23 = vsel %vm2928_vm5, %v364_v10, %v368_v62  ;;  %v503_v24 = vsel %vm2917_vm4, %v501_v12, %v502_v9  ;;  %v395_v27 = vshrl.u32 %v3067_v22, 16  ;;  %v2508_v10 = vld [vmem:[#allocation5 + $0x130] sm:$0xff]  }
  0x9c   : > { %2248 = vmatprep.subr.bf16.mxu1 %v2497_v50  ;;  %v3079_v30 = vcombine.low %v359_v56, %v369_v23  ;;  %v382_v32 = vrot.slane %v380_v19, 5  ;;  %v408_v36 = vshrl.u32 %v3075_v25, 16  ;;  %v378_v39 = vrot.slane %v377_v31, 4  ;;  %v237_v50 = vld [vmem:[%s2885_s6 + $0x50] sm:$0x1] }
  0x9d   : > { %1345 = vmatmul.mubr.bf16.gmra.mrb[8].mxu0 %v2958_v26  ;;  %v345_v44 = vsel %vm2928_vm5, %v340_v35, %v344_v21  ;;  %v390_v21 = vshll.u32 %v234_v13, 16  ;;  %v509_v43 = vrot.slane %v234_v13, 5  ;;  %v397_v54 = vrot.slane %v395_v27, 4 }
  0x9e   : > { %1442 = vmatmul.mubr.bf16.gmra.mrb[8].mxu1 %v3013_v17  ;;  %v3039_v51 = vcombine.low %v335_v34, %v345_v44  ;;  %2185 = vmatpush3.bf16.msra.mxu0 %v2498_v60  ;;  %v3081_v34 = vcombine.low %v500_v11, %v503_v24  ;;  %v387_v40 = vor.u32 %v386_v20, %v382_v32  ;;  %v2506_v44 = vld [vmem:[#allocation5 + $0x170] sm:$0xff]   ;;  %v400_v57 = vrot.slane %v398_v29, 5 }
  0x9f   : > { %1449 = vmatprep.mubr.bf16.mxu1 %v3021_v28  ;;  %2249 = vmatpush3.bf16.msra.mxu1 %v2499_v0  ;;  %v392_v35 = vrot.slane %v390_v21, 5  ;;  %v383_v46 = vsel %vm2928_vm5, %v378_v39, %v382_v32  ;;  %v404_v59 = vshll.u32 %v3075_v25, 16  ;;  %v410_v60 = vrot.slane %v408_v36, 4  ;;  %v3135_v39 = vld [vmem:[%s2885_s6 + $0x60] sm:$0xf] }
  0xa0   : > { %1352 = vmatprep.mubr.bf16.mxu0 %v3039_v51  ;;  %2186 = vmatprep.subr.bf16.mxu0 %v2501_v5  ;;  %v388_v48 = vrot.slane %v387_v40, 4  ;;  %v507_v63 = vsel %vm2917_vm4, %v1934_v37, %v506_v42  ;;  %v414_v0 = vshll.u32 %v237_v50, 16  ;;  %v419_v2 = vshrl.u32 %v3095_v53, 16  ;;  %v2511_v40 = vld [vmem:[#allocation5 + $0x178] sm:$0xff]  }
  0xa1   : > { %2250 = vmatprep.subr.bf16.mxu1 %v2502_v18  ;;  %v510_v4 = vsel %vm2917_vm4, %v508_v49, %v509_v43  ;;  %v401_v5 = vor.u32 %v400_v57, %v397_v54  ;;  %v406_v6 = vrot.slane %v404_v59, 5  ;;  %v422_v9 = vshll.u32 %v3095_v53, 16  ;;  %v2509_v18 = vld [vmem:[#allocation5 + $0x1b0] sm:$0xff]   ;;  %v2513_v57 = vld [vmem:[#allocation5 + $0x138] sm:$0xff]  }
  0xa2   : > { %2187 = vmatpush3.bf16.msra.mxu0 %v2503_v33  ;;  %v393_v62 = vsel %vm2928_vm5, %v388_v48, %v392_v35  ;;  %v432_v56 = vshrl.u32 %v3099_v61, 16  ;;  %v416_v13 = vrot.slane %v414_v0, 5  ;;  %v513_v14 = vrot.slane %v3075_v25, 5  ;;  %v240_v25 = vld [vmem:[%s2885_s6 + $0x5c] sm:$0x1] }
  0xa3   : > { %2251 = vmatpush3.bf16.msra.mxu1 %v2504_v38  ;;  %2188 = vmatprep.subr.bf16.mxu0 %v2506_v44  ;;  %v3108_v3 = vcombine.low %v383_v46, %v393_v62  ;;  %v402_v11 = vrot.slane %v401_v5, 4  ;;  %v411_v12 = vor.u32 %v410_v60, %v406_v6  ;;  %v3117_v15 = vcombine.low %v507_v63, %v510_v4  ;;  %v3143_v44 = vld [vmem:[%s2885_s6 + $0x64] sm:$0xf]  ;;  %v2512_v46 = vld [vmem:[#allocation5 + $0x1f8] sm:$0xff]  }
  0xa4   : > { %2252 = vmatprep.subr.bf16.mxu1 %v2507_v8  ;;  %v3121_v19 = vcombine.low %v3095_v53, %v3099_v61  ;;  %v1935_v20 = vrot.slane %v3067_v22, 9  ;;  %v421_v21 = vrot.slane %v419_v2, 4  ;;  %v515_v27 = vrot.slane %v513_v14, 4  ;;  %v2514_v60 = vld [vmem:[#allocation5 + $0x1b8] sm:$0xff]  }
  0xa5   : > { %1353 = vmatmul.mubr.bf16.gmra.mrb[12].mxu0 %v2988_v55  ;;  %v407_v23 = vsel %vm2928_vm5, %v402_v11, %v406_v6  ;;  %v412_v24 = vrot.slane %v411_v12, 4  ;;  %v516_v29 = vrot.slane %v237_v50, 5  ;;  %v424_v31 = vrot.slane %v422_v9, 5  ;;  %v2517_v11 = vld [vmem:[#allocation5 + $0x210] sm:$0xff]  }
  0xa6   : > { %1450 = vmatmul.mubr.bf16.gmra.mrb[12].mxu1 %v3049_v1  ;;  %1360 = vmatprep.mubr.bf16.mxu0 %v3079_v30  ;;  %v428_v32 = vshll.u32 %v3099_v61, 16  ;;  %v434_v33 = vrot.slane %v432_v56, 4  ;;  %v438_v35 = vshll.u32 %v240_v25, 16  ;;  %v514_v42 = vsel %vm2917_vm4, %v1935_v20, %v513_v14 }
  0xa7   : > { %1457 = vmatprep.mubr.bf16.mxu1 %v3055_v7  ;;  %2189 = vmatpush3.bf16.msra.mxu0 %v2508_v10  ;;  %v417_v22 = vsel %vm2928_vm5, %v412_v24, %v416_v13  ;;  %v425_v37 = vor.u32 %v424_v31, %v421_v21  ;;  %v517_v43 = vsel %vm2917_vm4, %v515_v27, %v516_v29  ;;  %v520_v54 = vrot.slane %v3099_v61, 5  ;;  %v2515_v61 = vld [vmem:[#allocation5 + $0x200] sm:$0xff]   ;;  %v2516_v10 = vld [vmem:[#allocation5 + $0x208] sm:$0xff]   ;;  %v243_v21 = vld [vmem:[%s2885_s6 + $0x68] sm:$0x1] }
  0xa8   : > { %2253 = vmatpush3.bf16.msra.mxu1 %v2509_v18  ;;  %v3132_v36 = vcombine.low %v407_v23, %v417_v22  ;;  %v430_v38 = vrot.slane %v428_v32, 5  ;;  %v440_v50 = vrot.slane %v438_v35, 5  ;;  %2190 = vmatprep.subr.bf16.mxu0 %v2511_v40  ;;  %v1936_v59 = vrot.slane %v3095_v53, 9  ;;  %v3192_v23 = vld [vmem:[%s2885_s6 + $0x6c] sm:$0xf] }
  0xa9   : > { %v426_v48 = vrot.slane %v425_v37, 4  ;;  %2254 = vmatprep.subr.bf16.mxu1 %v2512_v46  ;;  %v3148_v62 = vcombine.low %v514_v42, %v517_v43  ;;  %v523_v2 = vrot.slane %v240_v25, 5  ;;  %v3154_v4 = vcombine.low %v3135_v39, %v3143_v44  ;;  %v3195_v24 = vld [vmem:[%s2885_s6 + $0x70] sm:$0xf]  ;;  %v246_v46 = vld [vmem:[%s2885_s6 + $0x74] sm:$0x1] }
  0xaa   : > { %v435_v49 = vor.u32 %v434_v33, %v430_v38  ;;  %v522_v5 = vrot.slane %v520_v54, 4  ;;  %v521_v8 = vsel %vm2917_vm4, %v1936_v59, %v520_v54  ;;  %v539_v12 = vshrl.u32 %v3143_v44, 16  ;;  %v2523_v27 = vld [vmem:[#allocation5 + $0x238] sm:$0xff]  }
  0xab   : > { %v431_v63 = vsel %vm2928_vm5, %v426_v48, %v430_v38  ;;  %2191 = vmatpush3.bf16.msra.mxu0 %v2513_v57  ;;  %v535_v13 = vshll.u32 %v3143_v44, 16  ;;  %v545_v31 = vshll.u32 %v243_v21, 16  ;;  %v560_v32 = vshrl.u32 %v3192_v23, 16 }
  0xac   : > { %v436_v0 = vrot.slane %v435_v49, 4  ;;  %2255 = vmatpush3.bf16.msra.mxu1 %v2514_v60  ;;  %2320 = vmatprep.subr.bf16.mxu0 %v2515_v61  ;;  %v524_v9 = vsel %vm2917_vm4, %v522_v5, %v523_v2  ;;  %v541_v20 = vrot.slane %v539_v12, 4  ;;  %v563_v33 = vshll.u32 %v3192_v23, 16 }
  0xad   : > { %1361 = vmatmul.mubr.bf16.gmra.mrb[16].mxu0 %v3021_v28  ;;  %2352 = vmatprep.subr.bf16.mxu1 %v2515_v61  ;;  %v3168_v56 = vcombine.low %v521_v8, %v524_v9  ;;  %v537_v18 = vrot.slane %v535_v13, 5  ;;  %v569_v35 = vshll.u32 %v3195_v24, 16  ;;  %v547_v37 = vrot.slane %v545_v31, 5 }
  0xae   : > { %1458 = vmatmul.mubr.bf16.gmra.mrb[16].mxu1 %v3081_v34  ;;  %1368 = vmatprep.mubr.bf16.mxu0 %v3108_v3  ;;  %v441_v53 = vsel %vm2928_vm5, %v436_v0, %v440_v50  ;;  %v562_v38 = vrot.slane %v560_v32, 4  ;;  %v565_v40 = vrot.slane %v563_v33, 5  ;;  %v554_v49 = vrot.slane %v3143_v44, 5 }
  0xaf   : > { %1465 = vmatprep.mubr.bf16.mxu1 %v3089_v45  ;;  %v3158_v6 = vcombine.low %v431_v63, %v441_v53  ;;  %v542_v25 = vor.u32 %v541_v20, %v537_v18  ;;  %v571_v42 = vrot.slane %v569_v35, 5  ;;  %v579_v59 = vshll.u32 %v246_v46, 16 }
  0xb0   : > { %v566_v54 = vor.u32 %v565_v40, %v562_v38  ;;  %v557_v63 = vrot.slane %v243_v21, 5  ;;  %v588_v58 = vrot.slane %v3195_v24, 5 }
  0xb1   : > { %v543_v22 = vrot.slane %v542_v25, 4  ;;  %v581_v5 = vrot.slane %v579_v59, 5 }
  0xb2   : > { %v567_v0 = vrot.slane %v566_v54, 4 }
  0xb3   : > { %v548_v50 = vsel %vm2928_vm5, %v543_v22, %v547_v37 }
  0xb5   : > { %1369 = vmatmul.mubr.bf16.gmra.mrb[20].mxu0 %v3055_v7 }
  0xb6   : > { %1466 = vmatmul.mubr.bf16.gmra.mrb[20].mxu1 %v3117_v15  ;;  %1376 = vmatprep.mubr.bf16.mxu0 %v3132_v36 }
  0xb7   : > { %1473 = vmatprep.mubr.bf16.mxu1 %v3121_v19 }
  0xbd   : > { %1377 = vmatmul.mubr.bf16.gmra.mrb[24].mxu0 %v3089_v45 }
  0xbe   : > { %1474 = vmatmul.mubr.bf16.gmra.mrb[24].mxu1 %v3148_v62  ;;  %1384 = vmatprep.mubr.bf16.mxu0 %v3158_v6 }
  0xbf   : > { %1481 = vmatprep.mubr.bf16.mxu1 %v3154_v4 }
  0xc5   : > { %1385 = vmatmul.mubr.bf16.gmra.mrb[28].mxu0 %v3121_v19 }
  0xc6   : > { %1482 = vmatmul.mubr.bf16.gmra.mrb[28].mxu1 %v3168_v56  ;;  %1522 = vmatprep.mubr.bf16.mxu0 %v2980_v47  ;;  %v2518_v47 = vld [vmem:[#allocation5 + $0x218] sm:$0xff]  }
  0xc7   : > { %1619 = vmatprep.mubr.bf16.mxu1 %v3011_v16 }
  0xcd   : > { %1523 = vmatmul.mubr.bf16.vlgmr.msra.gmra.mrb[32].mxu0 %v2970_v41  ;;  %v2520_v41 = vld [vmem:[#allocation5 + $0x228] sm:$0xff]  }
  0xce   : > { %1620 = vmatmul.mubr.bf16.vlgmr.msra.gmra.mrb[32].mxu1 %v2958_v26  ;;  %2321 = vmatpush3.bf16.msra.mxu0 %v2515_v61  ;;  %v2519_v26 = vld [vmem:[#allocation5 + $0x220] sm:$0xff]  }
  0xcf   : > { %2360 = vmatpush3.bf16.msra.mxu1 %v2515_v61  ;;  %1530 = vmatprep.mubr.bf16.mxu0 %v3013_v17 }
  0xd0   : > { %1627 = vmatprep.mubr.bf16.mxu1 %v3039_v51  ;;  %2322 = vmatprep.subr.bf16.mxu0 %v2516_v10 }
  0xd1   : > { %2353 = vmatprep.subr.bf16.mxu1 %v2516_v10 }
  0xd2   : > { %2323 = vmatpush3.bf16.msra.mxu0 %v2516_v10 }
  0xd3   : > { %2361 = vmatpush3.bf16.msra.mxu1 %v2516_v10  ;;  %2324 = vmatprep.subr.bf16.mxu0 %v2517_v11  ;;  %v590_v10 = vrot.slane %v588_v58, 4 }
  0xd4   : > { %2354 = vmatprep.subr.bf16.mxu1 %v2517_v11 }
  0xd5   : > { %1531 = vmatmul.mubr.bf16.gmra.mrb[36].mxu0 %v3011_v16  ;;  %v529_v16 = vshll.u32 %v3135_v39, 16 }
  0xd6   : > { %1628 = vmatmul.mubr.bf16.gmra.mrb[36].mxu1 %v2988_v55  ;;  %1538 = vmatprep.mubr.bf16.mxu0 %v3049_v1  ;;  %v526_v55 = vshrl.u32 %v3135_v39, 16 }
  0xd7   : > { %1635 = vmatprep.mubr.bf16.mxu1 %v3079_v30  ;;  %2325 = vmatpush3.bf16.msra.mxu0 %v2517_v11  ;;  %v531_v14 = vrot.slane %v529_v16, 5 }
  0xd8   : > { %2362 = vmatpush3.bf16.msra.mxu1 %v2517_v11  ;;  %2326 = vmatprep.subr.bf16.mxu0 %v2518_v47  ;;  %v591_v11 = vrot.slane %v246_v46, 5 }
  0xd9   : > { %2355 = vmatprep.subr.bf16.mxu1 %v2518_v47 }
  0xdb   : > { %2327 = vmatpush3.bf16.msra.mxu0 %v2518_v47 }
  0xdc   : > { %2363 = vmatpush3.bf16.msra.mxu1 %v2518_v47  ;;  %2328 = vmatprep.subr.bf16.mxu0 %v2519_v26 }
  0xdd   : > { %2356 = vmatprep.subr.bf16.mxu1 %v2519_v26  ;;  %1539 = vmatmul.mubr.bf16.gmra.mrb[40].mxu0 %v3039_v51  ;;  %v528_v51 = vrot.slane %v526_v55, 4 }
  0xde   : > { %1636 = vmatmul.mubr.bf16.gmra.mrb[40].mxu1 %v3021_v28  ;;  %1546 = vmatprep.mubr.bf16.mxu0 %v3081_v34  ;;  %v2521_v28 = vld [vmem:[#allocation5 + $0x230] sm:$0xff]  }
  0xdf   : > { %1643 = vmatprep.mubr.bf16.mxu1 %v3108_v3  ;;  %2329 = vmatpush3.bf16.msra.mxu0 %v2519_v26  ;;  %v532_v29 = vor.u32 %v531_v14, %v528_v51 }
  0xe0   : > { %2364 = vmatpush3.bf16.msra.mxu1 %v2519_v26  ;;  %2330 = vmatprep.subr.bf16.mxu0 %v2520_v41  ;;  %v3243_v26 = vld [vmem:[#allocation7] ss:$0 sm:$0xff] }
  0xe1   : > { %2357 = vmatprep.subr.bf16.mxu1 %v2520_v41 }
  0xe3   : > { %2331 = vmatpush3.bf16.msra.mxu0 %v2520_v41 }
  0xe4   : > { %2365 = vmatpush3.bf16.msra.mxu1 %v2520_v41  ;;  %2332 = vmatprep.subr.bf16.mxu0 %v2521_v28 }
  0xe5   : > { %2358 = vmatprep.subr.bf16.mxu1 %v2521_v28  ;;  %1547 = vmatmul.mubr.bf16.gmra.mrb[44].mxu0 %v3079_v30  ;;  %v573_v30 = vshrl.u32 %v3195_v24, 16 }
  0xe6   : > { %1644 = vmatmul.mubr.bf16.gmra.mrb[44].mxu1 %v3055_v7  ;;  %1554 = vmatprep.mubr.bf16.mxu0 %v3117_v15  ;;  %v533_v7 = vrot.slane %v532_v29, 4 }
  0xe7   : > { %1651 = vmatprep.mubr.bf16.mxu1 %v3132_v36  ;;  %2333 = vmatpush3.bf16.msra.mxu0 %v2521_v28  ;;  %v575_v43 = vrot.slane %v573_v30, 4 }
  0xe8   : > { %2366 = vmatpush3.bf16.msra.mxu1 %v2521_v28  ;;  %2334 = vmatprep.subr.bf16.mxu0 %v2523_v27  ;;  %v538_v48 = vsel %vm2928_vm5, %v533_v7, %v537_v18 }
  0xe9   : > { %2359 = vmatprep.subr.bf16.mxu1 %v2523_v27  ;;  %v576_v57 = vor.u32 %v575_v43, %v571_v42  ;;  %v1964_v60 = vcombine.low %v538_v48, %v548_v50 }
  0xeb   : > { %2335 = vmatpush3.bf16.msra.mxu0 %v2523_v27  ;;  %v577_v2 = vrot.slane %v576_v57, 4 }
  0xec   : > { %2367 = vmatpush3.bf16.msra.mxu1 %v2523_v27 }
  0xed   : > { %1555 = vmatmul.mubr.bf16.gmra.mrb[48].mxu0 %v3108_v3  ;;  %v1937_v3 = vrot.slane %v3135_v39, 9  ;;  %v572_v39 = vsel %vm2928_vm5, %v567_v0, %v571_v42  ;;  %v582_v53 = vsel %vm2928_vm5, %v577_v2, %v581_v5 }
  0xee   : > { %1652 = vmatmul.mubr.bf16.gmra.mrb[48].mxu1 %v3089_v45  ;;  %1562 = vmatprep.mubr.bf16.mxu0 %v3148_v62  ;;  %v556_v45 = vrot.slane %v554_v49, 4  ;;  %v1967_v9 = vcombine.low %v572_v39, %v582_v53 }
  0xef   : > { %1659 = vmatprep.mubr.bf16.mxu1 %v3158_v6  ;;  %v555_v44 = vsel %vm2917_vm4, %v1937_v3, %v554_v49 }
  0xf0   : > { %v558_v61 = vsel %vm2917_vm4, %v556_v45, %v557_v63 }
  0xf1   : > { %v1965_v8 = vcombine.low %v555_v44, %v558_v61 }
  0xf5   : > { %1563 = vmatmul.mubr.bf16.gmra.mrb[52].mxu0 %v3132_v36  ;;  %v1938_v36 = vrot.slane %v3192_v23, 9 }
  0xf6   : > { %1660 = vmatmul.mubr.bf16.gmra.mrb[52].mxu1 %v3121_v19  ;;  %1570 = vmatprep.mubr.bf16.mxu0 %v3168_v56  ;;  %v1966_v19 = vcombine.low %v3192_v23, %v3195_v24 }
  0xf7   : > { %1667 = vmatprep.mubr.bf16.mxu1 %v1964_v60 }
  0xfd   : > { %1571 = vmatmul.mubr.bf16.gmra.mrb[56].mxu0 %v3158_v6 }
  0xfe   : > { %1668 = vmatmul.mubr.bf16.gmra.mrb[56].mxu1 %v3154_v4  ;;  %1578 = vmatprep.mubr.bf16.mxu0 %v1965_v8  ;;  %v589_v4 = vsel %vm2917_vm4, %v1938_v36, %v588_v58 }
  0xff   : > { %1675 = vmatprep.mubr.bf16.mxu1 %v1967_v9 }
 0x105   : > { %1579 = vmatmul.mubr.bf16.gmra.mrb[60].mxu0 %v1964_v60 }
 0x106   : > { %1676 = vmatmul.mubr.bf16.gmra.mrb[60].mxu1 %v1966_v19  ;;  %2336 = vmatprep.mubr.bf16.mxu0 %v3013_v17  ;;  %v592_v17 = vsel %vm2917_vm4, %v590_v10, %v591_v11 }
 0x107   : > { %2344 = vmatprep.mubr.bf16.mxu1 %v3148_v62  ;;  %v1968_v62 = vcombine.low %v589_v4, %v592_v17 }
 0x10d   : > { %2337 = vmatmul.mubr.bf16.vlgmr.msra.gmra.mrb[64].mxu0 %v3049_v1 }
 0x10e   : > { %2345 = vmatmul.mubr.bf16.vlgmr.msra.gmra.mrb[64].mxu1 %v3168_v56  ;;  %2340 = vmatprep.mubr.bf16.mxu0 %v3081_v34 }
 0x10f   : > { %2348 = vmatprep.mubr.bf16.mxu1 %v1965_v8 }
 0x115   : > { %2341 = vmatmul.mubr.bf16.gmra.mrb[68].mxu0 %v3117_v15 }
 0x116   : > { %2349 = vmatmul.mubr.bf16.gmra.mrb[68].mxu1 %v1968_v62 }
 0x160   : > { %v2064_v6 = vpop.f32.mrb[0].mxu0 }
 0x161   : > { %v2128_v47 = vpop.f32.mrb[0].mxu1  ;;  %v2065_v1 = vpop.f32.mrb[1].mxu0 }
 0x162   : > { %v2129_v41 = vpop.f32.mrb[1].mxu1  ;;  %v2066_v56 = vadd.f32 %v2065_v1, %v2064_v6  ;;  %v2067_v34 = vpop.f32.mrb[2].mxu0 }
 0x163   : > { %v2130_v55 = vadd.f32 %v2129_v41, %v2128_v47  ;;  %v2131_v16 = vpop.f32.mrb[2].mxu1  ;;  %v2068_v12 = vpop.f32.mrb[3].mxu0 }
 0x164   : > { %v2132_v13 = vpop.f32.mrb[3].mxu1  ;;  %v1331_v28 = vadd.f32 %v2066_v56, %v3243_v26  ;;  %v2069_v52 = vadd.f32 %v2068_v12, %v2067_v34 }
 0x165   : > { %v2133_v51 = vadd.f32 %v2132_v13, %v2131_v16 }
 0x166   : > { %v3246_v14 = vadd.f32 %v2130_v55, %v1331_v28  ;;  %v1334_v15 = vadd.f32 %v2069_v52, %v3243_v26 }
 0x168   : > { %v3249_v18 = vadd.f32 %v2133_v51, %v1334_v15  ;;  %v2070_v20 = vpop.f32.mrb[4].mxu0 }
 0x169   : > { %v2134_v21 = vpop.f32.mrb[4].mxu1  ;;  %v2071_v23 = vpop.f32.mrb[5].mxu0 }
 0x16a   : > { %v2135_v24 = vpop.f32.mrb[5].mxu1  ;;  %v2072_v27 = vadd.f32 %v2071_v23, %v2070_v20  ;;  %v2073_v25 = vpop.f32.mrb[6].mxu0 }
 0x16b   : > { %v2136_v29 = vadd.f32 %v2135_v24, %v2134_v21  ;;  %v2137_v31 = vpop.f32.mrb[6].mxu1  ;;  %v2074_v32 = vpop.f32.mrb[7].mxu0 }
 0x16c   : > { %v2138_v33 = vpop.f32.mrb[7].mxu1  ;;  %v1339_v35 = vadd.f32 %v2072_v27, %v3243_v26  ;;  %v2075_v30 = vadd.f32 %v2074_v32, %v2073_v25 }
 0x16d   : > { %v2139_v7 = vadd.f32 %v2138_v33, %v2137_v31 }
 0x16e   : > { %v3252_v22 = vadd.f32 %v2136_v29, %v1339_v35  ;;  %v1342_v37 = vadd.f32 %v2075_v30, %v3243_v26 }
 0x170   : > { %v3255_v38 = vadd.f32 %v2139_v7, %v1342_v37  ;;  %v2076_v40 = vpop.f32.mrb[8].mxu0 }
 0x171   : > { %v2140_v42 = vpop.f32.mrb[8].mxu1  ;;  %v2077_v43 = vpop.f32.mrb[9].mxu0 }
 0x172   : > { %v2141_v46 = vpop.f32.mrb[9].mxu1  ;;  %v2078_v48 = vadd.f32 %v2077_v43, %v2076_v40  ;;  %v2079_v50 = vpop.f32.mrb[10].mxu0 }
 0x173   : > { %v2142_v49 = vadd.f32 %v2141_v46, %v2140_v42  ;;  %v2143_v54 = vpop.f32.mrb[10].mxu1  ;;  %v2080_v57 = vpop.f32.mrb[11].mxu0 }
 0x174   : > { %v2144_v59 = vpop.f32.mrb[11].mxu1  ;;  %v1347_v60 = vadd.f32 %v2078_v48, %v3243_v26  ;;  %v2081_v3 = vadd.f32 %v2080_v57, %v2079_v50 }
 0x175   : > { %v2145_v63 = vadd.f32 %v2144_v59, %v2143_v54 }
 0x176   : > { %v3258_v45 = vadd.f32 %v2142_v49, %v1347_v60  ;;  %v1350_v0 = vadd.f32 %v2081_v3, %v3243_v26 }
 0x178   : > { %v3261_v2 = vadd.f32 %v2145_v63, %v1350_v0  ;;  %v2082_v5 = vpop.f32.mrb[12].mxu0 }
 0x179   : > { %v2146_v44 = vpop.f32.mrb[12].mxu1  ;;  %v2083_v61 = vpop.f32.mrb[13].mxu0 }
 0x17a   : > { %v2147_v39 = vpop.f32.mrb[13].mxu1  ;;  %v2084_v53 = vadd.f32 %v2083_v61, %v2082_v5  ;;  %v2085_v9 = vpop.f32.mrb[14].mxu0 }
 0x17b   : > { %v2148_v8 = vadd.f32 %v2147_v39, %v2146_v44  ;;  %v2149_v19 = vpop.f32.mrb[14].mxu1  ;;  %v2086_v58 = vpop.f32.mrb[15].mxu0 }
 0x17c   : > { %v2150_v36 = vpop.f32.mrb[15].mxu1  ;;  %v1355_v10 = vadd.f32 %v2084_v53, %v3243_v26  ;;  %v2087_v11 = vadd.f32 %v2086_v58, %v2085_v9 }
 0x17d   : > { %v2151_v4 = vadd.f32 %v2150_v36, %v2149_v19 }
 0x17e   : > { %v3264_v17 = vadd.f32 %v2148_v8, %v1355_v10  ;;  %v1358_v62 = vadd.f32 %v2087_v11, %v3243_v26 }
 0x180   : > { %v3267_v6 = vadd.f32 %v2151_v4, %v1358_v62  ;;  %v2088_v47 = vpop.f32.mrb[16].mxu0 }
 0x181   : > { %v2152_v1 = vpop.f32.mrb[16].mxu1  ;;  %v2089_v41 = vpop.f32.mrb[17].mxu0 }
 0x182   : > { %v2153_v56 = vpop.f32.mrb[17].mxu1  ;;  %v2090_v55 = vadd.f32 %v2089_v41, %v2088_v47  ;;  %v2091_v16 = vpop.f32.mrb[18].mxu0 }
 0x183   : > { %v2154_v34 = vadd.f32 %v2153_v56, %v2152_v1  ;;  %v2155_v12 = vpop.f32.mrb[18].mxu1  ;;  %v2092_v13 = vpop.f32.mrb[19].mxu0 }
 0x184   : > { %v2156_v28 = vpop.f32.mrb[19].mxu1  ;;  %v1363_v52 = vadd.f32 %v2090_v55, %v3243_v26  ;;  %v2093_v51 = vadd.f32 %v2092_v13, %v2091_v16 }
 0x185   : > { %v2157_v15 = vadd.f32 %v2156_v28, %v2155_v12 }
 0x186   : > { %v3270_v20 = vadd.f32 %v2154_v34, %v1363_v52  ;;  %v1366_v21 = vadd.f32 %v2093_v51, %v3243_v26 }
 0x188   : > { %v3273_v23 = vadd.f32 %v2157_v15, %v1366_v21  ;;  %v2094_v24 = vpop.f32.mrb[20].mxu0 }
 0x189   : > { %v2158_v27 = vpop.f32.mrb[20].mxu1  ;;  %v2095_v29 = vpop.f32.mrb[21].mxu0 }
 0x18a   : > { %v2159_v25 = vpop.f32.mrb[21].mxu1  ;;  %v2096_v31 = vadd.f32 %v2095_v29, %v2094_v24  ;;  %v2097_v33 = vpop.f32.mrb[22].mxu0 }
 0x18b   : > { %v2160_v32 = vadd.f32 %v2159_v25, %v2158_v27  ;;  %v2161_v35 = vpop.f32.mrb[22].mxu1  ;;  %v2098_v30 = vpop.f32.mrb[23].mxu0 }
 0x18c   : > { %v2162_v7 = vpop.f32.mrb[23].mxu1  ;;  %v1371_v37 = vadd.f32 %v2096_v31, %v3243_v26  ;;  %v2099_v40 = vadd.f32 %v2098_v30, %v2097_v33 }
 0x18d   : > { %v2163_v42 = vadd.f32 %v2162_v7, %v2161_v35 }
 0x18e   : > { %v3276_v43 = vadd.f32 %v2160_v32, %v1371_v37  ;;  %v1374_v46 = vadd.f32 %v2099_v40, %v3243_v26 }
 0x190   : > { %v3279_v48 = vadd.f32 %v2163_v42, %v1374_v46  ;;  %v2100_v49 = vpop.f32.mrb[24].mxu0 }
 0x191   : > { %v2164_v50 = vpop.f32.mrb[24].mxu1  ;;  %v2101_v54 = vpop.f32.mrb[25].mxu0 }
 0x192   : > { %v2165_v57 = vpop.f32.mrb[25].mxu1  ;;  %v2102_v59 = vadd.f32 %v2101_v54, %v2100_v49  ;;  %v2103_v3 = vpop.f32.mrb[26].mxu0 }
 0x193   : > { %v2166_v60 = vadd.f32 %v2165_v57, %v2164_v50  ;;  %v2167_v63 = vpop.f32.mrb[26].mxu1  ;;  %v2104_v0 = vpop.f32.mrb[27].mxu0 }
 0x194   : > { %v2168_v5 = vpop.f32.mrb[27].mxu1  ;;  %v1379_v44 = vadd.f32 %v2102_v59, %v3243_v26  ;;  %v2105_v61 = vadd.f32 %v2104_v0, %v2103_v3 }
 0x195   : > { %v2169_v39 = vadd.f32 %v2168_v5, %v2167_v63 }
 0x196   : > { %v3282_v53 = vadd.f32 %v2166_v60, %v1379_v44  ;;  %v1382_v8 = vadd.f32 %v2105_v61, %v3243_v26 }
 0x198   : > { %v3285_v9 = vadd.f32 %v2169_v39, %v1382_v8  ;;  %v2106_v19 = vpop.f32.mrb[28].mxu0 }
 0x199   : > { %v2170_v58 = vpop.f32.mrb[28].mxu1  ;;  %v2107_v36 = vpop.f32.mrb[29].mxu0 }
 0x19a   : > { %v2171_v10 = vpop.f32.mrb[29].mxu1  ;;  %v2108_v11 = vadd.f32 %v2107_v36, %v2106_v19  ;;  %v2109_v62 = vpop.f32.mrb[30].mxu0 }
 0x19b   : > { %v2172_v4 = vadd.f32 %v2171_v10, %v2170_v58  ;;  %v2173_v47 = vpop.f32.mrb[30].mxu1  ;;  %v2110_v1 = vpop.f32.mrb[31].mxu0 }
 0x19c   : > { %v2174_v41 = vpop.f32.mrb[31].mxu1  ;;  %v1387_v56 = vadd.f32 %v2108_v11, %v3243_v26  ;;  %v2111_v55 = vadd.f32 %v2110_v1, %v2109_v62 }
 0x19d   : > { %v2175_v34 = vadd.f32 %v2174_v41, %v2173_v47 }
 0x19e   : > { %v3288_v16 = vadd.f32 %v2172_v4, %v1387_v56  ;;  %v1390_v12 = vadd.f32 %v2111_v55, %v3243_v26 }
 0x1a0   : > { %v3291_v13 = vadd.f32 %v2175_v34, %v1390_v12  ;;  %v2192_v28 = vpop.f32.mrb[32].mxu0 }
 0x1a1   : > { %v2256_v52 = vpop.f32.mrb[32].mxu1  ;;  %v2193_v51 = vpop.f32.mrb[33].mxu0 }
 0x1a2   : > { %v2257_v15 = vpop.f32.mrb[33].mxu1  ;;  %v2194_v21 = vadd.f32 %v2193_v51, %v2192_v28  ;;  %v2195_v27 = vpop.f32.mrb[34].mxu0 }
 0x1a3   : > { %v2258_v24 = vadd.f32 %v2257_v15, %v2256_v52  ;;  %v2259_v29 = vpop.f32.mrb[34].mxu1  ;;  %v2196_v25 = vpop.f32.mrb[35].mxu0 }
 0x1a4   : > { %v2260_v31 = vpop.f32.mrb[35].mxu1  ;;  %v1525_v32 = vadd.f32 %v2194_v21, %v3246_v14  ;;  %v2197_v33 = vadd.f32 %v2196_v25, %v2195_v27 }
 0x1a5   : > { %v2261_v35 = vadd.f32 %v2260_v31, %v2259_v29 }
 0x1a6   : > { %v1528_v30 = vadd.f32 %v2197_v33, %v3249_v18  ;;  %v3295_v7 = vadd.f32 %v2258_v24, %v1525_v32 }
 0x1a8   : > { %v2198_v26 = vpop.f32.mrb[36].mxu0  ;;  %v3297_v40 = vadd.f32 %v2261_v35, %v1528_v30 }
 0x1a9   : > { %v2262_v37 = vpop.f32.mrb[36].mxu1  ;;  %v2199_v42 = vpop.f32.mrb[37].mxu0 }
 0x1aa   : > { %v2263_v46 = vpop.f32.mrb[37].mxu1  ;;  %v2200_v49 = vadd.f32 %v2199_v42, %v2198_v26  ;;  %v2201_v54 = vpop.f32.mrb[38].mxu0 }
 0x1ab   : > { %v2264_v50 = vadd.f32 %v2263_v46, %v2262_v37  ;;  %v2265_v57 = vpop.f32.mrb[38].mxu1  ;;  %v2202_v59 = vpop.f32.mrb[39].mxu0 }
 0x1ac   : > { %v2266_v60 = vpop.f32.mrb[39].mxu1  ;;  %v1533_v14 = vadd.f32 %v2200_v49, %v3252_v22  ;;  %v2203_v3 = vadd.f32 %v2202_v59, %v2201_v54 }
 0x1ad   : > { %v2267_v63 = vadd.f32 %v2266_v60, %v2265_v57 }
 0x1ae   : > { %v1536_v18 = vadd.f32 %v2203_v3, %v3255_v38  ;;  %v3301_v0 = vadd.f32 %v2264_v50, %v1533_v14 }
 0x1b0   : > { %v2204_v5 = vpop.f32.mrb[40].mxu0  ;;  %v3303_v61 = vadd.f32 %v2267_v63, %v1536_v18 }
 0x1b1   : > { %v2268_v44 = vpop.f32.mrb[40].mxu1  ;;  %v2205_v39 = vpop.f32.mrb[41].mxu0 }
 0x1b2   : > { %v2269_v8 = vpop.f32.mrb[41].mxu1  ;;  %v2206_v19 = vadd.f32 %v2205_v39, %v2204_v5  ;;  %v2207_v36 = vpop.f32.mrb[42].mxu0 }
 0x1b3   : > { %v2270_v58 = vadd.f32 %v2269_v8, %v2268_v44  ;;  %v2271_v10 = vpop.f32.mrb[42].mxu1  ;;  %v2208_v11 = vpop.f32.mrb[43].mxu0 }
 0x1b4   : > { %v2272_v4 = vpop.f32.mrb[43].mxu1  ;;  %v1541_v22 = vadd.f32 %v2206_v19, %v3258_v45  ;;  %v2209_v62 = vadd.f32 %v2208_v11, %v2207_v36 }
 0x1b5   : > { %v2273_v47 = vadd.f32 %v2272_v4, %v2271_v10 }
 0x1b6   : > { %v1544_v38 = vadd.f32 %v2209_v62, %v3261_v2  ;;  %v3307_v1 = vadd.f32 %v2270_v58, %v1541_v22 }
 0x1b8   : > { %v2210_v41 = vpop.f32.mrb[44].mxu0  ;;  %v3309_v55 = vadd.f32 %v2273_v47, %v1544_v38 }
 0x1b9   : > { %v2274_v56 = vpop.f32.mrb[44].mxu1  ;;  %v2211_v34 = vpop.f32.mrb[45].mxu0 }
 0x1ba   : > { %v2275_v12 = vpop.f32.mrb[45].mxu1  ;;  %v2212_v28 = vadd.f32 %v2211_v34, %v2210_v41  ;;  %v2213_v51 = vpop.f32.mrb[46].mxu0 }
 0x1bb   : > { %v2276_v52 = vadd.f32 %v2275_v12, %v2274_v56  ;;  %v2277_v15 = vpop.f32.mrb[46].mxu1  ;;  %v2214_v21 = vpop.f32.mrb[47].mxu0 }
 0x1bc   : > { %v2278_v24 = vpop.f32.mrb[47].mxu1  ;;  %v1549_v45 = vadd.f32 %v2212_v28, %v3264_v17  ;;  %v2215_v27 = vadd.f32 %v2214_v21, %v2213_v51 }
 0x1bd   : > { %v2279_v29 = vadd.f32 %v2278_v24, %v2277_v15 }
 0x1be   : > { %v1552_v2 = vadd.f32 %v2215_v27, %v3267_v6  ;;  %v3313_v25 = vadd.f32 %v2276_v52, %v1549_v45 }
 0x1c0   : > { %v2216_v31 = vpop.f32.mrb[48].mxu0  ;;  %v3315_v33 = vadd.f32 %v2279_v29, %v1552_v2 }
 0x1c1   : > { %v2280_v32 = vpop.f32.mrb[48].mxu1  ;;  %v2217_v35 = vpop.f32.mrb[49].mxu0 }
 0x1c2   : > { %v2281_v30 = vpop.f32.mrb[49].mxu1  ;;  %v2218_v26 = vadd.f32 %v2217_v35, %v2216_v31  ;;  %v2219_v42 = vpop.f32.mrb[50].mxu0 }
 0x1c3   : > { %v2282_v37 = vadd.f32 %v2281_v30, %v2280_v32  ;;  %v2283_v46 = vpop.f32.mrb[50].mxu1  ;;  %v2220_v49 = vpop.f32.mrb[51].mxu0 }
 0x1c4   : > { %v2284_v50 = vpop.f32.mrb[51].mxu1  ;;  %v1557_v17 = vadd.f32 %v2218_v26, %v3270_v20  ;;  %v2221_v54 = vadd.f32 %v2220_v49, %v2219_v42 }
 0x1c5   : > { %v2285_v57 = vadd.f32 %v2284_v50, %v2283_v46 }
 0x1c6   : > { %v1560_v6 = vadd.f32 %v2221_v54, %v3273_v23  ;;  %v1654_v59 = vadd.f32 %v2282_v37, %v1557_v17 }
 0x1c8   : > { %v2222_v60 = vpop.f32.mrb[52].mxu0  ;;  %v3319_v3 = vadd.f32 %v2285_v57, %v1560_v6 }
 0x1c9   : > { %v2286_v14 = vpop.f32.mrb[52].mxu1  ;;  %v2223_v63 = vpop.f32.mrb[53].mxu0 }
 0x1ca   : > { %v2287_v18 = vpop.f32.mrb[53].mxu1  ;;  %v2224_v5 = vadd.f32 %v2223_v63, %v2222_v60  ;;  %v2225_v39 = vpop.f32.mrb[54].mxu0 }
 0x1cb   : > { %v2288_v44 = vadd.f32 %v2287_v18, %v2286_v14  ;;  %v2289_v8 = vpop.f32.mrb[54].mxu1  ;;  %v2226_v19 = vpop.f32.mrb[55].mxu0 }
 0x1cc   : > { %v2290_v58 = vpop.f32.mrb[55].mxu1  ;;  %v1565_v36 = vadd.f32 %v2224_v5, %v3276_v43  ;;  %v2227_v20 = vadd.f32 %v2226_v19, %v2225_v39 }
 0x1cd   : > { %v2291_v10 = vadd.f32 %v2290_v58, %v2289_v8 }
 0x1ce   : > { %v1568_v11 = vadd.f32 %v2227_v20, %v3279_v48  ;;  %v1662_v23 = vadd.f32 %v2288_v44, %v1565_v36 }
 0x1d0   : > { %v2228_v4 = vpop.f32.mrb[56].mxu0  ;;  %v1665_v62 = vadd.f32 %v2291_v10, %v1568_v11 }
 0x1d1   : > { %v2292_v22 = vpop.f32.mrb[56].mxu1  ;;  %v2229_v47 = vpop.f32.mrb[57].mxu0 }
 0x1d2   : > { %v2293_v38 = vpop.f32.mrb[57].mxu1  ;;  %v2230_v41 = vadd.f32 %v2229_v47, %v2228_v4  ;;  %v2231_v34 = vpop.f32.mrb[58].mxu0 }
 0x1d3   : > { %v2294_v56 = vadd.f32 %v2293_v38, %v2292_v22  ;;  %v2295_v12 = vpop.f32.mrb[58].mxu1  ;;  %v2232_v28 = vpop.f32.mrb[59].mxu0 }
 0x1d4   : > { %v2296_v52 = vpop.f32.mrb[59].mxu1  ;;  %v1573_v51 = vadd.f32 %v2230_v41, %v3282_v53  ;;  %v2233_v15 = vadd.f32 %v2232_v28, %v2231_v34 }
 0x1d5   : > { %v2297_v43 = vadd.f32 %v2296_v52, %v2295_v12 }
 0x1d6   : > { %v1576_v21 = vadd.f32 %v2233_v15, %v3285_v9  ;;  %v1670_v24 = vadd.f32 %v2294_v56, %v1573_v51 }
 0x1d8   : > { %v2234_v48 = vpop.f32.mrb[60].mxu0  ;;  %v3325_v27 = vadd.f32 %v2297_v43, %v1576_v21 }
 0x1d9   : > { %v2298_v45 = vpop.f32.mrb[60].mxu1  ;;  %v2235_v29 = vpop.f32.mrb[61].mxu0 }
 0x1da   : > { %v2299_v2 = vpop.f32.mrb[61].mxu1  ;;  %v2236_v31 = vadd.f32 %v2235_v29, %v2234_v48  ;;  %v2237_v35 = vpop.f32.mrb[62].mxu0 }
 0x1db   : > { %v2300_v32 = vadd.f32 %v2299_v2, %v2298_v45  ;;  %v2301_v30 = vpop.f32.mrb[62].mxu1  ;;  %v2238_v26 = vpop.f32.mrb[63].mxu0 }
 0x1dc   : > { %v2302_v37 = vpop.f32.mrb[63].mxu1  ;;  %v1581_v53 = vadd.f32 %v2236_v31, %v3288_v16  ;;  %v2239_v42 = vadd.f32 %v2238_v26, %v2237_v35 }
 0x1dd   : > { %v2303_v46 = vadd.f32 %v2302_v37, %v2301_v30 }
 0x1de   : > { %v1584_v9 = vadd.f32 %v2239_v42, %v3291_v13  ;;  %v1678_v49 = vadd.f32 %v2300_v32, %v1581_v53 }
 0x1e0   : > { %v2338_v50 = vpop.f32.mrb[64].mxu0  ;;  %v1681_v54 = vadd.f32 %v2303_v46, %v1584_v9 }
 0x1e1   : > { %v2346_v17 = vpop.f32.mrb[64].mxu1  ;;  %v1727_v57 = vadd.f32 %v2338_v50, %v3301_v0  ;;  %v1718_v60 = vpop.f32.mrb[65].mxu0 }
 0x1e2   : > { %v1759_v6 = vadd.f32 %v2346_v17, %v1662_v23  ;;  %v1750_v14 = vpop.f32.mrb[65].mxu1  ;;  %v1719_v63 = vadd.f32 %v1718_v60, %v3295_v7  ;;  %v2339_v5 = vpop.f32.mrb[66].mxu0 }
 0x1e3   : > { %v1751_v18 = vadd.f32 %v1750_v14, %v1654_v59  ;;  %v2347_v44 = vpop.f32.mrb[66].mxu1  ;;  %v1783_v16 = vmax.f32 %v1727_v57, 0.0  ;;  %v1730_v8 = vadd.f32 %v2339_v5, %v3303_v61  ;;  %v1721_v19 = vpop.f32.mrb[67].mxu0 }
 0x1e4   : > { %v1791_v39 = vmax.f32 %v1759_v6, 0.0  ;;  %v1762_v13 = vadd.f32 %v2347_v44, %v1665_v62  ;;  %v1753_v58 = vpop.f32.mrb[67].mxu1  ;;  %v1781_v36 = vmax.f32 %v1719_v63, 0.0  ;;  %v1722_v10 = vadd.f32 %v1721_v19, %v3297_v40 }
 0x1e5   : > { %v1789_v20 = vmax.f32 %v1751_v18, 0.0  ;;  %v1754_v0 = vadd.f32 %v1753_v58, %v3319_v3  ;;  %1799 = vst [vmem:[%s3335_s20 + $0x10] sm:$0xff] %v1783_v16  ;;  %v1784_v7 = vmax.f32 %v1730_v8, 0.0 }
 0x1e6   : > { %1807 = vst [vmem:[%s3335_s20 + $0x50] sm:$0xff] %v1791_v39  ;;  %v1792_v61 = vmax.f32 %v1762_v13, 0.0  ;;  %1797 = vst [vmem:[%s3335_s20] sm:$0xff] %v1781_v36  ;;  %v1782_v59 = vmax.f32 %v1722_v10, 0.0 }
 0x1e7   : > { %1805 = vst [vmem:[%s3335_s20 + $0x40] sm:$0xff] %v1789_v20  ;;  %v1790_v40 = vmax.f32 %v1754_v0, 0.0  ;;  %1800 = vst [vmem:[%s3335_s20 + $0x18] sm:$0xff] %v1784_v7 }
 0x1e8   : > { %1808 = vst [vmem:[%s3335_s20 + $0x58] sm:$0xff] %v1792_v61  ;;  %1798 = vst [vmem:[%s3335_s20 + $0x8] sm:$0xff] %v1782_v59  ;;  %v2342_v3 = vpop.f32.mrb[68].mxu0 }
 0x1e9   : > { %1806 = vst [vmem:[%s3335_s20 + $0x48] sm:$0xff] %v1790_v40  ;;  %v2350_v11 = vpop.f32.mrb[68].mxu1  ;;  %v1743_v23 = vadd.f32 %v2342_v3, %v3313_v25  ;;  %v1734_v22 = vpop.f32.mrb[69].mxu0 }
 0x1ea   : > { %v1775_v4 = vadd.f32 %v2350_v11, %v1678_v49  ;;  %v1766_v62 = vpop.f32.mrb[69].mxu1  ;;  %v1735_v47 = vadd.f32 %v1734_v22, %v3307_v1  ;;  %v2343_v41 = vpop.f32.mrb[70].mxu0 }
 0x1eb   : > { %v1767_v38 = vadd.f32 %v1766_v62, %v1670_v24  ;;  %v2351_v56 = vpop.f32.mrb[70].mxu1  ;;  %v1787_v34 = vmax.f32 %v1743_v23, 0.0  ;;  %v1746_v28 = vadd.f32 %v2343_v41, %v3315_v33  ;;  %v1737_v25 = vpop.f32.mrb[71].mxu0 }
 0x1ec   : > { %v1795_v12 = vmax.f32 %v1775_v4, 0.0  ;;  %v1778_v52 = vadd.f32 %v2351_v56, %v1681_v54  ;;  %v1769_v51 = vpop.f32.mrb[71].mxu1  ;;  %v1785_v15 = vmax.f32 %v1735_v47, 0.0  ;;  %v1738_v43 = vadd.f32 %v1737_v25, %v3309_v55 }
 0x1ed   : > { %v1793_v1 = vmax.f32 %v1767_v38, 0.0  ;;  %v1770_v21 = vadd.f32 %v1769_v51, %v3325_v27  ;;  %1803 = vst [vmem:[%s3335_s20 + $0x30] sm:$0xff] %v1787_v34  ;;  %v1788_v24 = vmax.f32 %v1746_v28, 0.0 }
 0x1ee   : > { %1811 = vst [vmem:[%s3335_s20 + $0x70] sm:$0xff] %v1795_v12  ;;  %v1796_v48 = vmax.f32 %v1778_v52, 0.0  ;;  %1801 = vst [vmem:[%s3335_s20 + $0x20] sm:$0xff] %v1785_v15  ;;  %v1786_v55 = vmax.f32 %v1738_v43, 0.0 }
 0x1ef   : > { %1809 = vst [vmem:[%s3335_s20 + $0x60] sm:$0xff] %v1793_v1  ;;  %v1794_v33 = vmax.f32 %v1770_v21, 0.0  ;;  %1804 = vst [vmem:[%s3335_s20 + $0x38] sm:$0xff] %v1788_v24 }
 0x1f0   : > { %1812 = vst [vmem:[%s3335_s20 + $0x78] sm:$0xff] %v1796_v48  ;;  %1802 = vst [vmem:[%s3335_s20 + $0x28] sm:$0xff] %v1786_v55 }
 0x1f1   : > { %1810 = vst [vmem:[%s3335_s20 + $0x68] sm:$0xff] %v1794_v33 }
 0x1f2   : > { %2623 = shalt.err (!%p2620_p7)
}
 0x1f3   : > { %s2624_s17 = scalar_lea.hbm %s3357_s27, 2048  ;;  %s2628_s4 = scalar_lea.hbm %s3411_s3, 8192 }
 0x1f4   : > { %p2625_p9 = scmp.ne.s32.totalorder %s3357_s27, %s2624_s17  ;;  %p2629_p5 = scmp.lt.u32.totalorder %s3357_s27, %s3411_s3 }
 0x1f5   : > { %p2630_p10 = scmp.lt.u32.totalorder %s2628_s4, %s2624_s17  ;;  %p2632_p2 = scmp.lt.u32.totalorder %s2624_s17, %s3357_s27 }
 0x1f6   : > { %p2626_p12 = pnand %p2625_p9, %p2826_p6 }
 0x1f7   : > { %p2631_p1 = por %p2630_p10, %p2629_p5 }
 0x1f8   : > { %p2627_p0 = pneg %p2626_p12 }
 0x1f9   : > { %p2633_p4 = por %p2632_p2, %p2631_p1 }
 0x1fb   : > { %p2634_p8 = pnand %p2633_p4, %p2627_p0 }
 0x1fd   : > { %2637 = shalt.err (!%p2634_p8)
}
 0x1fe   : > { %s2688_s18 = smov 128   ;;  %s2689_s20 = smov 8  }
 0x1ff   : > { %2381 = dma.vmem_to_hbm [thread:$0]  (%p2826_p6), %s3359_s8, 2048, %s3357_s27, %s1814_s22, %s2688_s18, %s2688_s18, %s2689_s20  }
 0x200 PF: > { %p2403_p11 = scmp.ge.s32.totalorder %s2680_s15, 2  ;;  %s1842_s7 = sand.u32 1, %s2668_s12  }
 0x201   : > { %p3430_p13 = scmp.ne.s32.totalorder %s3416_s19, 0  ;;  %s1843_s16 = scalar_lea.sflag [#allocation4], %s1842_s7 }
 0x203   : > { %p2395_p3 = pnand %p2403_p11, %p3430_p13 }
 0x205   : > { %2663 = dma.done.wait (!%p2395_p3), %s1843_s16, 2048  }
 0x206   : > { %2665 = vsyncadd (!%p2395_p3), %s1843_s16, 4294965248  ;;  %p17_p7 = scmp.ge.s32.totalorder %s2816_s5, 6   ;;  %s3431_s12 = smov %s2672_s13 }
 0x207   : > { %s3432_s13 = smov %s2676_s14  ;;  %s3433_s14 = smov %s2832_s10 }
 0x208   : > { %s3434_s15 = smov %s2816_s5  ;;  %19 = sbr.rel (!%p17_p7) target bundleno = 6 (0x6), region = 85 }
 0x20f   :  { %1848 = vsyncpa [#allocation3], 1 }
 0x210   :  { %1850 = vsyncpa [#allocation3 + $0x1], 1 }
 0x211   :  { %1851 = vsyncpa [#allocation6], 1 }
 0x212   :  { %1852 = vsyncpa [#allocation4], 1 }
 0x213   :  { %1854 = vsyncpa [#allocation4 + $0x1], 1 }

// kernel: mul.110.clone
= control target key start
LH: loop header
LB: loop body
LE: loop exit
PB: predicated region body
PF: predicated region fallthrough
CT: control target
= control target key end

     0   :  { %s2602_s0 = inlined_call_operand.vmem [shape: f32[2,16,16,27], index: 0, kind: input, shape index: {}]   ;;  %s2603_s1 = inlined_call_operand.vmem [shape: f32[2,16,16,27,3], index: 1, kind: output, shape index: {}]  }
   0x1   :  { %v4_v0 = vld [vmem:[%s2602_s0] sm:$0xff]  ;;  %v866_v1 = vld [vmem:[%s2602_s0 + $0x1b0] sm:$0xff]  ;;  %v1080_v54 = vld [vmem:[%s2602_s0 + $0x8] sm:$0xff] }
   0x2   :  { %v868_v2 = vld [vmem:[%s2602_s0 + $0x10] sm:$0xff]  ;;  %5 = vst [vmem:[%s2603_s1] sm:$0xff] %v4_v0  ;;  %867 = vst [vmem:[%s2603_s1 + $0x510] sm:$0xff] %v866_v1  ;;  %v870_v3 = vld [vmem:[%s2602_s0 + $0x1c0] sm:$0xff] }
   0x3   :  { %869 = vst [vmem:[%s2603_s1 + $0x30] sm:$0xff] %v868_v2  ;;  %v872_v4 = vld [vmem:[%s2602_s0 + $0x20] sm:$0xff]  ;;  %v874_v5 = vld [vmem:[%s2602_s0 + $0x1d0] sm:$0xff]  ;;  %972 = vst [vmem:[%s2603_s1 + $0x10] sm:$0xff] %v4_v0 }
   0x4   :  { %973 = vst [vmem:[%s2603_s1 + $0x520] sm:$0xff] %v866_v1  ;;  %974 = vst [vmem:[%s2603_s1 + $0x40] sm:$0xff] %v868_v2  ;;  %v876_v6 = vld [vmem:[%s2602_s0 + $0x30] sm:$0xff]  ;;  %v878_v7 = vld [vmem:[%s2602_s0 + $0x1e0] sm:$0xff] }
   0x5   :  { %1026 = vst [vmem:[%s2603_s1 + $0x20] sm:$0xff] %v4_v0  ;;  %1027 = vst [vmem:[%s2603_s1 + $0x530] sm:$0xff] %v866_v1  ;;  %v880_v8 = vld [vmem:[%s2602_s0 + $0x40] sm:$0xff]  ;;  %v882_v9 = vld [vmem:[%s2602_s0 + $0x1f0] sm:$0xff] }
   0x6   :  { %1028 = vst [vmem:[%s2603_s1 + $0x50] sm:$0xff] %v868_v2  ;;  %871 = vst [vmem:[%s2603_s1 + $0x540] sm:$0xff] %v870_v3  ;;  %v884_v10 = vld [vmem:[%s2602_s0 + $0x50] sm:$0xff]  ;;  %v886_v11 = vld [vmem:[%s2602_s0 + $0x200] sm:$0xff] }
   0x7   :  { %873 = vst [vmem:[%s2603_s1 + $0x60] sm:$0xff] %v872_v4  ;;  %875 = vst [vmem:[%s2603_s1 + $0x570] sm:$0xff] %v874_v5  ;;  %v888_v12 = vld [vmem:[%s2602_s0 + $0x60] sm:$0xff]  ;;  %v890_v13 = vld [vmem:[%s2602_s0 + $0x210] sm:$0xff] }
   0x8   :  { %975 = vst [vmem:[%s2603_s1 + $0x550] sm:$0xff] %v870_v3  ;;  %976 = vst [vmem:[%s2603_s1 + $0x70] sm:$0xff] %v872_v4  ;;  %v892_v14 = vld [vmem:[%s2602_s0 + $0x70] sm:$0xff]  ;;  %v894_v15 = vld [vmem:[%s2602_s0 + $0x220] sm:$0xff] }
   0x9   :  { %977 = vst [vmem:[%s2603_s1 + $0x580] sm:$0xff] %v874_v5  ;;  %1029 = vst [vmem:[%s2603_s1 + $0x560] sm:$0xff] %v870_v3  ;;  %v896_v16 = vld [vmem:[%s2602_s0 + $0x80] sm:$0xff]  ;;  %v898_v17 = vld [vmem:[%s2602_s0 + $0x230] sm:$0xff] }
   0xa   :  { %1030 = vst [vmem:[%s2603_s1 + $0x80] sm:$0xff] %v872_v4  ;;  %1031 = vst [vmem:[%s2603_s1 + $0x590] sm:$0xff] %v874_v5  ;;  %v900_v18 = vld [vmem:[%s2602_s0 + $0x90] sm:$0xff]  ;;  %v902_v19 = vld [vmem:[%s2602_s0 + $0x240] sm:$0xff] }
   0xb   :  { %877 = vst [vmem:[%s2603_s1 + $0x90] sm:$0xff] %v876_v6  ;;  %879 = vst [vmem:[%s2603_s1 + $0x5a0] sm:$0xff] %v878_v7  ;;  %v904_v20 = vld [vmem:[%s2602_s0 + $0xa0] sm:$0xff]  ;;  %v906_v21 = vld [vmem:[%s2602_s0 + $0x250] sm:$0xff] }
   0xc   :  { %881 = vst [vmem:[%s2603_s1 + $0xc0] sm:$0xff] %v880_v8  ;;  %978 = vst [vmem:[%s2603_s1 + $0xa0] sm:$0xff] %v876_v6  ;;  %v908_v22 = vld [vmem:[%s2602_s0 + $0xb0] sm:$0xff]  ;;  %v910_v23 = vld [vmem:[%s2602_s0 + $0x260] sm:$0xff] }
   0xd   :  { %979 = vst [vmem:[%s2603_s1 + $0x5b0] sm:$0xff] %v878_v7  ;;  %980 = vst [vmem:[%s2603_s1 + $0xd0] sm:$0xff] %v880_v8  ;;  %v912_v24 = vld [vmem:[%s2602_s0 + $0xc0] sm:$0xff]  ;;  %v914_v25 = vld [vmem:[%s2602_s0 + $0x270] sm:$0xff] }
   0xe   :  { %1032 = vst [vmem:[%s2603_s1 + $0xb0] sm:$0xff] %v876_v6  ;;  %1033 = vst [vmem:[%s2603_s1 + $0x5c0] sm:$0xff] %v878_v7  ;;  %v916_v26 = vld [vmem:[%s2602_s0 + $0xd0] sm:$0xff]  ;;  %v918_v27 = vld [vmem:[%s2602_s0 + $0x280] sm:$0xff] }
   0xf   :  { %1034 = vst [vmem:[%s2603_s1 + $0xe0] sm:$0xff] %v880_v8  ;;  %883 = vst [vmem:[%s2603_s1 + $0x5d0] sm:$0xff] %v882_v9  ;;  %v920_v28 = vld [vmem:[%s2602_s0 + $0xe0] sm:$0xff]  ;;  %v922_v29 = vld [vmem:[%s2602_s0 + $0x290] sm:$0xff] }
  0x10   :  { %885 = vst [vmem:[%s2603_s1 + $0xf0] sm:$0xff] %v884_v10  ;;  %887 = vst [vmem:[%s2603_s1 + $0x600] sm:$0xff] %v886_v11  ;;  %v924_v30 = vld [vmem:[%s2602_s0 + $0xf0] sm:$0xff]  ;;  %v926_v31 = vld [vmem:[%s2602_s0 + $0x2a0] sm:$0xff] }
  0x11   :  { %981 = vst [vmem:[%s2603_s1 + $0x5e0] sm:$0xff] %v882_v9  ;;  %982 = vst [vmem:[%s2603_s1 + $0x100] sm:$0xff] %v884_v10  ;;  %v928_v32 = vld [vmem:[%s2602_s0 + $0x100] sm:$0xff]  ;;  %v930_v33 = vld [vmem:[%s2602_s0 + $0x2b0] sm:$0xff] }
  0x12   :  { %983 = vst [vmem:[%s2603_s1 + $0x610] sm:$0xff] %v886_v11  ;;  %1035 = vst [vmem:[%s2603_s1 + $0x5f0] sm:$0xff] %v882_v9  ;;  %v932_v34 = vld [vmem:[%s2602_s0 + $0x110] sm:$0xff]  ;;  %v934_v35 = vld [vmem:[%s2602_s0 + $0x2c0] sm:$0xff] }
  0x13   :  { %1036 = vst [vmem:[%s2603_s1 + $0x110] sm:$0xff] %v884_v10  ;;  %1037 = vst [vmem:[%s2603_s1 + $0x620] sm:$0xff] %v886_v11  ;;  %v936_v36 = vld [vmem:[%s2602_s0 + $0x120] sm:$0xff]  ;;  %v938_v37 = vld [vmem:[%s2602_s0 + $0x2d0] sm:$0xff] }
  0x14   :  { %889 = vst [vmem:[%s2603_s1 + $0x120] sm:$0xff] %v888_v12  ;;  %891 = vst [vmem:[%s2603_s1 + $0x630] sm:$0xff] %v890_v13  ;;  %v940_v38 = vld [vmem:[%s2602_s0 + $0x130] sm:$0xff]  ;;  %v942_v39 = vld [vmem:[%s2602_s0 + $0x2e0] sm:$0xff] }
  0x15   :  { %893 = vst [vmem:[%s2603_s1 + $0x150] sm:$0xff] %v892_v14  ;;  %984 = vst [vmem:[%s2603_s1 + $0x130] sm:$0xff] %v888_v12  ;;  %v944_v40 = vld [vmem:[%s2602_s0 + $0x140] sm:$0xff]  ;;  %v946_v41 = vld [vmem:[%s2602_s0 + $0x2f0] sm:$0xff] }
  0x16   :  { %985 = vst [vmem:[%s2603_s1 + $0x640] sm:$0xff] %v890_v13  ;;  %986 = vst [vmem:[%s2603_s1 + $0x160] sm:$0xff] %v892_v14  ;;  %v948_v42 = vld [vmem:[%s2602_s0 + $0x150] sm:$0xff]  ;;  %v950_v43 = vld [vmem:[%s2602_s0 + $0x300] sm:$0xff] }
  0x17   :  { %1038 = vst [vmem:[%s2603_s1 + $0x140] sm:$0xff] %v888_v12  ;;  %1039 = vst [vmem:[%s2603_s1 + $0x650] sm:$0xff] %v890_v13  ;;  %v952_v44 = vld [vmem:[%s2602_s0 + $0x160] sm:$0xff]  ;;  %v954_v45 = vld [vmem:[%s2602_s0 + $0x310] sm:$0xff] }
  0x18   :  { %1040 = vst [vmem:[%s2603_s1 + $0x170] sm:$0xff] %v892_v14  ;;  %895 = vst [vmem:[%s2603_s1 + $0x660] sm:$0xff] %v894_v15  ;;  %v956_v46 = vld [vmem:[%s2602_s0 + $0x170] sm:$0xff]  ;;  %v958_v47 = vld [vmem:[%s2602_s0 + $0x320] sm:$0xff] }
  0x19   :  { %897 = vst [vmem:[%s2603_s1 + $0x180] sm:$0xff] %v896_v16  ;;  %899 = vst [vmem:[%s2603_s1 + $0x690] sm:$0xff] %v898_v17  ;;  %v960_v48 = vld [vmem:[%s2602_s0 + $0x180] sm:$0xff]  ;;  %v962_v49 = vld [vmem:[%s2602_s0 + $0x330] sm:$0xff] }
  0x1a   :  { %987 = vst [vmem:[%s2603_s1 + $0x670] sm:$0xff] %v894_v15  ;;  %988 = vst [vmem:[%s2603_s1 + $0x190] sm:$0xff] %v896_v16  ;;  %v964_v50 = vld [vmem:[%s2602_s0 + $0x190] sm:$0xff]  ;;  %v966_v51 = vld [vmem:[%s2602_s0 + $0x340] sm:$0xff] }
  0x1b   :  { %989 = vst [vmem:[%s2603_s1 + $0x6a0] sm:$0xff] %v898_v17  ;;  %1041 = vst [vmem:[%s2603_s1 + $0x680] sm:$0xff] %v894_v15  ;;  %v968_v52 = vld [vmem:[%s2602_s0 + $0x1a0] sm:$0xff]  ;;  %v970_v53 = vld [vmem:[%s2602_s0 + $0x350] sm:$0xff] }
  0x1c   :  { %1042 = vst [vmem:[%s2603_s1 + $0x1a0] sm:$0xff] %v896_v16  ;;  %1043 = vst [vmem:[%s2603_s1 + $0x6b0] sm:$0xff] %v898_v17  ;;  %v1082_v55 = vld [vmem:[%s2602_s0 + $0x1b8] sm:$0xff]  ;;  %v1086_v57 = vld [vmem:[%s2602_s0 + $0x1c8] sm:$0xff] }
  0x1d   :  { %901 = vst [vmem:[%s2603_s1 + $0x1b0] sm:$0xff] %v900_v18  ;;  %903 = vst [vmem:[%s2603_s1 + $0x6c0] sm:$0xff] %v902_v19  ;;  %v1084_v56 = vld [vmem:[%s2602_s0 + $0x18] sm:$0xff]  ;;  %v1088_v58 = vld [vmem:[%s2602_s0 + $0x28] sm:$0xff] }
  0x1e   :  { %905 = vst [vmem:[%s2603_s1 + $0x1e0] sm:$0xff] %v904_v20  ;;  %990 = vst [vmem:[%s2603_s1 + $0x1c0] sm:$0xff] %v900_v18  ;;  %v1090_v59 = vld [vmem:[%s2602_s0 + $0x1d8] sm:$0xff]  ;;  %v1094_v61 = vld [vmem:[%s2602_s0 + $0x1e8] sm:$0xff] }
  0x1f   :  { %991 = vst [vmem:[%s2603_s1 + $0x6d0] sm:$0xff] %v902_v19  ;;  %992 = vst [vmem:[%s2603_s1 + $0x1f0] sm:$0xff] %v904_v20  ;;  %v1092_v60 = vld [vmem:[%s2602_s0 + $0x38] sm:$0xff]  ;;  %v1096_v62 = vld [vmem:[%s2602_s0 + $0x48] sm:$0xff] }
  0x20   :  { %1044 = vst [vmem:[%s2603_s1 + $0x1d0] sm:$0xff] %v900_v18  ;;  %1045 = vst [vmem:[%s2603_s1 + $0x6e0] sm:$0xff] %v902_v19  ;;  %v1098_v63 = vld [vmem:[%s2602_s0 + $0x1f8] sm:$0xff]  ;;  %v1102_v1 = vld [vmem:[%s2602_s0 + $0x208] sm:$0xff] }
  0x21   :  { %1046 = vst [vmem:[%s2603_s1 + $0x200] sm:$0xff] %v904_v20  ;;  %907 = vst [vmem:[%s2603_s1 + $0x6f0] sm:$0xff] %v906_v21  ;;  %v1100_v0 = vld [vmem:[%s2602_s0 + $0x58] sm:$0xff]  ;;  %v1104_v2 = vld [vmem:[%s2602_s0 + $0x68] sm:$0xff] }
  0x22   :  { %909 = vst [vmem:[%s2603_s1 + $0x210] sm:$0xff] %v908_v22  ;;  %911 = vst [vmem:[%s2603_s1 + $0x720] sm:$0xff] %v910_v23  ;;  %v1106_v3 = vld [vmem:[%s2602_s0 + $0x218] sm:$0xff]  ;;  %v1110_v5 = vld [vmem:[%s2602_s0 + $0x228] sm:$0xff] }
  0x23   :  { %993 = vst [vmem:[%s2603_s1 + $0x700] sm:$0xff] %v906_v21  ;;  %994 = vst [vmem:[%s2603_s1 + $0x220] sm:$0xff] %v908_v22  ;;  %v1108_v4 = vld [vmem:[%s2602_s0 + $0x78] sm:$0xff]  ;;  %v1112_v6 = vld [vmem:[%s2602_s0 + $0x88] sm:$0xff] }
  0x24   :  { %995 = vst [vmem:[%s2603_s1 + $0x730] sm:$0xff] %v910_v23  ;;  %1047 = vst [vmem:[%s2603_s1 + $0x710] sm:$0xff] %v906_v21  ;;  %v1114_v7 = vld [vmem:[%s2602_s0 + $0x238] sm:$0xff]  ;;  %v1118_v9 = vld [vmem:[%s2602_s0 + $0x248] sm:$0xff] }
  0x25   :  { %1048 = vst [vmem:[%s2603_s1 + $0x230] sm:$0xff] %v908_v22  ;;  %1049 = vst [vmem:[%s2603_s1 + $0x740] sm:$0xff] %v910_v23  ;;  %v1116_v8 = vld [vmem:[%s2602_s0 + $0x98] sm:$0xff]  ;;  %v1120_v10 = vld [vmem:[%s2602_s0 + $0xa8] sm:$0xff] }
  0x26   :  { %913 = vst [vmem:[%s2603_s1 + $0x240] sm:$0xff] %v912_v24  ;;  %915 = vst [vmem:[%s2603_s1 + $0x750] sm:$0xff] %v914_v25  ;;  %v1122_v11 = vld [vmem:[%s2602_s0 + $0x258] sm:$0xff]  ;;  %v1126_v13 = vld [vmem:[%s2602_s0 + $0x268] sm:$0xff] }
  0x27   :  { %917 = vst [vmem:[%s2603_s1 + $0x270] sm:$0xff] %v916_v26  ;;  %996 = vst [vmem:[%s2603_s1 + $0x250] sm:$0xff] %v912_v24  ;;  %v1124_v12 = vld [vmem:[%s2602_s0 + $0xb8] sm:$0xff]  ;;  %v1128_v14 = vld [vmem:[%s2602_s0 + $0xc8] sm:$0xff] }
  0x28   :  { %997 = vst [vmem:[%s2603_s1 + $0x760] sm:$0xff] %v914_v25  ;;  %998 = vst [vmem:[%s2603_s1 + $0x280] sm:$0xff] %v916_v26  ;;  %v1130_v15 = vld [vmem:[%s2602_s0 + $0x278] sm:$0xff]  ;;  %v1134_v17 = vld [vmem:[%s2602_s0 + $0x288] sm:$0xff] }
  0x29   :  { %1050 = vst [vmem:[%s2603_s1 + $0x260] sm:$0xff] %v912_v24  ;;  %1051 = vst [vmem:[%s2603_s1 + $0x770] sm:$0xff] %v914_v25  ;;  %v1132_v16 = vld [vmem:[%s2602_s0 + $0xd8] sm:$0xff]  ;;  %v1136_v18 = vld [vmem:[%s2602_s0 + $0xe8] sm:$0xff] }
  0x2a   :  { %1052 = vst [vmem:[%s2603_s1 + $0x290] sm:$0xff] %v916_v26  ;;  %919 = vst [vmem:[%s2603_s1 + $0x780] sm:$0xff] %v918_v27  ;;  %v1138_v19 = vld [vmem:[%s2602_s0 + $0x298] sm:$0xff]  ;;  %v1142_v21 = vld [vmem:[%s2602_s0 + $0x2a8] sm:$0xff] }
  0x2b   :  { %921 = vst [vmem:[%s2603_s1 + $0x2a0] sm:$0xff] %v920_v28  ;;  %923 = vst [vmem:[%s2603_s1 + $0x7b0] sm:$0xff] %v922_v29  ;;  %v1140_v20 = vld [vmem:[%s2602_s0 + $0xf8] sm:$0xff]  ;;  %v1144_v22 = vld [vmem:[%s2602_s0 + $0x108] sm:$0xff] }
  0x2c   :  { %999 = vst [vmem:[%s2603_s1 + $0x790] sm:$0xff] %v918_v27  ;;  %1000 = vst [vmem:[%s2603_s1 + $0x2b0] sm:$0xff] %v920_v28  ;;  %v1146_v23 = vld [vmem:[%s2602_s0 + $0x2b8] sm:$0xff]  ;;  %v1150_v25 = vld [vmem:[%s2602_s0 + $0x2c8] sm:$0xff] }
  0x2d   :  { %1001 = vst [vmem:[%s2603_s1 + $0x7c0] sm:$0xff] %v922_v29  ;;  %1053 = vst [vmem:[%s2603_s1 + $0x7a0] sm:$0xff] %v918_v27  ;;  %v1148_v24 = vld [vmem:[%s2602_s0 + $0x118] sm:$0xff]  ;;  %v1152_v26 = vld [vmem:[%s2602_s0 + $0x128] sm:$0xff] }
  0x2e   :  { %1054 = vst [vmem:[%s2603_s1 + $0x2c0] sm:$0xff] %v920_v28  ;;  %1055 = vst [vmem:[%s2603_s1 + $0x7d0] sm:$0xff] %v922_v29  ;;  %v1154_v27 = vld [vmem:[%s2602_s0 + $0x2d8] sm:$0xff]  ;;  %v1158_v29 = vld [vmem:[%s2602_s0 + $0x2e8] sm:$0xff] }
  0x2f   :  { %925 = vst [vmem:[%s2603_s1 + $0x2d0] sm:$0xff] %v924_v30  ;;  %927 = vst [vmem:[%s2603_s1 + $0x7e0] sm:$0xff] %v926_v31  ;;  %v1156_v28 = vld [vmem:[%s2602_s0 + $0x138] sm:$0xff] }
  0x30   :  { %929 = vst [vmem:[%s2603_s1 + $0x300] sm:$0xff] %v928_v32  ;;  %1002 = vst [vmem:[%s2603_s1 + $0x2e0] sm:$0xff] %v924_v30 }
  0x31   :  { %1003 = vst [vmem:[%s2603_s1 + $0x7f0] sm:$0xff] %v926_v31  ;;  %1004 = vst [vmem:[%s2603_s1 + $0x310] sm:$0xff] %v928_v32 }
  0x32   :  { %1056 = vst [vmem:[%s2603_s1 + $0x2f0] sm:$0xff] %v924_v30  ;;  %1057 = vst [vmem:[%s2603_s1 + $0x800] sm:$0xff] %v926_v31  ;;  %v1160_v30 = vld [vmem:[%s2602_s0 + $0x148] sm:$0xff]  ;;  %v1162_v31 = vld [vmem:[%s2602_s0 + $0x2f8] sm:$0xff] }
  0x33   :  { %1058 = vst [vmem:[%s2603_s1 + $0x320] sm:$0xff] %v928_v32  ;;  %931 = vst [vmem:[%s2603_s1 + $0x810] sm:$0xff] %v930_v33  ;;  %v1164_v32 = vld [vmem:[%s2602_s0 + $0x158] sm:$0xff] }
  0x34   :  { %933 = vst [vmem:[%s2603_s1 + $0x330] sm:$0xff] %v932_v34  ;;  %935 = vst [vmem:[%s2603_s1 + $0x840] sm:$0xff] %v934_v35 }
  0x35   :  { %1005 = vst [vmem:[%s2603_s1 + $0x820] sm:$0xff] %v930_v33  ;;  %1006 = vst [vmem:[%s2603_s1 + $0x340] sm:$0xff] %v932_v34 }
  0x36   :  { %1007 = vst [vmem:[%s2603_s1 + $0x850] sm:$0xff] %v934_v35  ;;  %1059 = vst [vmem:[%s2603_s1 + $0x830] sm:$0xff] %v930_v33  ;;  %v1166_v33 = vld [vmem:[%s2602_s0 + $0x308] sm:$0xff] }
  0x37   :  { %1060 = vst [vmem:[%s2603_s1 + $0x350] sm:$0xff] %v932_v34  ;;  %1061 = vst [vmem:[%s2603_s1 + $0x860] sm:$0xff] %v934_v35  ;;  %v1168_v34 = vld [vmem:[%s2602_s0 + $0x168] sm:$0xff]  ;;  %v1170_v35 = vld [vmem:[%s2602_s0 + $0x318] sm:$0xff] }
  0x38   :  { %937 = vst [vmem:[%s2603_s1 + $0x360] sm:$0xff] %v936_v36  ;;  %939 = vst [vmem:[%s2603_s1 + $0x870] sm:$0xff] %v938_v37 }
  0x39   :  { %941 = vst [vmem:[%s2603_s1 + $0x390] sm:$0xff] %v940_v38  ;;  %1008 = vst [vmem:[%s2603_s1 + $0x370] sm:$0xff] %v936_v36 }
  0x3a   :  { %1009 = vst [vmem:[%s2603_s1 + $0x880] sm:$0xff] %v938_v37  ;;  %1010 = vst [vmem:[%s2603_s1 + $0x3a0] sm:$0xff] %v940_v38 }
  0x3b   :  { %1062 = vst [vmem:[%s2603_s1 + $0x380] sm:$0xff] %v936_v36  ;;  %1063 = vst [vmem:[%s2603_s1 + $0x890] sm:$0xff] %v938_v37  ;;  %v1172_v36 = vld [vmem:[%s2602_s0 + $0x178] sm:$0xff]  ;;  %v1174_v37 = vld [vmem:[%s2602_s0 + $0x328] sm:$0xff] }
  0x3c   :  { %1064 = vst [vmem:[%s2603_s1 + $0x3b0] sm:$0xff] %v940_v38  ;;  %943 = vst [vmem:[%s2603_s1 + $0x8a0] sm:$0xff] %v942_v39  ;;  %v1176_v38 = vld [vmem:[%s2602_s0 + $0x188] sm:$0xff] }
  0x3d   :  { %945 = vst [vmem:[%s2603_s1 + $0x3c0] sm:$0xff] %v944_v40  ;;  %947 = vst [vmem:[%s2603_s1 + $0x8d0] sm:$0xff] %v946_v41 }
  0x3e   :  { %1011 = vst [vmem:[%s2603_s1 + $0x8b0] sm:$0xff] %v942_v39  ;;  %1012 = vst [vmem:[%s2603_s1 + $0x3d0] sm:$0xff] %v944_v40 }
  0x3f   :  { %1013 = vst [vmem:[%s2603_s1 + $0x8e0] sm:$0xff] %v946_v41  ;;  %1065 = vst [vmem:[%s2603_s1 + $0x8c0] sm:$0xff] %v942_v39  ;;  %v1178_v39 = vld [vmem:[%s2602_s0 + $0x338] sm:$0xff] }
  0x40   :  { %1066 = vst [vmem:[%s2603_s1 + $0x3e0] sm:$0xff] %v944_v40  ;;  %1067 = vst [vmem:[%s2603_s1 + $0x8f0] sm:$0xff] %v946_v41  ;;  %v1180_v40 = vld [vmem:[%s2602_s0 + $0x198] sm:$0xff]  ;;  %v1182_v41 = vld [vmem:[%s2602_s0 + $0x348] sm:$0xff] }
  0x41   :  { %949 = vst [vmem:[%s2603_s1 + $0x3f0] sm:$0xff] %v948_v42  ;;  %951 = vst [vmem:[%s2603_s1 + $0x900] sm:$0xff] %v950_v43 }
  0x42   :  { %953 = vst [vmem:[%s2603_s1 + $0x420] sm:$0xff] %v952_v44  ;;  %1014 = vst [vmem:[%s2603_s1 + $0x400] sm:$0xff] %v948_v42 }
  0x43   :  { %1015 = vst [vmem:[%s2603_s1 + $0x910] sm:$0xff] %v950_v43  ;;  %1016 = vst [vmem:[%s2603_s1 + $0x430] sm:$0xff] %v952_v44 }
  0x44   :  { %1068 = vst [vmem:[%s2603_s1 + $0x410] sm:$0xff] %v948_v42  ;;  %1069 = vst [vmem:[%s2603_s1 + $0x920] sm:$0xff] %v950_v43  ;;  %v1184_v42 = vld [vmem:[%s2602_s0 + $0x1a8] sm:$0xff]  ;;  %v1186_v43 = vld [vmem:[%s2602_s0 + $0x358] sm:$0xff] }
  0x45   :  { %1070 = vst [vmem:[%s2603_s1 + $0x440] sm:$0xff] %v952_v44  ;;  %955 = vst [vmem:[%s2603_s1 + $0x930] sm:$0xff] %v954_v45 }
  0x46   :  { %957 = vst [vmem:[%s2603_s1 + $0x450] sm:$0xff] %v956_v46  ;;  %959 = vst [vmem:[%s2603_s1 + $0x960] sm:$0xff] %v958_v47 }
  0x47   :  { %1017 = vst [vmem:[%s2603_s1 + $0x940] sm:$0xff] %v954_v45  ;;  %1018 = vst [vmem:[%s2603_s1 + $0x460] sm:$0xff] %v956_v46 }
  0x48   :  { %1019 = vst [vmem:[%s2603_s1 + $0x970] sm:$0xff] %v958_v47  ;;  %1071 = vst [vmem:[%s2603_s1 + $0x950] sm:$0xff] %v954_v45 }
  0x49   :  { %1072 = vst [vmem:[%s2603_s1 + $0x470] sm:$0xff] %v956_v46  ;;  %1073 = vst [vmem:[%s2603_s1 + $0x980] sm:$0xff] %v958_v47 }
  0x4a   :  { %961 = vst [vmem:[%s2603_s1 + $0x480] sm:$0xff] %v960_v48  ;;  %963 = vst [vmem:[%s2603_s1 + $0x990] sm:$0xff] %v962_v49 }
  0x4b   :  { %965 = vst [vmem:[%s2603_s1 + $0x4b0] sm:$0xff] %v964_v50  ;;  %1020 = vst [vmem:[%s2603_s1 + $0x490] sm:$0xff] %v960_v48 }
  0x4c   :  { %1021 = vst [vmem:[%s2603_s1 + $0x9a0] sm:$0xff] %v962_v49  ;;  %1022 = vst [vmem:[%s2603_s1 + $0x4c0] sm:$0xff] %v964_v50 }
  0x4d   :  { %1074 = vst [vmem:[%s2603_s1 + $0x4a0] sm:$0xff] %v960_v48  ;;  %1075 = vst [vmem:[%s2603_s1 + $0x9b0] sm:$0xff] %v962_v49 }
  0x4e   :  { %1076 = vst [vmem:[%s2603_s1 + $0x4d0] sm:$0xff] %v964_v50  ;;  %967 = vst [vmem:[%s2603_s1 + $0x9c0] sm:$0xff] %v966_v51 }
  0x4f   :  { %969 = vst [vmem:[%s2603_s1 + $0x4e0] sm:$0xff] %v968_v52  ;;  %971 = vst [vmem:[%s2603_s1 + $0x9f0] sm:$0xff] %v970_v53 }
  0x50   :  { %1023 = vst [vmem:[%s2603_s1 + $0x9d0] sm:$0xff] %v966_v51  ;;  %1024 = vst [vmem:[%s2603_s1 + $0x4f0] sm:$0xff] %v968_v52 }
  0x51   :  { %1025 = vst [vmem:[%s2603_s1 + $0xa00] sm:$0xff] %v970_v53  ;;  %1077 = vst [vmem:[%s2603_s1 + $0x9e0] sm:$0xff] %v966_v51 }
  0x52   :  { %1078 = vst [vmem:[%s2603_s1 + $0x500] sm:$0xff] %v968_v52  ;;  %1079 = vst [vmem:[%s2603_s1 + $0xa10] sm:$0xff] %v970_v53 }
  0x53   :  { %1081 = vst [vmem:[%s2603_s1 + $0x8] sm:$0xff] %v1080_v54  ;;  %1083 = vst [vmem:[%s2603_s1 + $0x518] sm:$0xff] %v1082_v55 }
  0x54   :  { %1085 = vst [vmem:[%s2603_s1 + $0x38] sm:$0xff] %v1084_v56  ;;  %1188 = vst [vmem:[%s2603_s1 + $0x18] sm:$0xff] %v1080_v54 }
  0x55   :  { %1189 = vst [vmem:[%s2603_s1 + $0x528] sm:$0xff] %v1082_v55  ;;  %1190 = vst [vmem:[%s2603_s1 + $0x48] sm:$0xff] %v1084_v56 }
  0x56   :  { %1242 = vst [vmem:[%s2603_s1 + $0x28] sm:$0xff] %v1080_v54  ;;  %1243 = vst [vmem:[%s2603_s1 + $0x538] sm:$0xff] %v1082_v55 }
  0x57   :  { %1244 = vst [vmem:[%s2603_s1 + $0x58] sm:$0xff] %v1084_v56  ;;  %1087 = vst [vmem:[%s2603_s1 + $0x548] sm:$0xff] %v1086_v57 }
  0x58   :  { %1089 = vst [vmem:[%s2603_s1 + $0x68] sm:$0xff] %v1088_v58  ;;  %1091 = vst [vmem:[%s2603_s1 + $0x578] sm:$0xff] %v1090_v59 }
  0x59   :  { %1191 = vst [vmem:[%s2603_s1 + $0x558] sm:$0xff] %v1086_v57  ;;  %1192 = vst [vmem:[%s2603_s1 + $0x78] sm:$0xff] %v1088_v58 }
  0x5a   :  { %1193 = vst [vmem:[%s2603_s1 + $0x588] sm:$0xff] %v1090_v59  ;;  %1245 = vst [vmem:[%s2603_s1 + $0x568] sm:$0xff] %v1086_v57 }
  0x5b   :  { %1246 = vst [vmem:[%s2603_s1 + $0x88] sm:$0xff] %v1088_v58  ;;  %1247 = vst [vmem:[%s2603_s1 + $0x598] sm:$0xff] %v1090_v59 }
  0x5c   :  { %1093 = vst [vmem:[%s2603_s1 + $0x98] sm:$0xff] %v1092_v60  ;;  %1095 = vst [vmem:[%s2603_s1 + $0x5a8] sm:$0xff] %v1094_v61 }
  0x5d   :  { %1097 = vst [vmem:[%s2603_s1 + $0xc8] sm:$0xff] %v1096_v62  ;;  %1194 = vst [vmem:[%s2603_s1 + $0xa8] sm:$0xff] %v1092_v60 }
  0x5e   :  { %1195 = vst [vmem:[%s2603_s1 + $0x5b8] sm:$0xff] %v1094_v61  ;;  %1196 = vst [vmem:[%s2603_s1 + $0xd8] sm:$0xff] %v1096_v62 }
  0x5f   :  { %1248 = vst [vmem:[%s2603_s1 + $0xb8] sm:$0xff] %v1092_v60  ;;  %1249 = vst [vmem:[%s2603_s1 + $0x5c8] sm:$0xff] %v1094_v61 }
  0x60   :  { %1250 = vst [vmem:[%s2603_s1 + $0xe8] sm:$0xff] %v1096_v62  ;;  %1099 = vst [vmem:[%s2603_s1 + $0x5d8] sm:$0xff] %v1098_v63 }
  0x61   :  { %1101 = vst [vmem:[%s2603_s1 + $0xf8] sm:$0xff] %v1100_v0  ;;  %1103 = vst [vmem:[%s2603_s1 + $0x608] sm:$0xff] %v1102_v1 }
  0x62   :  { %1197 = vst [vmem:[%s2603_s1 + $0x5e8] sm:$0xff] %v1098_v63  ;;  %1198 = vst [vmem:[%s2603_s1 + $0x108] sm:$0xff] %v1100_v0 }
  0x63   :  { %1199 = vst [vmem:[%s2603_s1 + $0x618] sm:$0xff] %v1102_v1  ;;  %1251 = vst [vmem:[%s2603_s1 + $0x5f8] sm:$0xff] %v1098_v63 }
  0x64   :  { %1252 = vst [vmem:[%s2603_s1 + $0x118] sm:$0xff] %v1100_v0  ;;  %1253 = vst [vmem:[%s2603_s1 + $0x628] sm:$0xff] %v1102_v1 }
  0x65   :  { %1105 = vst [vmem:[%s2603_s1 + $0x128] sm:$0xff] %v1104_v2  ;;  %1107 = vst [vmem:[%s2603_s1 + $0x638] sm:$0xff] %v1106_v3 }
  0x66   :  { %1109 = vst [vmem:[%s2603_s1 + $0x158] sm:$0xff] %v1108_v4  ;;  %1200 = vst [vmem:[%s2603_s1 + $0x138] sm:$0xff] %v1104_v2 }
  0x67   :  { %1201 = vst [vmem:[%s2603_s1 + $0x648] sm:$0xff] %v1106_v3  ;;  %1202 = vst [vmem:[%s2603_s1 + $0x168] sm:$0xff] %v1108_v4 }
  0x68   :  { %1254 = vst [vmem:[%s2603_s1 + $0x148] sm:$0xff] %v1104_v2  ;;  %1255 = vst [vmem:[%s2603_s1 + $0x658] sm:$0xff] %v1106_v3 }
  0x69   :  { %1256 = vst [vmem:[%s2603_s1 + $0x178] sm:$0xff] %v1108_v4  ;;  %1111 = vst [vmem:[%s2603_s1 + $0x668] sm:$0xff] %v1110_v5 }
  0x6a   :  { %1113 = vst [vmem:[%s2603_s1 + $0x188] sm:$0xff] %v1112_v6  ;;  %1115 = vst [vmem:[%s2603_s1 + $0x698] sm:$0xff] %v1114_v7 }
  0x6b   :  { %1203 = vst [vmem:[%s2603_s1 + $0x678] sm:$0xff] %v1110_v5  ;;  %1204 = vst [vmem:[%s2603_s1 + $0x198] sm:$0xff] %v1112_v6 }
  0x6c   :  { %1205 = vst [vmem:[%s2603_s1 + $0x6a8] sm:$0xff] %v1114_v7  ;;  %1257 = vst [vmem:[%s2603_s1 + $0x688] sm:$0xff] %v1110_v5 }
  0x6d   :  { %1258 = vst [vmem:[%s2603_s1 + $0x1a8] sm:$0xff] %v1112_v6  ;;  %1259 = vst [vmem:[%s2603_s1 + $0x6b8] sm:$0xff] %v1114_v7 }
  0x6e   :  { %1117 = vst [vmem:[%s2603_s1 + $0x1b8] sm:$0xff] %v1116_v8  ;;  %1119 = vst [vmem:[%s2603_s1 + $0x6c8] sm:$0xff] %v1118_v9 }
  0x6f   :  { %1121 = vst [vmem:[%s2603_s1 + $0x1e8] sm:$0xff] %v1120_v10  ;;  %1206 = vst [vmem:[%s2603_s1 + $0x1c8] sm:$0xff] %v1116_v8 }
  0x70   :  { %1207 = vst [vmem:[%s2603_s1 + $0x6d8] sm:$0xff] %v1118_v9  ;;  %1208 = vst [vmem:[%s2603_s1 + $0x1f8] sm:$0xff] %v1120_v10 }
  0x71   :  { %1260 = vst [vmem:[%s2603_s1 + $0x1d8] sm:$0xff] %v1116_v8  ;;  %1261 = vst [vmem:[%s2603_s1 + $0x6e8] sm:$0xff] %v1118_v9 }
  0x72   :  { %1262 = vst [vmem:[%s2603_s1 + $0x208] sm:$0xff] %v1120_v10  ;;  %1123 = vst [vmem:[%s2603_s1 + $0x6f8] sm:$0xff] %v1122_v11 }
  0x73   :  { %1125 = vst [vmem:[%s2603_s1 + $0x218] sm:$0xff] %v1124_v12  ;;  %1127 = vst [vmem:[%s2603_s1 + $0x728] sm:$0xff] %v1126_v13 }
  0x74   :  { %1209 = vst [vmem:[%s2603_s1 + $0x708] sm:$0xff] %v1122_v11  ;;  %1210 = vst [vmem:[%s2603_s1 + $0x228] sm:$0xff] %v1124_v12 }
  0x75   :  { %1211 = vst [vmem:[%s2603_s1 + $0x738] sm:$0xff] %v1126_v13  ;;  %1263 = vst [vmem:[%s2603_s1 + $0x718] sm:$0xff] %v1122_v11 }
  0x76   :  { %1264 = vst [vmem:[%s2603_s1 + $0x238] sm:$0xff] %v1124_v12  ;;  %1265 = vst [vmem:[%s2603_s1 + $0x748] sm:$0xff] %v1126_v13 }
  0x77   :  { %1129 = vst [vmem:[%s2603_s1 + $0x248] sm:$0xff] %v1128_v14  ;;  %1131 = vst [vmem:[%s2603_s1 + $0x758] sm:$0xff] %v1130_v15 }
  0x78   :  { %1133 = vst [vmem:[%s2603_s1 + $0x278] sm:$0xff] %v1132_v16  ;;  %1212 = vst [vmem:[%s2603_s1 + $0x258] sm:$0xff] %v1128_v14 }
  0x79   :  { %1213 = vst [vmem:[%s2603_s1 + $0x768] sm:$0xff] %v1130_v15  ;;  %1214 = vst [vmem:[%s2603_s1 + $0x288] sm:$0xff] %v1132_v16 }
  0x7a   :  { %1266 = vst [vmem:[%s2603_s1 + $0x268] sm:$0xff] %v1128_v14  ;;  %1267 = vst [vmem:[%s2603_s1 + $0x778] sm:$0xff] %v1130_v15 }
  0x7b   :  { %1268 = vst [vmem:[%s2603_s1 + $0x298] sm:$0xff] %v1132_v16  ;;  %1135 = vst [vmem:[%s2603_s1 + $0x788] sm:$0xff] %v1134_v17 }
  0x7c   :  { %1137 = vst [vmem:[%s2603_s1 + $0x2a8] sm:$0xff] %v1136_v18  ;;  %1139 = vst [vmem:[%s2603_s1 + $0x7b8] sm:$0xff] %v1138_v19 }
  0x7d   :  { %1215 = vst [vmem:[%s2603_s1 + $0x798] sm:$0xff] %v1134_v17  ;;  %1216 = vst [vmem:[%s2603_s1 + $0x2b8] sm:$0xff] %v1136_v18 }
  0x7e   :  { %1217 = vst [vmem:[%s2603_s1 + $0x7c8] sm:$0xff] %v1138_v19  ;;  %1269 = vst [vmem:[%s2603_s1 + $0x7a8] sm:$0xff] %v1134_v17 }
  0x7f   :  { %1270 = vst [vmem:[%s2603_s1 + $0x2c8] sm:$0xff] %v1136_v18  ;;  %1271 = vst [vmem:[%s2603_s1 + $0x7d8] sm:$0xff] %v1138_v19 }
  0x80   :  { %1141 = vst [vmem:[%s2603_s1 + $0x2d8] sm:$0xff] %v1140_v20  ;;  %1143 = vst [vmem:[%s2603_s1 + $0x7e8] sm:$0xff] %v1142_v21 }
  0x81   :  { %1145 = vst [vmem:[%s2603_s1 + $0x308] sm:$0xff] %v1144_v22  ;;  %1218 = vst [vmem:[%s2603_s1 + $0x2e8] sm:$0xff] %v1140_v20 }
  0x82   :  { %1219 = vst [vmem:[%s2603_s1 + $0x7f8] sm:$0xff] %v1142_v21  ;;  %1220 = vst [vmem:[%s2603_s1 + $0x318] sm:$0xff] %v1144_v22 }
  0x83   :  { %1272 = vst [vmem:[%s2603_s1 + $0x2f8] sm:$0xff] %v1140_v20  ;;  %1273 = vst [vmem:[%s2603_s1 + $0x808] sm:$0xff] %v1142_v21 }
  0x84   :  { %1274 = vst [vmem:[%s2603_s1 + $0x328] sm:$0xff] %v1144_v22  ;;  %1147 = vst [vmem:[%s2603_s1 + $0x818] sm:$0xff] %v1146_v23 }
  0x85   :  { %1149 = vst [vmem:[%s2603_s1 + $0x338] sm:$0xff] %v1148_v24  ;;  %1151 = vst [vmem:[%s2603_s1 + $0x848] sm:$0xff] %v1150_v25 }
  0x86   :  { %1221 = vst [vmem:[%s2603_s1 + $0x828] sm:$0xff] %v1146_v23  ;;  %1222 = vst [vmem:[%s2603_s1 + $0x348] sm:$0xff] %v1148_v24 }
  0x87   :  { %1223 = vst [vmem:[%s2603_s1 + $0x858] sm:$0xff] %v1150_v25  ;;  %1275 = vst [vmem:[%s2603_s1 + $0x838] sm:$0xff] %v1146_v23 }
  0x88   :  { %1276 = vst [vmem:[%s2603_s1 + $0x358] sm:$0xff] %v1148_v24  ;;  %1277 = vst [vmem:[%s2603_s1 + $0x868] sm:$0xff] %v1150_v25 }
  0x89   :  { %1153 = vst [vmem:[%s2603_s1 + $0x368] sm:$0xff] %v1152_v26  ;;  %1155 = vst [vmem:[%s2603_s1 + $0x878] sm:$0xff] %v1154_v27 }
  0x8a   :  { %1157 = vst [vmem:[%s2603_s1 + $0x398] sm:$0xff] %v1156_v28  ;;  %1224 = vst [vmem:[%s2603_s1 + $0x378] sm:$0xff] %v1152_v26 }
  0x8b   :  { %1225 = vst [vmem:[%s2603_s1 + $0x888] sm:$0xff] %v1154_v27  ;;  %1226 = vst [vmem:[%s2603_s1 + $0x3a8] sm:$0xff] %v1156_v28 }
  0x8c   :  { %1278 = vst [vmem:[%s2603_s1 + $0x388] sm:$0xff] %v1152_v26  ;;  %1279 = vst [vmem:[%s2603_s1 + $0x898] sm:$0xff] %v1154_v27 }
  0x8d   :  { %1280 = vst [vmem:[%s2603_s1 + $0x3b8] sm:$0xff] %v1156_v28  ;;  %1159 = vst [vmem:[%s2603_s1 + $0x8a8] sm:$0xff] %v1158_v29 }
  0x8e   :  { %1161 = vst [vmem:[%s2603_s1 + $0x3c8] sm:$0xff] %v1160_v30  ;;  %1163 = vst [vmem:[%s2603_s1 + $0x8d8] sm:$0xff] %v1162_v31 }
  0x8f   :  { %1227 = vst [vmem:[%s2603_s1 + $0x8b8] sm:$0xff] %v1158_v29  ;;  %1228 = vst [vmem:[%s2603_s1 + $0x3d8] sm:$0xff] %v1160_v30 }
  0x90   :  { %1229 = vst [vmem:[%s2603_s1 + $0x8e8] sm:$0xff] %v1162_v31  ;;  %1281 = vst [vmem:[%s2603_s1 + $0x8c8] sm:$0xff] %v1158_v29 }
  0x91   :  { %1282 = vst [vmem:[%s2603_s1 + $0x3e8] sm:$0xff] %v1160_v30  ;;  %1283 = vst [vmem:[%s2603_s1 + $0x8f8] sm:$0xff] %v1162_v31 }
  0x92   :  { %1165 = vst [vmem:[%s2603_s1 + $0x3f8] sm:$0xff] %v1164_v32  ;;  %1167 = vst [vmem:[%s2603_s1 + $0x908] sm:$0xff] %v1166_v33 }
  0x93   :  { %1169 = vst [vmem:[%s2603_s1 + $0x428] sm:$0xff] %v1168_v34  ;;  %1230 = vst [vmem:[%s2603_s1 + $0x408] sm:$0xff] %v1164_v32 }
  0x94   :  { %1231 = vst [vmem:[%s2603_s1 + $0x918] sm:$0xff] %v1166_v33  ;;  %1232 = vst [vmem:[%s2603_s1 + $0x438] sm:$0xff] %v1168_v34 }
  0x95   :  { %1284 = vst [vmem:[%s2603_s1 + $0x418] sm:$0xff] %v1164_v32  ;;  %1285 = vst [vmem:[%s2603_s1 + $0x928] sm:$0xff] %v1166_v33 }
  0x96   :  { %1286 = vst [vmem:[%s2603_s1 + $0x448] sm:$0xff] %v1168_v34  ;;  %1171 = vst [vmem:[%s2603_s1 + $0x938] sm:$0xff] %v1170_v35 }
  0x97   :  { %1173 = vst [vmem:[%s2603_s1 + $0x458] sm:$0xff] %v1172_v36  ;;  %1175 = vst [vmem:[%s2603_s1 + $0x968] sm:$0xff] %v1174_v37 }
  0x98   :  { %1233 = vst [vmem:[%s2603_s1 + $0x948] sm:$0xff] %v1170_v35  ;;  %1234 = vst [vmem:[%s2603_s1 + $0x468] sm:$0xff] %v1172_v36 }
  0x99   :  { %1235 = vst [vmem:[%s2603_s1 + $0x978] sm:$0xff] %v1174_v37  ;;  %1287 = vst [vmem:[%s2603_s1 + $0x958] sm:$0xff] %v1170_v35 }
  0x9a   :  { %1288 = vst [vmem:[%s2603_s1 + $0x478] sm:$0xff] %v1172_v36  ;;  %1289 = vst [vmem:[%s2603_s1 + $0x988] sm:$0xff] %v1174_v37 }
  0x9b   :  { %1177 = vst [vmem:[%s2603_s1 + $0x488] sm:$0xff] %v1176_v38  ;;  %1179 = vst [vmem:[%s2603_s1 + $0x998] sm:$0xff] %v1178_v39 }
  0x9c   :  { %1181 = vst [vmem:[%s2603_s1 + $0x4b8] sm:$0xff] %v1180_v40  ;;  %1236 = vst [vmem:[%s2603_s1 + $0x498] sm:$0xff] %v1176_v38 }
  0x9d   :  { %1237 = vst [vmem:[%s2603_s1 + $0x9a8] sm:$0xff] %v1178_v39  ;;  %1238 = vst [vmem:[%s2603_s1 + $0x4c8] sm:$0xff] %v1180_v40 }
  0x9e   :  { %1290 = vst [vmem:[%s2603_s1 + $0x4a8] sm:$0xff] %v1176_v38  ;;  %1291 = vst [vmem:[%s2603_s1 + $0x9b8] sm:$0xff] %v1178_v39 }
  0x9f   :  { %1292 = vst [vmem:[%s2603_s1 + $0x4d8] sm:$0xff] %v1180_v40  ;;  %1183 = vst [vmem:[%s2603_s1 + $0x9c8] sm:$0xff] %v1182_v41 }
  0xa0   :  { %1185 = vst [vmem:[%s2603_s1 + $0x4e8] sm:$0xff] %v1184_v42  ;;  %1187 = vst [vmem:[%s2603_s1 + $0x9f8] sm:$0xff] %v1186_v43 }
  0xa1   :  { %1239 = vst [vmem:[%s2603_s1 + $0x9d8] sm:$0xff] %v1182_v41  ;;  %1240 = vst [vmem:[%s2603_s1 + $0x4f8] sm:$0xff] %v1184_v42 }
  0xa2   :  { %1241 = vst [vmem:[%s2603_s1 + $0xa08] sm:$0xff] %v1186_v43  ;;  %1293 = vst [vmem:[%s2603_s1 + $0x9e8] sm:$0xff] %v1182_v41 }
  0xa3   :  { %1294 = vst [vmem:[%s2603_s1 + $0x508] sm:$0xff] %v1184_v42  ;;  %1295 = vst [vmem:[%s2603_s1 + $0xa18] sm:$0xff] %v1186_v43 }

// kernel: a_call__.10
= control target key start
LH: loop header
LB: loop body
LE: loop exit
PB: predicated region body
PF: predicated region fallthrough
CT: control target
= control target key end

     0   :  { %8 = vsyncpa [#allocation3], 0  ;;  %s5284_s0 = inlined_call_operand.hbm [shape: bf16[4,10,18,256], index: 0, kind: input, shape index: {}]   ;;  %s5285_s1 = inlined_call_operand.hbm [shape: bf16[2304,128], index: 1, kind: input, shape index: {}]   ;;  %s5286_s2 = inlined_call_operand.hbm [shape: f32[1,128], index: 2, kind: input, shape index: {}]   ;;  %s5287_s3 = inlined_call_operand.hbm [shape: f32[4,8,16,128], index: 3, kind: output, shape index: {}]  }
   0x1   :  { %10 = vsyncpa [#allocation3 + $0x1], 0 }
   0x2   :  { %11 = vsyncpa [#allocation6], 0 }
   0x3   :  { %12 = vsyncpa [#allocation4], 0 }
   0x4   :  { %14 = vsyncpa [#allocation4 + $0x1], 0  ;;  %s4254_s12 = smov 0   ;;  %s4256_s13 = smov 0  }
   0x5   :  { %s4258_s14 = smov 0   ;;  %s4260_s15 = smov 0  }
   0x6 LB: > { %s4275_s16 = sadd.s32 4294967295, %s4222_s15   ;;  %s3003_s17 = sadd.s32 4294967294, %s4222_s15   ;;  %s4222_s15 = sphi %s4260_s15, %s5321_s15   ;;  %s4218_s14 = sphi %s4258_s14, %s5320_s14   ;;  %s4214_s13 = sphi %s4256_s13, %s5319_s13   ;;  %s4210_s12 = sphi %s4254_s12, %s5318_s12  }
   0x7   : > { %p40_p0 = scmp.ne.s32.totalorder %s4214_s13, %s4210_s12  ;;  %p5288_p1 = scmp.eq.s32.totalorder %s4275_s16, 0 }
   0x8   : > { %p112_p3 = scmp.eq.s32.totalorder %s3003_s17, 3  ;;  %p3004_p5 = scmp.ge.s32.totalorder %s4222_s15, 1 }
   0x9   : > { %p4284_p4 = por %p5288_p1, %p40_p0  ;;  %p119_p7 = scmp.lt.s32.totalorder %s4222_s15, 5 }
   0xa   : > { %p4289_p6 = por %p112_p3, %p40_p0  ;;  %s4224_s21 = smov [#allocation5]  }
   0xb   : > { %s5295_s18 = scalar_select %p4284_p4, 1, 0 }
   0xc   : > { %s5296_s19 = scalar_select %p4289_p6, 1, 0 }
   0xd   : > { %p4294_p8 = pnand %p3004_p5, %p119_p7  ;;  %s131_s22 = sshll.u32 %s4224_s21, 4  ;;  %s132_s22 = int_to_ptr.vmem [resolvable:$true] %s131_s22 }
   0xe   : > { %s4225_s24 = smov [#allocation7]   ;;  %s4066_s28 = scalar_lea.hbm %s5285_s1, 18432 }
   0xf   : > { %s5297_s20 = scalar_select %p4294_p8, 1, 0 }
  0x10   : > { %p3841_p9 = pneg %p4294_p8  ;;  %s145_s25 = sshll.u32 %s4225_s24, 4  ;;  %s4306_s25 = int_to_ptr.vmem [resolvable:$true] %s145_s25 }
  0x11   : > { %p4067_p11 = scmp.ne.s32.totalorder %s5285_s1, %s4066_s28  ;;  %p4073_p3 = scmp.lt.u32.totalorder %s4066_s28, %s5285_s1 }
  0x12   : > { %p4302_p10 = pnand %p3841_p9, %p5288_p1 }
  0x14   : > { %p4068_p12 = pneg %p4302_p10 }
  0x16   : > { %p4069_p13 = pnand %p4068_p12, %p4067_p11 }
  0x18   : > { %p4070_p0 = pneg %p4069_p13 }
  0x1a   : > { %p4075_p5 = pnand %p4073_p3, %p4070_p0 }
  0x1c   : > { %4078 = shalt.err (!%p4075_p5)
}
  0x1d   : > { %s4079_s6 = scalar_lea.vmem %s132_s22, 18432  ;;  %p4087_p2 = scmp.lt.s32.totalorder %s132_s22, %s132_s22 }
  0x1e   : > { %p4080_p7 = scmp.ne.s32.totalorder %s132_s22, %s4079_s6  ;;  %p4088_p6 = scmp.lt.s32.totalorder %s4079_s6, %s4079_s6 }
  0x20   : > { %p4082_p9 = pnand %p4080_p7, %p4068_p12  ;;  %p4089_p4 = por %p4088_p6, %p4087_p2 }
  0x22   : > { %p4083_p1 = pneg %p4082_p9 }
  0x24   : > { %p4090_p8 = pnand %p4089_p4, %p4083_p1 }
  0x26   : > { %4093 = shalt.err (!%p4090_p8)
}
  0x27   : > { %s4226_s7 = smov 64   ;;  %s4227_s8 = smov 4  }
  0x28   : > { %3844 = dma.hbm_to_vmem [thread:$0]  (!%p4302_p10), %s5285_s1, 18432, %s132_s22, [#allocation6], %s4226_s7, %s4226_s7, %s4227_s8  }
  0x29   : > { %s4094_s21 = scalar_lea.hbm %s5286_s2, 16 }
  0x2a   : > { %p4095_p11 = scmp.ne.s32.totalorder %s5286_s2, %s4094_s21  ;;  %p4101_p4 = scmp.lt.u32.totalorder %s4094_s21, %s5286_s2 }
  0x2c   : > { %p4097_p1 = pnand %p4095_p11, %p4068_p12 }
  0x2e   : > { %p4098_p2 = pneg %p4097_p1 }
  0x30   : > { %p4103_p6 = pnand %p4101_p4, %p4098_p2 }
  0x32   : > { %4106 = shalt.err (!%p4103_p6)
}
  0x33   : > { %s4107_s22 = scalar_lea.vmem %s4306_s25, 16  ;;  %s4114_s29 = scalar_lea.vmem %s4306_s25, 32 }
  0x34   : > { %p4108_p8 = scmp.ne.s32.totalorder %s4306_s25, %s4107_s22  ;;  %p4115_p3 = scmp.lt.s32.totalorder %s4306_s25, %s4306_s25 }
  0x35   : > { %p4116_p5 = scmp.lt.s32.totalorder %s4114_s29, %s4107_s22 }
  0x36   : > { %p4110_p13 = pnand %p4108_p8, %p4068_p12 }
  0x37   : > { %p4117_p7 = por %p4116_p5, %p4115_p3 }
  0x38   : > { %p4111_p0 = pneg %p4110_p13 }
  0x3a   : > { %p4118_p9 = pnand %p4117_p7, %p4111_p0 }
  0x3c   : > { %4121 = shalt.err (!%p4118_p9)
}
  0x3d   : > { %3847 = dma.hbm_to_vmem [thread:$0]  (!%p4302_p10), %s5286_s2, 16, %s4306_s25, [#allocation6]  }
  0x3e   : > { %s4357_s5 = sadd.s32 1, %s4222_s15   ;;  %s27_s23 = sadd.s32 1, %s4218_s14 }
  0x3f   : > { %s24_s6 = ssub.s32 %s4222_s15, %s4357_s5  ;;  %p34_p12 = scmp.ne.s32.totalorder %s4218_s14, %s4214_s13 }
  0x40   : > { %p25_p11 = scmp.eq.s32.totalorder %s24_s6, 0  ;;  %p35_p1 = scmp.eq.s32.totalorder %s4222_s15, 0 }
  0x41   : > { %p5299_p2 = scmp.eq.s32.totalorder %s4275_s16, 3  ;;  %p3858_p6 = scmp.lt.s32.totalorder %s4222_s15, 4 }
  0x42   : > { %s4373_s8 = scalar_select %p25_p11, %s4218_s14, %s27_s23  }
  0x43   : > { %p4367_p4 = por %p5299_p2, %p34_p12  ;;  %p36_p8 = por %p35_p1, %p34_p12 }
  0x44   : > { %s156_s9 = sand.u32 1, %s4218_s14   ;;  %s3827_s25 = smul.u32 3840, %s4222_s15 }
  0x45   : > { %s3826_s10 = smul.u32 240, %s156_s9  ;;  %p4377_p10 = pnand %p3858_p6, %p36_p8 }
  0x46   : > { %s4384_s24 = scalar_lea.hbm %s5284_s0, %s3827_s25  ;;  %s4388_s28 = scalar_lea.sflag [#allocation3], %s156_s9 }
  0x47   : > { %s160_s26 = scalar_lea.vmem [#allocation2], %s3826_s10  ;;  %s4122_s22 = scalar_lea.hbm %s4384_s24, 3840 }
  0x48   : > { %s167_s27 = sshll.u32 %s160_s26, 4  ;;  %p4123_p13 = scmp.ne.s32.totalorder %s4384_s24, %s4122_s22  ;;  %s4386_s27 = int_to_ptr.vmem [resolvable:$true] %s167_s27 }
  0x49   : > { %p4124_p0 = pneg %p4377_p10  ;;  %s4127_s4 = scalar_lea.hbm %s5284_s0, 15360 }
  0x4a   : > { %p4128_p7 = scmp.lt.u32.totalorder %s4384_s24, %s5284_s0  ;;  %p4129_p9 = scmp.lt.u32.totalorder %s4127_s4, %s4122_s22 }
  0x4b   : > { %p4125_p3 = pnand %p4124_p0, %p4123_p13  ;;  %p4131_p11 = scmp.lt.u32.totalorder %s4122_s22, %s4384_s24 }
  0x4c   : > { %p4130_p12 = por %p4129_p9, %p4128_p7 }
  0x4d   : > { %p4126_p5 = pneg %p4125_p3 }
  0x4e   : > { %p4132_p1 = por %p4131_p11, %p4130_p12 }
  0x50   : > { %p4133_p2 = pnand %p4132_p1, %p4126_p5 }
  0x52   : > { %4136 = shalt.err (!%p4133_p2)
}
  0x53   : > { %s4137_s9 = scalar_lea.vmem %s4386_s27, 3840  ;;  %s4228_s10 = smov [#allocation2]  }
  0x54   : > { %p4138_p6 = scmp.ne.s32.totalorder %s4386_s27, %s4137_s9  ;;  %s4142_s25 = sshll.u32 %s4228_s10, 4  ;;  %s4143_s25 = int_to_ptr.vmem [resolvable:$false] %s4142_s25 }
  0x55   : > { %s4144_s17 = scalar_lea.vmem %s4143_s25, 7680  ;;  %p4145_p3 = scmp.lt.s32.totalorder %s4386_s27, %s4143_s25 }
  0x56   : > { %p4140_p8 = pnand %p4138_p6, %p4124_p0  ;;  %p4146_p7 = scmp.lt.s32.totalorder %s4144_s17, %s4137_s9 }
  0x58   : > { %p4141_p13 = pneg %p4140_p8  ;;  %p4147_p9 = por %p4146_p7, %p4145_p3 }
  0x5a   : > { %p4148_p12 = pnand %p4147_p9, %p4141_p13 }
  0x5c   : > { %4151 = shalt.err (!%p4148_p12)
}
  0x5d   : > { %s4229_s21 = smov 128   ;;  %s4230_s26 = smov 8  }
  0x5e   : > { %3851 = dma.hbm_to_vmem [thread:$0]  (!%p4377_p10), %s4384_s24, 3840, %s4386_s27, %s4388_s28, %s4229_s21, %s4229_s21, %s4230_s26  }
  0x5f   : > { %p5302_p0 = scmp.ne.s32.totalorder %s5297_s20, 0 }
  0x61   : > { %179 = sbr.rel (%p5302_p0) target bundleno = 663 (0x297), region = 32 }
  0x68   : > { %s4419_s22 = sand.u32 1, %s4214_s13   ;;  %p5303_p5 = scmp.ne.s32.totalorder %s5295_s18, 0 }
  0x69   : > { %s3828_s29 = smul.u32 240, %s4419_s22  ;;  %s182_s30 = scalar_lea.sflag [#allocation3], %s4419_s22 }
  0x6b   : > { %s4423_s4 = scalar_lea.vmem [#allocation2], %s3828_s29 }
  0x6c   : > { %4197 = dma.done.wait (%p5303_p5), %s182_s30, 3840  }
  0x6d   : > { %4199 = vsyncadd (%p5303_p5), %s182_s30, 4294963456  ;;  %p5304_p10 = scmp.eq.s32.totalorder %s4275_s16, 0 }
  0x6f   : > { %4201 = dma.done.wait (%p5304_p10), [#allocation6], 18448   ;;  %p5305_p11 = pmov %p5304_p10 }
  0x70   : > { %v3902_v0 = vld [vmem:[#allocation5 + $0x40] sm:$0xff]   ;;  %v3904_v2 = vld [vmem:[#allocation5 + $0x48] sm:$0xff]   ;;  %v3906_v4 = vld [vmem:[#allocation5 + $0x50] sm:$0xff]   ;;  %vm247_vm0 = vsmask.f32 3328  ;;  %vm466_vm2 = vcmask 1042432  }
  0x71   : > { %4203 = vsyncadd (%p5305_p11), [#allocation6], 4294948848  ;;  %v3903_v1 = vld [vmem:[#allocation5] sm:$0xff]   ;;  %3234 = vmatprep.subr.bf16.mxu0 %v3902_v0  ;;  %3810 = vmatprep.subr.bf16.mxu1 %v3902_v0  ;;  %v3905_v3 = vld [vmem:[#allocation5 + $0x8] sm:$0xff]   ;;  %vm248_vm1 = vsmask.f32 7440 }
  0x72   : > { %3235 = vmatpush3.bf16.msra.mxu0 %v3903_v1  ;;  %3818 = vmatpush3.bf16.msra.mxu1 %v3903_v1  ;;  %v3907_v5 = vld [vmem:[#allocation5 + $0x10] sm:$0xff]   ;;  %v3908_v6 = vld [vmem:[#allocation5 + $0x58] sm:$0xff]   ;;  %v3910_v8 = vld [vmem:[#allocation5 + $0x60] sm:$0xff]   ;;  %vm467_vm3 = vcmask 1046532   ;;  %s3012_s18 = sshll.u32 %s4419_s22, 7  ;;  %s3233_s11 = sshll.u32 %s4275_s16, 11 }
  0x73   : > { %3236 = vmatprep.subr.bf16.mxu0 %v3904_v2  ;;  %3811 = vmatprep.subr.bf16.mxu1 %v3904_v2  ;;  %v3909_v7 = vld [vmem:[#allocation5 + $0x18] sm:$0xff]   ;;  %v3911_v9 = vld [vmem:[#allocation5 + $0x20] sm:$0xff]   ;;  %v3912_v10 = vld [vmem:[#allocation5 + $0x68] sm:$0xff]   ;;  %s5202_s20 = scalar_lea.vmem [#allocation8], %s3012_s18  ;;  %s5237_s23 = scalar_lea.hbm %s5287_s3, %s3233_s11 }
  0x74   : > { %v4434_v11 = vld [vmem:[%s4423_s4] sm:$0xff]  ;;  %v4437_v12 = vld [vmem:[%s4423_s4 + $0x8] sm:$0xff]  ;;  %v4455_v28 = vld [vmem:[%s4423_s4 + $0x18] sm:$0xff]  ;;  %s2911_s24 = sshll.u32 %s5202_s20, 4  ;;  %s2898_s6 = scalar_lea.sflag [#allocation4], %s4419_s22  ;;  %s5239_s24 = int_to_ptr.vmem [resolvable:$true] %s2911_s24 }
  0x75   : > { %v4440_v13 = vld [vmem:[%s4423_s4 + $0x60] sm:$0xff]  ;;  %v3024_v14 = vcombine.high %v4434_v11, %v4437_v12  ;;  %v4445_v15 = vld [vmem:[%s4423_s4 + $0x68] sm:$0xff]  ;;  %v251_v19 = vshrl.u32 %v4434_v11, 16  ;;  %v254_v20 = vshll.u32 %v4434_v11, 16  ;;  %v4461_v32 = vld [vmem:[%s4423_s4 + $0x78] sm:$0xff]  ;;  %v260_v33 = vshll.u32 %v4437_v12, 16 }
  0x76   : > { %3237 = vmatpush3.bf16.msra.mxu0 %v3905_v3  ;;  %3819 = vmatpush3.bf16.msra.mxu1 %v3905_v3  ;;  %v4449_v16 = vcombine.high %v4440_v13, %v4445_v15  ;;  %v3913_v17 = vld [vmem:[#allocation5 + $0x28] sm:$0xff]   ;;  %v3914_v18 = vld [vmem:[#allocation5 + $0x70] sm:$0xff]   ;;  %v3916_v22 = vld [vmem:[#allocation5 + $0x78] sm:$0xff]   ;;  %v3023_v34 = vcombine.low %v4434_v11, %v4437_v12  ;;  %v4468_v35 = vcombine.low %v4440_v13, %v4445_v15  ;;  %v264_v39 = vshrl.u32 %v4437_v12, 16  ;;  %s4152_s9 = scalar_lea.vmem %s5239_s24, 2048  ;;  %s4231_s16 = smov [#allocation8]  }
  0x77   : > { %3238 = vmatprep.subr.bf16.mxu0 %v3906_v4  ;;  %3812 = vmatprep.subr.bf16.mxu1 %v3906_v4  ;;  %v3915_v21 = vld [vmem:[#allocation5 + $0x30] sm:$0xff]   ;;  %v3917_v23 = vld [vmem:[#allocation5 + $0x38] sm:$0xff]   ;;  %v3922_v24 = vld [vmem:[#allocation5 + $0xc0] sm:$0xff]   ;;  %v253_v25 = vrot.slane %v251_v19, 4  ;;  %v256_v26 = vrot.slane %v254_v20, 5  ;;  %v275_v40 = vshrl.u32 %v4455_v28, 16  ;;  %p4153_p1 = scmp.ne.s32.totalorder %s5239_s24, %s4152_s9 }
  0x78   : > { %2024 = vmatprep.mubr.bf16.mxu0 %v3024_v14  ;;  %2056 = vmatprep.mubr.bf16.mxu1 %v4449_v16  ;;  %v3923_v27 = vld [vmem:[#allocation5 + $0x140] sm:$0xff]   ;;  %v3926_v36 = vld [vmem:[#allocation5 + $0xc8] sm:$0xff]   ;;  %v4483_v44 = vrot.slane %v260_v33, 5  ;;  %v278_v48 = vshll.u32 %v4455_v28, 16  ;;  %v3934_v49 = vld [vmem:[#allocation5 + $0xd0] sm:$0xff]   ;;  %v266_v52 = vrot.slane %v264_v39, 4 }
  0x79   : > { %v4458_v29 = vld [vmem:[%s4423_s4 + $0x20] sm:$0xff]  ;;  %v257_v38 = vor.u32 %v256_v26, %v253_v25  ;;  %v3927_v41 = vld [vmem:[#allocation5 + $0x148] sm:$0xff]   ;;  %v4490_v51 = vld [vmem:[%s4423_s4 + $0x30] sm:$0xff]  ;;  %v4492_v53 = vrot.slane %v275_v40, 4  ;;  %v471_v4 = vrot.slane %v4437_v12, 5  ;;  %v3013_v19 = vrot.slane %v4434_v11, 9  ;;  %p4154_p2 = pnand %p4153_p1, %p4367_p4 }
  0x7a   : > { %3239 = vmatpush3.bf16.msra.mxu0 %v3907_v5  ;;  %3820 = vmatpush3.bf16.msra.mxu1 %v3907_v5  ;;  %v3924_v30 = vld [vmem:[#allocation5 + $0x80] sm:$0xff]   ;;  %v4477_v42 = vcombine.high %v4455_v28, %v4458_v29  ;;  %v3928_v45 = vld [vmem:[#allocation5 + $0x88] sm:$0xff]   ;;  %v3935_v50 = vld [vmem:[#allocation5 + $0x150] sm:$0xff]   ;;  %v284_v54 = vshll.u32 %v4458_v29, 16  ;;  %v288_v57 = vshrl.u32 %v4458_v29, 16  ;;  %v299_v60 = vshrl.u32 %v4490_v51, 16 }
  0x7b   : > { %3240 = vmatprep.subr.bf16.mxu0 %v3908_v6  ;;  %3813 = vmatprep.subr.bf16.mxu1 %v3908_v6  ;;  %v3925_v31 = vld [vmem:[#allocation5 + $0x100] sm:$0xff]   ;;  %v3929_v46 = vld [vmem:[#allocation5 + $0x108] sm:$0xff]   ;;  %v4486_v47 = vrot.slane %v257_v38, 4  ;;  %v3936_v58 = vld [vmem:[#allocation5 + $0x90] sm:$0xff]   ;;  %v302_v61 = vshll.u32 %v4490_v51, 16  ;;  %v4508_v62 = vcombine.low %v4455_v28, %v4458_v29  ;;  %v280_v2 = vrot.slane %v278_v48, 5  ;;  %p4155_p6 = pneg %p4154_p2 }
  0x7c   : > { %v4471_v37 = vld [vmem:[%s4423_s4 + $0x80] sm:$0xff]  ;;  %v4496_v55 = vld [vmem:[%s4423_s4 + $0x38] sm:$0xff]  ;;  %v4499_v56 = vld [vmem:[%s4423_s4 + $0x90] sm:$0xff]  ;;  %v267_v5 = vor.u32 %v266_v52, %v4483_v44  ;;  %v4519_v6 = vrot.slane %v284_v54, 5  ;;  %v301_v14 = vrot.slane %v299_v60, 4  ;;  %s4156_s10 = sshll.u32 %s4231_s16, 4  ;;  %s4157_s10 = int_to_ptr.vmem [resolvable:$false] %s4156_s10 }
  0x7d   : > { %v4481_v43 = vcombine.high %v4461_v32, %v4471_v37  ;;  %v3937_v59 = vld [vmem:[#allocation5 + $0x110] sm:$0xff]   ;;  %v4512_v63 = vcombine.low %v4461_v32, %v4471_v37  ;;  %v3938_v0 = vld [vmem:[#allocation5 + $0xd8] sm:$0xff]   ;;  %v281_v20 = vor.u32 %v280_v2, %v4492_v53  ;;  %v3948_v33 = vld [vmem:[#allocation5 + $0xa0] sm:$0xff]   ;;  %v308_v39 = vshll.u32 %v4496_v55, 16  ;;  %s4158_s25 = scalar_lea.vmem %s4157_s10, 4096  ;;  %p4159_p8 = scmp.lt.s32.totalorder %s5239_s24, %s4157_s10 }
  0x7e   : > { %3241 = vmatpush3.bf16.msra.mxu0 %v3909_v7  ;;  %3821 = vmatpush3.bf16.msra.mxu1 %v3909_v7  ;;  %v4515_v1 = vld [vmem:[%s4423_s4 + $0x98] sm:$0xff]  ;;  %v290_v7 = vrot.slane %v288_v57, 4  ;;  %v4538_v25 = vld [vmem:[%s4423_s4 + $0x50] sm:$0xff]  ;;  %v4540_v26 = vrot.slane %v267_v5, 4  ;;  %v4556_v40 = vcombine.low %v4490_v51, %v4496_v55  ;;  %v312_v53 = vshrl.u32 %v4496_v55, 16  ;;  %vm4584_vm4 = vmor %vm247_vm0, %vm248_vm1  ;;  %p4160_p13 = scmp.lt.s32.totalorder %s4158_s25, %s4152_s9 }
  0x7f   : > { %3242 = vmatprep.subr.bf16.mxu0 %v3910_v8  ;;  %3814 = vmatprep.subr.bf16.mxu1 %v3910_v8  ;;  %v3939_v3 = vld [vmem:[#allocation5 + $0x158] sm:$0xff]   ;;  %v4565_v48 = vrot.slane %v281_v20, 4  ;;  %v3952_v54 = vld [vmem:[#allocation5 + $0xa8] sm:$0xff]   ;;  %vm4596_vm5 = vmor %vm466_vm2, %vm467_vm3  ;;  %v263_v11 = vsel %vm4584_vm4, %v4486_v47, %v4483_v44 }
  0x80   : > { %v3940_v8 = vld [vmem:[#allocation5 + $0x98] sm:$0xff]   ;;  %v3953_v57 = vld [vmem:[#allocation5 + $0x128] sm:$0xff]   ;;  %p4161_p3 = por %p4160_p13, %p4159_p8 }
  0x82   : > { %3243 = vmatpush3.bf16.msra.mxu0 %v3911_v9  ;;  %3822 = vmatpush3.bf16.msra.mxu1 %v3911_v9  ;;  %v4523_v9 = vcombine.high %v4490_v51, %v4496_v55  ;;  %p4162_p7 = pnand %p4161_p3, %p4155_p6 }
  0x83   : > { %3244 = vmatprep.subr.bf16.mxu0 %v3912_v10  ;;  %3815 = vmatprep.subr.bf16.mxu1 %v3912_v10  ;;  %v4527_v10 = vcombine.high %v4499_v56, %v4515_v1 }
  0x86   : > { %3245 = vmatpush3.bf16.msra.mxu0 %v3913_v17  ;;  %3823 = vmatpush3.bf16.msra.mxu1 %v3913_v17  ;;  %v304_v17 = vrot.slane %v302_v61, 5 }
  0x87   : > { %3246 = vmatprep.subr.bf16.mxu0 %v3914_v18  ;;  %3816 = vmatprep.subr.bf16.mxu1 %v3914_v18  ;;  %v3941_v18 = vld [vmem:[#allocation5 + $0x118] sm:$0xff]  }
  0x88   : > { %v305_v38 = vor.u32 %v304_v17, %v301_v14  ;;  %v3959_v14 = vld [vmem:[#allocation5 + $0x170] sm:$0xff]   ;;  %v314_v17 = vrot.slane %v312_v53, 4 }
  0x8a   : > { %3247 = vmatpush3.bf16.msra.mxu0 %v3915_v21  ;;  %3824 = vmatpush3.bf16.msra.mxu1 %v3915_v21  ;;  %v3946_v21 = vld [vmem:[#allocation5 + $0xe0] sm:$0xff]   ;;  %v4588_v61 = vrot.slane %v305_v38, 4  ;;  %v3962_v38 = vld [vmem:[#allocation5 + $0xf8] sm:$0xff]  }
  0x8b   : > { %3248 = vmatprep.subr.bf16.mxu0 %v3916_v22  ;;  %3817 = vmatprep.subr.bf16.mxu1 %v3916_v22  ;;  %v478_v22 = vrot.slane %v4458_v29, 5 }
  0x8e   : > { %3249 = vmatpush3.bf16.msra.mxu0 %v3917_v23  ;;  %3825 = vmatpush3.bf16.msra.mxu1 %v3917_v23  ;;  %v3947_v23 = vld [vmem:[#allocation5 + $0x160] sm:$0xff]  }
  0x8f   : > { %3298 = vmatprep.subr.bf16.mxu1 %v3922_v24  ;;  %3362 = vmatprep.subr.bf16.mxu0 %v3923_v27  ;;  %v4535_v24 = vld [vmem:[%s4423_s4 + $0x48] sm:$0xff]  ;;  %v4544_v27 = vrot.slane %v471_v4, 4 }
  0x90   : > { %v323_v5 = vshrl.u32 %v4535_v24, 16 }
  0x91   : > { %2025 = vmatmul.mubr.bf16.vlgmr.msra.gmra.mrb[0].mxu0 %v3023_v34  ;;  %2057 = vmatmul.mubr.bf16.vlgmr.msra.gmra.mrb[0].mxu1 %v4468_v35  ;;  %v3949_v34 = vld [vmem:[#allocation5 + $0x120] sm:$0xff]  }
  0x92   : > { %3299 = vmatpush3.bf16.msra.mxu1 %v3924_v30  ;;  %3363 = vmatpush3.bf16.msra.mxu0 %v3925_v31  ;;  %v291_v30 = vor.u32 %v290_v7, %v4519_v6  ;;  %v3958_v7 = vld [vmem:[#allocation5 + $0xf0] sm:$0xff]   ;;  %v3965_v31 = vld [vmem:[#allocation5 + $0x138] sm:$0xff]  }
  0x93   : > { %3300 = vmatprep.subr.bf16.mxu1 %v3926_v36  ;;  %3364 = vmatprep.subr.bf16.mxu0 %v3927_v41  ;;  %v4551_v36 = vld [vmem:[%s4423_s4 + $0xa8] sm:$0xff]  ;;  %v4560_v41 = vcombine.low %v4499_v56, %v4515_v1 }
  0x94   : > { %2032 = vmatprep.mubr.bf16.mxu0 %v4477_v42  ;;  %2064 = vmatprep.mubr.bf16.mxu1 %v4481_v43  ;;  %v4571_v52 = vrot.slane %v291_v30, 4  ;;  %v219_v30 = vld [vmem:[%s4423_s4 + $0x10] sm:$0x11] }
  0x96   : > { %3301 = vmatpush3.bf16.msra.mxu1 %v3928_v45  ;;  %3365 = vmatpush3.bf16.msra.mxu0 %v3929_v46  ;;  %v3950_v45 = vld [vmem:[#allocation5 + $0xe8] sm:$0xff]   ;;  %v4563_v46 = vld [vmem:[%s4423_s4 + $0xb0] sm:$0xff] }
  0x97   : > { %3302 = vmatprep.subr.bf16.mxu1 %v3934_v49  ;;  %3366 = vmatprep.subr.bf16.mxu0 %v3935_v50  ;;  %v3951_v49 = vld [vmem:[#allocation5 + $0x168] sm:$0xff]   ;;  %v4569_v50 = vrot.slane %v478_v22, 4  ;;  %v4611_v20 = vcombine.low %v4551_v36, %v4563_v46 }
  0x99   : > { %2033 = vmatmul.mubr.bf16.gmra.mrb[4].mxu0 %v4508_v62  ;;  %2065 = vmatmul.mubr.bf16.gmra.mrb[4].mxu1 %v4512_v63 }
  0x9a   : > { %3303 = vmatpush3.bf16.msra.mxu1 %v3936_v58  ;;  %3367 = vmatpush3.bf16.msra.mxu0 %v3937_v59  ;;  %v4576_v58 = vcombine.high %v4535_v24, %v4538_v25  ;;  %v4580_v59 = vcombine.high %v4551_v36, %v4563_v46 }
  0x9b   : > { %3304 = vmatprep.subr.bf16.mxu1 %v3938_v0  ;;  %3368 = vmatprep.subr.bf16.mxu0 %v3939_v3  ;;  %v4590_v0 = vrot.slane %v308_v39, 5  ;;  %v270_v39 = vshll.u32 %v219_v30, 16  ;;  %v3963_v3 = vld [vmem:[#allocation5 + $0x178] sm:$0xff]  }
  0x9c   : > { %2040 = vmatprep.mubr.bf16.mxu0 %v4523_v9  ;;  %2072 = vmatprep.mubr.bf16.mxu1 %v4527_v10 }
  0x9d   : > { %v272_v12 = vrot.slane %v270_v39, 5  ;;  %v3968_v39 = vld [vmem:[#allocation5 + $0x240] sm:$0xff]  }
  0x9e   : > { %3305 = vmatpush3.bf16.msra.mxu1 %v3940_v8  ;;  %3369 = vmatpush3.bf16.msra.mxu0 %v3941_v18  ;;  %v326_v8 = vshll.u32 %v4535_v24, 16  ;;  %v4607_v18 = vcombine.low %v4535_v24, %v4538_v25 }
  0x9f   : > { %3306 = vmatprep.subr.bf16.mxu1 %v3946_v21  ;;  %3370 = vmatprep.subr.bf16.mxu0 %v3947_v23  ;;  %v3960_v21 = vld [vmem:[#allocation5 + $0xb0] sm:$0xff]   ;;  %v273_v44 = vsel %vm4584_vm4, %v4540_v26, %v272_v12  ;;  %v3970_v12 = vld [vmem:[#allocation5 + $0x1c8] sm:$0xff]  }
  0xa0   : > { %v3961_v23 = vld [vmem:[#allocation5 + $0x130] sm:$0xff]   ;;  %v328_v53 = vrot.slane %v326_v8, 5  ;;  %v222_v8 = vld [vmem:[%s4423_s4 + $0x28] sm:$0x11] }
  0xa1   : > { %2041 = vmatmul.mubr.bf16.gmra.mrb[8].mxu0 %v4556_v40  ;;  %2073 = vmatmul.mubr.bf16.gmra.mrb[8].mxu1 %v4560_v41  ;;  %v294_v47 = vshll.u32 %v222_v8, 16 }
  0xa2   : > { %3307 = vmatpush3.bf16.msra.mxu1 %v3948_v33  ;;  %3371 = vmatpush3.bf16.msra.mxu0 %v3949_v34  ;;  %v4620_v33 = vsel %vm4596_vm5, %v3013_v19, %v471_v4  ;;  %v5291_v34 = vrot.slane %v4496_v55, 5  ;;  %v3964_v19 = vld [vmem:[#allocation5 + $0xb8] sm:$0xff]  }
  0xa3   : > { %3308 = vmatprep.subr.bf16.mxu1 %v3950_v45  ;;  %3372 = vmatprep.subr.bf16.mxu0 %v3951_v49  ;;  %v474_v45 = vrot.slane %v219_v30, 5  ;;  %v325_v49 = vrot.slane %v323_v5, 4  ;;  %v3966_v30 = vld [vmem:[#allocation5 + $0x1c0] sm:$0xff]  }
  0xa4   : > { %2048 = vmatprep.mubr.bf16.mxu0 %v4576_v58  ;;  %2080 = vmatprep.mubr.bf16.mxu1 %v4580_v59 }
  0xa5   : > { %v475_v4 = vsel %vm4596_vm5, %v4544_v27, %v474_v45  ;;  %v481_v27 = vrot.slane %v222_v8, 5  ;;  %v296_v45 = vrot.slane %v294_v47, 5  ;;  %v3972_v8 = vld [vmem:[#allocation5 + $0x248] sm:$0xff]   ;;  %v5311_v47 = vrot.slane %v4496_v55, 5 }
  0xa6   : > { %3309 = vmatpush3.bf16.msra.mxu1 %v3952_v54  ;;  %3373 = vmatpush3.bf16.msra.mxu0 %v3953_v57  ;;  %v3056_v5 = vcombine.high %v4620_v33, %v475_v4  ;;  %v315_v54 = vor.u32 %v314_v17, %v4590_v0  ;;  %v487_v57 = vrot.slane %v5291_v34, 4  ;;  %v332_v17 = vshll.u32 %v4538_v25, 16 }
  0xa7   : > { %3310 = vmatprep.subr.bf16.mxu1 %v3958_v7  ;;  %3374 = vmatprep.subr.bf16.mxu0 %v3959_v14  ;;  %v329_v7 = vor.u32 %v328_v53, %v325_v49  ;;  %v3040_v14 = vcombine.high %v263_v11, %v273_v44  ;;  %v5310_v34 = vrot.slane %v4455_v28, 9  ;;  %v3969_v49 = vld [vmem:[#allocation5 + $0x200] sm:$0xff]   ;;  %v482_v29 = vsel %vm4596_vm5, %v4569_v50, %v481_v27 }
  0xa8   : > { %v3039_v28 = vcombine.low %v263_v11, %v273_v44  ;;  %v336_v53 = vshrl.u32 %v4538_v25, 16  ;;  %v228_v44 = vld [vmem:[%s4423_s4 + $0x58] sm:$0x11]  ;;  %v5312_v27 = vrot.slane %v4490_v51, 9  ;;  %v3016_v51 = vrot.slane %v4535_v24, 9 }
  0xa9   : > { %2049 = vmatmul.mubr.bf16.gmra.mrb[12].mxu0 %v4607_v18  ;;  %2081 = vmatmul.mubr.bf16.gmra.mrb[12].mxu1 %v4611_v20  ;;  %v479_v26 = vsel %vm4596_vm5, %v5310_v34, %v478_v22  ;;  %v297_v22 = vsel %vm4584_vm4, %v4571_v52, %v296_v45  ;;  %v225_v34 = vld [vmem:[%s4423_s4 + $0x40] sm:$0x11]  ;;  %v347_v24 = vshrl.u32 %v4440_v13, 16 }
  0xaa   : > { %3311 = vmatpush3.bf16.msra.mxu1 %v3960_v21  ;;  %3375 = vmatpush3.bf16.msra.mxu0 %v3961_v23  ;;  %v3055_v21 = vcombine.low %v4620_v33, %v475_v4  ;;  %v3967_v23 = vld [vmem:[#allocation5 + $0x180] sm:$0xff]   ;;  %v330_v33 = vrot.slane %v329_v7, 4  ;;  %v318_v4 = vshll.u32 %v225_v34, 16  ;;  %v4662_v11 = vcombine.high %v479_v26, %v482_v29 }
  0xab   : > { %3312 = vmatprep.subr.bf16.mxu1 %v3962_v38  ;;  %3376 = vmatprep.subr.bf16.mxu0 %v3963_v3  ;;  %v287_v3 = vsel %vm4584_vm4, %v4565_v48, %v4519_v6  ;;  %v316_v38 = vrot.slane %v315_v54, 4  ;;  %v488_v6 = vrot.slane %v225_v34, 5  ;;  %v334_v48 = vrot.slane %v332_v17, 5  ;;  %v3973_v54 = vld [vmem:[#allocation5 + $0x208] sm:$0xff]  }
  0xac   : > { %2121 = vmatprep.mubr.bf16.mxu1 %v3040_v14  ;;  %2218 = vmatprep.mubr.bf16.mxu0 %v3056_v5  ;;  %v4660_v50 = vcombine.high %v287_v3, %v297_v22  ;;  %v3971_v5 = vld [vmem:[#allocation5 + $0x188] sm:$0xff]   ;;  %v320_v52 = vrot.slane %v318_v4, 5  ;;  %v486_v7 = vsel %vm4596_vm5, %v5312_v27, %v5311_v47  ;;  %v3974_v14 = vld [vmem:[#allocation5 + $0x1d0] sm:$0xff]   ;;  %v342_v17 = vshll.u32 %v228_v44, 16 }
  0xad   : > { %v489_v55 = vsel %vm4596_vm5, %v487_v57, %v488_v6  ;;  %v231_v4 = vld [vmem:[%s4423_s4 + $0x70] sm:$0x11]  ;;  %v350_v6 = vshll.u32 %v4440_v13, 16  ;;  %v3017_v27 = vrot.slane %v4440_v13, 9 }
  0xae   : > { %3313 = vmatpush3.bf16.msra.mxu1 %v3964_v19  ;;  %3377 = vmatpush3.bf16.msra.mxu0 %v3965_v31  ;;  %v338_v19 = vrot.slane %v336_v53, 4  ;;  %v311_v31 = vsel %vm4584_vm4, %v4588_v61, %v4590_v0  ;;  %v321_v45 = vsel %vm4584_vm4, %v316_v38, %v320_v52  ;;  %v344_v34 = vrot.slane %v342_v17, 5  ;;  %v3978_v53 = vld [vmem:[#allocation5 + $0x1d8] sm:$0xff]  }
  0xaf   : > { %3426 = vmatprep.subr.bf16.mxu1 %v3966_v30  ;;  %3490 = vmatprep.subr.bf16.mxu0 %v3968_v39  ;;  %v3976_v30 = vld [vmem:[#allocation5 + $0x250] sm:$0xff]   ;;  %v492_v39 = vrot.slane %v4538_v25, 5  ;;  %v4685_v25 = vcombine.low %v479_v26, %v482_v29  ;;  %v4687_v38 = vcombine.high %v311_v31, %v321_v45  ;;  %v4689_v57 = vcombine.high %v486_v7, %v489_v55 }
  0xb0   : > { %v339_v61 = vor.u32 %v338_v19, %v334_v48  ;;  %v4698_v26 = vsel %vm4584_vm4, %v330_v33, %v334_v48  ;;  %v349_v52 = vrot.slane %v347_v24, 4  ;;  %v3981_v33 = vld [vmem:[#allocation5 + $0x218] sm:$0xff]   ;;  %v360_v19 = vshrl.u32 %v4445_v15, 16 }
  0xb1   : > { %2122 = vmatmul.mubr.bf16.vlgmr.msra.gmra.mrb[16].mxu1 %v3039_v28  ;;  %2219 = vmatmul.mubr.bf16.vlgmr.msra.gmra.mrb[16].mxu0 %v3055_v21  ;;  %v494_v0 = vrot.slane %v492_v39, 4  ;;  %v495_v21 = vrot.slane %v228_v44, 5  ;;  %5313 = vst [vmem:[#allocation12_spill] sm:$0xff] %v4685_v25  ;;  %v3977_v28 = vld [vmem:[#allocation5 + $0x210] sm:$0xff]   ;;  %5314 = vst [vmem:[#allocation13_spill] sm:$0xff] %v4689_v57  ;;  %v3979_v44 = vld [vmem:[#allocation5 + $0x198] sm:$0xff]  }
  0xb2   : > { %3427 = vmatpush3.bf16.msra.mxu1 %v3967_v23  ;;  %3491 = vmatpush3.bf16.msra.mxu0 %v3969_v49  ;;  %v4683_v23 = vcombine.low %v287_v3, %v297_v22  ;;  %v3975_v49 = vld [vmem:[#allocation5 + $0x190] sm:$0xff]   ;;  %v4694_v3 = vcombine.low %v486_v7, %v489_v55  ;;  %v340_v29 = vrot.slane %v339_v61, 4  ;;  %v356_v22 = vshll.u32 %v4445_v15, 16 }
  0xb3   : > { %2129 = vmatprep.mubr.bf16.mxu1 %v4660_v50  ;;  %2226 = vmatprep.mubr.bf16.mxu0 %v4662_v11  ;;  %v366_v47 = vshll.u32 %v231_v4, 16  ;;  %v4715_v7 = vcombine.low %v311_v31, %v321_v45  ;;  %v502_v17 = vrot.slane %v231_v4, 5  ;;  %v362_v61 = vrot.slane %v360_v19, 4  ;;  %v3985_v4 = vld [vmem:[#allocation5 + $0x220] sm:$0xff]  }
  0xb4   : > { %3428 = vmatprep.subr.bf16.mxu1 %v3970_v12  ;;  %3492 = vmatprep.subr.bf16.mxu0 %v3972_v8  ;;  %v3980_v12 = vld [vmem:[#allocation5 + $0x258] sm:$0xff]   ;;  %v4707_v8 = vsel %vm4596_vm5, %v494_v0, %v495_v21  ;;  %v358_v48 = vrot.slane %v356_v22, 5  ;;  %v345_v55 = vsel %vm4584_vm4, %v340_v29, %v344_v34  ;;  %v3984_v0 = vld [vmem:[#allocation5 + $0x260] sm:$0xff]   ;;  %v374_v24 = vshll.u32 %v4461_v32, 16 }
  0xb5   : > { %v4727_v21 = vld [vmem:[%s4423_s4 + $0x88] sm:$0x11]  ;;  %v3983_v34 = vld [vmem:[#allocation5 + $0x1a0] sm:$0xff]  }
  0xb6   : > { %3429 = vmatpush3.bf16.msra.mxu1 %v3971_v5  ;;  %3493 = vmatpush3.bf16.msra.mxu0 %v3973_v54  ;;  %v4703_v5 = vsel %vm4596_vm5, %v3016_v51, %v492_v39  ;;  %v352_v54 = vrot.slane %v350_v6, 5  ;;  %v3982_v39 = vld [vmem:[#allocation5 + $0x1e0] sm:$0xff]   ;;  %v368_v51 = vrot.slane %v366_v47, 5  ;;  %v380_v6 = vshll.u32 %v4471_v37, 16 }
  0xb7   : > { %3430 = vmatprep.subr.bf16.mxu1 %v3974_v14  ;;  %3494 = vmatprep.subr.bf16.mxu0 %v3976_v30  ;;  %v499_v30 = vrot.slane %v4445_v15, 5  ;;  %v4722_v13 = vcombine.high %v4703_v5, %v4707_v8 }
  0xb8   : > { %v353_v14 = vor.u32 %v352_v54, %v349_v52  ;;  %v390_v52 = vshll.u32 %v4727_v21, 16 }
  0xb9   : > { %2130 = vmatmul.mubr.bf16.gmra.mrb[20].mxu1 %v4683_v23  ;;  %2227 = vmatmul.mubr.bf16.gmra.mrb[20].mxu0 %v4685_v25  ;;  %v500_v45 = vsel %vm4596_vm5, %v3017_v27, %v499_v30  ;;  %v501_v15 = vrot.slane %v499_v30, 4  ;;  %v376_v27 = vrot.slane %v374_v24, 5  ;;  %v3988_v30 = vld [vmem:[#allocation5 + $0x268] sm:$0xff]  }
  0xba   : > { %2137 = vmatprep.mubr.bf16.mxu1 %v4687_v38  ;;  %2234 = vmatprep.mubr.bf16.mxu0 %v4689_v57  ;;  %v354_v31 = vrot.slane %v353_v14, 4  ;;  %v3986_v14 = vld [vmem:[#allocation5 + $0x1e8] sm:$0xff]   ;;  %v392_v25 = vrot.slane %v390_v52, 5 }
  0xbb   : > { %3431 = vmatpush3.bf16.msra.mxu1 %v3975_v49  ;;  %3495 = vmatpush3.bf16.msra.mxu0 %v3977_v28  ;;  %v371_v49 = vshrl.u32 %v4461_v32, 16  ;;  %v363_v28 = vor.u32 %v362_v61, %v358_v48  ;;  %v503_v29 = vsel %vm4596_vm5, %v501_v15, %v502_v17  ;;  %v382_v61 = vrot.slane %v380_v6, 5  ;;  %v3987_v15 = vld [vmem:[#allocation5 + $0x1a8] sm:$0xff]  }
  0xbc   : > { %3432 = vmatprep.subr.bf16.mxu1 %v3978_v53  ;;  %3496 = vmatprep.subr.bf16.mxu0 %v3980_v12  ;;  %v384_v53 = vshrl.u32 %v4471_v37, 16  ;;  %v4734_v12 = vcombine.high %v4698_v26, %v345_v55  ;;  %v4739_v19 = vcombine.high %v500_v45, %v503_v29  ;;  %v4741_v47 = vcombine.low %v500_v45, %v503_v29 }
  0xbd   : > { %v373_v22 = vrot.slane %v371_v49, 4  ;;  %v364_v54 = vrot.slane %v363_v28, 4  ;;  %v3018_v17 = vrot.slane %v4461_v32, 9  ;;  %v509_v45 = vrot.slane %v4727_v21, 5  ;;  %v3989_v49 = vld [vmem:[#allocation5 + $0x228] sm:$0xff]  }
  0xbe   : > { %v386_v57 = vrot.slane %v384_v53, 4  ;;  %v4753_v32 = vld [vmem:[%s4423_s4 + $0xa0] sm:$0x11]  ;;  %v395_v28 = vshrl.u32 %v4499_v56, 16  ;;  %v398_v6 = vshll.u32 %v4499_v56, 16 }
  0xbf   : > { %3433 = vmatpush3.bf16.msra.mxu1 %v3979_v44  ;;  %3497 = vmatpush3.bf16.msra.mxu0 %v3981_v33  ;;  %v377_v44 = vor.u32 %v376_v27, %v373_v22  ;;  %v506_v33 = vrot.slane %v4471_v37, 5  ;;  %v369_v24 = vsel %vm4584_vm4, %v364_v54, %v368_v51  ;;  %v3990_v53 = vld [vmem:[#allocation5 + $0x1f0] sm:$0xff]   ;;  %v4762_v22 = vcombine.low %v4698_v26, %v345_v55 }
  0xc0   : > { %3434 = vmatprep.subr.bf16.mxu1 %v3982_v39  ;;  %3498 = vmatprep.subr.bf16.mxu0 %v3984_v0  ;;  %v359_v39 = vsel %vm4584_vm4, %v354_v31, %v358_v48  ;;  %v387_v0 = vor.u32 %v386_v57, %v382_v61  ;;  %v397_v48 = vrot.slane %v395_v28, 4  ;;  %v404_v57 = vshll.u32 %v4515_v1, 16  ;;  %v3991_v27 = vld [vmem:[#allocation5 + $0x1b0] sm:$0xff]  }
  0xc1   : > { %2138 = vmatmul.mubr.bf16.gmra.mrb[24].mxu1 %v4715_v7  ;;  %2235 = vmatmul.mubr.bf16.gmra.mrb[24].mxu0 %v4694_v3  ;;  %v378_v37 = vrot.slane %v377_v44, 4  ;;  %v508_v21 = vrot.slane %v506_v33, 4  ;;  %v408_v31 = vshrl.u32 %v4515_v1, 16  ;;  %v4766_v51 = vcombine.low %v4703_v5, %v4707_v8  ;;  %v3992_v44 = vld [vmem:[#allocation5 + $0x270] sm:$0xff]   ;;  %v3994_v8 = vld [vmem:[#allocation5 + $0x1f8] sm:$0xff]  }
  0xc2   : > { %2145 = vmatprep.mubr.bf16.mxu1 %v4734_v12  ;;  %2242 = vmatprep.mubr.bf16.mxu0 %v4722_v13  ;;  %v388_v29 = vrot.slane %v387_v0, 4  ;;  %v4769_v52 = vcombine.high %v359_v39, %v369_v24  ;;  %v406_v54 = vrot.slane %v404_v57, 5  ;;  %v507_v55 = vsel %vm4596_vm5, %v3018_v17, %v506_v33  ;;  %v3993_v5 = vld [vmem:[#allocation5 + $0x230] sm:$0xff]   ;;  %v3995_v57 = vld [vmem:[#allocation5 + $0x1b8] sm:$0xff]  }
  0xc3   : > { %3435 = vmatpush3.bf16.msra.mxu1 %v3983_v34  ;;  %3499 = vmatpush3.bf16.msra.mxu0 %v3985_v4  ;;  %v400_v34 = vrot.slane %v398_v6, 5  ;;  %v414_v4 = vshll.u32 %v4753_v32, 16  ;;  %v383_v26 = vsel %vm4584_vm4, %v378_v37, %v382_v61  ;;  %v422_v28 = vshll.u32 %v4551_v36, 16  ;;  %v3996_v6 = vld [vmem:[#allocation5 + $0x278] sm:$0xff]  }
  0xc4   : > { %3436 = vmatprep.subr.bf16.mxu1 %v3986_v14  ;;  %3500 = vmatprep.subr.bf16.mxu0 %v3988_v30  ;;  %v410_v30 = vrot.slane %v408_v31, 4  ;;  %v393_v61 = vsel %vm4584_vm4, %v388_v29, %v392_v25  ;;  %v3019_v17 = vrot.slane %v4499_v56, 9  ;;  %v513_v33 = vrot.slane %v4515_v1, 5  ;;  %v3997_v56 = vld [vmem:[#allocation5 + $0x238] sm:$0xff]   ;;  %v3998_v29 = vld [vmem:[#allocation5 + $0x2c0] sm:$0xff]  }
  0xc5   : > { %v401_v14 = vor.u32 %v400_v34, %v397_v48  ;;  %v416_v0 = vrot.slane %v414_v4, 5  ;;  %v516_v37 = vrot.slane %v4753_v32, 5  ;;  %v432_v48 = vshrl.u32 %v4563_v46, 16  ;;  %v240_v4 = vld [vmem:[%s4423_s4 + $0xb8] sm:$0x11] }
  0xc6   : > { %v424_v25 = vrot.slane %v422_v28, 5  ;;  %v4790_v1 = vcombine.low %v359_v39, %v369_v24  ;;  %v4792_v32 = vcombine.high %v383_v26, %v393_v61  ;;  %v438_v24 = vshll.u32 %v240_v4, 16 }
  0xc7   : > { %3437 = vmatpush3.bf16.msra.mxu1 %v3987_v15  ;;  %3501 = vmatpush3.bf16.msra.mxu0 %v3989_v49  ;;  %v510_v15 = vsel %vm4596_vm5, %v508_v21, %v509_v45  ;;  %v419_v49 = vshrl.u32 %v4551_v36, 16  ;;  %v402_v45 = vrot.slane %v401_v14, 4  ;;  %v411_v21 = vor.u32 %v410_v30, %v406_v54 }
  0xc8   : > { %3438 = vmatprep.subr.bf16.mxu1 %v3990_v53  ;;  %3502 = vmatprep.subr.bf16.mxu0 %v3992_v44  ;;  %v428_v53 = vshll.u32 %v4563_v46, 16  ;;  %v4794_v34 = vcombine.high %v507_v55, %v510_v15  ;;  %v515_v14 = vrot.slane %v513_v33, 4  ;;  %v434_v44 = vrot.slane %v432_v48, 4 }
  0xc9   : > { %2146 = vmatmul.mubr.bf16.gmra.mrb[28].mxu1 %v4762_v22  ;;  %2243 = vmatmul.mubr.bf16.gmra.mrb[28].mxu0 %v4766_v51  ;;  %v421_v31 = vrot.slane %v419_v49, 4  ;;  %v514_v49 = vsel %vm4596_vm5, %v3019_v17, %v513_v33  ;;  %v4810_v48 = vcombine.low %v383_v26, %v393_v61  ;;  %v3020_v17 = vrot.slane %v4551_v36, 9 }
  0xca   : > { %2153 = vmatprep.mubr.bf16.mxu1 %v4769_v52  ;;  %2250 = vmatprep.mubr.bf16.mxu0 %v4739_v19  ;;  %v430_v30 = vrot.slane %v428_v53, 5  ;;  %v520_v53 = vrot.slane %v4563_v46, 5 }
  0xcb   : > { %3439 = vmatpush3.bf16.msra.mxu1 %v3991_v27  ;;  %3503 = vmatpush3.bf16.msra.mxu0 %v3993_v5  ;;  %v412_v27 = vrot.slane %v411_v21, 4  ;;  %v4000_v5 = vld [vmem:[#allocation5 + $0x340] sm:$0xff]   ;;  %v425_v39 = vor.u32 %v424_v25, %v421_v31  ;;  %v440_v25 = vrot.slane %v438_v24, 5  ;;  %v4003_v24 = vld [vmem:[#allocation5 + $0x288] sm:$0xff]  }
  0xcc   : > { %3440 = vmatprep.subr.bf16.mxu1 %v3994_v8  ;;  %3504 = vmatprep.subr.bf16.mxu0 %v3996_v6  ;;  %v407_v8 = vsel %vm4584_vm4, %v402_v45, %v406_v54  ;;  %v517_v6 = vsel %vm4596_vm5, %v515_v14, %v516_v37  ;;  %v435_v21 = vor.u32 %v434_v44, %v430_v30  ;;  %v3999_v14 = vld [vmem:[#allocation5 + $0x280] sm:$0xff]   ;;  %v4002_v44 = vld [vmem:[#allocation5 + $0x2c8] sm:$0xff]  }
  0xcd   : > { %v417_v28 = vsel %vm4584_vm4, %v412_v27, %v416_v0  ;;  %v426_v31 = vrot.slane %v425_v39, 4  ;;  %v4816_v45 = vcombine.high %v514_v49, %v517_v6  ;;  %v523_v0 = vrot.slane %v240_v4, 5  ;;  %v4852_v39 = vld [vmem:[%s4423_s4 + $0xc0] sm:$0xff] }
  0xce   : > { %v4814_v54 = vcombine.high %v407_v8, %v417_v28  ;;  %v436_v33 = vrot.slane %v435_v21, 4  ;;  %v521_v36 = vsel %vm4596_vm5, %v3020_v17, %v520_v53  ;;  %v4833_v61 = vcombine.low %v514_v49, %v517_v6  ;;  %v4855_v49 = vld [vmem:[%s4423_s4 + $0xc8] sm:$0xff]  ;;  %v4008_v6 = vld [vmem:[#allocation5 + $0x350] sm:$0xff]  }
  0xcf   : > { %3441 = vmatpush3.bf16.msra.mxu1 %v3995_v57  ;;  %3505 = vmatpush3.bf16.msra.mxu0 %v3997_v56  ;;  %v4812_v57 = vcombine.low %v507_v55, %v510_v15  ;;  %v522_v56 = vrot.slane %v520_v53, 4  ;;  %v431_v46 = vsel %vm4584_vm4, %v426_v31, %v430_v30  ;;  %v4831_v15 = vcombine.low %v407_v8, %v417_v28  ;;  %v4001_v30 = vld [vmem:[#allocation5 + $0x300] sm:$0xff]   ;;  %v4005_v8 = vld [vmem:[#allocation5 + $0x308] sm:$0xff]   ;;  %v4007_v31 = vld [vmem:[#allocation5 + $0x290] sm:$0xff]  }
  0xd0   : > { %3554 = vmatprep.subr.bf16.mxu1 %v3998_v29  ;;  %3618 = vmatprep.subr.bf16.mxu0 %v4000_v5  ;;  %v441_v26 = vsel %vm4584_vm4, %v436_v33, %v440_v25  ;;  %v4004_v5 = vld [vmem:[#allocation5 + $0x348] sm:$0xff]   ;;  %v3021_v28 = vrot.slane %v4852_v39, 9  ;;  %v4864_v21 = vld [vmem:[%s4423_s4 + $0xd0] sm:$0x11]  ;;  %v4010_v17 = vld [vmem:[#allocation5 + $0x2d8] sm:$0xff]  }
  0xd1   : > { %2154 = vmatmul.mubr.bf16.gmra.mrb[32].mxu1 %v4790_v1  ;;  %2251 = vmatmul.mubr.bf16.gmra.mrb[32].mxu0 %v4741_v47  ;;  %v524_v55 = vsel %vm4596_vm5, %v522_v56, %v523_v0  ;;  %v4835_v37 = vcombine.high %v431_v46, %v441_v26  ;;  %v4843_v4 = vcombine.low %v431_v46, %v441_v26  ;;  %v4009_v25 = vld [vmem:[#allocation5 + $0x310] sm:$0xff]   ;;  %v4012_v33 = vld [vmem:[#allocation5 + $0x358] sm:$0xff]  }
  0xd2   : > { %2161 = vmatprep.mubr.bf16.mxu1 %v4792_v32  ;;  %2258 = vmatprep.mubr.bf16.mxu0 %v4794_v34  ;;  %v4837_v29 = vcombine.high %v521_v36, %v524_v55  ;;  %v4845_v27 = vcombine.low %v521_v36, %v524_v55  ;;  %v4011_v26 = vld [vmem:[#allocation5 + $0x298] sm:$0xff]   ;;  %v4014_v55 = vld [vmem:[#allocation5 + $0x2e0] sm:$0xff]  }
  0xd3   : > { %v4013_v36 = vld [vmem:[#allocation5 + $0x318] sm:$0xff]  }
  0xd9   : > { %2162 = vmatmul.mubr.bf16.gmra.mrb[36].mxu1 %v4810_v48  ;;  %2259 = vmatmul.mubr.bf16.gmra.mrb[36].mxu0 %v4812_v57 }
  0xda   : > { %2169 = vmatprep.mubr.bf16.mxu1 %v4814_v54  ;;  %2266 = vmatprep.mubr.bf16.mxu0 %v4816_v45 }
  0xe1   : > { %2170 = vmatmul.mubr.bf16.gmra.mrb[40].mxu1 %v4831_v15  ;;  %2267 = vmatmul.mubr.bf16.gmra.mrb[40].mxu0 %v4833_v61 }
  0xe2   : > { %2177 = vmatprep.mubr.bf16.mxu1 %v4835_v37  ;;  %2274 = vmatprep.mubr.bf16.mxu0 %v4837_v29 }
  0xe9   : > { %2178 = vmatmul.mubr.bf16.gmra.mrb[44].mxu1 %v4843_v4  ;;  %2275 = vmatmul.mubr.bf16.gmra.mrb[44].mxu0 %v4845_v27 }
  0xea   : > { %2315 = vmatprep.mubr.bf16.mxu1 %v4477_v42  ;;  %2412 = vmatprep.mubr.bf16.mxu0 %v4660_v50  ;;  %v4006_v42 = vld [vmem:[#allocation5 + $0x2d0] sm:$0xff]   ;;  %v554_v50 = vrot.slane %v4855_v49, 5 }
  0xec   : > { %v555_v53 = vsel %vm4596_vm5, %v3021_v28, %v554_v50  ;;  %v4021_v28 = vld [vmem:[#allocation5 + $0x328] sm:$0xff]  }
  0xf1   : > { %2316 = vmatmul.mubr.bf16.vlgmr.msra.gmra.mrb[48].mxu1 %v4508_v62  ;;  %2413 = vmatmul.mubr.bf16.vlgmr.msra.gmra.mrb[48].mxu0 %v4683_v23  ;;  %v556_v62 = vrot.slane %v554_v50, 4  ;;  %v557_v23 = vrot.slane %v4864_v21, 5  ;;  %v4024_v50 = vld [vmem:[#allocation5 + $0x370] sm:$0xff]  }
  0xf2   : > { %3555 = vmatpush3.bf16.msra.mxu1 %v3999_v14  ;;  %3619 = vmatpush3.bf16.msra.mxu0 %v4001_v30  ;;  %v4016_v14 = vld [vmem:[#allocation5 + $0x360] sm:$0xff]  }
  0xf3   : > { %2323 = vmatprep.mubr.bf16.mxu1 %v4523_v9  ;;  %2420 = vmatprep.mubr.bf16.mxu0 %v4687_v38  ;;  %v558_v0 = vsel %vm4596_vm5, %v556_v62, %v557_v23  ;;  %v4015_v30 = vld [vmem:[#allocation5 + $0x2a0] sm:$0xff]   ;;  %v4028_v62 = vld [vmem:[#allocation5 + $0x2f8] sm:$0xff]  }
  0xf4   : > { %3556 = vmatprep.subr.bf16.mxu1 %v4002_v44  ;;  %3620 = vmatprep.subr.bf16.mxu0 %v4004_v5  ;;  %v4871_v56 = vcombine.high %v555_v53, %v558_v0  ;;  %v4873_v46 = vcombine.low %v555_v53, %v558_v0  ;;  %v4017_v44 = vld [vmem:[#allocation5 + $0x320] sm:$0xff]   ;;  %v4018_v5 = vld [vmem:[#allocation5 + $0x2e8] sm:$0xff]   ;;  %v4025_v53 = vld [vmem:[#allocation5 + $0x330] sm:$0xff]   ;;  %v535_v0 = vshll.u32 %v4855_v49, 16 }
  0xf5   : > { %v4030_v23 = vld [vmem:[#allocation5 + $0x378] sm:$0xff]  }
  0xf6   : > { %3557 = vmatpush3.bf16.msra.mxu1 %v4003_v24  ;;  %3621 = vmatpush3.bf16.msra.mxu0 %v4005_v8  ;;  %v4020_v24 = vld [vmem:[#allocation5 + $0x368] sm:$0xff]  }
  0xf7   : > { %3558 = vmatprep.subr.bf16.mxu1 %v4006_v42  ;;  %3622 = vmatprep.subr.bf16.mxu0 %v4008_v6  ;;  %v4019_v8 = vld [vmem:[#allocation5 + $0x2a8] sm:$0xff]   ;;  %v4022_v42 = vld [vmem:[#allocation5 + $0x2f0] sm:$0xff]  }
  0xf8   : > { %v4023_v6 = vld [vmem:[#allocation5 + $0x2b0] sm:$0xff]  }
  0xf9   : > { %2324 = vmatmul.mubr.bf16.gmra.mrb[52].mxu1 %v4556_v40  ;;  %2421 = vmatmul.mubr.bf16.gmra.mrb[52].mxu0 %v4715_v7 }
  0xfa   : > { %2331 = vmatprep.mubr.bf16.mxu1 %v4576_v58  ;;  %2428 = vmatprep.mubr.bf16.mxu0 %v4734_v12 }
  0xfb   : > { %3559 = vmatpush3.bf16.msra.mxu1 %v4007_v31  ;;  %3623 = vmatpush3.bf16.msra.mxu0 %v4009_v25  ;;  %v526_v31 = vshrl.u32 %v4852_v39, 16  ;;  %v529_v25 = vshll.u32 %v4852_v39, 16 }
  0xfc   : > { %3560 = vmatprep.subr.bf16.mxu1 %v4010_v17  ;;  %3624 = vmatprep.subr.bf16.mxu0 %v4012_v33  ;;  %v4029_v17 = vld [vmem:[#allocation5 + $0x2b8] sm:$0xff]  }
  0xfd   : > { %v4031_v33 = vld [vmem:[#allocation5 + $0x338] sm:$0xff]  }
  0xff   : > { %3561 = vmatpush3.bf16.msra.mxu1 %v4011_v26  ;;  %3625 = vmatpush3.bf16.msra.mxu0 %v4013_v36  ;;  %v539_v26 = vshrl.u32 %v4855_v49, 16  ;;  %v4032_v36 = vld [vmem:[#allocation5 + $0x3c0] sm:$0xff]  }
 0x100   : > { %3562 = vmatprep.subr.bf16.mxu1 %v4014_v55  ;;  %3626 = vmatprep.subr.bf16.mxu0 %v4016_v14  ;;  %v4034_v55 = vld [vmem:[#allocation5 + $0x440] sm:$0xff]   ;;  %v528_v14 = vrot.slane %v526_v31, 4 }
 0x101   : > { %2332 = vmatmul.mubr.bf16.gmra.mrb[56].mxu1 %v4607_v18  ;;  %2429 = vmatmul.mubr.bf16.gmra.mrb[56].mxu0 %v4762_v22 }
 0x102   : > { %2339 = vmatprep.mubr.bf16.mxu1 %v4449_v16  ;;  %2436 = vmatprep.mubr.bf16.mxu0 %v4769_v52 }
 0x103   : > { %3563 = vmatpush3.bf16.msra.mxu1 %v4015_v30  ;;  %3627 = vmatpush3.bf16.msra.mxu0 %v4017_v44  ;;  %v531_v30 = vrot.slane %v529_v25, 5  ;;  %v537_v44 = vrot.slane %v535_v0, 5  ;;  %v4035_v0 = vld [vmem:[#allocation5 + $0x400] sm:$0xff]  }
 0x104   : > { %3564 = vmatprep.subr.bf16.mxu1 %v4018_v5  ;;  %3628 = vmatprep.subr.bf16.mxu0 %v4020_v24  ;;  %v541_v5 = vrot.slane %v539_v26, 4  ;;  %v4038_v26 = vld [vmem:[#allocation5 + $0x448] sm:$0xff]  }
 0x105   : > { %v532_v24 = vor.u32 %v531_v30, %v528_v14  ;;  %v4040_v14 = vld [vmem:[#allocation5 + $0x3d0] sm:$0xff]  }
 0x106   : > { %v4043_v30 = vld [vmem:[#allocation5 + $0x410] sm:$0xff]  }
 0x107   : > { %3565 = vmatpush3.bf16.msra.mxu1 %v4019_v8  ;;  %3629 = vmatpush3.bf16.msra.mxu0 %v4021_v28  ;;  %v542_v8 = vor.u32 %v541_v5, %v537_v44  ;;  %v545_v28 = vshll.u32 %v4864_v21, 16  ;;  %v4906_v21 = vcombine.high %v4852_v39, %v4855_v49  ;;  %v4047_v5 = vld [vmem:[#allocation5 + $0x418] sm:$0xff]  }
 0x108   : > { %3566 = vmatprep.subr.bf16.mxu1 %v4022_v42  ;;  %3630 = vmatprep.subr.bf16.mxu0 %v4024_v50  ;;  %v533_v42 = vrot.slane %v532_v24, 4  ;;  %v4048_v24 = vld [vmem:[#allocation5 + $0x3e0] sm:$0xff]  }
 0x109   : > { %2340 = vmatmul.mubr.bf16.gmra.mrb[60].mxu1 %v4468_v35  ;;  %2437 = vmatmul.mubr.bf16.gmra.mrb[60].mxu0 %v4790_v1  ;;  %v543_v50 = vrot.slane %v542_v8, 4  ;;  %v4050_v8 = vld [vmem:[#allocation5 + $0x460] sm:$0xff]  }
 0x10a   : > { %2347 = vmatprep.mubr.bf16.mxu1 %v4481_v43  ;;  %2444 = vmatprep.mubr.bf16.mxu0 %v4792_v32 }
 0x10b   : > { %3567 = vmatpush3.bf16.msra.mxu1 %v4023_v6  ;;  %3631 = vmatpush3.bf16.msra.mxu0 %v4025_v53  ;;  %v547_v6 = vrot.slane %v545_v28, 5  ;;  %v538_v53 = vsel %vm4584_vm4, %v533_v42, %v537_v44  ;;  %v4044_v44 = vld [vmem:[#allocation5 + $0x3d8] sm:$0xff]   ;;  %v4049_v28 = vld [vmem:[#allocation5 + $0x3a0] sm:$0xff]  }
 0x10c   : > { %3568 = vmatprep.subr.bf16.mxu1 %v4028_v62  ;;  %3632 = vmatprep.subr.bf16.mxu0 %v4030_v23  ;;  %v4916_v23 = vcombine.low %v4852_v39, %v4855_v49  ;;  %v4037_v39 = vld [vmem:[#allocation5 + $0x388] sm:$0xff]   ;;  %v4051_v42 = vld [vmem:[#allocation5 + $0x420] sm:$0xff]  }
 0x10d   : > { %v548_v62 = vsel %vm4584_vm4, %v543_v50, %v547_v6  ;;  %v4039_v49 = vld [vmem:[#allocation5 + $0x408] sm:$0xff]  }
 0x10e   : > { %v4908_v31 = vcombine.high %v538_v53, %v548_v62  ;;  %v4918_v25 = vcombine.low %v538_v53, %v548_v62  ;;  %v4052_v50 = vld [vmem:[#allocation5 + $0x3e8] sm:$0xff]   ;;  %v4056_v53 = vld [vmem:[#allocation5 + $0x3f0] sm:$0xff]  }
 0x10f   : > { %3569 = vmatpush3.bf16.msra.mxu1 %v4029_v17  ;;  %3633 = vmatpush3.bf16.msra.mxu0 %v4031_v33  ;;  %v4033_v17 = vld [vmem:[#allocation5 + $0x380] sm:$0xff]   ;;  %v4036_v33 = vld [vmem:[#allocation5 + $0x3c8] sm:$0xff]   ;;  %v4058_v62 = vld [vmem:[#allocation5 + $0x470] sm:$0xff]  }
 0x110   : > { %3682 = vmatprep.subr.bf16.mxu1 %v4032_v36  ;;  %3746 = vmatprep.subr.bf16.mxu0 %v4034_v55  ;;  %v5315_v36 = vld [vmem:[#allocation12_spill] sm:$0xff]  ;;  %v5316_v55 = vld [vmem:[#allocation13_spill] sm:$0xff] }
 0x111   : > { %2348 = vmatmul.mubr.bf16.gmra.mrb[64].mxu1 %v4512_v63  ;;  %2445 = vmatmul.mubr.bf16.gmra.mrb[64].mxu0 %v4810_v48  ;;  %v4055_v6 = vld [vmem:[#allocation5 + $0x428] sm:$0xff]  }
 0x112   : > { %2355 = vmatprep.mubr.bf16.mxu1 %v4527_v10  ;;  %2452 = vmatprep.mubr.bf16.mxu0 %v4814_v54 }
 0x119   : > { %2356 = vmatmul.mubr.bf16.gmra.mrb[68].mxu1 %v4560_v41  ;;  %2453 = vmatmul.mubr.bf16.gmra.mrb[68].mxu0 %v4831_v15 }
 0x11a   : > { %2363 = vmatprep.mubr.bf16.mxu1 %v4580_v59  ;;  %2460 = vmatprep.mubr.bf16.mxu0 %v4835_v37 }
 0x121   : > { %2364 = vmatmul.mubr.bf16.gmra.mrb[72].mxu1 %v4611_v20  ;;  %2461 = vmatmul.mubr.bf16.gmra.mrb[72].mxu0 %v4843_v4 }
 0x122   : > { %2371 = vmatprep.mubr.bf16.mxu1 %v4906_v21  ;;  %2468 = vmatprep.mubr.bf16.mxu0 %v4908_v31 }
 0x129   : > { %2372 = vmatmul.mubr.bf16.gmra.mrb[76].mxu1 %v4916_v23  ;;  %2469 = vmatmul.mubr.bf16.gmra.mrb[76].mxu0 %v4918_v25 }
 0x12a   : > { %2509 = vmatprep.mubr.bf16.mxu1 %v4662_v11  ;;  %2606 = vmatprep.mubr.bf16.mxu0 %v4523_v9  ;;  %v4042_v11 = vld [vmem:[#allocation5 + $0x450] sm:$0xff]  }
 0x12b   : > { %v4041_v9 = vld [vmem:[#allocation5 + $0x390] sm:$0xff]  }
 0x131   : > { %2510 = vmatmul.mubr.bf16.vlgmr.msra.gmra.mrb[80].mxu1 %v5315_v36  ;;  %2607 = vmatmul.mubr.bf16.vlgmr.msra.gmra.mrb[80].mxu0 %v4556_v40  ;;  %v4046_v40 = vld [vmem:[#allocation5 + $0x458] sm:$0xff]  }
 0x132   : > { %3683 = vmatpush3.bf16.msra.mxu1 %v4033_v17  ;;  %3747 = vmatpush3.bf16.msra.mxu0 %v4035_v0  ;;  %v4057_v17 = vld [vmem:[#allocation5 + $0x3b0] sm:$0xff]  }
 0x133   : > { %2517 = vmatprep.mubr.bf16.mxu1 %v5316_v55  ;;  %2614 = vmatprep.mubr.bf16.mxu0 %v4576_v58  ;;  %v4045_v58 = vld [vmem:[#allocation5 + $0x398] sm:$0xff]   ;;  %v4059_v0 = vld [vmem:[#allocation5 + $0x430] sm:$0xff]  }
 0x134   : > { %3684 = vmatprep.subr.bf16.mxu1 %v4036_v33  ;;  %3748 = vmatprep.subr.bf16.mxu0 %v4038_v26  ;;  %v4062_v33 = vld [vmem:[#allocation5 + $0x3f8] sm:$0xff]  }
 0x135   : > { %v4065_v26 = vld [vmem:[#allocation5 + $0x438] sm:$0xff]  }
 0x136   : > { %3685 = vmatpush3.bf16.msra.mxu1 %v4037_v39  ;;  %3749 = vmatpush3.bf16.msra.mxu0 %v4039_v49 }
 0x137   : > { %3686 = vmatprep.subr.bf16.mxu1 %v4040_v14  ;;  %3750 = vmatprep.subr.bf16.mxu0 %v4042_v11 }
 0x139   : > { %2518 = vmatmul.mubr.bf16.gmra.mrb[84].mxu1 %v4694_v3  ;;  %2615 = vmatmul.mubr.bf16.gmra.mrb[84].mxu0 %v4607_v18  ;;  %v4054_v18 = vld [vmem:[#allocation5 + $0x468] sm:$0xff]  }
 0x13a   : > { %2525 = vmatprep.mubr.bf16.mxu1 %v4722_v13  ;;  %2622 = vmatprep.mubr.bf16.mxu0 %v4449_v16  ;;  %v4053_v16 = vld [vmem:[#allocation5 + $0x3a8] sm:$0xff]  }
 0x13b   : > { %3687 = vmatpush3.bf16.msra.mxu1 %v4041_v9  ;;  %3751 = vmatpush3.bf16.msra.mxu0 %v4043_v30 }
 0x13c   : > { %3688 = vmatprep.subr.bf16.mxu1 %v4044_v44  ;;  %3752 = vmatprep.subr.bf16.mxu0 %v4046_v40 }
 0x13f   : > { %3689 = vmatpush3.bf16.msra.mxu1 %v4045_v58  ;;  %3753 = vmatpush3.bf16.msra.mxu0 %v4047_v5 }
 0x140   : > { %3690 = vmatprep.subr.bf16.mxu1 %v4048_v24  ;;  %3754 = vmatprep.subr.bf16.mxu0 %v4050_v8 }
 0x141   : > { %2526 = vmatmul.mubr.bf16.gmra.mrb[88].mxu1 %v4766_v51  ;;  %2623 = vmatmul.mubr.bf16.gmra.mrb[88].mxu0 %v4468_v35  ;;  %v4064_v35 = vld [vmem:[#allocation5 + $0x478] sm:$0xff]  }
 0x142   : > { %2533 = vmatprep.mubr.bf16.mxu1 %v4739_v19  ;;  %2630 = vmatprep.mubr.bf16.mxu0 %v4481_v43  ;;  %v4063_v43 = vld [vmem:[#allocation5 + $0x3b8] sm:$0xff]  }
 0x143   : > { %3691 = vmatpush3.bf16.msra.mxu1 %v4049_v28  ;;  %3755 = vmatpush3.bf16.msra.mxu0 %v4051_v42 }
 0x144   : > { %3692 = vmatprep.subr.bf16.mxu1 %v4052_v50  ;;  %3756 = vmatprep.subr.bf16.mxu0 %v4054_v18 }
 0x147   : > { %3693 = vmatpush3.bf16.msra.mxu1 %v4053_v16  ;;  %3757 = vmatpush3.bf16.msra.mxu0 %v4055_v6 }
 0x148   : > { %3694 = vmatprep.subr.bf16.mxu1 %v4056_v53  ;;  %3758 = vmatprep.subr.bf16.mxu0 %v4058_v62 }
 0x149   : > { %2534 = vmatmul.mubr.bf16.gmra.mrb[92].mxu1 %v4741_v47  ;;  %2631 = vmatmul.mubr.bf16.gmra.mrb[92].mxu0 %v4512_v63  ;;  %v4949_v63 = vld [vmem:[%s4423_s4 + $0xd8] sm:$0xff] }
 0x14a   : > { %2541 = vmatprep.mubr.bf16.mxu1 %v4794_v34  ;;  %2638 = vmatprep.mubr.bf16.mxu0 %v4527_v10  ;;  %v4952_v10 = vld [vmem:[%s4423_s4 + $0xe0] sm:$0xff] }
 0x14b   : > { %3695 = vmatpush3.bf16.msra.mxu1 %v4057_v17  ;;  %3759 = vmatpush3.bf16.msra.mxu0 %v4059_v0  ;;  %v3078_v36 = vcombine.high %v4949_v63, %v4952_v10 }
 0x14c   : > { %3696 = vmatprep.subr.bf16.mxu1 %v4062_v33  ;;  %3760 = vmatprep.subr.bf16.mxu0 %v4064_v35 }
 0x14f   : > { %3697 = vmatpush3.bf16.msra.mxu1 %v4063_v43  ;;  %3761 = vmatpush3.bf16.msra.mxu0 %v4065_v26 }
 0x151   : > { %2542 = vmatmul.mubr.bf16.gmra.mrb[96].mxu1 %v4812_v57  ;;  %2639 = vmatmul.mubr.bf16.gmra.mrb[96].mxu0 %v4560_v41 }
 0x152   : > { %2549 = vmatprep.mubr.bf16.mxu1 %v4816_v45  ;;  %2646 = vmatprep.mubr.bf16.mxu0 %v4580_v59 }
 0x159   : > { %2550 = vmatmul.mubr.bf16.gmra.mrb[100].mxu1 %v4833_v61  ;;  %2647 = vmatmul.mubr.bf16.gmra.mrb[100].mxu0 %v4611_v20 }
 0x15a   : > { %2557 = vmatprep.mubr.bf16.mxu1 %v4837_v29  ;;  %2654 = vmatprep.mubr.bf16.mxu0 %v4906_v21  ;;  %v3077_v21 = vcombine.low %v4949_v63, %v4952_v10 }
 0x161   : > { %2558 = vmatmul.mubr.bf16.gmra.mrb[104].mxu1 %v4845_v27  ;;  %2655 = vmatmul.mubr.bf16.gmra.mrb[104].mxu0 %v4916_v23 }
 0x162   : > { %2565 = vmatprep.mubr.bf16.mxu1 %v4871_v56  ;;  %2662 = vmatprep.mubr.bf16.mxu0 %v3078_v36 }
 0x164   : > { %v3250_v41 = vpop.f32.mrb[0].mxu0  ;;  %v3274_v59 = vpop.f32.mrb[0].mxu1 }
 0x165   : > { %v3251_v20 = vpop.f32.mrb[1].mxu0  ;;  %v3275_v39 = vpop.f32.mrb[1].mxu1 }
 0x166   : > { %v4961_v49 = vadd.f32 %v3251_v20, %v3250_v41  ;;  %v4963_v14 = vadd.f32 %v3275_v39, %v3274_v59  ;;  %v3253_v11 = vpop.f32.mrb[2].mxu0  ;;  %v3277_v9 = vpop.f32.mrb[2].mxu1 }
 0x167   : > { %v3254_v30 = vpop.f32.mrb[3].mxu0  ;;  %v3278_v44 = vpop.f32.mrb[3].mxu1 }
 0x168   : > { %v4965_v40 = vadd.f32 %v3254_v30, %v3253_v11  ;;  %v4967_v23 = vadd.f32 %v3278_v44, %v3277_v9 }
 0x169   : > { %2566 = vmatmul.mubr.bf16.gmra.mrb[108].mxu1 %v4873_v46  ;;  %2663 = vmatmul.mubr.bf16.gmra.mrb[108].mxu0 %v3077_v21 }
 0x16a   : > { %2703 = vmatprep.mubr.bf16.mxu1 %v4687_v38  ;;  %2800 = vmatprep.mubr.bf16.mxu0 %v5316_v55 }
 0x16c   : > { %v3256_v58 = vpop.f32.mrb[4].mxu0  ;;  %v3280_v5 = vpop.f32.mrb[4].mxu1 }
 0x16d   : > { %v3257_v24 = vpop.f32.mrb[5].mxu0  ;;  %v3281_v8 = vpop.f32.mrb[5].mxu1 }
 0x16e   : > { %v4972_v28 = vadd.f32 %v3257_v24, %v3256_v58  ;;  %v4974_v42 = vadd.f32 %v3281_v8, %v3280_v5  ;;  %v3259_v50 = vpop.f32.mrb[6].mxu0  ;;  %v3283_v18 = vpop.f32.mrb[6].mxu1 }
 0x16f   : > { %v3260_v16 = vpop.f32.mrb[7].mxu0  ;;  %v3284_v6 = vpop.f32.mrb[7].mxu1 }
 0x170   : > { %v4976_v53 = vadd.f32 %v3260_v16, %v3259_v50  ;;  %v4978_v62 = vadd.f32 %v3284_v6, %v3283_v18 }
 0x171   : > { %2704 = vmatmul.mubr.bf16.vlgmr.msra.gmra.mrb[112].mxu1 %v4715_v7  ;;  %2801 = vmatmul.mubr.bf16.vlgmr.msra.gmra.mrb[112].mxu0 %v4694_v3 }
 0x172   : > { %2711 = vmatprep.mubr.bf16.mxu1 %v4734_v12  ;;  %2808 = vmatprep.mubr.bf16.mxu0 %v4722_v13 }
 0x174   : > { %v3262_v38 = vpop.f32.mrb[8].mxu0  ;;  %v3286_v55 = vpop.f32.mrb[8].mxu1 }
 0x175   : > { %v3263_v17 = vpop.f32.mrb[9].mxu0  ;;  %v3287_v0 = vpop.f32.mrb[9].mxu1 }
 0x176   : > { %v4984_v33 = vadd.f32 %v3263_v17, %v3262_v38  ;;  %v4986_v35 = vadd.f32 %v3287_v0, %v3286_v55  ;;  %v3265_v43 = vpop.f32.mrb[10].mxu0  ;;  %v3289_v26 = vpop.f32.mrb[10].mxu1  ;;  %v560_v17 = vshrl.u32 %v4949_v63, 16  ;;  %v569_v0 = vshll.u32 %v4952_v10, 16 }
 0x177   : > { %v3266_v36 = vpop.f32.mrb[11].mxu0  ;;  %v3290_v41 = vpop.f32.mrb[11].mxu1 }
 0x178   : > { %v4988_v59 = vadd.f32 %v3266_v36, %v3265_v43  ;;  %v4990_v7 = vadd.f32 %v3290_v41, %v3289_v26  ;;  %v573_v43 = vshrl.u32 %v4952_v10, 16 }
 0x179   : > { %2712 = vmatmul.mubr.bf16.gmra.mrb[116].mxu1 %v4762_v22  ;;  %2809 = vmatmul.mubr.bf16.gmra.mrb[116].mxu0 %v4766_v51 }
 0x17a   : > { %2719 = vmatprep.mubr.bf16.mxu1 %v4769_v52  ;;  %2816 = vmatprep.mubr.bf16.mxu0 %v4739_v19  ;;  %v5008_v19 = vld [vmem:[#allocation7] ss:$0 sm:$0xff] }
 0x17b   : > { %v2027_v8 = vadd.f32 %v4961_v49, %v5008_v19  ;;  %v563_v49 = vshll.u32 %v4949_v63, 16 }
 0x17c   : > { %v3268_v3 = vpop.f32.mrb[12].mxu0  ;;  %v3292_v13 = vpop.f32.mrb[12].mxu1 }
 0x17d   : > { %v3269_v12 = vpop.f32.mrb[13].mxu0  ;;  %v3293_v20 = vpop.f32.mrb[13].mxu1 }
 0x17e   : > { %v4996_v39 = vadd.f32 %v3269_v12, %v3268_v3  ;;  %v4998_v21 = vadd.f32 %v3293_v20, %v3292_v13  ;;  %v3271_v11 = vpop.f32.mrb[14].mxu0  ;;  %v3295_v9 = vpop.f32.mrb[14].mxu1  ;;  %v562_v13 = vrot.slane %v560_v17, 4  ;;  %v565_v12 = vrot.slane %v563_v49, 5 }
 0x17f   : > { %v3272_v30 = vpop.f32.mrb[15].mxu0  ;;  %v3296_v44 = vpop.f32.mrb[15].mxu1  ;;  %v571_v20 = vrot.slane %v569_v0, 5  ;;  %v2043_v49 = vadd.f32 %v4984_v33, %v5008_v19 }
 0x180   : > { %v5000_v58 = vadd.f32 %v3272_v30, %v3271_v11  ;;  %v5002_v22 = vadd.f32 %v3296_v44, %v3295_v9  ;;  %v575_v11 = vrot.slane %v573_v43, 4  ;;  %v2035_v9 = vadd.f32 %v4972_v28, %v5008_v19 }
 0x181   : > { %2720 = vmatmul.mubr.bf16.gmra.mrb[120].mxu1 %v4790_v1  ;;  %2817 = vmatmul.mubr.bf16.gmra.mrb[120].mxu0 %v4741_v47  ;;  %v2030_v47 = vadd.f32 %v4965_v40, %v5008_v19 }
 0x182   : > { %2727 = vmatprep.mubr.bf16.mxu1 %v4792_v32  ;;  %2824 = vmatprep.mubr.bf16.mxu0 %v4794_v34  ;;  %v2054_v2 = vadd.f32 %v5000_v58, %v5008_v19 }
 0x184   : > { %v3314_v51 = vpop.f32.mrb[16].mxu1  ;;  %v3378_v52 = vpop.f32.mrb[16].mxu0 }
 0x185   : > { %v3315_v5 = vpop.f32.mrb[17].mxu1  ;;  %v3379_v24 = vpop.f32.mrb[17].mxu0 }
 0x186   : > { %v3316_v50 = vadd.f32 %v3315_v5, %v3314_v51  ;;  %v3380_v18 = vadd.f32 %v3379_v24, %v3378_v52  ;;  %v3317_v16 = vpop.f32.mrb[18].mxu1  ;;  %v3381_v6 = vpop.f32.mrb[18].mxu0  ;;  %v246_v5 = vld [vmem:[%s4423_s4 + $0xe8] sm:$0x11]  ;;  %v2038_v24 = vadd.f32 %v4976_v53, %v5008_v19 }
 0x187   : > { %v3318_v1 = vpop.f32.mrb[19].mxu1  ;;  %v3382_v38 = vpop.f32.mrb[19].mxu0 }
 0x188   : > { %v2124_v32 = vadd.f32 %v3316_v50, %v2027_v8  ;;  %v3319_v34 = vadd.f32 %v3318_v1, %v3317_v16  ;;  %v3383_v55 = vadd.f32 %v3382_v38, %v3381_v6  ;;  %v566_v16 = vor.u32 %v565_v12, %v562_v13 }
 0x189   : > { %2728 = vmatmul.mubr.bf16.gmra.mrb[124].mxu1 %v4810_v48  ;;  %2825 = vmatmul.mubr.bf16.gmra.mrb[124].mxu0 %v4812_v57  ;;  %v576_v6 = vor.u32 %v575_v11, %v571_v20  ;;  %v579_v38 = vshll.u32 %v246_v5, 16  ;;  %v2046_v13 = vadd.f32 %v4988_v59, %v5008_v19 }
 0x18a   : > { %v5020_v26 = vadd.f32 %v3380_v18, %v2124_v32  ;;  %v2127_v36 = vadd.f32 %v3319_v34, %v2030_v47  ;;  %2735 = vmatprep.mubr.bf16.mxu1 %v4814_v54  ;;  %2832 = vmatprep.mubr.bf16.mxu0 %v4816_v45  ;;  %v588_v47 = vrot.slane %v4952_v10, 5  ;;  %v567_v17 = vrot.slane %v566_v16, 4 }
 0x18b   : > { %v3022_v10 = vrot.slane %v4949_v63, 9 }
 0x18c   : > { %v5024_v40 = vadd.f32 %v3383_v55, %v2127_v36  ;;  %v3320_v48 = vpop.f32.mrb[20].mxu1  ;;  %v3384_v57 = vpop.f32.mrb[20].mxu0  ;;  %v572_v33 = vsel %vm4584_vm4, %v567_v17, %v571_v20 }
 0x18d   : > { %v3321_v41 = vpop.f32.mrb[21].mxu1  ;;  %v3385_v3 = vpop.f32.mrb[21].mxu0  ;;  %v589_v59 = vsel %vm4596_vm5, %v3022_v10, %v588_v47 }
 0x18e   : > { %v3322_v30 = vadd.f32 %v3321_v41, %v3320_v48  ;;  %v3386_v44 = vadd.f32 %v3385_v3, %v3384_v57  ;;  %v3323_v51 = vpop.f32.mrb[22].mxu1  ;;  %v3387_v54 = vpop.f32.mrb[22].mxu0  ;;  %v581_v48 = vrot.slane %v579_v38, 5  ;;  %v590_v41 = vrot.slane %v588_v47, 4 }
 0x18f   : > { %v3324_v52 = vpop.f32.mrb[23].mxu1  ;;  %v3388_v45 = vpop.f32.mrb[23].mxu0  ;;  %v591_v3 = vrot.slane %v246_v5, 5 }
 0x190   : > { %v2132_v8 = vadd.f32 %v3322_v30, %v2035_v9  ;;  %v3325_v50 = vadd.f32 %v3324_v52, %v3323_v51  ;;  %v3389_v18 = vadd.f32 %v3388_v45, %v3387_v54 }
 0x191   : > { %2736 = vmatmul.mubr.bf16.gmra.mrb[128].mxu1 %v4831_v15  ;;  %2833 = vmatmul.mubr.bf16.gmra.mrb[128].mxu0 %v4833_v61  ;;  %v577_v61 = vrot.slane %v576_v6, 4 }
 0x192   : > { %v5033_v28 = vadd.f32 %v3386_v44, %v2132_v8  ;;  %v2135_v1 = vadd.f32 %v3325_v50, %v2038_v24  ;;  %2743 = vmatprep.mubr.bf16.mxu1 %v4835_v37  ;;  %2840 = vmatprep.mubr.bf16.mxu0 %v4837_v29 }
 0x193   : > { %v582_v63 = vsel %vm4584_vm4, %v577_v61, %v581_v48  ;;  %v2059_v61 = vadd.f32 %v4963_v14, %v5008_v19 }
 0x194   : > { %v5038_v53 = vadd.f32 %v3389_v18, %v2135_v1  ;;  %v3326_v32 = vpop.f32.mrb[24].mxu1  ;;  %v3390_v34 = vpop.f32.mrb[24].mxu0  ;;  %v3080_v45 = vcombine.high %v572_v33, %v582_v63  ;;  %v3079_v17 = vcombine.low %v572_v33, %v582_v63 }
 0x195   : > { %v3327_v55 = vpop.f32.mrb[25].mxu1  ;;  %v3391_v15 = vpop.f32.mrb[25].mxu0 }
 0x196   : > { %v3328_v0 = vadd.f32 %v3327_v55, %v3326_v32  ;;  %v3392_v43 = vadd.f32 %v3391_v15, %v3390_v34  ;;  %v3329_v36 = vpop.f32.mrb[26].mxu1  ;;  %v3393_v37 = vpop.f32.mrb[26].mxu0 }
 0x197   : > { %v3330_v29 = vpop.f32.mrb[27].mxu1  ;;  %v3394_v57 = vpop.f32.mrb[27].mxu0 }
 0x198   : > { %v2140_v12 = vadd.f32 %v3328_v0, %v2043_v49  ;;  %v3331_v11 = vadd.f32 %v3330_v29, %v3329_v36  ;;  %v3395_v9 = vadd.f32 %v3394_v57, %v3393_v37  ;;  %v2062_v37 = vadd.f32 %v4967_v23, %v5008_v19 }
 0x199   : > { %2744 = vmatmul.mubr.bf16.gmra.mrb[132].mxu1 %v4843_v4  ;;  %2841 = vmatmul.mubr.bf16.gmra.mrb[132].mxu0 %v4845_v27  ;;  %v592_v4 = vsel %vm4596_vm5, %v590_v41, %v591_v3 }
 0x19a   : > { %v5049_v30 = vadd.f32 %v3392_v43, %v2140_v12  ;;  %v2143_v44 = vadd.f32 %v3331_v11, %v2046_v13  ;;  %2751 = vmatprep.mubr.bf16.mxu1 %v4908_v31  ;;  %2848 = vmatprep.mubr.bf16.mxu0 %v4871_v56  ;;  %v2051_v31 = vadd.f32 %v4996_v39, %v5008_v19 }
 0x19b   : > { %v3082_v8 = vcombine.high %v589_v59, %v592_v4  ;;  %v3081_v58 = vcombine.low %v589_v59, %v592_v4 }
 0x19c   : > { %v5059_v27 = vadd.f32 %v3395_v9, %v2143_v44  ;;  %v3332_v51 = vpop.f32.mrb[28].mxu1  ;;  %v3396_v20 = vpop.f32.mrb[28].mxu0  ;;  %v2067_v9 = vadd.f32 %v4974_v42, %v5008_v19 }
 0x19d   : > { %v3333_v54 = vpop.f32.mrb[29].mxu1  ;;  %v3397_v52 = vpop.f32.mrb[29].mxu0 }
 0x19e   : > { %v3334_v56 = vadd.f32 %v3333_v54, %v3332_v51  ;;  %v3398_v5 = vadd.f32 %v3397_v52, %v3396_v20  ;;  %v3335_v60 = vpop.f32.mrb[30].mxu1  ;;  %v3399_v24 = vpop.f32.mrb[30].mxu0  ;;  %v2070_v51 = vadd.f32 %v4978_v62, %v5008_v19 }
 0x19f   : > { %v3336_v50 = vpop.f32.mrb[31].mxu1  ;;  %v3400_v18 = vpop.f32.mrb[31].mxu0 }
 0x1a0   : > { %v2148_v16 = vadd.f32 %v3334_v56, %v2051_v31  ;;  %v3337_v6 = vadd.f32 %v3336_v50, %v3335_v60  ;;  %v3401_v1 = vadd.f32 %v3400_v18, %v3399_v24 }
 0x1a1   : > { %2752 = vmatmul.mubr.bf16.gmra.mrb[136].mxu1 %v4918_v25  ;;  %2849 = vmatmul.mubr.bf16.gmra.mrb[136].mxu0 %v4873_v46 }
 0x1a2   : > { %v5067_v38 = vadd.f32 %v3398_v5, %v2148_v16  ;;  %v2151_v39 = vadd.f32 %v3337_v6, %v2054_v2  ;;  %2759 = vmatprep.mubr.bf16.mxu1 %v3080_v45  ;;  %2856 = vmatprep.mubr.bf16.mxu0 %v3082_v8  ;;  %v2075_v8 = vadd.f32 %v4986_v35, %v5008_v19 }
 0x1a4   : > { %v5069_v47 = vadd.f32 %v3401_v1, %v2151_v39  ;;  %v3338_v32 = vpop.f32.mrb[32].mxu1  ;;  %v3402_v34 = vpop.f32.mrb[32].mxu0  ;;  %v2078_v1 = vadd.f32 %v4990_v7, %v5008_v19 }
 0x1a5   : > { %v3339_v55 = vpop.f32.mrb[33].mxu1  ;;  %v3403_v15 = vpop.f32.mrb[33].mxu0 }
 0x1a6   : > { %v3340_v49 = vadd.f32 %v3339_v55, %v3338_v32  ;;  %v3404_v25 = vadd.f32 %v3403_v15, %v3402_v34  ;;  %v3341_v0 = vpop.f32.mrb[34].mxu1  ;;  %v3405_v46 = vpop.f32.mrb[34].mxu0 }
 0x1a7   : > { %v3342_v43 = vpop.f32.mrb[35].mxu1  ;;  %v3406_v36 = vpop.f32.mrb[35].mxu0 }
 0x1a8   : > { %v2156_v48 = vadd.f32 %v3340_v49, %v2059_v61  ;;  %v3343_v29 = vadd.f32 %v3342_v43, %v3341_v0  ;;  %v3407_v57 = vadd.f32 %v3406_v36, %v3405_v46 }
 0x1a9   : > { %2760 = vmatmul.mubr.bf16.gmra.mrb[140].mxu1 %v3079_v17  ;;  %2857 = vmatmul.mubr.bf16.gmra.mrb[140].mxu0 %v3081_v58 }
 0x1aa   : > { %v5075_v10 = vadd.f32 %v3404_v25, %v2156_v48  ;;  %v2159_v41 = vadd.f32 %v3343_v29, %v2062_v37  ;;  %v2083_v25 = vadd.f32 %v4998_v21, %v5008_v19  ;;  %v2086_v48 = vadd.f32 %v5002_v22, %v5008_v19 }
 0x1ac   : > { %v5077_v3 = vadd.f32 %v3407_v57, %v2159_v41  ;;  %v3344_v14 = vpop.f32.mrb[36].mxu1  ;;  %v3408_v13 = vpop.f32.mrb[36].mxu0 }
 0x1ad   : > { %v3345_v12 = vpop.f32.mrb[37].mxu1  ;;  %v3409_v11 = vpop.f32.mrb[37].mxu0 }
 0x1ae   : > { %v3346_v33 = vadd.f32 %v3345_v12, %v3344_v14  ;;  %v3410_v44 = vadd.f32 %v3409_v11, %v3408_v13  ;;  %v3347_v23 = vpop.f32.mrb[38].mxu1  ;;  %v3411_v63 = vpop.f32.mrb[38].mxu0 }
 0x1af   : > { %v3348_v59 = vpop.f32.mrb[39].mxu1  ;;  %v3412_v4 = vpop.f32.mrb[39].mxu0 }
 0x1b0   : > { %v2164_v20 = vadd.f32 %v3346_v33, %v2067_v9  ;;  %v3349_v54 = vadd.f32 %v3348_v59, %v3347_v23  ;;  %v3413_v52 = vadd.f32 %v3412_v4, %v3411_v63 }
 0x1b2   : > { %v5083_v45 = vadd.f32 %v3410_v44, %v2164_v20  ;;  %v2167_v31 = vadd.f32 %v3349_v54, %v2070_v51 }
 0x1b4   : > { %v5085_v56 = vadd.f32 %v3413_v52, %v2167_v31  ;;  %v3350_v5 = vpop.f32.mrb[40].mxu1  ;;  %v3414_v60 = vpop.f32.mrb[40].mxu0 }
 0x1b5   : > { %v3351_v42 = vpop.f32.mrb[41].mxu1  ;;  %v3415_v24 = vpop.f32.mrb[41].mxu0 }
 0x1b6   : > { %v3352_v50 = vadd.f32 %v3351_v42, %v3350_v5  ;;  %v3416_v18 = vadd.f32 %v3415_v24, %v3414_v60  ;;  %v3353_v2 = vpop.f32.mrb[42].mxu1  ;;  %v3417_v16 = vpop.f32.mrb[42].mxu0 }
 0x1b7   : > { %v3354_v62 = vpop.f32.mrb[43].mxu1  ;;  %v3418_v6 = vpop.f32.mrb[43].mxu0 }
 0x1b8   : > { %v2172_v39 = vadd.f32 %v3352_v50, %v2075_v8  ;;  %v3355_v32 = vadd.f32 %v3354_v62, %v3353_v2  ;;  %v3419_v34 = vadd.f32 %v3418_v6, %v3417_v16 }
 0x1ba   : > { %v5091_v55 = vadd.f32 %v3416_v18, %v2172_v39  ;;  %v2175_v15 = vadd.f32 %v3355_v32, %v2078_v1 }
 0x1bc   : > { %v5093_v17 = vadd.f32 %v3419_v34, %v2175_v15  ;;  %v3356_v58 = vpop.f32.mrb[44].mxu1  ;;  %v3420_v61 = vpop.f32.mrb[44].mxu0 }
 0x1bd   : > { %v3357_v35 = vpop.f32.mrb[45].mxu1  ;;  %v3421_v49 = vpop.f32.mrb[45].mxu0 }
 0x1be   : > { %v3358_v0 = vadd.f32 %v3357_v35, %v3356_v58  ;;  %v3422_v46 = vadd.f32 %v3421_v49, %v3420_v61  ;;  %v3359_v43 = vpop.f32.mrb[46].mxu1  ;;  %v3423_v36 = vpop.f32.mrb[46].mxu0 }
 0x1bf   : > { %v3360_v7 = vpop.f32.mrb[47].mxu1  ;;  %v3424_v37 = vpop.f32.mrb[47].mxu0 }
 0x1c0   : > { %v2180_v29 = vadd.f32 %v3358_v0, %v2083_v25  ;;  %v3361_v57 = vadd.f32 %v3360_v7, %v3359_v43  ;;  %v3425_v41 = vadd.f32 %v3424_v37, %v3423_v36 }
 0x1c2   : > { %v5099_v14 = vadd.f32 %v3422_v46, %v2180_v29  ;;  %v2183_v13 = vadd.f32 %v3361_v57, %v2086_v48 }
 0x1c4   : > { %v5101_v12 = vadd.f32 %v3425_v41, %v2183_v13  ;;  %v3442_v11 = vpop.f32.mrb[48].mxu1  ;;  %v3506_v9 = vpop.f32.mrb[48].mxu0 }
 0x1c5   : > { %v3443_v21 = vpop.f32.mrb[49].mxu1  ;;  %v3507_v33 = vpop.f32.mrb[49].mxu0 }
 0x1c6   : > { %v3444_v44 = vadd.f32 %v3443_v21, %v3442_v11  ;;  %v3508_v23 = vadd.f32 %v3507_v33, %v3506_v9  ;;  %v3445_v63 = vpop.f32.mrb[50].mxu1  ;;  %v3509_v59 = vpop.f32.mrb[50].mxu0 }
 0x1c7   : > { %v3446_v4 = vpop.f32.mrb[51].mxu1  ;;  %v3510_v51 = vpop.f32.mrb[51].mxu0 }
 0x1c8   : > { %v2318_v22 = vadd.f32 %v3444_v44, %v5020_v26  ;;  %v3447_v19 = vadd.f32 %v3446_v4, %v3445_v63  ;;  %v3511_v20 = vadd.f32 %v3510_v51, %v3509_v59 }
 0x1ca   : > { %v5104_v54 = vadd.f32 %v3508_v23, %v2318_v22  ;;  %v2321_v52 = vadd.f32 %v3447_v19, %v5024_v40 }
 0x1cc   : > { %v5107_v31 = vadd.f32 %v3511_v20, %v2321_v52  ;;  %v3448_v5 = vpop.f32.mrb[52].mxu1  ;;  %v3512_v60 = vpop.f32.mrb[52].mxu0 }
 0x1cd   : > { %v3449_v42 = vpop.f32.mrb[53].mxu1  ;;  %v3513_v24 = vpop.f32.mrb[53].mxu0 }
 0x1ce   : > { %v3450_v8 = vadd.f32 %v3449_v42, %v3448_v5  ;;  %v3514_v50 = vadd.f32 %v3513_v24, %v3512_v60  ;;  %v3451_v18 = vpop.f32.mrb[54].mxu1  ;;  %v3515_v2 = vpop.f32.mrb[54].mxu0 }
 0x1cf   : > { %v3452_v16 = vpop.f32.mrb[55].mxu1  ;;  %v3516_v62 = vpop.f32.mrb[55].mxu0 }
 0x1d0   : > { %v2326_v26 = vadd.f32 %v3450_v8, %v5033_v28  ;;  %v3453_v6 = vadd.f32 %v3452_v16, %v3451_v18  ;;  %v3517_v1 = vadd.f32 %v3516_v62, %v3515_v2 }
 0x1d2   : > { %v5110_v39 = vadd.f32 %v3514_v50, %v2326_v26  ;;  %v2329_v40 = vadd.f32 %v3453_v6, %v5038_v53 }
 0x1d4   : > { %v5113_v32 = vadd.f32 %v3517_v1, %v2329_v40  ;;  %v3454_v34 = vpop.f32.mrb[56].mxu1  ;;  %v3518_v15 = vpop.f32.mrb[56].mxu0 }
 0x1d5   : > { %v3455_v58 = vpop.f32.mrb[57].mxu1  ;;  %v3519_v61 = vpop.f32.mrb[57].mxu0 }
 0x1d6   : > { %v3456_v35 = vadd.f32 %v3455_v58, %v3454_v34  ;;  %v3520_v49 = vadd.f32 %v3519_v61, %v3518_v15  ;;  %v3457_v25 = vpop.f32.mrb[58].mxu1  ;;  %v3521_v0 = vpop.f32.mrb[58].mxu0 }
 0x1d7   : > { %v3458_v46 = vpop.f32.mrb[59].mxu1  ;;  %v3522_v43 = vpop.f32.mrb[59].mxu0 }
 0x1d8   : > { %v2334_v28 = vadd.f32 %v3456_v35, %v5049_v30  ;;  %v3459_v36 = vadd.f32 %v3458_v46, %v3457_v25  ;;  %v3523_v7 = vadd.f32 %v3522_v43, %v3521_v0 }
 0x1da   : > { %v5116_v37 = vadd.f32 %v3520_v49, %v2334_v28  ;;  %v2337_v53 = vadd.f32 %v3459_v36, %v5059_v27 }
 0x1dc   : > { %v5119_v48 = vadd.f32 %v3523_v7, %v2337_v53  ;;  %v3460_v29 = vpop.f32.mrb[60].mxu1  ;;  %v3524_v57 = vpop.f32.mrb[60].mxu0 }
 0x1dd   : > { %v3461_v41 = vpop.f32.mrb[61].mxu1  ;;  %v3525_v13 = vpop.f32.mrb[61].mxu0 }
 0x1de   : > { %v3462_v11 = vadd.f32 %v3461_v41, %v3460_v29  ;;  %v3526_v9 = vadd.f32 %v3525_v13, %v3524_v57  ;;  %v3463_v21 = vpop.f32.mrb[62].mxu1  ;;  %v3527_v33 = vpop.f32.mrb[62].mxu0 }
 0x1df   : > { %v3464_v44 = vpop.f32.mrb[63].mxu1  ;;  %v3528_v23 = vpop.f32.mrb[63].mxu0 }
 0x1e0   : > { %v2342_v30 = vadd.f32 %v3462_v11, %v5067_v38  ;;  %v3465_v63 = vadd.f32 %v3464_v44, %v3463_v21  ;;  %v3529_v59 = vadd.f32 %v3528_v23, %v3527_v33 }
 0x1e2   : > { %v5122_v4 = vadd.f32 %v3526_v9, %v2342_v30  ;;  %v2345_v27 = vadd.f32 %v3465_v63, %v5069_v47 }
 0x1e4   : > { %v5125_v51 = vadd.f32 %v3529_v59, %v2345_v27  ;;  %v3466_v22 = vpop.f32.mrb[64].mxu1  ;;  %v3530_v19 = vpop.f32.mrb[64].mxu0 }
 0x1e5   : > { %v3467_v20 = vpop.f32.mrb[65].mxu1  ;;  %v3531_v52 = vpop.f32.mrb[65].mxu0 }
 0x1e6   : > { %v3468_v5 = vadd.f32 %v3467_v20, %v3466_v22  ;;  %v3532_v60 = vadd.f32 %v3531_v52, %v3530_v19  ;;  %v3469_v42 = vpop.f32.mrb[66].mxu1  ;;  %v3533_v24 = vpop.f32.mrb[66].mxu0 }
 0x1e7   : > { %v3470_v8 = vpop.f32.mrb[67].mxu1  ;;  %v3534_v50 = vpop.f32.mrb[67].mxu0 }
 0x1e8   : > { %v2350_v38 = vadd.f32 %v3468_v5, %v5075_v10  ;;  %v3471_v18 = vadd.f32 %v3470_v8, %v3469_v42  ;;  %v3535_v2 = vadd.f32 %v3534_v50, %v3533_v24 }
 0x1ea   : > { %v5128_v16 = vadd.f32 %v3532_v60, %v2350_v38  ;;  %v2353_v47 = vadd.f32 %v3471_v18, %v5077_v3 }
 0x1ec   : > { %v5131_v62 = vadd.f32 %v3535_v2, %v2353_v47  ;;  %v3472_v26 = vpop.f32.mrb[68].mxu1  ;;  %v3536_v6 = vpop.f32.mrb[68].mxu0 }
 0x1ed   : > { %v3473_v1 = vpop.f32.mrb[69].mxu1  ;;  %v3537_v40 = vpop.f32.mrb[69].mxu0 }
 0x1ee   : > { %v3474_v34 = vadd.f32 %v3473_v1, %v3472_v26  ;;  %v3538_v15 = vadd.f32 %v3537_v40, %v3536_v6  ;;  %v3475_v58 = vpop.f32.mrb[70].mxu1  ;;  %v3539_v61 = vpop.f32.mrb[70].mxu0 }
 0x1ef   : > { %v3476_v35 = vpop.f32.mrb[71].mxu1  ;;  %v3540_v49 = vpop.f32.mrb[71].mxu0 }
 0x1f0   : > { %v2358_v10 = vadd.f32 %v3474_v34, %v5083_v45  ;;  %v3477_v25 = vadd.f32 %v3476_v35, %v3475_v58  ;;  %v3541_v0 = vadd.f32 %v3540_v49, %v3539_v61 }
 0x1f2   : > { %v5134_v46 = vadd.f32 %v3538_v15, %v2358_v10  ;;  %v2361_v3 = vadd.f32 %v3477_v25, %v5085_v56 }
 0x1f4   : > { %v5137_v43 = vadd.f32 %v3541_v0, %v2361_v3  ;;  %v3478_v28 = vpop.f32.mrb[72].mxu1  ;;  %v3542_v36 = vpop.f32.mrb[72].mxu0 }
 0x1f5   : > { %v3479_v7 = vpop.f32.mrb[73].mxu1  ;;  %v3543_v53 = vpop.f32.mrb[73].mxu0 }
 0x1f6   : > { %v3480_v29 = vadd.f32 %v3479_v7, %v3478_v28  ;;  %v3544_v57 = vadd.f32 %v3543_v53, %v3542_v36  ;;  %v3481_v41 = vpop.f32.mrb[74].mxu1  ;;  %v3545_v13 = vpop.f32.mrb[74].mxu0 }
 0x1f7   : > { %v3482_v11 = vpop.f32.mrb[75].mxu1  ;;  %v3546_v9 = vpop.f32.mrb[75].mxu0 }
 0x1f8   : > { %v2366_v45 = vadd.f32 %v3480_v29, %v5091_v55  ;;  %v3483_v21 = vadd.f32 %v3482_v11, %v3481_v41  ;;  %v3547_v33 = vadd.f32 %v3546_v9, %v3545_v13 }
 0x1fa   : > { %v5140_v44 = vadd.f32 %v3544_v57, %v2366_v45  ;;  %v2369_v56 = vadd.f32 %v3483_v21, %v5093_v17 }
 0x1fc   : > { %v5143_v23 = vadd.f32 %v3547_v33, %v2369_v56  ;;  %v3484_v30 = vpop.f32.mrb[76].mxu1  ;;  %v3548_v63 = vpop.f32.mrb[76].mxu0 }
 0x1fd   : > { %v3485_v59 = vpop.f32.mrb[77].mxu1  ;;  %v3549_v27 = vpop.f32.mrb[77].mxu0 }
 0x1fe   : > { %v3486_v22 = vadd.f32 %v3485_v59, %v3484_v30  ;;  %v3550_v19 = vadd.f32 %v3549_v27, %v3548_v63  ;;  %v3487_v20 = vpop.f32.mrb[78].mxu1  ;;  %v3551_v52 = vpop.f32.mrb[78].mxu0 }
 0x1ff   : > { %v3488_v5 = vpop.f32.mrb[79].mxu1  ;;  %v3552_v60 = vpop.f32.mrb[79].mxu0 }
 0x200   : > { %v2374_v55 = vadd.f32 %v3486_v22, %v5099_v14  ;;  %v3489_v42 = vadd.f32 %v3488_v5, %v3487_v20  ;;  %v3553_v24 = vadd.f32 %v3552_v60, %v3551_v52 }
 0x202   : > { %v5146_v8 = vadd.f32 %v3550_v19, %v2374_v55  ;;  %v2377_v17 = vadd.f32 %v3489_v42, %v5101_v12 }
 0x204   : > { %v5149_v50 = vadd.f32 %v3553_v24, %v2377_v17  ;;  %v3570_v38 = vpop.f32.mrb[80].mxu1  ;;  %v3634_v18 = vpop.f32.mrb[80].mxu0 }
 0x205   : > { %v3571_v2 = vpop.f32.mrb[81].mxu1  ;;  %v3635_v47 = vpop.f32.mrb[81].mxu0 }
 0x206   : > { %v3572_v26 = vadd.f32 %v3571_v2, %v3570_v38  ;;  %v3636_v6 = vadd.f32 %v3635_v47, %v3634_v18  ;;  %v3573_v1 = vpop.f32.mrb[82].mxu1  ;;  %v3637_v40 = vpop.f32.mrb[82].mxu0 }
 0x207   : > { %v3574_v34 = vpop.f32.mrb[83].mxu1  ;;  %v3638_v15 = vpop.f32.mrb[83].mxu0 }
 0x208   : > { %v2512_v14 = vadd.f32 %v3572_v26, %v5104_v54  ;;  %v3575_v58 = vadd.f32 %v3574_v34, %v3573_v1  ;;  %v3639_v61 = vadd.f32 %v3638_v15, %v3637_v40 }
 0x20a   : > { %v5152_v35 = vadd.f32 %v3636_v6, %v2512_v14  ;;  %v2515_v12 = vadd.f32 %v3575_v58, %v5107_v31 }
 0x20c   : > { %v5155_v49 = vadd.f32 %v3639_v61, %v2515_v12  ;;  %v3576_v10 = vpop.f32.mrb[84].mxu1  ;;  %v3640_v25 = vpop.f32.mrb[84].mxu0 }
 0x20d   : > { %v3577_v0 = vpop.f32.mrb[85].mxu1  ;;  %v3641_v3 = vpop.f32.mrb[85].mxu0 }
 0x20e   : > { %v3578_v28 = vadd.f32 %v3577_v0, %v3576_v10  ;;  %v3642_v36 = vadd.f32 %v3641_v3, %v3640_v25  ;;  %v3579_v7 = vpop.f32.mrb[86].mxu1  ;;  %v3643_v53 = vpop.f32.mrb[86].mxu0 }
 0x20f   : > { %v3580_v29 = vpop.f32.mrb[87].mxu1  ;;  %v3644_v57 = vpop.f32.mrb[87].mxu0 }
 0x210   : > { %v2520_v54 = vadd.f32 %v3578_v28, %v5110_v39  ;;  %v3581_v41 = vadd.f32 %v3580_v29, %v3579_v7  ;;  %v3645_v13 = vadd.f32 %v3644_v57, %v3643_v53 }
 0x212   : > { %v5158_v11 = vadd.f32 %v3642_v36, %v2520_v54  ;;  %v2523_v31 = vadd.f32 %v3581_v41, %v5113_v32 }
 0x214   : > { %v5161_v9 = vadd.f32 %v3645_v13, %v2523_v31  ;;  %v3582_v45 = vpop.f32.mrb[88].mxu1  ;;  %v3646_v21 = vpop.f32.mrb[88].mxu0 }
 0x215   : > { %v3583_v33 = vpop.f32.mrb[89].mxu1  ;;  %v3647_v56 = vpop.f32.mrb[89].mxu0 }
 0x216   : > { %v3584_v30 = vadd.f32 %v3583_v33, %v3582_v45  ;;  %v3648_v63 = vadd.f32 %v3647_v56, %v3646_v21  ;;  %v3585_v59 = vpop.f32.mrb[90].mxu1  ;;  %v3649_v27 = vpop.f32.mrb[90].mxu0 }
 0x217   : > { %v3586_v22 = vpop.f32.mrb[91].mxu1  ;;  %v3650_v19 = vpop.f32.mrb[91].mxu0 }
 0x218   : > { %v2528_v39 = vadd.f32 %v3584_v30, %v5116_v37  ;;  %v3587_v20 = vadd.f32 %v3586_v22, %v3585_v59  ;;  %v3651_v52 = vadd.f32 %v3650_v19, %v3649_v27 }
 0x21a   : > { %v5164_v5 = vadd.f32 %v3648_v63, %v2528_v39  ;;  %v2531_v32 = vadd.f32 %v3587_v20, %v5119_v48 }
 0x21c   : > { %v5167_v60 = vadd.f32 %v3651_v52, %v2531_v32  ;;  %v3588_v55 = vpop.f32.mrb[92].mxu1  ;;  %v3652_v42 = vpop.f32.mrb[92].mxu0 }
 0x21d   : > { %v3589_v24 = vpop.f32.mrb[93].mxu1  ;;  %v3653_v17 = vpop.f32.mrb[93].mxu0 }
 0x21e   : > { %v3590_v38 = vadd.f32 %v3589_v24, %v3588_v55  ;;  %v3654_v18 = vadd.f32 %v3653_v17, %v3652_v42  ;;  %v3591_v2 = vpop.f32.mrb[94].mxu1  ;;  %v3655_v47 = vpop.f32.mrb[94].mxu0 }
 0x21f   : > { %v3592_v26 = vpop.f32.mrb[95].mxu1  ;;  %v3656_v6 = vpop.f32.mrb[95].mxu0 }
 0x220   : > { %v2536_v37 = vadd.f32 %v3590_v38, %v5122_v4  ;;  %v3593_v1 = vadd.f32 %v3592_v26, %v3591_v2  ;;  %v3657_v40 = vadd.f32 %v3656_v6, %v3655_v47 }
 0x222   : > { %v5170_v34 = vadd.f32 %v3654_v18, %v2536_v37  ;;  %v2539_v48 = vadd.f32 %v3593_v1, %v5125_v51 }
 0x224   : > { %v5173_v15 = vadd.f32 %v3657_v40, %v2539_v48  ;;  %v3594_v14 = vpop.f32.mrb[96].mxu1  ;;  %v3658_v58 = vpop.f32.mrb[96].mxu0 }
 0x225   : > { %v3595_v61 = vpop.f32.mrb[97].mxu1  ;;  %v3659_v12 = vpop.f32.mrb[97].mxu0 }
 0x226   : > { %v3596_v10 = vadd.f32 %v3595_v61, %v3594_v14  ;;  %v3660_v25 = vadd.f32 %v3659_v12, %v3658_v58  ;;  %v3597_v0 = vpop.f32.mrb[98].mxu1  ;;  %v3661_v3 = vpop.f32.mrb[98].mxu0 }
 0x227   : > { %v3598_v28 = vpop.f32.mrb[99].mxu1  ;;  %v3662_v36 = vpop.f32.mrb[99].mxu0 }
 0x228   : > { %v2544_v4 = vadd.f32 %v3596_v10, %v5128_v16  ;;  %v3599_v7 = vadd.f32 %v3598_v28, %v3597_v0  ;;  %v3663_v53 = vadd.f32 %v3662_v36, %v3661_v3 }
 0x22a   : > { %v5176_v29 = vadd.f32 %v3660_v25, %v2544_v4  ;;  %v2547_v51 = vadd.f32 %v3599_v7, %v5131_v62 }
 0x22c   : > { %v5179_v57 = vadd.f32 %v3663_v53, %v2547_v51  ;;  %v3600_v54 = vpop.f32.mrb[100].mxu1  ;;  %v3664_v41 = vpop.f32.mrb[100].mxu0 }
 0x22d   : > { %v3601_v13 = vpop.f32.mrb[101].mxu1  ;;  %v3665_v31 = vpop.f32.mrb[101].mxu0 }
 0x22e   : > { %v3602_v45 = vadd.f32 %v3601_v13, %v3600_v54  ;;  %v3666_v21 = vadd.f32 %v3665_v31, %v3664_v41  ;;  %v3603_v33 = vpop.f32.mrb[102].mxu1  ;;  %v3667_v56 = vpop.f32.mrb[102].mxu0 }
 0x22f   : > { %v3604_v30 = vpop.f32.mrb[103].mxu1  ;;  %v3668_v63 = vpop.f32.mrb[103].mxu0 }
 0x230   : > { %v2552_v16 = vadd.f32 %v3602_v45, %v5134_v46  ;;  %v3605_v59 = vadd.f32 %v3604_v30, %v3603_v33  ;;  %v3669_v27 = vadd.f32 %v3668_v63, %v3667_v56 }
 0x232   : > { %v5182_v22 = vadd.f32 %v3666_v21, %v2552_v16  ;;  %v2555_v62 = vadd.f32 %v3605_v59, %v5137_v43 }
 0x234   : > { %v5185_v19 = vadd.f32 %v3669_v27, %v2555_v62  ;;  %v3606_v39 = vpop.f32.mrb[104].mxu1  ;;  %v3670_v20 = vpop.f32.mrb[104].mxu0 }
 0x235   : > { %v3607_v52 = vpop.f32.mrb[105].mxu1  ;;  %v3671_v32 = vpop.f32.mrb[105].mxu0 }
 0x236   : > { %v3608_v55 = vadd.f32 %v3607_v52, %v3606_v39  ;;  %v3672_v42 = vadd.f32 %v3671_v32, %v3670_v20  ;;  %v3609_v24 = vpop.f32.mrb[106].mxu1  ;;  %v3673_v17 = vpop.f32.mrb[106].mxu0 }
 0x237   : > { %v3610_v38 = vpop.f32.mrb[107].mxu1  ;;  %v3674_v18 = vpop.f32.mrb[107].mxu0 }
 0x238   : > { %v2560_v46 = vadd.f32 %v3608_v55, %v5140_v44  ;;  %v3611_v2 = vadd.f32 %v3610_v38, %v3609_v24  ;;  %v3675_v47 = vadd.f32 %v3674_v18, %v3673_v17 }
 0x23a   : > { %v5188_v26 = vadd.f32 %v3672_v42, %v2560_v46  ;;  %v2563_v43 = vadd.f32 %v3611_v2, %v5143_v23 }
 0x23c   : > { %v5191_v6 = vadd.f32 %v3675_v47, %v2563_v43  ;;  %v3612_v37 = vpop.f32.mrb[108].mxu1  ;;  %v3676_v1 = vpop.f32.mrb[108].mxu0 }
 0x23d   : > { %v3613_v40 = vpop.f32.mrb[109].mxu1  ;;  %v3677_v48 = vpop.f32.mrb[109].mxu0 }
 0x23e   : > { %v3614_v14 = vadd.f32 %v3613_v40, %v3612_v37  ;;  %v3678_v58 = vadd.f32 %v3677_v48, %v3676_v1  ;;  %v3615_v61 = vpop.f32.mrb[110].mxu1  ;;  %v3679_v12 = vpop.f32.mrb[110].mxu0 }
 0x23f   : > { %v3616_v10 = vpop.f32.mrb[111].mxu1  ;;  %v3680_v25 = vpop.f32.mrb[111].mxu0 }
 0x240   : > { %v2568_v44 = vadd.f32 %v3614_v14, %v5146_v8  ;;  %v3617_v0 = vadd.f32 %v3616_v10, %v3615_v61  ;;  %v3681_v3 = vadd.f32 %v3680_v25, %v3679_v12 }
 0x242   : > { %v5194_v28 = vadd.f32 %v3678_v58, %v2568_v44  ;;  %v2571_v23 = vadd.f32 %v3617_v0, %v5149_v50 }
 0x244   : > { %v5197_v36 = vadd.f32 %v3681_v3, %v2571_v23  ;;  %v3698_v4 = vpop.f32.mrb[112].mxu1  ;;  %v3762_v7 = vpop.f32.mrb[112].mxu0 }
 0x245   : > { %v3699_v53 = vpop.f32.mrb[113].mxu1  ;;  %v3763_v51 = vpop.f32.mrb[113].mxu0 }
 0x246   : > { %v3700_v54 = vadd.f32 %v3699_v53, %v3698_v4  ;;  %v3764_v41 = vadd.f32 %v3763_v51, %v3762_v7  ;;  %v3701_v13 = vpop.f32.mrb[114].mxu1  ;;  %v3765_v31 = vpop.f32.mrb[114].mxu0 }
 0x247   : > { %v3702_v45 = vpop.f32.mrb[115].mxu1  ;;  %v3766_v21 = vpop.f32.mrb[115].mxu0 }
 0x248   : > { %v2706_v8 = vadd.f32 %v3700_v54, %v5152_v35  ;;  %v3703_v33 = vadd.f32 %v3702_v45, %v3701_v13  ;;  %v3767_v56 = vadd.f32 %v3766_v21, %v3765_v31 }
 0x24a   : > { %v2803_v30 = vadd.f32 %v3764_v41, %v2706_v8  ;;  %v2709_v50 = vadd.f32 %v3703_v33, %v5155_v49 }
 0x24c   : > { %v2865_v63 = vmax.f32 %v2803_v30, 0.0  ;;  %v2806_v16 = vadd.f32 %v3767_v56, %v2709_v50  ;;  %v3704_v59 = vpop.f32.mrb[116].mxu1  ;;  %v3768_v27 = vpop.f32.mrb[116].mxu0 }
 0x24d   : > { %v3705_v62 = vpop.f32.mrb[117].mxu1  ;;  %v3769_v39 = vpop.f32.mrb[117].mxu0 }
 0x24e   : > { %2881 = vst [vmem:[%s5202_s20] sm:$0xff] %v2865_v63  ;;  %v2866_v20 = vmax.f32 %v2806_v16, 0.0  ;;  %v3706_v52 = vadd.f32 %v3705_v62, %v3704_v59  ;;  %v3770_v35 = vadd.f32 %v3769_v39, %v3768_v27  ;;  %v3707_v32 = vpop.f32.mrb[118].mxu1  ;;  %v3771_v55 = vpop.f32.mrb[118].mxu0 }
 0x24f   : > { %v3708_v42 = vpop.f32.mrb[119].mxu1  ;;  %v3772_v24 = vpop.f32.mrb[119].mxu0 }
 0x250   : > { %2882 = vst [vmem:[%s5202_s20 + $0x8] sm:$0xff] %v2866_v20  ;;  %v2714_v49 = vadd.f32 %v3706_v52, %v5158_v11  ;;  %v3709_v17 = vadd.f32 %v3708_v42, %v3707_v32  ;;  %v3773_v38 = vadd.f32 %v3772_v24, %v3771_v55 }
 0x252   : > { %v2811_v18 = vadd.f32 %v3770_v35, %v2714_v49  ;;  %v2717_v46 = vadd.f32 %v3709_v17, %v5161_v9 }
 0x254   : > { %v2867_v2 = vmax.f32 %v2811_v18, 0.0  ;;  %v2814_v47 = vadd.f32 %v3773_v38, %v2717_v46  ;;  %v3710_v43 = vpop.f32.mrb[120].mxu1  ;;  %v3774_v37 = vpop.f32.mrb[120].mxu0 }
 0x255   : > { %v3711_v1 = vpop.f32.mrb[121].mxu1  ;;  %v3775_v40 = vpop.f32.mrb[121].mxu0 }
 0x256   : > { %2883 = vst [vmem:[%s5202_s20 + $0x10] sm:$0xff] %v2867_v2  ;;  %v2868_v48 = vmax.f32 %v2814_v47, 0.0  ;;  %v3712_v14 = vadd.f32 %v3711_v1, %v3710_v43  ;;  %v3776_v58 = vadd.f32 %v3775_v40, %v3774_v37  ;;  %v3713_v61 = vpop.f32.mrb[122].mxu1  ;;  %v3777_v12 = vpop.f32.mrb[122].mxu0 }
 0x257   : > { %v3714_v11 = vpop.f32.mrb[123].mxu1  ;;  %v3778_v10 = vpop.f32.mrb[123].mxu0 }
 0x258   : > { %2884 = vst [vmem:[%s5202_s20 + $0x18] sm:$0xff] %v2868_v48  ;;  %v2722_v25 = vadd.f32 %v3712_v14, %v5164_v5  ;;  %v3715_v44 = vadd.f32 %v3714_v11, %v3713_v61  ;;  %v3779_v9 = vadd.f32 %v3778_v10, %v3777_v12 }
 0x25a   : > { %v2819_v0 = vadd.f32 %v3776_v58, %v2722_v25  ;;  %v2725_v3 = vadd.f32 %v3715_v44, %v5167_v60 }
 0x25c   : > { %v2869_v23 = vmax.f32 %v2819_v0, 0.0  ;;  %v2822_v4 = vadd.f32 %v3779_v9, %v2725_v3  ;;  %v3716_v7 = vpop.f32.mrb[124].mxu1  ;;  %v3780_v53 = vpop.f32.mrb[124].mxu0 }
 0x25d   : > { %v3717_v51 = vpop.f32.mrb[125].mxu1  ;;  %v3781_v54 = vpop.f32.mrb[125].mxu0 }
 0x25e   : > { %2885 = vst [vmem:[%s5202_s20 + $0x20] sm:$0xff] %v2869_v23  ;;  %v2870_v41 = vmax.f32 %v2822_v4, 0.0  ;;  %v3718_v13 = vadd.f32 %v3717_v51, %v3716_v7  ;;  %v3782_v31 = vadd.f32 %v3781_v54, %v3780_v53  ;;  %v3719_v45 = vpop.f32.mrb[126].mxu1  ;;  %v3783_v21 = vpop.f32.mrb[126].mxu0 }
 0x25f   : > { %v3720_v5 = vpop.f32.mrb[127].mxu1  ;;  %v3784_v8 = vpop.f32.mrb[127].mxu0 }
 0x260   : > { %2886 = vst [vmem:[%s5202_s20 + $0x28] sm:$0xff] %v2870_v41  ;;  %v2730_v33 = vadd.f32 %v3718_v13, %v5170_v34  ;;  %v3721_v56 = vadd.f32 %v3720_v5, %v3719_v45  ;;  %v3785_v60 = vadd.f32 %v3784_v8, %v3783_v21 }
 0x262   : > { %v2827_v30 = vadd.f32 %v3782_v31, %v2730_v33  ;;  %v2733_v50 = vadd.f32 %v3721_v56, %v5173_v15 }
 0x264   : > { %v2871_v63 = vmax.f32 %v2827_v30, 0.0  ;;  %v2830_v16 = vadd.f32 %v3785_v60, %v2733_v50  ;;  %v3722_v59 = vpop.f32.mrb[128].mxu1  ;;  %v3786_v27 = vpop.f32.mrb[128].mxu0 }
 0x265   : > { %v3723_v62 = vpop.f32.mrb[129].mxu1  ;;  %v3787_v39 = vpop.f32.mrb[129].mxu0 }
 0x266   : > { %2887 = vst [vmem:[%s5202_s20 + $0x30] sm:$0xff] %v2871_v63  ;;  %v2872_v20 = vmax.f32 %v2830_v16, 0.0  ;;  %v3724_v52 = vadd.f32 %v3723_v62, %v3722_v59  ;;  %v3788_v35 = vadd.f32 %v3787_v39, %v3786_v27  ;;  %v3725_v32 = vpop.f32.mrb[130].mxu1  ;;  %v3789_v55 = vpop.f32.mrb[130].mxu0 }
 0x267   : > { %v3726_v34 = vpop.f32.mrb[131].mxu1  ;;  %v3790_v42 = vpop.f32.mrb[131].mxu0 }
 0x268   : > { %2888 = vst [vmem:[%s5202_s20 + $0x38] sm:$0xff] %v2872_v20  ;;  %v2738_v24 = vadd.f32 %v3724_v52, %v5176_v29  ;;  %v3727_v49 = vadd.f32 %v3726_v34, %v3725_v32  ;;  %v3791_v15 = vadd.f32 %v3790_v42, %v3789_v55 }
 0x26a   : > { %v2835_v17 = vadd.f32 %v3788_v35, %v2738_v24  ;;  %v2741_v38 = vadd.f32 %v3727_v49, %v5179_v57 }
 0x26c   : > { %v2873_v18 = vmax.f32 %v2835_v17, 0.0  ;;  %v2838_v46 = vadd.f32 %v3791_v15, %v2741_v38  ;;  %v3728_v2 = vpop.f32.mrb[132].mxu1  ;;  %v3792_v47 = vpop.f32.mrb[132].mxu0 }
 0x26d   : > { %v3729_v43 = vpop.f32.mrb[133].mxu1  ;;  %v3793_v37 = vpop.f32.mrb[133].mxu0 }
 0x26e   : > { %2889 = vst [vmem:[%s5202_s20 + $0x40] sm:$0xff] %v2873_v18  ;;  %v2874_v1 = vmax.f32 %v2838_v46, 0.0  ;;  %v3730_v40 = vadd.f32 %v3729_v43, %v3728_v2  ;;  %v3794_v48 = vadd.f32 %v3793_v37, %v3792_v47  ;;  %v3731_v14 = vpop.f32.mrb[134].mxu1  ;;  %v3795_v58 = vpop.f32.mrb[134].mxu0 }
 0x26f   : > { %v3732_v29 = vpop.f32.mrb[135].mxu1  ;;  %v3796_v61 = vpop.f32.mrb[135].mxu0 }
 0x270   : > { %2890 = vst [vmem:[%s5202_s20 + $0x48] sm:$0xff] %v2874_v1  ;;  %v2746_v12 = vadd.f32 %v3730_v40, %v5182_v22  ;;  %v3733_v11 = vadd.f32 %v3732_v29, %v3731_v14  ;;  %v3797_v57 = vadd.f32 %v3796_v61, %v3795_v58 }
 0x272   : > { %v2843_v10 = vadd.f32 %v3794_v48, %v2746_v12  ;;  %v2749_v25 = vadd.f32 %v3733_v11, %v5185_v19 }
 0x274   : > { %v2875_v44 = vmax.f32 %v2843_v10, 0.0  ;;  %v2846_v9 = vadd.f32 %v3797_v57, %v2749_v25  ;;  %v3734_v0 = vpop.f32.mrb[136].mxu1  ;;  %v3798_v3 = vpop.f32.mrb[136].mxu0 }
 0x275   : > { %v3735_v23 = vpop.f32.mrb[137].mxu1  ;;  %v3799_v4 = vpop.f32.mrb[137].mxu0 }
 0x276   : > { %2891 = vst [vmem:[%s5202_s20 + $0x50] sm:$0xff] %v2875_v44  ;;  %v2876_v7 = vmax.f32 %v2846_v9, 0.0  ;;  %v3736_v53 = vadd.f32 %v3735_v23, %v3734_v0  ;;  %v3800_v51 = vadd.f32 %v3799_v4, %v3798_v3  ;;  %v3737_v54 = vpop.f32.mrb[138].mxu1  ;;  %v3801_v41 = vpop.f32.mrb[138].mxu0 }
 0x277   : > { %v3738_v22 = vpop.f32.mrb[139].mxu1  ;;  %v3802_v13 = vpop.f32.mrb[139].mxu0 }
 0x278   : > { %2892 = vst [vmem:[%s5202_s20 + $0x58] sm:$0xff] %v2876_v7  ;;  %v2754_v31 = vadd.f32 %v3736_v53, %v5188_v26  ;;  %v3739_v45 = vadd.f32 %v3738_v22, %v3737_v54  ;;  %v3803_v19 = vadd.f32 %v3802_v13, %v3801_v41 }
 0x27a   : > { %v2851_v21 = vadd.f32 %v3800_v51, %v2754_v31  ;;  %v2757_v5 = vadd.f32 %v3739_v45, %v5191_v6 }
 0x27c   : > { %v2877_v8 = vmax.f32 %v2851_v21, 0.0  ;;  %v2854_v33 = vadd.f32 %v3803_v19, %v2757_v5  ;;  %v3740_v56 = vpop.f32.mrb[140].mxu1  ;;  %v3804_v60 = vpop.f32.mrb[140].mxu0 }
 0x27d   : > { %v3741_v30 = vpop.f32.mrb[141].mxu1  ;;  %v3805_v50 = vpop.f32.mrb[141].mxu0 }
 0x27e   : > { %2893 = vst [vmem:[%s5202_s20 + $0x60] sm:$0xff] %v2877_v8  ;;  %v2878_v63 = vmax.f32 %v2854_v33, 0.0  ;;  %v3742_v16 = vadd.f32 %v3741_v30, %v3740_v56  ;;  %v3806_v59 = vadd.f32 %v3805_v50, %v3804_v60  ;;  %v3743_v27 = vpop.f32.mrb[142].mxu1  ;;  %v3807_v26 = vpop.f32.mrb[142].mxu0 }
 0x27f   : > { %v3744_v62 = vpop.f32.mrb[143].mxu1  ;;  %v3808_v39 = vpop.f32.mrb[143].mxu0 }
 0x280   : > { %2894 = vst [vmem:[%s5202_s20 + $0x68] sm:$0xff] %v2878_v63  ;;  %v2762_v6 = vadd.f32 %v3742_v16, %v5194_v28  ;;  %v3745_v20 = vadd.f32 %v3744_v62, %v3743_v27  ;;  %v3809_v52 = vadd.f32 %v3808_v39, %v3807_v26 }
 0x282   : > { %v2859_v35 = vadd.f32 %v3806_v59, %v2762_v6  ;;  %v2765_v32 = vadd.f32 %v3745_v20, %v5197_v36 }
 0x284   : > { %v2879_v55 = vmax.f32 %v2859_v35, 0.0  ;;  %v2862_v34 = vadd.f32 %v3809_v52, %v2765_v32 }
 0x286   : > { %2895 = vst [vmem:[%s5202_s20 + $0x70] sm:$0xff] %v2879_v55  ;;  %v2880_v28 = vmax.f32 %v2862_v34, 0.0 }
 0x288   : > { %2896 = vst [vmem:[%s5202_s20 + $0x78] sm:$0xff] %v2880_v28 }
 0x289   : > { %4165 = shalt.err (!%p4162_p7)
}
 0x28a   : > { %s4166_s17 = scalar_lea.hbm %s5237_s23, 2048  ;;  %s4170_s29 = scalar_lea.hbm %s5287_s3, 8192 }
 0x28b   : > { %p4167_p9 = scmp.ne.s32.totalorder %s5237_s23, %s4166_s17  ;;  %p4171_p5 = scmp.lt.u32.totalorder %s5237_s23, %s5287_s3 }
 0x28c   : > { %p4172_p10 = scmp.lt.u32.totalorder %s4170_s29, %s4166_s17  ;;  %p4174_p1 = scmp.lt.u32.totalorder %s4166_s17, %s5237_s23 }
 0x28d   : > { %p4168_p12 = pnand %p4167_p9, %p4367_p4 }
 0x28e   : > { %p4173_p11 = por %p4172_p10, %p4171_p5 }
 0x28f   : > { %p4169_p0 = pneg %p4168_p12 }
 0x290   : > { %p4175_p2 = por %p4174_p1, %p4173_p11 }
 0x292   : > { %p4176_p6 = pnand %p4175_p2, %p4169_p0 }
 0x294   : > { %4179 = shalt.err (!%p4176_p6)
}
 0x295   : > { %s4232_s18 = smov 128   ;;  %s4233_s20 = smov 8  }
 0x296   : > { %3839 = dma.vmem_to_hbm [thread:$0]  (%p4367_p4), %s5239_s24, 2048, %s5237_s23, %s2898_s6, %s4232_s18, %s4232_s18, %s4233_s20  }
 0x297 PF: > { %p3861_p8 = scmp.ge.s32.totalorder %s4222_s15, 2  ;;  %s2926_s11 = sand.u32 1, %s4210_s12  }
 0x298   : > { %p5317_p13 = scmp.ne.s32.totalorder %s5296_s19, 0  ;;  %s2927_s27 = scalar_lea.sflag [#allocation4], %s2926_s11 }
 0x29a   : > { %p3853_p3 = pnand %p3861_p8, %p5317_p13 }
 0x29c   : > { %4205 = dma.done.wait (!%p3853_p3), %s2927_s27, 2048  }
 0x29d   : > { %4207 = vsyncadd (!%p3853_p3), %s2927_s27, 4294965248  ;;  %p17_p7 = scmp.ge.s32.totalorder %s4357_s5, 6   ;;  %s5318_s12 = smov %s4214_s13 }
 0x29e   : > { %s5319_s13 = smov %s4218_s14  ;;  %s5320_s14 = smov %s4373_s8 }
 0x29f   : > { %s5321_s15 = smov %s4357_s5  ;;  %19 = sbr.rel (!%p17_p7) target bundleno = 6 (0x6), region = 85 }
 0x2a6   :  { %2932 = vsyncpa [#allocation3], 1 }
 0x2a7   :  { %2934 = vsyncpa [#allocation3 + $0x1], 1 }
 0x2a8   :  { %2935 = vsyncpa [#allocation6], 1 }
 0x2a9   :  { %2936 = vsyncpa [#allocation4], 1 }
 0x2aa   :  { %2938 = vsyncpa [#allocation4 + $0x1], 1 }

// kernel: a_call__.13
= control target key start
LH: loop header
LB: loop body
LE: loop exit
PB: predicated region body
PF: predicated region fallthrough
CT: control target
= control target key end

     0   :  { %s1012_s9 = smov 0   ;;  %s1441_s0 = inlined_call_operand.vmem [shape: f32[2,27,3,256], index: 0, kind: input, shape index: {}]   ;;  %s1442_s1 = inlined_call_operand.vmem [shape: f32[2,27,256], index: 1, kind: input, shape index: {}]   ;;  %s1443_s2 = inlined_call_operand.vmem [shape: f32[2,9,256], index: 2, kind: output, shape index: {}]  }
   0x1 LB: > { %s954_s10 = sadd.s32 4294967295, %s994_s9   ;;  %p958_p0 = scmp.ge.s32.totalorder %s994_s9, 1  ;;  %s994_s9 = sphi %s1012_s9, %s12_s9  }
   0x2   : > { %p122_p1 = scmp.lt.s32.totalorder %s994_s9, 3 }
   0x4   : > { %p123_p2 = pnand %p958_p0, %p122_p1 }
   0x5   : > { %p149_p3 = scmp.lt.s32.totalorder (!%p123_p2), %s954_s10, 1  ;;  %v996_v0 = vmov (!%p123_p2), 1966171168   ;;  %v212_v2 = vlaneseq (!%p123_p2)  ;;  %vm705_vm0 = vcmask (!%p123_p2), 1042432   ;;  %vm876_vm1 = vcmask (!%p123_p2), 1045504  }
   0x6   : > { %126 = sbr.rel (%p123_p2) target bundleno = 101 (0x65), region = 28  ;;  %v210_v1 = vunpack.c.l.s4 (!%p123_p2), %v996_v0 }
   0x7   : > { %v213_v4 = vshrl.u32 (!%p123_p2), %v212_v2, 7 }
   0x8   : > { %v211_v3 = vunpack.c.0.s8 (!%p123_p2), %v210_v1 }
   0x9   : > { %v1030_v25 = vsub.s32 (!%p123_p2), 0, %v213_v4  ;;  %v1036_v29 = vsub.s32 (!%p123_p2), 1, %v213_v4 }
   0xa   : > { %v214_v5 = vsub.s32 (!%p123_p2), %v211_v3, %v213_v4 }
   0xd   : > { %s1449_s10 = smov (!%p149_p3, %s954_s10), 1 }
   0xe   : > { %s966_s11 = sshll.u32 %s1449_s10, 6  ;;  %s968_s15 = smul.u32 216, %s1449_s10 }
   0xf   : > { %s158_s14 = scalar_lea.vmem %s1442_s1, %s966_s11  ;;  %s967_s19 = sshll.u32 %s1449_s10, 5 }
  0x10   : > { %v978_v6 = vld [vmem:[%s158_s14] ss:$8 sps:$4 sm:$0xff]   ;;  %v980_v7 = vld [vmem:[%s158_s14 + $0x4] ss:$8 sps:$4 sm:$0xff]   ;;  %v981_v8 = vld [vmem:[%s158_s14 + $0x10] ss:$8 sps:$4 sm:$0xff]   ;;  %s1222_s18 = scalar_lea.vmem %s1441_s0, %s968_s15  ;;  %s163_s22 = scalar_lea.vmem %s1443_s2, %s967_s19 }
  0x11   : > { %v983_v9 = vld [vmem:[%s158_s14 + $0x14] ss:$8 sps:$4 sm:$0xff]   ;;  %v215_v10 = vrot.slane %v978_v6, %v214_v5  ;;  %v984_v11 = vld [vmem:[%s158_s14 + $0x20] ss:$8 sps:$4 sm:$0xff]   ;;  %v986_v12 = vld [vmem:[%s158_s14 + $0x24] ss:$8 sps:$4 sm:$0xff]   ;;  %v222_v13 = vrot.slane %v980_v7, %v214_v5  ;;  %v265_v14 = vrot.slane %v981_v8, %v214_v5 }
  0x12   : > { %v272_v15 = vrot.slane %v983_v9, %v214_v5  ;;  %v315_v17 = vrot.slane %v984_v11, %v214_v5  ;;  %v322_v20 = vrot.slane %v986_v12, %v214_v5  ;;  %v987_v22 = vld [vmem:[%s158_s14 + $0x30] ss:$8 sps:$4 sm:$0x77]  }
  0x13   : > { %v223_v16 = vcombine.high %v215_v10, %v215_v10  ;;  %v1026_v18 = vrot.slane %v215_v10, %v214_v5  ;;  %v273_v19 = vcombine.high %v265_v14, %v265_v14  ;;  %v224_v21 = vcombine.high %v222_v13, %v222_v13 }
  0x14   : > { %v274_v23 = vcombine.high %v272_v15, %v272_v15  ;;  %v1028_v24 = vrot.slane %v265_v14, %v214_v5  ;;  %v1032_v26 = vrot.slane %v222_v13, %v214_v5  ;;  %v323_v28 = vcombine.high %v315_v17, %v315_v17 }
  0x15   : > { %v1034_v27 = vrot.slane %v223_v16, %v214_v5  ;;  %v1040_v30 = vcombine.high %v1026_v18, %v1026_v18  ;;  %v1042_v31 = vrot.slane %v272_v15, %v214_v5  ;;  %v1044_v32 = vrot.slane %v273_v19, %v214_v5 }
  0x16   : > { %v324_v33 = vcombine.high %v322_v20, %v322_v20  ;;  %v1046_v34 = vrot.slane %v224_v21, %v214_v5  ;;  %v1050_v35 = vcombine.high %v1032_v26, %v1032_v26  ;;  %v1052_v36 = vrot.slane %v315_v17, %v214_v5 }
  0x17   : > { %v364_v37 = vrot.slane %v987_v22, %v214_v5  ;;  %v1056_v38 = vcombine.high %v1034_v27, %v1034_v27  ;;  %v1058_v39 = vrot.slane %v274_v23, %v214_v5  ;;  %v1062_v40 = vcombine.high %v1028_v24, %v1028_v24 }
  0x18   : > { %v1064_v41 = vrot.slane %v323_v28, %v214_v5  ;;  %v1068_v42 = vcombine.high %v1046_v34, %v1046_v34  ;;  %v1072_v43 = vcombine.high %v1042_v31, %v1042_v31  ;;  %v1074_v44 = vrot.slane %v322_v20, %v214_v5 }
  0x19   : > { %v365_v45 = vcombine.high %v364_v37, %v364_v37  ;;  %v1078_v46 = vcombine.high %v1044_v32, %v1044_v32  ;;  %v1082_v47 = vcombine.high %v1058_v39, %v1058_v39  ;;  %v1084_v48 = vrot.slane %v324_v33, %v214_v5 }
  0x1a   : > { %v384_v49 = vrot.slane %v1026_v18, %v1030_v25  ;;  %v1090_v50 = vcombine.high %v1052_v36, %v1052_v36  ;;  %v1094_v51 = vcombine.high %v1074_v44, %v1074_v44  ;;  %v388_v52 = vrot.slane %v1026_v18, %v1036_v29 }
  0x1b   : > { %v392_v53 = vrot.slane %v1034_v27, %v1030_v25  ;;  %v1102_v54 = vcombine.high %v1064_v41, %v1064_v41  ;;  %v1106_v55 = vcombine.high %v1084_v48, %v1084_v48  ;;  %v1108_v56 = vrot.slane %v364_v37, %v214_v5 }
  0x1c   : > { %v396_v57 = vrot.slane %v1034_v27, %v1036_v29  ;;  %v1112_v58 = vrot.slane %v365_v45, %v214_v5  ;;  %v400_v59 = vrot.slane %v1040_v30, %v1030_v25  ;;  %v404_v60 = vrot.slane %v1040_v30, %v1036_v29 }
  0x1d   : > { %v408_v61 = vrot.slane %v1056_v38, %v1030_v25  ;;  %v1122_v62 = vcombine.high %v1108_v56, %v1108_v56  ;;  %v412_v63 = vrot.slane %v1056_v38, %v1036_v29  ;;  %v416_v0 = vrot.slane %v1032_v26, %v1030_v25  ;;  %v170_v38 = vld [vmem:[%s1222_s18 + $0x30] sm:$0x77] }
  0x1e   : > { %v420_v1 = vrot.slane %v1032_v26, %v1036_v29  ;;  %v424_v2 = vrot.slane %v1046_v34, %v1030_v25  ;;  %v428_v3 = vrot.slane %v1046_v34, %v1036_v29  ;;  %v432_v4 = vrot.slane %v1050_v35, %v1030_v25 }
  0x1f   : > { %v436_v5 = vrot.slane %v1050_v35, %v1036_v29  ;;  %v440_v6 = vrot.slane %v1068_v42, %v1030_v25  ;;  %v444_v7 = vrot.slane %v1068_v42, %v1036_v29  ;;  %v448_v8 = vrot.slane %v1028_v24, %v1030_v25 }
  0x20   : > { %v452_v9 = vrot.slane %v1028_v24, %v1036_v29  ;;  %v456_v10 = vrot.slane %v1044_v32, %v1030_v25  ;;  %v460_v11 = vrot.slane %v1044_v32, %v1036_v29  ;;  %v464_v12 = vrot.slane %v1062_v40, %v1030_v25 }
  0x21   : > { %v468_v13 = vrot.slane %v1062_v40, %v1036_v29  ;;  %v472_v14 = vrot.slane %v1078_v46, %v1030_v25  ;;  %v476_v15 = vrot.slane %v1078_v46, %v1036_v29  ;;  %v480_v16 = vrot.slane %v1042_v31, %v1030_v25 }
  0x22   : > { %v484_v17 = vrot.slane %v1042_v31, %v1036_v29  ;;  %v488_v18 = vrot.slane %v1058_v39, %v1030_v25  ;;  %v492_v19 = vrot.slane %v1058_v39, %v1036_v29  ;;  %v496_v20 = vrot.slane %v1072_v43, %v1030_v25  ;;  %v171_v39 = vld [vmem:[%s1222_s18 + $0x38] sm:$0x77] }
  0x23   : > { %v500_v21 = vrot.slane %v1072_v43, %v1036_v29  ;;  %v504_v22 = vrot.slane %v1082_v47, %v1030_v25  ;;  %v508_v23 = vrot.slane %v1082_v47, %v1036_v29  ;;  %v512_v24 = vrot.slane %v1052_v36, %v1030_v25 }
  0x24   : > { %v516_v26 = vrot.slane %v1052_v36, %v1036_v29  ;;  %v520_v27 = vrot.slane %v1064_v41, %v1030_v25  ;;  %v524_v28 = vrot.slane %v1064_v41, %v1036_v29  ;;  %v528_v30 = vrot.slane %v1090_v50, %v1030_v25 }
  0x25   : > { %v532_v31 = vrot.slane %v1090_v50, %v1036_v29  ;;  %v536_v32 = vrot.slane %v1102_v54, %v1030_v25  ;;  %v540_v33 = vrot.slane %v1102_v54, %v1036_v29  ;;  %v544_v34 = vrot.slane %v1074_v44, %v1030_v25 }
  0x26   : > { %v548_v35 = vrot.slane %v1074_v44, %v1036_v29  ;;  %v552_v36 = vrot.slane %v1084_v48, %v1030_v25  ;;  %v556_v37 = vrot.slane %v1084_v48, %v1036_v29  ;;  %v576_v42 = vrot.slane %v1108_v56, %v1030_v25 }
  0x27   : > { %v580_v43 = vrot.slane %v1108_v56, %v1036_v29  ;;  %v584_v44 = vrot.slane %v1112_v58, %v1030_v25  ;;  %v588_v45 = vrot.slane %v1112_v58, %v1036_v29  ;;  %v592_v46 = vrot.slane %v1122_v62, %v1030_v25 }
  0x28   : > { %v596_v47 = vrot.slane %v1122_v62, %v1036_v29  ;;  %v597_v48 = vcombine.low %v384_v49, %v388_v52  ;;  %v598_v50 = vcombine.low %v392_v53, %v396_v57  ;;  %v599_v54 = vcombine.low %v400_v59, %v404_v60  ;;  %v164_v49 = vld [vmem:[%s1222_s18] sm:$0x77]  ;;  %v169_v53 = vld [vmem:[%s1222_s18 + $0x28] sm:$0x77] }
  0x29   : > { %v600_v40 = vcombine.low %v408_v61, %v412_v63  ;;  %v601_v56 = vcombine.low %v416_v0, %v420_v1  ;;  %v602_v58 = vcombine.low %v424_v2, %v428_v3  ;;  %v603_v41 = vcombine.low %v432_v4, %v436_v5  ;;  %v168_v52 = vld [vmem:[%s1222_s18 + $0x20] sm:$0x77]  ;;  %v165_v63 = vld [vmem:[%s1222_s18 + $0x8] sm:$0x77]  ;;  %v166_v4 = vld [vmem:[%s1222_s18 + $0x10] sm:$0x77] }
  0x2a   : > { %v604_v62 = vcombine.low %v440_v6, %v444_v7  ;;  %v605_v57 = vcombine.low %v448_v8, %v452_v9  ;;  %v606_v59 = vcombine.low %v456_v10, %v460_v11  ;;  %v607_v60 = vcombine.low %v464_v12, %v468_v13  ;;  %v176_v5 = vld [vmem:[%s1222_s18 + $0x60] sm:$0x77]  ;;  %v177_v6 = vld [vmem:[%s1222_s18 + $0x68] sm:$0x77]  ;;  %v167_v11 = vld [vmem:[%s1222_s18 + $0x18] sm:$0x77] }
  0x2b   : > { %v608_v61 = vcombine.low %v472_v14, %v476_v15  ;;  %v609_v0 = vcombine.low %v480_v16, %v484_v17  ;;  %v610_v1 = vcombine.low %v488_v18, %v492_v19  ;;  %v611_v2 = vcombine.low %v496_v20, %v500_v21  ;;  %v178_v12 = vld [vmem:[%s1222_s18 + $0x70] sm:$0x77]  ;;  %v179_v13 = vld [vmem:[%s1222_s18 + $0x78] sm:$0x77]  ;;  %v172_v18 = vld [vmem:[%s1222_s18 + $0x40] sm:$0x77] }
  0x2c   : > { %v612_v3 = vcombine.low %v504_v22, %v508_v23  ;;  %v613_v7 = vcombine.low %v512_v24, %v516_v26  ;;  %v614_v8 = vcombine.low %v520_v27, %v524_v28  ;;  %v615_v9 = vcombine.low %v528_v30, %v532_v31  ;;  %v173_v19 = vld [vmem:[%s1222_s18 + $0x48] sm:$0x77]  ;;  %v174_v20 = vld [vmem:[%s1222_s18 + $0x50] sm:$0x77]  ;;  %v175_v26 = vld [vmem:[%s1222_s18 + $0x58] sm:$0x77] }
  0x2d   : > { %v616_v10 = vcombine.low %v536_v32, %v540_v33  ;;  %v617_v14 = vcombine.low %v544_v34, %v548_v35  ;;  %v618_v15 = vcombine.low %v552_v36, %v556_v37  ;;  %v1236_v16 = vmul.f32 %v601_v56, %v168_v52  ;;  %v188_v27 = vld [vmem:[%s1222_s18 + $0xc0] sm:$0x77]  ;;  %v189_v28 = vld [vmem:[%s1222_s18 + $0xc8] sm:$0x77]  ;;  %v190_v36 = vld [vmem:[%s1222_s18 + $0xd0] sm:$0x77] }
  0x2e   : > { %v1238_v17 = vmul.f32 %v602_v58, %v169_v53  ;;  %v621_v21 = vcombine.low %v576_v42, %v580_v43  ;;  %v622_v22 = vcombine.low %v584_v44, %v588_v45  ;;  %v1243_v23 = vmul.f32 %v603_v41, %v170_v38  ;;  %v180_v34 = vld [vmem:[%s1222_s18 + $0x80] sm:$0x77]  ;;  %v181_v35 = vld [vmem:[%s1222_s18 + $0x88] sm:$0x77]  ;;  %v182_v42 = vld [vmem:[%s1222_s18 + $0x90] sm:$0x77] }
  0x2f   : > { %v1245_v24 = vmul.f32 %v604_v62, %v171_v39  ;;  %v623_v30 = vcombine.low %v592_v46, %v596_v47  ;;  %v651_v31 = vmul.f32 %v597_v48, %v164_v49  ;;  %v1250_v32 = vmul.f32 %v609_v0, %v176_v5  ;;  %v183_v56 = vld [vmem:[%s1222_s18 + $0x98] sm:$0x77]  ;;  %v184_v58 = vld [vmem:[%s1222_s18 + $0xa0] sm:$0x77]  ;;  %v185_v53 = vld [vmem:[%s1222_s18 + $0xa8] sm:$0x77] }
  0x30   : > { %v1252_v33 = vmul.f32 %v610_v1, %v177_v6  ;;  %v652_v37 = vmul.f32 %v598_v50, %v165_v63  ;;  %v653_v38 = vmul.f32 %v599_v54, %v166_v4  ;;  %v1257_v41 = vmul.f32 %v611_v2, %v178_v12  ;;  %v187_v4 = vld [vmem:[%s1222_s18 + $0xb8] sm:$0x77] }
  0x31   : > { %v1259_v39 = vmul.f32 %v612_v3, %v179_v13  ;;  %v1444_v43 = vrot.slane %v1094_v51, %v1036_v29  ;;  %v1445_v44 = vrot.slane %v1094_v51, %v1030_v25  ;;  %v1446_v46 = vrot.slane %v1106_v55, %v1036_v29 }
  0x32   : > { %v1447_v47 = vrot.slane %v1106_v55, %v1030_v25  ;;  %v654_v50 = vmul.f32 %v600_v40, %v167_v11  ;;  %v1274_v54 = vmul.f32 %v605_v57, %v172_v18  ;;  %v1278_v62 = vmul.f32 %v606_v59, %v173_v19  ;;  %v186_v40 = vld [vmem:[%s1222_s18 + $0xb0] sm:$0x77] }
  0x33   : > { %v619_v45 = vcombine.low %v1445_v44, %v1444_v43  ;;  %v1280_v49 = vmul.f32 %v607_v60, %v174_v20  ;;  %v1282_v52 = vmul.f32 %v621_v21, %v188_v27  ;;  %v1284_v51 = vmul.f32 %v622_v22, %v189_v28 }
  0x34   : > { %v620_v48 = vcombine.low %v1447_v47, %v1446_v46  ;;  %v1287_v29 = vmul.f32 %v608_v61, %v175_v26  ;;  %v1289_v63 = vmul.f32 %v613_v7, %v180_v34  ;;  %v1291_v25 = vmul.f32 %v614_v8, %v181_v35 }
  0x35   : > { %v1293_v55 = vmul.f32 %v623_v30, %v190_v36  ;;  %v1296_v57 = vmul.f32 %v615_v9, %v182_v42  ;;  %v687_v59 = vcombine.high %v651_v31, %v651_v31  ;;  %v688_v60 = vcombine.high %v652_v37, %v652_v37 }
  0x36   : > { %v689_v0 = vcombine.high %v653_v38, %v653_v38  ;;  %v1298_v1 = vmul.f32 %v616_v10, %v183_v56  ;;  %v1300_v2 = vmul.f32 %v617_v14, %v184_v58  ;;  %v706_v3 = vsel %vm705_vm0, %v651_v31, 0.0 }
  0x37   : > { %v707_v61 = vsel %vm705_vm0, %v652_v37, 0.0  ;;  %v1305_v5 = vmul.f32 %v618_v15, %v185_v53  ;;  %v690_v6 = vcombine.high %v654_v50, %v654_v50  ;;  %v709_v8 = vsel %vm705_vm0, %v653_v38, 0.0 }
  0x38   : > { %v708_v7 = vadd.f32 %v707_v61, %v706_v3  ;;  %v1308_v9 = vmul.f32 %v619_v45, %v186_v40  ;;  %v691_v11 = vcombine.high %v1236_v16, %v1236_v16  ;;  %v692_v10 = vcombine.high %v1238_v17, %v1238_v17 }
  0x39   : > { %v711_v12 = vsel %vm705_vm0, %v654_v50, 0.0  ;;  %v723_v14 = vsel %vm705_vm0, %v687_v59, 0.0  ;;  %v724_v15 = vsel %vm705_vm0, %v688_v60, 0.0  ;;  %v726_v18 = vsel %vm705_vm0, %v689_v0, 0.0 }
  0x3a   : > { %v710_v13 = vadd.f32 %v709_v8, %v708_v7  ;;  %v1318_v19 = vmul.f32 %v620_v48, %v187_v4  ;;  %v693_v20 = vcombine.high %v1243_v23, %v1243_v23  ;;  %v713_v21 = vsel %vm705_vm0, %v1236_v16, 0.0 }
  0x3b   : > { %v725_v22 = vadd.f32 %v724_v15, %v723_v14  ;;  %v694_v26 = vcombine.high %v1245_v24, %v1245_v24  ;;  %v695_v27 = vcombine.high %v1274_v54, %v1274_v54  ;;  %v728_v30 = vsel %vm705_vm0, %v690_v6, 0.0 }
  0x3c   : > { %v712_v28 = vadd.f32 %v711_v12, %v710_v13  ;;  %v715_v31 = vsel %vm705_vm0, %v1238_v17, 0.0  ;;  %v717_v34 = vsel %vm705_vm0, %v1243_v23, 0.0  ;;  %v719_v35 = vsel %vm705_vm0, %v1245_v24, 0.0 }
  0x3d   : > { %v727_v16 = vadd.f32 %v726_v18, %v725_v22  ;;  %v721_v37 = vsel %vm705_vm0, %v1274_v54, 0.0  ;;  %v730_v38 = vsel %vm705_vm0, %v691_v11, 0.0  ;;  %v732_v42 = vsel %vm705_vm0, %v692_v10, 0.0 }
  0x3e   : > { %v714_v36 = vadd.f32 %v713_v21, %v712_v28  ;;  %v749_v44 = vcombine.high %v1278_v62, %v1278_v62  ;;  %v750_v17 = vcombine.high %v1280_v49, %v1280_v49  ;;  %v751_v23 = vcombine.high %v1287_v29, %v1287_v29 }
  0x3f   : > { %v729_v43 = vadd.f32 %v728_v30, %v727_v16  ;;  %v767_v45 = vsel %vm705_vm0, %v1278_v62, 0.0  ;;  %v768_v46 = vsel %vm705_vm0, %v1280_v49, 0.0  ;;  %v770_v47 = vsel %vm705_vm0, %v1287_v29, 0.0 }
  0x40   : > { %v716_v24 = vadd.f32 %v715_v31, %v714_v36  ;;  %v734_v50 = vsel %vm705_vm0, %v693_v20, 0.0  ;;  %v736_v54 = vsel %vm705_vm0, %v694_v26, 0.0  ;;  %v769_v56 = vadd.f32 %v768_v46, %v767_v45 }
  0x41   : > { %v731_v48 = vadd.f32 %v730_v38, %v729_v43  ;;  %v738_v53 = vsel %vm705_vm0, %v695_v27, 0.0  ;;  %v752_v40 = vcombine.high %v1250_v32, %v1250_v32  ;;  %v772_v62 = vsel %vm705_vm0, %v1250_v32, 0.0 }
  0x42   : > { %v718_v58 = vadd.f32 %v717_v34, %v716_v24  ;;  %v753_v49 = vcombine.high %v1252_v33, %v1252_v33  ;;  %v771_v29 = vadd.f32 %v770_v47, %v769_v56  ;;  %v784_v60 = vsel %vm705_vm0, %v749_v44, 0.0 }
  0x43   : > { %v733_v59 = vadd.f32 %v732_v42, %v731_v48  ;;  %v774_v3 = vsel %vm705_vm0, %v1252_v33, 0.0  ;;  %v785_v61 = vsel %vm705_vm0, %v750_v17, 0.0  ;;  %v787_v4 = vsel %vm705_vm0, %v751_v23, 0.0 }
  0x44   : > { %v720_v0 = vadd.f32 %v719_v35, %v718_v58  ;;  %v754_v7 = vcombine.high %v1257_v41, %v1257_v41  ;;  %v773_v32 = vadd.f32 %v772_v62, %v771_v29  ;;  %v786_v8 = vadd.f32 %v785_v61, %v784_v60 }
  0x45   : > { %v735_v6 = vadd.f32 %v734_v50, %v733_v59  ;;  %v755_v10 = vcombine.high %v1259_v39, %v1259_v39  ;;  %v776_v12 = vsel %vm705_vm0, %v1257_v41, 0.0  ;;  %v789_v13 = vsel %vm705_vm0, %v752_v40, 0.0 }
  0x46   : > { %v722_v11 = vadd.f32 %v721_v37, %v720_v0  ;;  %v756_v14 = vcombine.high %v1289_v63, %v1289_v63  ;;  %v775_v15 = vadd.f32 %v774_v3, %v773_v32  ;;  %v788_v18 = vadd.f32 %v787_v4, %v786_v8 }
  0x47   : > { %v737_v33 = vadd.f32 %v736_v54, %v735_v6  ;;  %v757_v20 = vcombine.high %v1291_v25, %v1291_v25  ;;  %v778_v21 = vsel %vm705_vm0, %v1259_v39, 0.0  ;;  %v780_v22 = vsel %vm705_vm0, %v1289_v63, 0.0 }
  0x48   : > { %v791_v26 = vsel %vm705_vm0, %v753_v49, 0.0  ;;  %v777_v27 = vadd.f32 %v776_v12, %v775_v15  ;;  %v782_v28 = vsel %vm705_vm0, %v1291_v25, 0.0  ;;  %v790_v30 = vadd.f32 %v789_v13, %v788_v18 }
  0x49   : > { %v739_v41 = vadd.f32 %v738_v53, %v737_v33  ;;  %v793_v31 = vsel %vm705_vm0, %v754_v7, 0.0  ;;  %v810_v34 = vcombine.high %v1296_v57, %v1296_v57  ;;  %v811_v35 = vcombine.high %v1298_v1, %v1298_v1 }
  0x4a   : > { %v812_v39 = vcombine.high %v1300_v2, %v1300_v2  ;;  %v779_v63 = vadd.f32 %v778_v21, %v777_v27  ;;  %v792_v16 = vadd.f32 %v791_v26, %v790_v30  ;;  %v828_v36 = vsel %vm705_vm0, %v1296_v57, 0.0 }
  0x4b   : > { %v829_v25 = vsel %vm705_vm0, %v1298_v1, 0.0  ;;  %v795_v37 = vsel %vm705_vm0, %v755_v10, 0.0  ;;  %v797_v38 = vsel %vm705_vm0, %v756_v14, 0.0  ;;  %v831_v43 = vsel %vm705_vm0, %v1300_v2, 0.0 }
  0x4c   : > { %v830_v42 = vadd.f32 %v829_v25, %v828_v36  ;;  %v781_v44 = vadd.f32 %v780_v22, %v779_v63  ;;  %v794_v17 = vadd.f32 %v793_v31, %v792_v16  ;;  %v813_v23 = vcombine.high %v1305_v5, %v1305_v5 }
  0x4d   : > { %v833_v24 = vsel %vm705_vm0, %v1305_v5, 0.0  ;;  %v814_v57 = vcombine.high %v1308_v9, %v1308_v9  ;;  %v835_v45 = vsel %vm705_vm0, %v1308_v9, 0.0  ;;  %v845_v46 = vsel %vm705_vm0, %v810_v34, 0.0 }
  0x4e   : > { %v832_v1 = vadd.f32 %v831_v43, %v830_v42  ;;  %v783_v47 = vadd.f32 %v782_v28, %v781_v44  ;;  %v796_v48 = vadd.f32 %v795_v37, %v794_v17  ;;  %v846_v2 = vsel %vm705_vm0, %v811_v35, 0.0 }
  0x4f   : > { %v848_v50 = vsel %vm705_vm0, %v812_v39, 0.0  ;;  %v799_v54 = vsel %vm705_vm0, %v757_v20, 0.0  ;;  %v847_v58 = vadd.f32 %v846_v2, %v845_v46  ;;  %v815_v53 = vcombine.high %v1318_v19, %v1318_v19 }
  0x50   : > { %v834_v56 = vadd.f32 %v833_v24, %v832_v1  ;;  %v798_v5 = vadd.f32 %v797_v38, %v796_v48  ;;  %v837_v40 = vsel %vm705_vm0, %v1318_v19, 0.0  ;;  %v850_v9 = vsel %vm705_vm0, %v813_v23, 0.0 }
  0x51   : > { %v849_v59 = vadd.f32 %v848_v50, %v847_v58  ;;  %v864_v49 = vrot.slane %v783_v47, 5  ;;  %v816_v60 = vcombine.high %v1282_v52, %v1282_v52  ;;  %v839_v0 = vsel %vm705_vm0, %v1282_v52, 0.0 }
  0x52   : > { %v836_v62 = vadd.f32 %v835_v45, %v834_v56  ;;  %v800_v29 = vadd.f32 %v799_v54, %v798_v5  ;;  %v852_v3 = vsel %vm705_vm0, %v814_v57, 0.0  ;;  %v817_v19 = vcombine.high %v1284_v51, %v1284_v51 }
  0x53   : > { %v851_v4 = vadd.f32 %v850_v9, %v849_v59  ;;  %v874_v6 = vsel %vm705_vm0, %v722_v11, %v864_v49  ;;  %v841_v7 = vsel %vm705_vm0, %v1284_v51, 0.0  ;;  %v854_v32 = vsel %vm705_vm0, %v815_v53, 0.0 }
  0x54   : > { %v838_v61 = vadd.f32 %v837_v40, %v836_v62  ;;  %v865_v8 = vrot.slane %v800_v29, 5  ;;  %v818_v52 = vcombine.high %v1293_v55, %v1293_v55  ;;  %v843_v13 = vsel %vm705_vm0, %v1293_v55, 0.0 }
  0x55   : > { %v853_v12 = vadd.f32 %v852_v3, %v851_v4  ;;  %v856_v33 = vsel %vm705_vm0, %v816_v60, 0.0  ;;  %v858_v18 = vsel %vm705_vm0, %v817_v19, 0.0 }
  0x56   : > { %v840_v10 = vadd.f32 %v839_v0, %v838_v61  ;;  %v875_v11 = vsel %vm705_vm0, %v739_v41, %v865_v8  ;;  %v860_v21 = vsel %vm705_vm0, %v818_v52, 0.0 }
  0x57   : > { %v855_v15 = vadd.f32 %v854_v32, %v853_v12 }
  0x58   : > { %v842_v14 = vadd.f32 %v841_v7, %v840_v10 }
  0x59   : > { %v857_v20 = vadd.f32 %v856_v33, %v855_v15 }
  0x5a   : > { %v844_v51 = vadd.f32 %v843_v13, %v842_v14 }
  0x5b   : > { %v859_v22 = vadd.f32 %v858_v18, %v857_v20 }
  0x5c   : > { %v870_v26 = vrot.slane %v844_v51, 2 }
  0x5d   : > { %v861_v55 = vadd.f32 %v860_v21, %v859_v22 }
  0x5e   : > { %v877_v27 = vsel %vm876_vm1, %v874_v6, %v870_v26  ;;  %v881_v28 = vmul.f32 3.0, %v870_v26 }
  0x5f   : > { %v879_v41 = vmul.f32 3.0, %v877_v27  ;;  %v871_v30 = vrot.slane %v861_v55, 2 }
  0x60   : > { %885 = vst [vmem:[%s163_s22 + $0x10] sm:$0x1] %v881_v28 }
  0x61   : > { %883 = vst [vmem:[%s163_s22] sm:$0xff] %v879_v41  ;;  %v878_v31 = vsel %vm876_vm1, %v875_v11, %v871_v30  ;;  %v882_v34 = vmul.f32 3.0, %v871_v30 }
  0x62   : > { %v880_v35 = vmul.f32 3.0, %v878_v31 }
  0x63   : > { %886 = vst [vmem:[%s163_s22 + $0x18] sm:$0x1] %v882_v34 }
  0x64   : > { %884 = vst [vmem:[%s163_s22 + $0x8] sm:$0xff] %v880_v35 }
  0x65 PF: > { %s12_s9 = sadd.s32 1, %s994_s9  }
  0x66   : > { %p9_p4 = scmp.ge.s32.totalorder %s12_s9, 4  }
  0x68   :  { %11 = sbr.rel (!%p9_p4) target bundleno = 1 (0x1), region = 61 }

</bundles_post_ra>
